<compile_context>
chip_gen: v6e
topology: v6e:2x2x1
jax: 0.10.0
libtpu: 0.0.40
codegen_flags: <defaults>
</compile_context>

<pallas_src>
import functools

import jax
import jax.numpy as jnp
from jax import lax
from jax.experimental import pallas as pl
from jax.experimental.pallas import tpu as pltpu

ACT_DTYPE = jnp.bfloat16              # storage dtype for activations/weights (f32 accumulation)
TM_TARGET = 2048                      # target rows per grid step
VMEM_LIMIT_BYTES = 48 * 1024 * 1024   # > v5e 16 MiB scoped default, < v7x 64 MiB physical


# ---------------------------------------------------------------------------
# Tile-size helpers
# ---------------------------------------------------------------------------
def _round_up(x, m):
    return ((x + m - 1) // m) * m


def _cap_rows(width):
    """Cap one streamed bf16 activation tile at ~4 MiB so double-buffered I/O plus
    resident weights stay inside v7x's 64 MiB VMEM even at 1024 channels."""
    cap = (4 * 1024 * 1024) // (2 * max(int(width), 1))
    return max(256, min(TM_TARGET, (cap // 8) * 8))


def _row_tile(M, width):
    """Row tile for per-row kernels.  Small M: one full block (no padding).  Mid M:
    split in two (v7x has 2 TensorCores; a 1-tile 'parallel' grid idles one).
    Large M: capped tile, multiple of 8 so ragged last blocks stay legal."""
    tm_cap = _cap_rows(width)
    if M <= 1024:
        return M
    if M <= tm_cap:
        return _round_up((M + 1) // 2, 8)
    return tm_cap


def _group_tile(G, k, width):
    """Groups-per-tile for the fused pre-extraction(+pool) kernel.  gpt is a multiple
    of 8 (output-block sublane rule) unless gpt == G; the input row tile is gpt*k."""
    tm_cap = _cap_rows(width)
    gpt_cap = max(8, (tm_cap // k) // 8 * 8)
    if G <= max(8, 1024 // k):
        return G
    if G <= gpt_cap:
        return min(G, _round_up((G + 1) // 2, 8))
    return gpt_cap


def _replicated(shape):
    """BlockSpec for a weight/bias replicated across the 1-D grid."""
    return pl.BlockSpec(shape, lambda g: (0,) * len(shape))


# ---------------------------------------------------------------------------
# Pallas kernels
# ---------------------------------------------------------------------------
def _pre_stage_kernel(*refs, n_blocks, k):
    """Fused PreExtraction stage for one row tile of whole k-neighbour groups:
         h = relu(x @ Wt + bt)                                    (transfer ConvBNReLU1D)
         h = relu(relu(h @ W1 + b1) @ W2 + b2 + h)   x n_blocks   (ConvBNReLURes1D)
         out[g] = max over the k rows of each group               (adaptive_max_pool1d)
    All hiddens stay in VMEM/vregs; accumulation and epilogues in f32."""
    x_ref, wt_ref, bt_ref = refs[0], refs[1], refs[2]
    o_ref = refs[-1]
    blk = refs[3:-1]

    h = jnp.dot(x_ref[...], wt_ref[...], preferred_element_type=jnp.float32) + bt_ref[...]
    h = jnp.maximum(h, 0.0)
    for b in range(n_blocks):
        w1, b1, w2, b2 = blk[4 * b: 4 * b + 4]
        z = jnp.dot(h.astype(w1.dtype), w1[...], preferred_element_type=jnp.float32) + b1[...]
        z = jnp.maximum(z, 0.0)
        z = jnp.dot(z.astype(w2.dtype), w2[...], preferred_element_type=jnp.float32) + b2[...]
        h = jnp.maximum(z + h, 0.0)          # residual before the final ReLU

    tm, C = h.shape
    # Neighbour max-pool fused into the epilogue.  The tile holds whole groups, so a
    # ragged last block only produces garbage in rows whose output group index is OOB
    # (Pallas masks those output writes) -- no explicit -inf masking is needed.
    pooled = jnp.max(h.reshape(tm // k, k, C), axis=1)
    o_ref[...] = pooled.astype(o_ref.dtype)


def _pos_stage_kernel(*refs, n_blocks):
    """Fused PosExtraction stage: chain of ConvBNReLURes1D blocks, hiddens in VMEM."""
    x_ref = refs[0]
    o_ref = refs[-1]
    blk = refs[1:-1]

    h = x_ref[...].astype(jnp.float32)
    for b in range(n_blocks):
        w1, b1, w2, b2 = blk[4 * b: 4 * b + 4]
        z = jnp.dot(h.astype(w1.dtype), w1[...], preferred_element_type=jnp.float32) + b1[...]
        z = jnp.maximum(z, 0.0)
        z = jnp.dot(z.astype(w2.dtype), w2[...], preferred_element_type=jnp.float32) + b2[...]
        h = jnp.maximum(z + h, 0.0)
    o_ref[...] = h.astype(o_ref.dtype)


def _classifier_kernel(x_ref, w1, b1, w2, b2, w3, b3, o_ref):
    """Fused 3-layer classifier (Linear+BN+ReLU, Linear+BN+ReLU, Linear); Dropout(eval)=id."""
    h = jnp.dot(x_ref[...], w1[...], preferred_element_type=jnp.float32) + b1[...]
    h = jnp.maximum(h, 0.0)
    h = jnp.dot(h.astype(w2.dtype), w2[...], preferred_element_type=jnp.float32) + b2[...]
    h = jnp.maximum(h, 0.0)
    o_ref[...] = jnp.dot(h.astype(w3.dtype), w3[...], preferred_element_type=jnp.float32) + b3[...]


# ---------------------------------------------------------------------------
# Pallas wrappers
# ---------------------------------------------------------------------------
def pre_stage(grouped, stage_p, k):
    """PreExtraction.  grouped: [B, S, k, Din] (ACT_DTYPE) -> [B, S, C] (ACT_DTYPE)."""
    B, S, kk, Din = grouped.shape
    assert kk == k
    G = B * S
    wt, bt = stage_p["transfer"]
    C = wt.shape[1]
    widths = [Din, C] + [w1.shape[1] for (w1, _, _, _) in stage_p["blocks"]]
    gpt = _group_tile(G, k, max(widths))
    grid = pl.cdiv(G, gpt)
    x2d = grouped.reshape(G * k, Din)

    operands = [x2d, wt, bt]
    in_specs = [
        pl.BlockSpec((gpt * k, Din), lambda g: (g, 0)),   # streamed activation rows
        _replicated((Din, C)),
        _replicated((1, C)),
    ]
    for (w1, b1, w2, b2) in stage_p["blocks"]:
        H = w1.shape[1]
        operands += [w1, b1, w2, b2]
        in_specs += [_replicated((C, H)), _replicated((1, H)),
                     _replicated((H, C)), _replicated((1, C))]

    out = pl.pallas_call(
        functools.partial(_pre_stage_kernel, n_blocks=len(stage_p["blocks"]), k=k),
        out_shape=jax.ShapeDtypeStruct((G, C), ACT_DTYPE),
        grid=(grid,),
        in_specs=in_specs,
        out_specs=pl.BlockSpec((gpt, C), lambda g: (g, 0)),
        compiler_params=pltpu.CompilerParams(
            dimension_semantics=("parallel",),
            vmem_limit_bytes=VMEM_LIMIT_BYTES),
    )(*operands)
    return out.reshape(B, S, C)


def pos_stage(x, stage_p):
    """PosExtraction.  x: [B, S, C] (ACT_DTYPE) -> [B, S, C] (ACT_DTYPE)."""
    B, S, C = x.shape
    if not stage_p["blocks"]:
        return x
    M = B * S
    widths = [C] + [w1.shape[1] for (w1, _, _, _) in stage_p["blocks"]]
    tm = _row_tile(M, max(widths))
    grid = pl.cdiv(M, tm)
    x2d = x.reshape(M, C)

    operands = [x2d]
    in_specs = [pl.BlockSpec((tm, C), lambda g: (g, 0))]
    for (w1, b1, w2, b2) in stage_p["blocks"]:
        H = w1.shape[1]
        operands += [w1, b1, w2, b2]
        in_specs += [_replicated((C, H)), _replicated((1, H)),
                     _replicated((H, C)), _replicated((1, C))]

    out = pl.pallas_call(
        functools.partial(_pos_stage_kernel, n_blocks=len(stage_p["blocks"])),
        out_shape=jax.ShapeDtypeStruct((M, C), ACT_DTYPE),
        grid=(grid,),
        in_specs=in_specs,
        out_specs=pl.BlockSpec((tm, C), lambda g: (g, 0)),
        compiler_params=pltpu.CompilerParams(
            dimension_semantics=("parallel",),
            vmem_limit_bytes=VMEM_LIMIT_BYTES),
    )(*operands)
    return out.reshape(B, S, C)


def classifier(feat, cp):
    """feat: [B, C] -> logits [B, num_classes] (f32).  One fused pallas_call."""
    B, C = feat.shape
    w1, b1, w2, b2, w3, b3 = cp["w1"], cp["b1"], cp["w2"], cp["b2"], cp["w3"], cp["b3"]
    ncls = w3.shape[1]
    return pl.pallas_call(
        _classifier_kernel,
        out_shape=jax.ShapeDtypeStruct((B, ncls), jnp.float32),
        grid=(1,),
        in_specs=[
            _replicated((B, C)),
            _replicated(w1.shape), _replicated((1, w1.shape[1])),
            _replicated(w2.shape), _replicated((1, w2.shape[1])),
            _replicated(w3.shape), _replicated((1, ncls)),
        ],
        out_specs=_replicated((B, ncls)),
        compiler_params=pltpu.CompilerParams(vmem_limit_bytes=VMEM_LIMIT_BYTES),
    )(feat.astype(ACT_DTYPE), w1, b1, w2, b2, w3, b3)


# ---------------------------------------------------------------------------
# BN folding / parameter preparation (hoisted out of the jitted forward)
# ---------------------------------------------------------------------------
def _fold_conv_bn(w, b, bn, eps=1e-5):
    """Fold eval-mode BatchNorm into a (Cin, Cout) weight / (Cout,) bias.
    Returns ACT_DTYPE weight (MXU operand) and f32 (1, Cout) bias."""
    scale = bn["gamma"] / jnp.sqrt(bn["var"] + eps)
    shift = bn["beta"] - bn["mean"] * scale
    wf = (w * scale[None, :]).astype(ACT_DTYPE)
    bf = (b * scale + shift).reshape(1, -1).astype(jnp.float32)
    return wf, bf


def prepare_params(params, cfg):
    """BN folding + weight casting; run once, eagerly, OUTSIDE the jitted forward."""
    del cfg
    fp = {}
    emb = params["embedding"]
    s = emb["bn"]["gamma"] / jnp.sqrt(emb["bn"]["var"] + 1e-5)
    t = emb["bn"]["beta"] - emb["bn"]["mean"] * s
    fp["emb_w"] = emb["w"] * s[None, :]          # embedding stays plain XLA, keep f32
    fp["emb_b"] = emb["b"] * s + t
    fp["groupers"] = params["groupers"]

    fp["pre"], fp["pos"] = [], []
    for st in params["pre"]:
        tr = _fold_conv_bn(st["transfer"]["w"], st["transfer"]["b"], st["transfer"]["bn"])
        blocks = []
        for blk in st["blocks"]:
            w1, b1 = _fold_conv_bn(blk["w1"], blk["b1"], blk["bn1"])
            w2, b2 = _fold_conv_bn(blk["w2"], blk["b2"], blk["bn2"])
            blocks.append((w1, b1, w2, b2))
        fp["pre"].append(dict(transfer=tr, blocks=blocks))
    for st in params["pos"]:
        blocks = []
        for blk in st["blocks"]:
            w1, b1 = _fold_conv_bn(blk["w1"], blk["b1"], blk["bn1"])
            w2, b2 = _fold_conv_bn(blk["w2"], blk["b2"], blk["bn2"])
            blocks.append((w1, b1, w2, b2))
        fp["pos"].append(dict(blocks=blocks))

    cl = params["classifier"]
    w1, b1 = _fold_conv_bn(cl["w1"], cl["b1"], cl["bn1"])
    w2, b2 = _fold_conv_bn(cl["w2"], cl["b2"], cl["bn2"])
    fp["classifier"] = dict(w1=w1, b1=b1, w2=w2, b2=b2,
                            w3=cl["w3"].astype(ACT_DTYPE),
                            b3=cl["b3"].reshape(1, -1).astype(jnp.float32))
    return fp


# ---------------------------------------------------------------------------
# Plain-JAX glue (gather, FPS, kNN, normalization bookkeeping)
# ---------------------------------------------------------------------------
def index_points(points, idx):
    """points: [B, N, C]; idx: [B, ...] -> [B, ..., C]"""
    B = points.shape[0]
    flat = idx.reshape(B, -1)
    g = jnp.take_along_axis(points, flat[..., None], axis=1)
    return g.reshape(idx.shape + (points.shape[-1],))


def square_distance(src, dst):
    d = -2.0 * jnp.einsum("bnc,bmc->bnm", src, dst)
    d = d + jnp.sum(src ** 2, -1)[:, :, None]
    d = d + jnp.sum(dst ** 2, -1)[:, None, :]
    return d


def furthest_point_sample(xyz, npoint):
    # TODO(synk): reference uses an external CUDA op; this sequential data-dependent
    # loop (npoint argmax-over-N iterations per batch) dominates wall clock at realistic
    # N and is the next candidate for a VMEM-resident Pallas scan kernel.
    _, N, _ = xyz.shape

    def one(pts):
        def body(i, state):
            idxs, dists, far = state
            idxs = idxs.at[i].set(far)
            centroid = pts[far]
            d = jnp.sum((pts - centroid) ** 2, axis=-1)
            dists = jnp.minimum(dists, d)
            far = jnp.argmax(dists).astype(jnp.int32)
            return idxs, dists, far

        idxs0 = jnp.zeros((npoint,), jnp.int32)
        d0 = jnp.full((N,), 1e10, jnp.float32)
        idxs, _, _ = lax.fori_loop(0, npoint, body, (idxs0, d0, jnp.int32(0)))
        return idxs

    return jax.vmap(one)(xyz)


def local_grouper(xyz, points, sample_ratio, kneighbors, gp):
    """LocalGrouper with use_xyz=False, normalize='anchor' (PointMLP defaults)."""
    B, N, _ = xyz.shape
    S = N // sample_ratio
    points = points.astype(jnp.float32)                    # normalization math in f32
    fps_idx = furthest_point_sample(xyz, S)                # [B, S]
    new_xyz = index_points(xyz, fps_idx)                   # [B, S, 3]
    new_points = index_points(points, fps_idx)             # [B, S, D]
    dist = square_distance(new_xyz, xyz)                   # [B, S, N]
    _, idx = lax.top_k(-dist, kneighbors)                  # k smallest distances
    grouped_points = index_points(points, idx)             # [B, S, k, D]
    mean = new_points[:, :, None, :]                       # anchor normalization
    diff = grouped_points - mean
    std = jnp.std(diff.reshape(B, -1), axis=-1, ddof=1)[:, None, None, None]
    grouped = diff / (std + 1e-5)
    grouped = gp["alpha"] * grouped + gp["beta"]
    anchor = jnp.broadcast_to(new_points[:, :, None, :], grouped_points.shape)
    new_feat = jnp.concatenate([grouped, anchor], axis=-1)  # [B, S, k, 2D]
    # bf16-store the largest intermediate: halves its HBM write+read traffic.
    return new_xyz, new_feat.astype(ACT_DTYPE)


# ---------------------------------------------------------------------------
# Forward pass
# ---------------------------------------------------------------------------
def pointmlp_forward(p_xyz, fp, cfg):
    """p_xyz: [B, N, 3] point positions.  Returns logits [B, num_classes] (f32)."""
    # Embedding (Cin=3): left to XLA -- a 3-wide MXU contraction with Cout<128 would be
    # masked-store / lane-under-dense in Pallas and saves nothing.
    x = jnp.maximum(jnp.einsum("bnc,cd->bnd", p_xyz, fp["emb_w"]) + fp["emb_b"], 0.0)
    x = x.astype(ACT_DTYPE)
    xyz = p_xyz
    for i in range(cfg["stages"]):
        xyz, grouped = local_grouper(xyz, x, cfg["reducers"][i], cfg["k_neighbors"][i],
                                     fp["groupers"][i])
        x = pre_stage(grouped, fp["pre"][i], cfg["k_neighbors"][i])   # fused MLP chain + pool
        x = pos_stage(x, fp["pos"][i])                                # fused res-block chain
    feat = jnp.max(x, axis=1)            # global adaptive_max_pool1d (tiny; plain XLA)
    return classifier(feat, fp["classifier"])


# ---------------------------------------------------------------------------
# Deterministic parameter init (shapes follow the module's __init__)
# ---------------------------------------------------------------------------
def init_bn(c):
    return dict(gamma=jnp.ones((c,), jnp.float32), beta=jnp.zeros((c,), jnp.float32),
                mean=jnp.zeros((c,), jnp.float32), var=jnp.ones((c,), jnp.float32))


def init_conv(key, cin, cout, bias):
    k1, k2 = jax.random.split(key)
    w = jax.random.normal(k1, (cin, cout), jnp.float32) * (1.0 / jnp.sqrt(cin))
    b = (jax.random.normal(k2, (cout,), jnp.float32) * 0.01) if bias else jnp.zeros((cout,), jnp.float32)
    return w, b


def init_params(key, cfg):
    keys = iter(jax.random.split(key, 256))
    params = {}
    w, b = init_conv(next(keys), cfg["in_channels"], cfg["embed_dim"], cfg["bias"])
    params["embedding"] = dict(w=w, b=b, bn=init_bn(cfg["embed_dim"]))
    groupers, pres, poss = [], [], []
    last = cfg["embed_dim"]
    for i in range(cfg["stages"]):
        out = last * cfg["dim_expansion"][i]
        groupers.append(dict(alpha=jnp.ones((1, 1, 1, last), jnp.float32),
                             beta=jnp.zeros((1, 1, 1, last), jnp.float32)))
        wt, bt = init_conv(next(keys), 2 * last, out, cfg["bias"])   # use_xyz=False -> 2*last
        blocks = []
        for _ in range(cfg["pre_blocks"][i]):
            hid = int(out * cfg["res_expansion"])
            w1, b1 = init_conv(next(keys), out, hid, cfg["bias"])
            w2, b2 = init_conv(next(keys), hid, out, cfg["bias"])
            blocks.append(dict(w1=w1, b1=b1, bn1=init_bn(hid), w2=w2, b2=b2, bn2=init_bn(out)))
        pres.append(dict(transfer=dict(w=wt, b=bt, bn=init_bn(out)), blocks=blocks))
        blocks = []
        for _ in range(cfg["pos_blocks"][i]):
            hid = int(out * cfg["res_expansion"])
            w1, b1 = init_conv(next(keys), out, hid, cfg["bias"])
            w2, b2 = init_conv(next(keys), hid, out, cfg["bias"])
            blocks.append(dict(w1=w1, b1=b1, bn1=init_bn(hid), w2=w2, b2=b2, bn2=init_bn(out)))
        poss.append(dict(blocks=blocks))
        last = out
    params["groupers"], params["pre"], params["pos"] = groupers, pres, poss
    w1, b1 = init_conv(next(keys), last, 512, True)
    w2, b2 = init_conv(next(keys), 512, 256, True)
    w3, b3 = init_conv(next(keys), 256, cfg["num_classes"], True)
    params["classifier"] = dict(w1=w1, b1=b1, bn1=init_bn(512),
                                w2=w2, b2=b2, bn2=init_bn(256),
                                w3=w3, b3=b3)
    return params


if __name__ == "__main__":
    # Small config consistent with PointMLP's structure (2 stages instead of 4).
    cfg = dict(
        in_channels=3, num_classes=15, embed_dim=32, stages=2, bias=False,
        res_expansion=1.0, dim_expansion=[2, 2], pre_blocks=[2, 2], pos_blocks=[2, 2],
        k_neighbors=[8, 8], reducers=[2, 2],
    )
    key = jax.random.PRNGKey(0)
    kp, kd = jax.random.split(key)
    params = init_params(kp, cfg)
    folded = prepare_params(params, cfg)      # BN fold + casts hoisted out of jit (runs once)
    p = jax.random.normal(kd, (2, 64, 3), jnp.float32)   # [B, N, 3] point cloud

    forward = jax.jit(functools.partial(pointmlp_forward, cfg=cfg))
    logits = forward(p, folded)
    jax.block_until_ready(logits)
    assert logits.shape == (2, cfg["num_classes"]), logits.shape
    assert bool(jnp.all(jnp.isfinite(logits))), "non-finite logits"
    print("KERNEL_OK")
</pallas_src>

<mosaic_0001>
module attributes {stable_mosaic.version = 11 : i64} {
  func.func @_pre_stage_kernel(%arg0: i32, %arg1: memref<512x64xbf16, #tpu.memory_space<vmem>>, %arg2: memref<64x64xbf16, #tpu.memory_space<vmem>>, %arg3: memref<1x64xf32, #tpu.memory_space<vmem>>, %arg4: memref<64x64xbf16, #tpu.memory_space<vmem>>, %arg5: memref<1x64xf32, #tpu.memory_space<vmem>>, %arg6: memref<64x64xbf16, #tpu.memory_space<vmem>>, %arg7: memref<1x64xf32, #tpu.memory_space<vmem>>, %arg8: memref<64x64xbf16, #tpu.memory_space<vmem>>, %arg9: memref<1x64xf32, #tpu.memory_space<vmem>>, %arg10: memref<64x64xbf16, #tpu.memory_space<vmem>>, %arg11: memref<1x64xf32, #tpu.memory_space<vmem>>, %arg12: memref<64x64xbf16, #tpu.memory_space<vmem>>) attributes {dimension_semantics = [#tpu.dimension_semantics<parallel>], iteration_bounds = array<i64: 1>, scalar_prefetch = 0 : i64, scratch_operands = 0 : i64, tpu.core_type = #tpu.core_type<tc>, window_params = [{transform_indices = @transform_0, window_bounds = array<i64: 512, 64>}, {pipeline_mode = #tpu.pipeline_mode<synchronous>, transform_indices = @transform_1, window_bounds = array<i64: 64, 64>}, {pipeline_mode = #tpu.pipeline_mode<synchronous>, transform_indices = @transform_2, window_bounds = array<i64: 1, 64>}, {pipeline_mode = #tpu.pipeline_mode<synchronous>, transform_indices = @transform_3, window_bounds = array<i64: 64, 64>}, {pipeline_mode = #tpu.pipeline_mode<synchronous>, transform_indices = @transform_4, window_bounds = array<i64: 1, 64>}, {pipeline_mode = #tpu.pipeline_mode<synchronous>, transform_indices = @transform_5, window_bounds = array<i64: 64, 64>}, {pipeline_mode = #tpu.pipeline_mode<synchronous>, transform_indices = @transform_6, window_bounds = array<i64: 1, 64>}, {pipeline_mode = #tpu.pipeline_mode<synchronous>, transform_indices = @transform_7, window_bounds = array<i64: 64, 64>}, {pipeline_mode = #tpu.pipeline_mode<synchronous>, transform_indices = @transform_8, window_bounds = array<i64: 1, 64>}, {pipeline_mode = #tpu.pipeline_mode<synchronous>, transform_indices = @transform_9, window_bounds = array<i64: 64, 64>}, {pipeline_mode = #tpu.pipeline_mode<synchronous>, transform_indices = @transform_10, window_bounds = array<i64: 1, 64>}, {transform_indices = @transform_11, window_bounds = array<i64: 64, 64>}]} {
    %c0 = arith.constant 0 : index
    %c0_0 = arith.constant 0 : index
    %0 = vector.load %arg1[%c0, %c0_0] : memref<512x64xbf16, #tpu.memory_space<vmem>>, vector<512x64xbf16>
    %c0_1 = arith.constant 0 : index
    %c0_2 = arith.constant 0 : index
    %1 = vector.load %arg2[%c0_1, %c0_2] : memref<64x64xbf16, #tpu.memory_space<vmem>>, vector<64x64xbf16>
    %cst = arith.constant dense<0.000000e+00> : vector<512x64xf32>
    %2 = tpu.matmul %0, %1, %cst {dimension_numbers = #tpu.dot_dimension_numbers<[1], [0], [0], [1], [0, 0, 1, 1], [], []>} : vector<512x64xbf16>, vector<64x64xbf16>, vector<512x64xf32> -> vector<512x64xf32>
    %c0_3 = arith.constant 0 : index
    %c0_4 = arith.constant 0 : index
    %3 = vector.load %arg3[%c0_3, %c0_4] : memref<1x64xf32, #tpu.memory_space<vmem>>, vector<1x64xf32>
    %4 = vector.broadcast %3 : vector<1x64xf32> to vector<512x64xf32>
    %5 = arith.addf %2, %4 : vector<512x64xf32>
    %cst_5 = arith.constant 0.000000e+00 : f32
    %6 = vector.broadcast %cst_5 : f32 to vector<512x64xf32>
    %7 = arith.maximumf %5, %6 : vector<512x64xf32>
    %8 = arith.truncf %7 : vector<512x64xf32> to vector<512x64xbf16>
    %c0_6 = arith.constant 0 : index
    %c0_7 = arith.constant 0 : index
    %9 = vector.load %arg4[%c0_6, %c0_7] : memref<64x64xbf16, #tpu.memory_space<vmem>>, vector<64x64xbf16>
    %cst_8 = arith.constant dense<0.000000e+00> : vector<512x64xf32>
    %10 = tpu.matmul %8, %9, %cst_8 {dimension_numbers = #tpu.dot_dimension_numbers<[1], [0], [0], [1], [0, 0, 1, 1], [], []>} : vector<512x64xbf16>, vector<64x64xbf16>, vector<512x64xf32> -> vector<512x64xf32>
    %c0_9 = arith.constant 0 : index
    %c0_10 = arith.constant 0 : index
    %11 = vector.load %arg5[%c0_9, %c0_10] : memref<1x64xf32, #tpu.memory_space<vmem>>, vector<1x64xf32>
    %12 = vector.broadcast %11 : vector<1x64xf32> to vector<512x64xf32>
    %13 = arith.addf %10, %12 : vector<512x64xf32>
    %cst_11 = arith.constant 0.000000e+00 : f32
    %14 = vector.broadcast %cst_11 : f32 to vector<512x64xf32>
    %15 = arith.maximumf %13, %14 : vector<512x64xf32>
    %16 = arith.truncf %15 : vector<512x64xf32> to vector<512x64xbf16>
    %c0_12 = arith.constant 0 : index
    %c0_13 = arith.constant 0 : index
    %17 = vector.load %arg6[%c0_12, %c0_13] : memref<64x64xbf16, #tpu.memory_space<vmem>>, vector<64x64xbf16>
    %cst_14 = arith.constant dense<0.000000e+00> : vector<512x64xf32>
    %18 = tpu.matmul %16, %17, %cst_14 {dimension_numbers = #tpu.dot_dimension_numbers<[1], [0], [0], [1], [0, 0, 1, 1], [], []>} : vector<512x64xbf16>, vector<64x64xbf16>, vector<512x64xf32> -> vector<512x64xf32>
    %c0_15 = arith.constant 0 : index
    %c0_16 = arith.constant 0 : index
    %19 = vector.load %arg7[%c0_15, %c0_16] : memref<1x64xf32, #tpu.memory_space<vmem>>, vector<1x64xf32>
    %20 = vector.broadcast %19 : vector<1x64xf32> to vector<512x64xf32>
    %21 = arith.addf %18, %20 : vector<512x64xf32>
    %22 = arith.addf %21, %7 : vector<512x64xf32>
    %cst_17 = arith.constant 0.000000e+00 : f32
    %23 = vector.broadcast %cst_17 : f32 to vector<512x64xf32>
    %24 = arith.maximumf %22, %23 : vector<512x64xf32>
    %25 = arith.truncf %24 : vector<512x64xf32> to vector<512x64xbf16>
    %c0_18 = arith.constant 0 : index
    %c0_19 = arith.constant 0 : index
    %26 = vector.load %arg8[%c0_18, %c0_19] : memref<64x64xbf16, #tpu.memory_space<vmem>>, vector<64x64xbf16>
    %cst_20 = arith.constant dense<0.000000e+00> : vector<512x64xf32>
    %27 = tpu.matmul %25, %26, %cst_20 {dimension_numbers = #tpu.dot_dimension_numbers<[1], [0], [0], [1], [0, 0, 1, 1], [], []>} : vector<512x64xbf16>, vector<64x64xbf16>, vector<512x64xf32> -> vector<512x64xf32>
    %c0_21 = arith.constant 0 : index
    %c0_22 = arith.constant 0 : index
    %28 = vector.load %arg9[%c0_21, %c0_22] : memref<1x64xf32, #tpu.memory_space<vmem>>, vector<1x64xf32>
    %29 = vector.broadcast %28 : vector<1x64xf32> to vector<512x64xf32>
    %30 = arith.addf %27, %29 : vector<512x64xf32>
    %cst_23 = arith.constant 0.000000e+00 : f32
    %31 = vector.broadcast %cst_23 : f32 to vector<512x64xf32>
    %32 = arith.maximumf %30, %31 : vector<512x64xf32>
    %33 = arith.truncf %32 : vector<512x64xf32> to vector<512x64xbf16>
    %c0_24 = arith.constant 0 : index
    %c0_25 = arith.constant 0 : index
    %34 = vector.load %arg10[%c0_24, %c0_25] : memref<64x64xbf16, #tpu.memory_space<vmem>>, vector<64x64xbf16>
    %cst_26 = arith.constant dense<0.000000e+00> : vector<512x64xf32>
    %35 = tpu.matmul %33, %34, %cst_26 {dimension_numbers = #tpu.dot_dimension_numbers<[1], [0], [0], [1], [0, 0, 1, 1], [], []>} : vector<512x64xbf16>, vector<64x64xbf16>, vector<512x64xf32> -> vector<512x64xf32>
    %c0_27 = arith.constant 0 : index
    %c0_28 = arith.constant 0 : index
    %36 = vector.load %arg11[%c0_27, %c0_28] : memref<1x64xf32, #tpu.memory_space<vmem>>, vector<1x64xf32>
    %37 = vector.broadcast %36 : vector<1x64xf32> to vector<512x64xf32>
    %38 = arith.addf %35, %37 : vector<512x64xf32>
    %39 = arith.addf %38, %24 : vector<512x64xf32>
    %cst_29 = arith.constant 0.000000e+00 : f32
    %40 = vector.broadcast %cst_29 : f32 to vector<512x64xf32>
    %41 = arith.maximumf %39, %40 : vector<512x64xf32>
    %42 = vector.shape_cast %41 : vector<512x64xf32> to vector<64x8x64xf32>
    %cst_30 = arith.constant dense<0xFF800000> : vector<64x64xf32>
    %43 = vector.multi_reduction <maximumf>, %42, %cst_30 [1] : vector<64x8x64xf32> to vector<64x64xf32>
    %44 = arith.truncf %43 : vector<64x64xf32> to vector<64x64xbf16>
    %c0_31 = arith.constant 0 : index
    %c0_32 = arith.constant 0 : index
    %45 = vector.load %arg12[%c0_31, %c0_32] : memref<64x64xbf16, #tpu.memory_space<vmem>>, vector<64x64xbf16>
    tpu.vector_store %arg12[%c0_31, %c0_32], %44 {strides = array<i32>} : memref<64x64xbf16, #tpu.memory_space<vmem>>, vector<64x64xbf16>,
    return
  }
  func.func @transform_0(%arg0: i32) -> (i32, i32) {
    %c0_i32 = arith.constant 0 : i32
    %c0_i32_0 = arith.constant 0 : i32
    return %arg0, %c0_i32 : i32, i32
  }
  func.func @transform_1(%arg0: i32) -> (i32, i32) {
    %c0_i32 = arith.constant 0 : i32
    %c0_i32_0 = arith.constant 0 : i32
    %c0_i32_1 = arith.constant 0 : i32
    return %c0_i32, %c0_i32_0 : i32, i32
  }
  func.func @transform_2(%arg0: i32) -> (i32, i32) {
    %c0_i32 = arith.constant 0 : i32
    %c0_i32_0 = arith.constant 0 : i32
    %c0_i32_1 = arith.constant 0 : i32
    return %c0_i32, %c0_i32_0 : i32, i32
  }
  func.func @transform_3(%arg0: i32) -> (i32, i32) {
    %c0_i32 = arith.constant 0 : i32
    %c0_i32_0 = arith.constant 0 : i32
    %c0_i32_1 = arith.constant 0 : i32
    return %c0_i32, %c0_i32_0 : i32, i32
  }
  func.func @transform_4(%arg0: i32) -> (i32, i32) {
    %c0_i32 = arith.constant 0 : i32
    %c0_i32_0 = arith.constant 0 : i32
    %c0_i32_1 = arith.constant 0 : i32
    return %c0_i32, %c0_i32_0 : i32, i32
  }
  func.func @transform_5(%arg0: i32) -> (i32, i32) {
    %c0_i32 = arith.constant 0 : i32
    %c0_i32_0 = arith.constant 0 : i32
    %c0_i32_1 = arith.constant 0 : i32
    return %c0_i32, %c0_i32_0 : i32, i32
  }
  func.func @transform_6(%arg0: i32) -> (i32, i32) {
    %c0_i32 = arith.constant 0 : i32
    %c0_i32_0 = arith.constant 0 : i32
    %c0_i32_1 = arith.constant 0 : i32
    return %c0_i32, %c0_i32_0 : i32, i32
  }
  func.func @transform_7(%arg0: i32) -> (i32, i32) {
    %c0_i32 = arith.constant 0 : i32
    %c0_i32_0 = arith.constant 0 : i32
    %c0_i32_1 = arith.constant 0 : i32
    return %c0_i32, %c0_i32_0 : i32, i32
  }
  func.func @transform_8(%arg0: i32) -> (i32, i32) {
    %c0_i32 = arith.constant 0 : i32
    %c0_i32_0 = arith.constant 0 : i32
    %c0_i32_1 = arith.constant 0 : i32
    return %c0_i32, %c0_i32_0 : i32, i32
  }
  func.func @transform_9(%arg0: i32) -> (i32, i32) {
    %c0_i32 = arith.constant 0 : i32
    %c0_i32_0 = arith.constant 0 : i32
    %c0_i32_1 = arith.constant 0 : i32
    return %c0_i32, %c0_i32_0 : i32, i32
  }
  func.func @transform_10(%arg0: i32) -> (i32, i32) {
    %c0_i32 = arith.constant 0 : i32
    %c0_i32_0 = arith.constant 0 : i32
    %c0_i32_1 = arith.constant 0 : i32
    return %c0_i32, %c0_i32_0 : i32, i32
  }
  func.func @transform_11(%arg0: i32) -> (i32, i32) {
    %c0_i32 = arith.constant 0 : i32
    %c0_i32_0 = arith.constant 0 : i32
    return %arg0, %c0_i32 : i32, i32
  }
}

module attributes {stable_mosaic.version = 11 : i64} {
  func.func @_pos_stage_kernel(%arg0: i32, %arg1: memref<64x64xbf16, #tpu.memory_space<vmem>>, %arg2: memref<64x64xbf16, #tpu.memory_space<vmem>>, %arg3: memref<1x64xf32, #tpu.memory_space<vmem>>, %arg4: memref<64x64xbf16, #tpu.memory_space<vmem>>, %arg5: memref<1x64xf32, #tpu.memory_space<vmem>>, %arg6: memref<64x64xbf16, #tpu.memory_space<vmem>>, %arg7: memref<1x64xf32, #tpu.memory_space<vmem>>, %arg8: memref<64x64xbf16, #tpu.memory_space<vmem>>, %arg9: memref<1x64xf32, #tpu.memory_space<vmem>>, %arg10: memref<64x64xbf16, #tpu.memory_space<vmem>>) attributes {dimension_semantics = [#tpu.dimension_semantics<parallel>], iteration_bounds = array<i64: 1>, scalar_prefetch = 0 : i64, scratch_operands = 0 : i64, tpu.core_type = #tpu.core_type<tc>, window_params = [{transform_indices = @transform_0, window_bounds = array<i64: 64, 64>}, {pipeline_mode = #tpu.pipeline_mode<synchronous>, transform_indices = @transform_1, window_bounds = array<i64: 64, 64>}, {pipeline_mode = #tpu.pipeline_mode<synchronous>, transform_indices = @transform_2, window_bounds = array<i64: 1, 64>}, {pipeline_mode = #tpu.pipeline_mode<synchronous>, transform_indices = @transform_3, window_bounds = array<i64: 64, 64>}, {pipeline_mode = #tpu.pipeline_mode<synchronous>, transform_indices = @transform_4, window_bounds = array<i64: 1, 64>}, {pipeline_mode = #tpu.pipeline_mode<synchronous>, transform_indices = @transform_5, window_bounds = array<i64: 64, 64>}, {pipeline_mode = #tpu.pipeline_mode<synchronous>, transform_indices = @transform_6, window_bounds = array<i64: 1, 64>}, {pipeline_mode = #tpu.pipeline_mode<synchronous>, transform_indices = @transform_7, window_bounds = array<i64: 64, 64>}, {pipeline_mode = #tpu.pipeline_mode<synchronous>, transform_indices = @transform_8, window_bounds = array<i64: 1, 64>}, {transform_indices = @transform_9, window_bounds = array<i64: 64, 64>}]} {
    %c0 = arith.constant 0 : index
    %c0_0 = arith.constant 0 : index
    %0 = vector.load %arg1[%c0, %c0_0] : memref<64x64xbf16, #tpu.memory_space<vmem>>, vector<64x64xbf16>
    %1 = arith.extf %0 : vector<64x64xbf16> to vector<64x64xf32>
    %2 = arith.truncf %1 : vector<64x64xf32> to vector<64x64xbf16>
    %c0_1 = arith.constant 0 : index
    %c0_2 = arith.constant 0 : index
    %3 = vector.load %arg2[%c0_1, %c0_2] : memref<64x64xbf16, #tpu.memory_space<vmem>>, vector<64x64xbf16>
    %cst = arith.constant dense<0.000000e+00> : vector<64x64xf32>
    %4 = tpu.matmul %2, %3, %cst {dimension_numbers = #tpu.dot_dimension_numbers<[1], [0], [0], [1], [0, 0, 1, 1], [], []>} : vector<64x64xbf16>, vector<64x64xbf16>, vector<64x64xf32> -> vector<64x64xf32>
    %c0_3 = arith.constant 0 : index
    %c0_4 = arith.constant 0 : index
    %5 = vector.load %arg3[%c0_3, %c0_4] : memref<1x64xf32, #tpu.memory_space<vmem>>, vector<1x64xf32>
    %6 = vector.broadcast %5 : vector<1x64xf32> to vector<64x64xf32>
    %7 = arith.addf %4, %6 : vector<64x64xf32>
    %cst_5 = arith.constant 0.000000e+00 : f32
    %8 = vector.broadcast %cst_5 : f32 to vector<64x64xf32>
    %9 = arith.maximumf %7, %8 : vector<64x64xf32>
    %10 = arith.truncf %9 : vector<64x64xf32> to vector<64x64xbf16>
    %c0_6 = arith.constant 0 : index
    %c0_7 = arith.constant 0 : index
    %11 = vector.load %arg4[%c0_6, %c0_7] : memref<64x64xbf16, #tpu.memory_space<vmem>>, vector<64x64xbf16>
    %cst_8 = arith.constant dense<0.000000e+00> : vector<64x64xf32>
    %12 = tpu.matmul %10, %11, %cst_8 {dimension_numbers = #tpu.dot_dimension_numbers<[1], [0], [0], [1], [0, 0, 1, 1], [], []>} : vector<64x64xbf16>, vector<64x64xbf16>, vector<64x64xf32> -> vector<64x64xf32>
    %c0_9 = arith.constant 0 : index
    %c0_10 = arith.constant 0 : index
    %13 = vector.load %arg5[%c0_9, %c0_10] : memref<1x64xf32, #tpu.memory_space<vmem>>, vector<1x64xf32>
    %14 = vector.broadcast %13 : vector<1x64xf32> to vector<64x64xf32>
    %15 = arith.addf %12, %14 : vector<64x64xf32>
    %16 = arith.addf %15, %1 : vector<64x64xf32>
    %cst_11 = arith.constant 0.000000e+00 : f32
    %17 = vector.broadcast %cst_11 : f32 to vector<64x64xf32>
    %18 = arith.maximumf %16, %17 : vector<64x64xf32>
    %19 = arith.truncf %18 : vector<64x64xf32> to vector<64x64xbf16>
    %c0_12 = arith.constant 0 : index
    %c0_13 = arith.constant 0 : index
    %20 = vector.load %arg6[%c0_12, %c0_13] : memref<64x64xbf16, #tpu.memory_space<vmem>>, vector<64x64xbf16>
    %cst_14 = arith.constant dense<0.000000e+00> : vector<64x64xf32>
    %21 = tpu.matmul %19, %20, %cst_14 {dimension_numbers = #tpu.dot_dimension_numbers<[1], [0], [0], [1], [0, 0, 1, 1], [], []>} : vector<64x64xbf16>, vector<64x64xbf16>, vector<64x64xf32> -> vector<64x64xf32>
    %c0_15 = arith.constant 0 : index
    %c0_16 = arith.constant 0 : index
    %22 = vector.load %arg7[%c0_15, %c0_16] : memref<1x64xf32, #tpu.memory_space<vmem>>, vector<1x64xf32>
    %23 = vector.broadcast %22 : vector<1x64xf32> to vector<64x64xf32>
    %24 = arith.addf %21, %23 : vector<64x64xf32>
    %cst_17 = arith.constant 0.000000e+00 : f32
    %25 = vector.broadcast %cst_17 : f32 to vector<64x64xf32>
    %26 = arith.maximumf %24, %25 : vector<64x64xf32>
    %27 = arith.truncf %26 : vector<64x64xf32> to vector<64x64xbf16>
    %c0_18 = arith.constant 0 : index
    %c0_19 = arith.constant 0 : index
    %28 = vector.load %arg8[%c0_18, %c0_19] : memref<64x64xbf16, #tpu.memory_space<vmem>>, vector<64x64xbf16>
    %cst_20 = arith.constant dense<0.000000e+00> : vector<64x64xf32>
    %29 = tpu.matmul %27, %28, %cst_20 {dimension_numbers = #tpu.dot_dimension_numbers<[1], [0], [0], [1], [0, 0, 1, 1], [], []>} : vector<64x64xbf16>, vector<64x64xbf16>, vector<64x64xf32> -> vector<64x64xf32>
    %c0_21 = arith.constant 0 : index
    %c0_22 = arith.constant 0 : index
    %30 = vector.load %arg9[%c0_21, %c0_22] : memref<1x64xf32, #tpu.memory_space<vmem>>, vector<1x64xf32>
    %31 = vector.broadcast %30 : vector<1x64xf32> to vector<64x64xf32>
    %32 = arith.addf %29, %31 : vector<64x64xf32>
    %33 = arith.addf %32, %18 : vector<64x64xf32>
    %cst_23 = arith.constant 0.000000e+00 : f32
    %34 = vector.broadcast %cst_23 : f32 to vector<64x64xf32>
    %35 = arith.maximumf %33, %34 : vector<64x64xf32>
    %36 = arith.truncf %35 : vector<64x64xf32> to vector<64x64xbf16>
    %c0_24 = arith.constant 0 : index
    %c0_25 = arith.constant 0 : index
    %37 = vector.load %arg10[%c0_24, %c0_25] : memref<64x64xbf16, #tpu.memory_space<vmem>>, vector<64x64xbf16>
    tpu.vector_store %arg10[%c0_24, %c0_25], %36 {strides = array<i32>} : memref<64x64xbf16, #tpu.memory_space<vmem>>, vector<64x64xbf16>,
    return
  }
  func.func @transform_0(%arg0: i32) -> (i32, i32) {
    %c0_i32 = arith.constant 0 : i32
    %c0_i32_0 = arith.constant 0 : i32
    return %arg0, %c0_i32 : i32, i32
  }
  func.func @transform_1(%arg0: i32) -> (i32, i32) {
    %c0_i32 = arith.constant 0 : i32
    %c0_i32_0 = arith.constant 0 : i32
    %c0_i32_1 = arith.constant 0 : i32
    return %c0_i32, %c0_i32_0 : i32, i32
  }
  func.func @transform_2(%arg0: i32) -> (i32, i32) {
    %c0_i32 = arith.constant 0 : i32
    %c0_i32_0 = arith.constant 0 : i32
    %c0_i32_1 = arith.constant 0 : i32
    return %c0_i32, %c0_i32_0 : i32, i32
  }
  func.func @transform_3(%arg0: i32) -> (i32, i32) {
    %c0_i32 = arith.constant 0 : i32
    %c0_i32_0 = arith.constant 0 : i32
    %c0_i32_1 = arith.constant 0 : i32
    return %c0_i32, %c0_i32_0 : i32, i32
  }
  func.func @transform_4(%arg0: i32) -> (i32, i32) {
    %c0_i32 = arith.constant 0 : i32
    %c0_i32_0 = arith.constant 0 : i32
    %c0_i32_1 = arith.constant 0 : i32
    return %c0_i32, %c0_i32_0 : i32, i32
  }
  func.func @transform_5(%arg0: i32) -> (i32, i32) {
    %c0_i32 = arith.constant 0 : i32
    %c0_i32_0 = arith.constant 0 : i32
    %c0_i32_1 = arith.constant 0 : i32
    return %c0_i32, %c0_i32_0 : i32, i32
  }
  func.func @transform_6(%arg0: i32) -> (i32, i32) {
    %c0_i32 = arith.constant 0 : i32
    %c0_i32_0 = arith.constant 0 : i32
    %c0_i32_1 = arith.constant 0 : i32
    return %c0_i32, %c0_i32_0 : i32, i32
  }
  func.func @transform_7(%arg0: i32) -> (i32, i32) {
    %c0_i32 = arith.constant 0 : i32
    %c0_i32_0 = arith.constant 0 : i32
    %c0_i32_1 = arith.constant 0 : i32
    return %c0_i32, %c0_i32_0 : i32, i32
  }
  func.func @transform_8(%arg0: i32) -> (i32, i32) {
    %c0_i32 = arith.constant 0 : i32
    %c0_i32_0 = arith.constant 0 : i32
    %c0_i32_1 = arith.constant 0 : i32
    return %c0_i32, %c0_i32_0 : i32, i32
  }
  func.func @transform_9(%arg0: i32) -> (i32, i32) {
    %c0_i32 = arith.constant 0 : i32
    %c0_i32_0 = arith.constant 0 : i32
    return %arg0, %c0_i32 : i32, i32
  }
}

module attributes {stable_mosaic.version = 11 : i64} {
  func.func @_pre_stage_kernel(%arg0: i32, %arg1: memref<256x128xbf16, #tpu.memory_space<vmem>>, %arg2: memref<128x128xbf16, #tpu.memory_space<vmem>>, %arg3: memref<1x128xf32, #tpu.memory_space<vmem>>, %arg4: memref<128x128xbf16, #tpu.memory_space<vmem>>, %arg5: memref<1x128xf32, #tpu.memory_space<vmem>>, %arg6: memref<128x128xbf16, #tpu.memory_space<vmem>>, %arg7: memref<1x128xf32, #tpu.memory_space<vmem>>, %arg8: memref<128x128xbf16, #tpu.memory_space<vmem>>, %arg9: memref<1x128xf32, #tpu.memory_space<vmem>>, %arg10: memref<128x128xbf16, #tpu.memory_space<vmem>>, %arg11: memref<1x128xf32, #tpu.memory_space<vmem>>, %arg12: memref<32x128xbf16, #tpu.memory_space<vmem>>) attributes {dimension_semantics = [#tpu.dimension_semantics<parallel>], iteration_bounds = array<i64: 1>, scalar_prefetch = 0 : i64, scratch_operands = 0 : i64, tpu.core_type = #tpu.core_type<tc>, window_params = [{transform_indices = @transform_0, window_bounds = array<i64: 256, 128>}, {pipeline_mode = #tpu.pipeline_mode<synchronous>, transform_indices = @transform_1, window_bounds = array<i64: 128, 128>}, {pipeline_mode = #tpu.pipeline_mode<synchronous>, transform_indices = @transform_2, window_bounds = array<i64: 1, 128>}, {pipeline_mode = #tpu.pipeline_mode<synchronous>, transform_indices = @transform_3, window_bounds = array<i64: 128, 128>}, {pipeline_mode = #tpu.pipeline_mode<synchronous>, transform_indices = @transform_4, window_bounds = array<i64: 1, 128>}, {pipeline_mode = #tpu.pipeline_mode<synchronous>, transform_indices = @transform_5, window_bounds = array<i64: 128, 128>}, {pipeline_mode = #tpu.pipeline_mode<synchronous>, transform_indices = @transform_6, window_bounds = array<i64: 1, 128>}, {pipeline_mode = #tpu.pipeline_mode<synchronous>, transform_indices = @transform_7, window_bounds = array<i64: 128, 128>}, {pipeline_mode = #tpu.pipeline_mode<synchronous>, transform_indices = @transform_8, window_bounds = array<i64: 1, 128>}, {pipeline_mode = #tpu.pipeline_mode<synchronous>, transform_indices = @transform_9, window_bounds = array<i64: 128, 128>}, {pipeline_mode = #tpu.pipeline_mode<synchronous>, transform_indices = @transform_10, window_bounds = array<i64: 1, 128>}, {transform_indices = @transform_11, window_bounds = array<i64: 32, 128>}]} {
    %c0 = arith.constant 0 : index
    %c0_0 = arith.constant 0 : index
    %0 = vector.load %arg1[%c0, %c0_0] : memref<256x128xbf16, #tpu.memory_space<vmem>>, vector<256x128xbf16>
    %c0_1 = arith.constant 0 : index
    %c0_2 = arith.constant 0 : index
    %1 = vector.load %arg2[%c0_1, %c0_2] : memref<128x128xbf16, #tpu.memory_space<vmem>>, vector<128x128xbf16>
    %cst = arith.constant dense<0.000000e+00> : vector<256x128xf32>
    %2 = tpu.matmul %0, %1, %cst {dimension_numbers = #tpu.dot_dimension_numbers<[1], [0], [0], [1], [0, 0, 1, 1], [], []>} : vector<256x128xbf16>, vector<128x128xbf16>, vector<256x128xf32> -> vector<256x128xf32>
    %c0_3 = arith.constant 0 : index
    %c0_4 = arith.constant 0 : index
    %3 = vector.load %arg3[%c0_3, %c0_4] : memref<1x128xf32, #tpu.memory_space<vmem>>, vector<1x128xf32>
    %4 = vector.broadcast %3 : vector<1x128xf32> to vector<256x128xf32>
    %5 = arith.addf %2, %4 : vector<256x128xf32>
    %cst_5 = arith.constant 0.000000e+00 : f32
    %6 = vector.broadcast %cst_5 : f32 to vector<256x128xf32>
    %7 = arith.maximumf %5, %6 : vector<256x128xf32>
    %8 = arith.truncf %7 : vector<256x128xf32> to vector<256x128xbf16>
    %c0_6 = arith.constant 0 : index
    %c0_7 = arith.constant 0 : index
    %9 = vector.load %arg4[%c0_6, %c0_7] : memref<128x128xbf16, #tpu.memory_space<vmem>>, vector<128x128xbf16>
    %cst_8 = arith.constant dense<0.000000e+00> : vector<256x128xf32>
    %10 = tpu.matmul %8, %9, %cst_8 {dimension_numbers = #tpu.dot_dimension_numbers<[1], [0], [0], [1], [0, 0, 1, 1], [], []>} : vector<256x128xbf16>, vector<128x128xbf16>, vector<256x128xf32> -> vector<256x128xf32>
    %c0_9 = arith.constant 0 : index
    %c0_10 = arith.constant 0 : index
    %11 = vector.load %arg5[%c0_9, %c0_10] : memref<1x128xf32, #tpu.memory_space<vmem>>, vector<1x128xf32>
    %12 = vector.broadcast %11 : vector<1x128xf32> to vector<256x128xf32>
    %13 = arith.addf %10, %12 : vector<256x128xf32>
    %cst_11 = arith.constant 0.000000e+00 : f32
    %14 = vector.broadcast %cst_11 : f32 to vector<256x128xf32>
    %15 = arith.maximumf %13, %14 : vector<256x128xf32>
    %16 = arith.truncf %15 : vector<256x128xf32> to vector<256x128xbf16>
    %c0_12 = arith.constant 0 : index
    %c0_13 = arith.constant 0 : index
    %17 = vector.load %arg6[%c0_12, %c0_13] : memref<128x128xbf16, #tpu.memory_space<vmem>>, vector<128x128xbf16>
    %cst_14 = arith.constant dense<0.000000e+00> : vector<256x128xf32>
    %18 = tpu.matmul %16, %17, %cst_14 {dimension_numbers = #tpu.dot_dimension_numbers<[1], [0], [0], [1], [0, 0, 1, 1], [], []>} : vector<256x128xbf16>, vector<128x128xbf16>, vector<256x128xf32> -> vector<256x128xf32>
    %c0_15 = arith.constant 0 : index
    %c0_16 = arith.constant 0 : index
    %19 = vector.load %arg7[%c0_15, %c0_16] : memref<1x128xf32, #tpu.memory_space<vmem>>, vector<1x128xf32>
    %20 = vector.broadcast %19 : vector<1x128xf32> to vector<256x128xf32>
    %21 = arith.addf %18, %20 : vector<256x128xf32>
    %22 = arith.addf %21, %7 : vector<256x128xf32>
    %cst_17 = arith.constant 0.000000e+00 : f32
    %23 = vector.broadcast %cst_17 : f32 to vector<256x128xf32>
    %24 = arith.maximumf %22, %23 : vector<256x128xf32>
    %25 = arith.truncf %24 : vector<256x128xf32> to vector<256x128xbf16>
    %c0_18 = arith.constant 0 : index
    %c0_19 = arith.constant 0 : index
    %26 = vector.load %arg8[%c0_18, %c0_19] : memref<128x128xbf16, #tpu.memory_space<vmem>>, vector<128x128xbf16>
    %cst_20 = arith.constant dense<0.000000e+00> : vector<256x128xf32>
    %27 = tpu.matmul %25, %26, %cst_20 {dimension_numbers = #tpu.dot_dimension_numbers<[1], [0], [0], [1], [0, 0, 1, 1], [], []>} : vector<256x128xbf16>, vector<128x128xbf16>, vector<256x128xf32> -> vector<256x128xf32>
    %c0_21 = arith.constant 0 : index
    %c0_22 = arith.constant 0 : index
    %28 = vector.load %arg9[%c0_21, %c0_22] : memref<1x128xf32, #tpu.memory_space<vmem>>, vector<1x128xf32>
    %29 = vector.broadcast %28 : vector<1x128xf32> to vector<256x128xf32>
    %30 = arith.addf %27, %29 : vector<256x128xf32>
    %cst_23 = arith.constant 0.000000e+00 : f32
    %31 = vector.broadcast %cst_23 : f32 to vector<256x128xf32>
    %32 = arith.maximumf %30, %31 : vector<256x128xf32>
    %33 = arith.truncf %32 : vector<256x128xf32> to vector<256x128xbf16>
    %c0_24 = arith.constant 0 : index
    %c0_25 = arith.constant 0 : index
    %34 = vector.load %arg10[%c0_24, %c0_25] : memref<128x128xbf16, #tpu.memory_space<vmem>>, vector<128x128xbf16>
    %cst_26 = arith.constant dense<0.000000e+00> : vector<256x128xf32>
    %35 = tpu.matmul %33, %34, %cst_26 {dimension_numbers = #tpu.dot_dimension_numbers<[1], [0], [0], [1], [0, 0, 1, 1], [], []>} : vector<256x128xbf16>, vector<128x128xbf16>, vector<256x128xf32> -> vector<256x128xf32>
    %c0_27 = arith.constant 0 : index
    %c0_28 = arith.constant 0 : index
    %36 = vector.load %arg11[%c0_27, %c0_28] : memref<1x128xf32, #tpu.memory_space<vmem>>, vector<1x128xf32>
    %37 = vector.broadcast %36 : vector<1x128xf32> to vector<256x128xf32>
    %38 = arith.addf %35, %37 : vector<256x128xf32>
    %39 = arith.addf %38, %24 : vector<256x128xf32>
    %cst_29 = arith.constant 0.000000e+00 : f32
    %40 = vector.broadcast %cst_29 : f32 to vector<256x128xf32>
    %41 = arith.maximumf %39, %40 : vector<256x128xf32>
    %42 = vector.shape_cast %41 : vector<256x128xf32> to vector<32x8x128xf32>
    %cst_30 = arith.constant dense<0xFF800000> : vector<32x128xf32>
    %43 = vector.multi_reduction <maximumf>, %42, %cst_30 [1] : vector<32x8x128xf32> to vector<32x128xf32>
    %44 = arith.truncf %43 : vector<32x128xf32> to vector<32x128xbf16>
    %c0_31 = arith.constant 0 : index
    %c0_32 = arith.constant 0 : index
    %45 = vector.load %arg12[%c0_31, %c0_32] : memref<32x128xbf16, #tpu.memory_space<vmem>>, vector<32x128xbf16>
    tpu.vector_store %arg12[%c0_31, %c0_32], %44 {strides = array<i32>} : memref<32x128xbf16, #tpu.memory_space<vmem>>, vector<32x128xbf16>,
    return
  }
  func.func @transform_0(%arg0: i32) -> (i32, i32) {
    %c0_i32 = arith.constant 0 : i32
    %c0_i32_0 = arith.constant 0 : i32
    return %arg0, %c0_i32 : i32, i32
  }
  func.func @transform_1(%arg0: i32) -> (i32, i32) {
    %c0_i32 = arith.constant 0 : i32
    %c0_i32_0 = arith.constant 0 : i32
    %c0_i32_1 = arith.constant 0 : i32
    return %c0_i32, %c0_i32_0 : i32, i32
  }
  func.func @transform_2(%arg0: i32) -> (i32, i32) {
    %c0_i32 = arith.constant 0 : i32
    %c0_i32_0 = arith.constant 0 : i32
    %c0_i32_1 = arith.constant 0 : i32
    return %c0_i32, %c0_i32_0 : i32, i32
  }
  func.func @transform_3(%arg0: i32) -> (i32, i32) {
    %c0_i32 = arith.constant 0 : i32
    %c0_i32_0 = arith.constant 0 : i32
    %c0_i32_1 = arith.constant 0 : i32
    return %c0_i32, %c0_i32_0 : i32, i32
  }
  func.func @transform_4(%arg0: i32) -> (i32, i32) {
    %c0_i32 = arith.constant 0 : i32
    %c0_i32_0 = arith.constant 0 : i32
    %c0_i32_1 = arith.constant 0 : i32
    return %c0_i32, %c0_i32_0 : i32, i32
  }
  func.func @transform_5(%arg0: i32) -> (i32, i32) {
    %c0_i32 = arith.constant 0 : i32
    %c0_i32_0 = arith.constant 0 : i32
    %c0_i32_1 = arith.constant 0 : i32
    return %c0_i32, %c0_i32_0 : i32, i32
  }
  func.func @transform_6(%arg0: i32) -> (i32, i32) {
    %c0_i32 = arith.constant 0 : i32
    %c0_i32_0 = arith.constant 0 : i32
    %c0_i32_1 = arith.constant 0 : i32
    return %c0_i32, %c0_i32_0 : i32, i32
  }
  func.func @transform_7(%arg0: i32) -> (i32, i32) {
    %c0_i32 = arith.constant 0 : i32
    %c0_i32_0 = arith.constant 0 : i32
    %c0_i32_1 = arith.constant 0 : i32
    return %c0_i32, %c0_i32_0 : i32, i32
  }
  func.func @transform_8(%arg0: i32) -> (i32, i32) {
    %c0_i32 = arith.constant 0 : i32
    %c0_i32_0 = arith.constant 0 : i32
    %c0_i32_1 = arith.constant 0 : i32
    return %c0_i32, %c0_i32_0 : i32, i32
  }
  func.func @transform_9(%arg0: i32) -> (i32, i32) {
    %c0_i32 = arith.constant 0 : i32
    %c0_i32_0 = arith.constant 0 : i32
    %c0_i32_1 = arith.constant 0 : i32
    return %c0_i32, %c0_i32_0 : i32, i32
  }
  func.func @transform_10(%arg0: i32) -> (i32, i32) {
    %c0_i32 = arith.constant 0 : i32
    %c0_i32_0 = arith.constant 0 : i32
    %c0_i32_1 = arith.constant 0 : i32
    return %c0_i32, %c0_i32_0 : i32, i32
  }
  func.func @transform_11(%arg0: i32) -> (i32, i32) {
    %c0_i32 = arith.constant 0 : i32
    %c0_i32_0 = arith.constant 0 : i32
    return %arg0, %c0_i32 : i32, i32
  }
}

module attributes {stable_mosaic.version = 11 : i64} {
  func.func @_pos_stage_kernel(%arg0: i32, %arg1: memref<32x128xbf16, #tpu.memory_space<vmem>>, %arg2: memref<128x128xbf16, #tpu.memory_space<vmem>>, %arg3: memref<1x128xf32, #tpu.memory_space<vmem>>, %arg4: memref<128x128xbf16, #tpu.memory_space<vmem>>, %arg5: memref<1x128xf32, #tpu.memory_space<vmem>>, %arg6: memref<128x128xbf16, #tpu.memory_space<vmem>>, %arg7: memref<1x128xf32, #tpu.memory_space<vmem>>, %arg8: memref<128x128xbf16, #tpu.memory_space<vmem>>, %arg9: memref<1x128xf32, #tpu.memory_space<vmem>>, %arg10: memref<32x128xbf16, #tpu.memory_space<vmem>>) attributes {dimension_semantics = [#tpu.dimension_semantics<parallel>], iteration_bounds = array<i64: 1>, scalar_prefetch = 0 : i64, scratch_operands = 0 : i64, tpu.core_type = #tpu.core_type<tc>, window_params = [{transform_indices = @transform_0, window_bounds = array<i64: 32, 128>}, {pipeline_mode = #tpu.pipeline_mode<synchronous>, transform_indices = @transform_1, window_bounds = array<i64: 128, 128>}, {pipeline_mode = #tpu.pipeline_mode<synchronous>, transform_indices = @transform_2, window_bounds = array<i64: 1, 128>}, {pipeline_mode = #tpu.pipeline_mode<synchronous>, transform_indices = @transform_3, window_bounds = array<i64: 128, 128>}, {pipeline_mode = #tpu.pipeline_mode<synchronous>, transform_indices = @transform_4, window_bounds = array<i64: 1, 128>}, {pipeline_mode = #tpu.pipeline_mode<synchronous>, transform_indices = @transform_5, window_bounds = array<i64: 128, 128>}, {pipeline_mode = #tpu.pipeline_mode<synchronous>, transform_indices = @transform_6, window_bounds = array<i64: 1, 128>}, {pipeline_mode = #tpu.pipeline_mode<synchronous>, transform_indices = @transform_7, window_bounds = array<i64: 128, 128>}, {pipeline_mode = #tpu.pipeline_mode<synchronous>, transform_indices = @transform_8, window_bounds = array<i64: 1, 128>}, {transform_indices = @transform_9, window_bounds = array<i64: 32, 128>}]} {
    %c0 = arith.constant 0 : index
    %c0_0 = arith.constant 0 : index
    %0 = vector.load %arg1[%c0, %c0_0] : memref<32x128xbf16, #tpu.memory_space<vmem>>, vector<32x128xbf16>
    %1 = arith.extf %0 : vector<32x128xbf16> to vector<32x128xf32>
    %2 = arith.truncf %1 : vector<32x128xf32> to vector<32x128xbf16>
    %c0_1 = arith.constant 0 : index
    %c0_2 = arith.constant 0 : index
    %3 = vector.load %arg2[%c0_1, %c0_2] : memref<128x128xbf16, #tpu.memory_space<vmem>>, vector<128x128xbf16>
    %cst = arith.constant dense<0.000000e+00> : vector<32x128xf32>
    %4 = tpu.matmul %2, %3, %cst {dimension_numbers = #tpu.dot_dimension_numbers<[1], [0], [0], [1], [0, 0, 1, 1], [], []>} : vector<32x128xbf16>, vector<128x128xbf16>, vector<32x128xf32> -> vector<32x128xf32>
    %c0_3 = arith.constant 0 : index
    %c0_4 = arith.constant 0 : index
    %5 = vector.load %arg3[%c0_3, %c0_4] : memref<1x128xf32, #tpu.memory_space<vmem>>, vector<1x128xf32>
    %6 = vector.broadcast %5 : vector<1x128xf32> to vector<32x128xf32>
    %7 = arith.addf %4, %6 : vector<32x128xf32>
    %cst_5 = arith.constant 0.000000e+00 : f32
    %8 = vector.broadcast %cst_5 : f32 to vector<32x128xf32>
    %9 = arith.maximumf %7, %8 : vector<32x128xf32>
    %10 = arith.truncf %9 : vector<32x128xf32> to vector<32x128xbf16>
    %c0_6 = arith.constant 0 : index
    %c0_7 = arith.constant 0 : index
    %11 = vector.load %arg4[%c0_6, %c0_7] : memref<128x128xbf16, #tpu.memory_space<vmem>>, vector<128x128xbf16>
    %cst_8 = arith.constant dense<0.000000e+00> : vector<32x128xf32>
    %12 = tpu.matmul %10, %11, %cst_8 {dimension_numbers = #tpu.dot_dimension_numbers<[1], [0], [0], [1], [0, 0, 1, 1], [], []>} : vector<32x128xbf16>, vector<128x128xbf16>, vector<32x128xf32> -> vector<32x128xf32>
    %c0_9 = arith.constant 0 : index
    %c0_10 = arith.constant 0 : index
    %13 = vector.load %arg5[%c0_9, %c0_10] : memref<1x128xf32, #tpu.memory_space<vmem>>, vector<1x128xf32>
    %14 = vector.broadcast %13 : vector<1x128xf32> to vector<32x128xf32>
    %15 = arith.addf %12, %14 : vector<32x128xf32>
    %16 = arith.addf %15, %1 : vector<32x128xf32>
    %cst_11 = arith.constant 0.000000e+00 : f32
    %17 = vector.broadcast %cst_11 : f32 to vector<32x128xf32>
    %18 = arith.maximumf %16, %17 : vector<32x128xf32>
    %19 = arith.truncf %18 : vector<32x128xf32> to vector<32x128xbf16>
    %c0_12 = arith.constant 0 : index
    %c0_13 = arith.constant 0 : index
    %20 = vector.load %arg6[%c0_12, %c0_13] : memref<128x128xbf16, #tpu.memory_space<vmem>>, vector<128x128xbf16>
    %cst_14 = arith.constant dense<0.000000e+00> : vector<32x128xf32>
    %21 = tpu.matmul %19, %20, %cst_14 {dimension_numbers = #tpu.dot_dimension_numbers<[1], [0], [0], [1], [0, 0, 1, 1], [], []>} : vector<32x128xbf16>, vector<128x128xbf16>, vector<32x128xf32> -> vector<32x128xf32>
    %c0_15 = arith.constant 0 : index
    %c0_16 = arith.constant 0 : index
    %22 = vector.load %arg7[%c0_15, %c0_16] : memref<1x128xf32, #tpu.memory_space<vmem>>, vector<1x128xf32>
    %23 = vector.broadcast %22 : vector<1x128xf32> to vector<32x128xf32>
    %24 = arith.addf %21, %23 : vector<32x128xf32>
    %cst_17 = arith.constant 0.000000e+00 : f32
    %25 = vector.broadcast %cst_17 : f32 to vector<32x128xf32>
    %26 = arith.maximumf %24, %25 : vector<32x128xf32>
    %27 = arith.truncf %26 : vector<32x128xf32> to vector<32x128xbf16>
    %c0_18 = arith.constant 0 : index
    %c0_19 = arith.constant 0 : index
    %28 = vector.load %arg8[%c0_18, %c0_19] : memref<128x128xbf16, #tpu.memory_space<vmem>>, vector<128x128xbf16>
    %cst_20 = arith.constant dense<0.000000e+00> : vector<32x128xf32>
    %29 = tpu.matmul %27, %28, %cst_20 {dimension_numbers = #tpu.dot_dimension_numbers<[1], [0], [0], [1], [0, 0, 1, 1], [], []>} : vector<32x128xbf16>, vector<128x128xbf16>, vector<32x128xf32> -> vector<32x128xf32>
    %c0_21 = arith.constant 0 : index
    %c0_22 = arith.constant 0 : index
    %30 = vector.load %arg9[%c0_21, %c0_22] : memref<1x128xf32, #tpu.memory_space<vmem>>, vector<1x128xf32>
    %31 = vector.broadcast %30 : vector<1x128xf32> to vector<32x128xf32>
    %32 = arith.addf %29, %31 : vector<32x128xf32>
    %33 = arith.addf %32, %18 : vector<32x128xf32>
    %cst_23 = arith.constant 0.000000e+00 : f32
    %34 = vector.broadcast %cst_23 : f32 to vector<32x128xf32>
    %35 = arith.maximumf %33, %34 : vector<32x128xf32>
    %36 = arith.truncf %35 : vector<32x128xf32> to vector<32x128xbf16>
    %c0_24 = arith.constant 0 : index
    %c0_25 = arith.constant 0 : index
    %37 = vector.load %arg10[%c0_24, %c0_25] : memref<32x128xbf16, #tpu.memory_space<vmem>>, vector<32x128xbf16>
    tpu.vector_store %arg10[%c0_24, %c0_25], %36 {strides = array<i32>} : memref<32x128xbf16, #tpu.memory_space<vmem>>, vector<32x128xbf16>,
    return
  }
  func.func @transform_0(%arg0: i32) -> (i32, i32) {
    %c0_i32 = arith.constant 0 : i32
    %c0_i32_0 = arith.constant 0 : i32
    return %arg0, %c0_i32 : i32, i32
  }
  func.func @transform_1(%arg0: i32) -> (i32, i32) {
    %c0_i32 = arith.constant 0 : i32
    %c0_i32_0 = arith.constant 0 : i32
    %c0_i32_1 = arith.constant 0 : i32
    return %c0_i32, %c0_i32_0 : i32, i32
  }
  func.func @transform_2(%arg0: i32) -> (i32, i32) {
    %c0_i32 = arith.constant 0 : i32
    %c0_i32_0 = arith.constant 0 : i32
    %c0_i32_1 = arith.constant 0 : i32
    return %c0_i32, %c0_i32_0 : i32, i32
  }
  func.func @transform_3(%arg0: i32) -> (i32, i32) {
    %c0_i32 = arith.constant 0 : i32
    %c0_i32_0 = arith.constant 0 : i32
    %c0_i32_1 = arith.constant 0 : i32
    return %c0_i32, %c0_i32_0 : i32, i32
  }
  func.func @transform_4(%arg0: i32) -> (i32, i32) {
    %c0_i32 = arith.constant 0 : i32
    %c0_i32_0 = arith.constant 0 : i32
    %c0_i32_1 = arith.constant 0 : i32
    return %c0_i32, %c0_i32_0 : i32, i32
  }
  func.func @transform_5(%arg0: i32) -> (i32, i32) {
    %c0_i32 = arith.constant 0 : i32
    %c0_i32_0 = arith.constant 0 : i32
    %c0_i32_1 = arith.constant 0 : i32
    return %c0_i32, %c0_i32_0 : i32, i32
  }
  func.func @transform_6(%arg0: i32) -> (i32, i32) {
    %c0_i32 = arith.constant 0 : i32
    %c0_i32_0 = arith.constant 0 : i32
    %c0_i32_1 = arith.constant 0 : i32
    return %c0_i32, %c0_i32_0 : i32, i32
  }
  func.func @transform_7(%arg0: i32) -> (i32, i32) {
    %c0_i32 = arith.constant 0 : i32
    %c0_i32_0 = arith.constant 0 : i32
    %c0_i32_1 = arith.constant 0 : i32
    return %c0_i32, %c0_i32_0 : i32, i32
  }
  func.func @transform_8(%arg0: i32) -> (i32, i32) {
    %c0_i32 = arith.constant 0 : i32
    %c0_i32_0 = arith.constant 0 : i32
    %c0_i32_1 = arith.constant 0 : i32
    return %c0_i32, %c0_i32_0 : i32, i32
  }
  func.func @transform_9(%arg0: i32) -> (i32, i32) {
    %c0_i32 = arith.constant 0 : i32
    %c0_i32_0 = arith.constant 0 : i32
    return %arg0, %c0_i32 : i32, i32
  }
}

module attributes {stable_mosaic.version = 11 : i64} {
  func.func @_classifier_kernel(%arg0: i32, %arg1: memref<2x128xbf16, #tpu.memory_space<vmem>>, %arg2: memref<128x512xbf16, #tpu.memory_space<vmem>>, %arg3: memref<1x512xf32, #tpu.memory_space<vmem>>, %arg4: memref<512x256xbf16, #tpu.memory_space<vmem>>, %arg5: memref<1x256xf32, #tpu.memory_space<vmem>>, %arg6: memref<256x15xbf16, #tpu.memory_space<vmem>>, %arg7: memref<1x15xf32, #tpu.memory_space<vmem>>, %arg8: memref<2x15xf32, #tpu.memory_space<vmem>>) attributes {dimension_semantics = [#tpu.dimension_semantics<arbitrary>], iteration_bounds = array<i64: 1>, scalar_prefetch = 0 : i64, scratch_operands = 0 : i64, tpu.core_type = #tpu.core_type<tc>, window_params = [{pipeline_mode = #tpu.pipeline_mode<synchronous>, transform_indices = @transform_0, window_bounds = array<i64: 2, 128>}, {pipeline_mode = #tpu.pipeline_mode<synchronous>, transform_indices = @transform_1, window_bounds = array<i64: 128, 512>}, {pipeline_mode = #tpu.pipeline_mode<synchronous>, transform_indices = @transform_2, window_bounds = array<i64: 1, 512>}, {pipeline_mode = #tpu.pipeline_mode<synchronous>, transform_indices = @transform_3, window_bounds = array<i64: 512, 256>}, {pipeline_mode = #tpu.pipeline_mode<synchronous>, transform_indices = @transform_4, window_bounds = array<i64: 1, 256>}, {pipeline_mode = #tpu.pipeline_mode<synchronous>, transform_indices = @transform_5, window_bounds = array<i64: 256, 15>}, {pipeline_mode = #tpu.pipeline_mode<synchronous>, transform_indices = @transform_6, window_bounds = array<i64: 1, 15>}, {pipeline_mode = #tpu.pipeline_mode<synchronous>, transform_indices = @transform_7, window_bounds = array<i64: 2, 15>}]} {
    %c0 = arith.constant 0 : index
    %c0_0 = arith.constant 0 : index
    %0 = vector.load %arg1[%c0, %c0_0] : memref<2x128xbf16, #tpu.memory_space<vmem>>, vector<2x128xbf16>
    %c0_1 = arith.constant 0 : index
    %c0_2 = arith.constant 0 : index
    %1 = vector.load %arg2[%c0_1, %c0_2] : memref<128x512xbf16, #tpu.memory_space<vmem>>, vector<128x512xbf16>
    %cst = arith.constant dense<0.000000e+00> : vector<2x512xf32>
    %2 = tpu.matmul %0, %1, %cst {dimension_numbers = #tpu.dot_dimension_numbers<[1], [0], [0], [1], [0, 0, 1, 1], [], []>} : vector<2x128xbf16>, vector<128x512xbf16>, vector<2x512xf32> -> vector<2x512xf32>
    %c0_3 = arith.constant 0 : index
    %c0_4 = arith.constant 0 : index
    %3 = vector.load %arg3[%c0_3, %c0_4] : memref<1x512xf32, #tpu.memory_space<vmem>>, vector<1x512xf32>
    %4 = vector.broadcast %3 : vector<1x512xf32> to vector<2x512xf32>
    %5 = arith.addf %2, %4 : vector<2x512xf32>
    %cst_5 = arith.constant 0.000000e+00 : f32
    %6 = vector.broadcast %cst_5 : f32 to vector<2x512xf32>
    %7 = arith.maximumf %5, %6 : vector<2x512xf32>
    %8 = arith.truncf %7 : vector<2x512xf32> to vector<2x512xbf16>
    %c0_6 = arith.constant 0 : index
    %c0_7 = arith.constant 0 : index
    %9 = vector.load %arg4[%c0_6, %c0_7] : memref<512x256xbf16, #tpu.memory_space<vmem>>, vector<512x256xbf16>
    %cst_8 = arith.constant dense<0.000000e+00> : vector<2x256xf32>
    %10 = tpu.matmul %8, %9, %cst_8 {dimension_numbers = #tpu.dot_dimension_numbers<[1], [0], [0], [1], [0, 0, 1, 1], [], []>} : vector<2x512xbf16>, vector<512x256xbf16>, vector<2x256xf32> -> vector<2x256xf32>
    %c0_9 = arith.constant 0 : index
    %c0_10 = arith.constant 0 : index
    %11 = vector.load %arg5[%c0_9, %c0_10] : memref<1x256xf32, #tpu.memory_space<vmem>>, vector<1x256xf32>
    %12 = vector.broadcast %11 : vector<1x256xf32> to vector<2x256xf32>
    %13 = arith.addf %10, %12 : vector<2x256xf32>
    %cst_11 = arith.constant 0.000000e+00 : f32
    %14 = vector.broadcast %cst_11 : f32 to vector<2x256xf32>
    %15 = arith.maximumf %13, %14 : vector<2x256xf32>
    %16 = arith.truncf %15 : vector<2x256xf32> to vector<2x256xbf16>
    %c0_12 = arith.constant 0 : index
    %c0_13 = arith.constant 0 : index
    %17 = vector.load %arg6[%c0_12, %c0_13] : memref<256x15xbf16, #tpu.memory_space<vmem>>, vector<256x15xbf16>
    %cst_14 = arith.constant dense<0.000000e+00> : vector<2x15xf32>
    %18 = tpu.matmul %16, %17, %cst_14 {dimension_numbers = #tpu.dot_dimension_numbers<[1], [0], [0], [1], [0, 0, 1, 1], [], []>} : vector<2x256xbf16>, vector<256x15xbf16>, vector<2x15xf32> -> vector<2x15xf32>
    %c0_15 = arith.constant 0 : index
    %c0_16 = arith.constant 0 : index
    %19 = vector.load %arg7[%c0_15, %c0_16] : memref<1x15xf32, #tpu.memory_space<vmem>>, vector<1x15xf32>
    %20 = vector.broadcast %19 : vector<1x15xf32> to vector<2x15xf32>
    %21 = arith.addf %18, %20 : vector<2x15xf32>
    %c0_17 = arith.constant 0 : index
    %c0_18 = arith.constant 0 : index
    %22 = vector.load %arg8[%c0_17, %c0_18] : memref<2x15xf32, #tpu.memory_space<vmem>>, vector<2x15xf32>
    tpu.vector_store %arg8[%c0_17, %c0_18], %21 {strides = array<i32>} : memref<2x15xf32, #tpu.memory_space<vmem>>, vector<2x15xf32>,
    return
  }
  func.func @transform_0(%arg0: i32) -> (i32, i32) {
    %c0_i32 = arith.constant 0 : i32
    %c0_i32_0 = arith.constant 0 : i32
    %c0_i32_1 = arith.constant 0 : i32
    return %c0_i32, %c0_i32_0 : i32, i32
  }
  func.func @transform_1(%arg0: i32) -> (i32, i32) {
    %c0_i32 = arith.constant 0 : i32
    %c0_i32_0 = arith.constant 0 : i32
    %c0_i32_1 = arith.constant 0 : i32
    return %c0_i32, %c0_i32_0 : i32, i32
  }
  func.func @transform_2(%arg0: i32) -> (i32, i32) {
    %c0_i32 = arith.constant 0 : i32
    %c0_i32_0 = arith.constant 0 : i32
    %c0_i32_1 = arith.constant 0 : i32
    return %c0_i32, %c0_i32_0 : i32, i32
  }
  func.func @transform_3(%arg0: i32) -> (i32, i32) {
    %c0_i32 = arith.constant 0 : i32
    %c0_i32_0 = arith.constant 0 : i32
    %c0_i32_1 = arith.constant 0 : i32
    return %c0_i32, %c0_i32_0 : i32, i32
  }
  func.func @transform_4(%arg0: i32) -> (i32, i32) {
    %c0_i32 = arith.constant 0 : i32
    %c0_i32_0 = arith.constant 0 : i32
    %c0_i32_1 = arith.constant 0 : i32
    return %c0_i32, %c0_i32_0 : i32, i32
  }
  func.func @transform_5(%arg0: i32) -> (i32, i32) {
    %c0_i32 = arith.constant 0 : i32
    %c0_i32_0 = arith.constant 0 : i32
    %c0_i32_1 = arith.constant 0 : i32
    return %c0_i32, %c0_i32_0 : i32, i32
  }
  func.func @transform_6(%arg0: i32) -> (i32, i32) {
    %c0_i32 = arith.constant 0 : i32
    %c0_i32_0 = arith.constant 0 : i32
    %c0_i32_1 = arith.constant 0 : i32
    return %c0_i32, %c0_i32_0 : i32, i32
  }
  func.func @transform_7(%arg0: i32) -> (i32, i32) {
    %c0_i32 = arith.constant 0 : i32
    %c0_i32_0 = arith.constant 0 : i32
    %c0_i32_1 = arith.constant 0 : i32
    return %c0_i32, %c0_i32_0 : i32, i32
  }
}

</mosaic_0001>

<bundles_post_ra>
// kernel: custom-call.16
= control target key start
LH: loop header
LB: loop body
LE: loop exit
PB: predicated region body
PF: predicated region fallthrough
CT: control target
= control target key end

     0   :  { %s6_s0 = inlined_call_operand.vmem [shape: f32[2,64], index: 0, kind: output, shape index: {}]  }

// kernel: custom-call.17
= control target key start
LH: loop header
LB: loop body
LE: loop exit
PB: predicated region body
PF: predicated region fallthrough
CT: control target
= control target key end

     0   :  { %s6_s0 = inlined_call_operand.vmem [shape: f32[2,32], index: 0, kind: output, shape index: {}]  }

// kernel: pointmlp_forward.6
= control target key start
LH: loop header
LB: loop body
LE: loop exit
PB: predicated region body
PF: predicated region fallthrough
CT: control target
= control target key end

     0   :  { %vm108_vm0 = vcmask 523264   ;;  %vm626_vm1 = vcmask 519168   ;;  %s1061_s1 = inlined_call_operand.vmem [shape: bf16[64,64], index: 1, kind: input, shape index: {}]   ;;  %s1062_s0 = inlined_call_operand.vmem [shape: bf16[64,64], index: 0, kind: input, shape index: {}]   ;;  %s1063_s3 = inlined_call_operand.vmem [shape: bf16[64,64], index: 3, kind: input, shape index: {}]   ;;  %s1064_s5 = inlined_call_operand.vmem [shape: bf16[64,64], index: 5, kind: input, shape index: {}]   ;;  %s1065_s2 = inlined_call_operand.vmem [shape: f32[1,64], index: 2, kind: input, shape index: {}]   ;;  %s1066_s7 = inlined_call_operand.vmem [shape: bf16[64,64], index: 7, kind: input, shape index: {}]   ;;  %s1067_s4 = inlined_call_operand.vmem [shape: f32[1,64], index: 4, kind: input, shape index: {}]   ;;  %s1068_s6 = inlined_call_operand.vmem [shape: f32[1,64], index: 6, kind: input, shape index: {}]   ;;  %s1069_s8 = inlined_call_operand.vmem [shape: f32[1,64], index: 8, kind: input, shape index: {}]   ;;  %s1070_s9 = inlined_call_operand.vmem [shape: bf16[64,64], index: 9, kind: output, shape index: {}]  }
   0x1   :  { %v791_v0 = vld [vmem:[%s1061_s1 + $0x18] sm:$0xff]   ;;  %v792_v1 = vld [vmem:[%s1061_s1 + $0x10] sm:$0xff]   ;;  %v793_v2 = vld [vmem:[%s1061_s1 + $0x8] sm:$0xff]  }
   0x2   :  { %727 = vmatprep.subr.bf16.mxu0 %v791_v0  ;;  %v877_v3 = vld [vmem:[%s1062_s0] sm:$0xff]   ;;  %v799_v4 = vld [vmem:[%s1063_s3 + $0x18] sm:$0xff]   ;;  %v890_v6 = vld [vmem:[%s1062_s0 + $0x8] sm:$0xff]  }
   0x3   :  { %728 = vmatpush3.bf16.msra.mxu0 %v791_v0  ;;  %735 = vmatprep.mubr.msk.bf16.mxu0 %vm108_vm0, %v877_v3  ;;  %v794_v5 = vld [vmem:[%s1061_s1] sm:$0xff]   ;;  %v895_v7 = vld [vmem:[%s1062_s0 + $0x10] sm:$0xff]   ;;  %v904_v8 = vld [vmem:[%s1062_s0 + $0x18] sm:$0xff]   ;;  %v41_v49 = vunpack.c.l.bf16 %v877_v3  ;;  %v44_v51 = vunpack.c.h.bf16 %v890_v6  ;;  %v43_v52 = vunpack.c.l.bf16 %v890_v6  ;;  %v42_v55 = vunpack.c.h.bf16 %v877_v3 }
   0x4   :  { %729 = vmatprep.subr.bf16.mxu0 %v792_v1  ;;  %743 = vmatprep.subr.bf16.mxu1 %v799_v4  ;;  %v800_v9 = vld [vmem:[%s1063_s3 + $0x10] sm:$0xff]   ;;  %v801_v10 = vld [vmem:[%s1063_s3 + $0x8] sm:$0xff]   ;;  %v802_v11 = vld [vmem:[%s1063_s3] sm:$0xff]  }
   0x5   :  { %744 = vmatpush3.bf16.msra.mxu1 %v799_v4  ;;  %v803_v12 = vld [vmem:[%s1064_s5 + $0x18] sm:$0xff]   ;;  %v639_v15 = vld [vmem:[%s1065_s2] ss:$0 sm:$0xff]  ;;  %v804_v42 = vld [vmem:[%s1064_s5 + $0x10] sm:$0xff]  }
   0x6   :  { %745 = vmatprep.subr.bf16.mxu1 %v800_v9  ;;  %v805_v43 = vld [vmem:[%s1064_s5 + $0x8] sm:$0xff]   ;;  %v806_v44 = vld [vmem:[%s1064_s5] sm:$0xff]   ;;  %v807_v45 = vld [vmem:[%s1066_s7 + $0x18] sm:$0xff]  }
   0x7   :  { %730 = vmatpush3.bf16.msra.mxu0 %v792_v1  ;;  %v652_v47 = vld [vmem:[%s1067_s4] ss:$0 sm:$0xff]  ;;  %v45_v1 = vunpack.c.l.bf16 %v895_v7 }
   0x8   :  { %731 = vmatprep.subr.bf16.mxu0 %v793_v2 }
   0x9   :  { %746 = vmatpush3.bf16.msra.mxu1 %v800_v9 }
   0xa   :  { %747 = vmatprep.subr.bf16.mxu1 %v801_v10 }
   0xb   :  { %732 = vmatpush3.bf16.msra.mxu0 %v793_v2 }
   0xc   :  { %733 = vmatprep.subr.bf16.mxu0 %v794_v5 }
   0xd   :  { %748 = vmatpush3.bf16.msra.mxu1 %v801_v10  ;;  %v47_v10 = vunpack.c.l.bf16 %v904_v8 }
   0xe   :  { %749 = vmatprep.subr.bf16.mxu1 %v802_v11 }
   0xf   :  { %734 = vmatpush3.bf16.msra.mxu0 %v794_v5 }
  0x10   :  { %759 = vmatprep.subr.bf16.mxu0 %v803_v12 }
  0x11   :  { %750 = vmatpush3.bf16.msra.mxu1 %v802_v11 }
  0x12   :  { %736 = vmatmul.mubr.msk.bf16.vlgmr.msra.gmra.mxu0 %vm108_vm0, %v890_v6  ;;  %775 = vmatprep.subr.bf16.mxu1 %v807_v45  ;;  %v48_v6 = vunpack.c.h.bf16 %v904_v8 }
  0x13   :  { %739 = vmatprep.mubr.msk.bf16.mxu0 %vm108_vm0, %v895_v7  ;;  %760 = vmatpush3.bf16.msra.mxu0 %v803_v12 }
  0x14   :  { %761 = vmatprep.subr.bf16.mxu0 %v804_v42 }
  0x17   :  { %762 = vmatpush3.bf16.msra.mxu0 %v804_v42 }
  0x18   :  { %763 = vmatprep.subr.bf16.mxu0 %v805_v43 }
  0x1a   :  { %740 = vmatmul.mubr.msk.bf16.gmra.mxu0 %vm108_vm0, %v904_v8 }
  0x1b   :  { %764 = vmatpush3.bf16.msra.mxu0 %v805_v43 }
  0x1c   :  { %765 = vmatprep.subr.bf16.mxu0 %v806_v44 }
  0x1f   :  { %766 = vmatpush3.bf16.msra.mxu0 %v806_v44 }
  0xd2   :  { %v737_v13 = vpop.f32.mrf.mxu0 }
  0xd3   :  { %v164_v19 = vadd.f32 %v737_v13, %v639_v15 }
  0xd4   :  { %v155_v14 = vpop.f32.mrf.mxu0 }
  0xd5   :  { %v156_v17 = vadd.f32 %v639_v15, %v155_v14  ;;  %v188_v26 = vmax.f32 %v164_v19, 0.0 }
  0xd6   :  { %v738_v16 = vpop.f32.mrf.mxu0 }
  0xd7   :  { %v167_v18 = vadd.f32 %v738_v16, %v639_v15  ;;  %v186_v24 = vmax.f32 %v156_v17, 0.0 }
  0xd8   :  { %v158_v20 = vpop.f32.mrf.mxu0 }
  0xd9   :  { %v159_v21 = vadd.f32 %v639_v15, %v158_v20  ;;  %v189_v22 = vmax.f32 %v167_v18, 0.0 }
  0xda   :  { %v741_v23 = vpop.f32.mrf.mxu0 }
  0xdb   :  { %v187_v25 = vmax.f32 %v159_v21, 0.0  ;;  %v195_v29 = vpack.c.bf16 %v189_v22, %v188_v26  ;;  %v180_v33 = vadd.f32 %v741_v23, %v639_v15 }
  0xdc   :  { %v171_v27 = vpop.f32.mrf.mxu0 }
  0xdd   :  { %v194_v28 = vpack.c.bf16 %v187_v25, %v186_v24  ;;  %v172_v31 = vadd.f32 %v639_v15, %v171_v27  ;;  %v192_v39 = vmax.f32 %v180_v33, 0.0  ;;  %v808_v27 = vld [vmem:[%s1066_s7 + $0x10] sm:$0xff]  }
  0xde   :  { %v742_v30 = vpop.f32.mrf.mxu0 }
  0xdf   :  { %v183_v32 = vadd.f32 %v742_v30, %v639_v15  ;;  %751 = vmatprep.mubr.msk.bf16.mxu1 %vm108_vm0, %v194_v28  ;;  %v190_v37 = vmax.f32 %v172_v31, 0.0  ;;  %v809_v28 = vld [vmem:[%s1066_s7 + $0x8] sm:$0xff]  }
  0xe0   :  { %v174_v34 = vpop.f32.mrf.mxu0  ;;  %752 = vmatmul.mubr.msk.bf16.vlgmr.msra.gmra.mxu1 %vm108_vm0, %v195_v29  ;;  %v810_v29 = vld [vmem:[%s1066_s7] sm:$0xff]  }
  0xe1   :  { %v175_v35 = vadd.f32 %v639_v15, %v174_v34  ;;  %v193_v36 = vmax.f32 %v183_v32, 0.0  ;;  %776 = vmatpush3.bf16.msra.mxu1 %v807_v45  ;;  %v46_v15 = vunpack.c.h.bf16 %v895_v7  ;;  %v661_v32 = vld [vmem:[%s1068_s6] ss:$0 sm:$0xff] }
  0xe2   :  { %777 = vmatprep.subr.bf16.mxu1 %v808_v27 }
  0xe3   :  { %v191_v38 = vmax.f32 %v175_v35, 0.0  ;;  %v197_v41 = vpack.c.bf16 %v193_v36, %v192_v39 }
  0xe5   :  { %v196_v40 = vpack.c.bf16 %v191_v38, %v190_v37  ;;  %778 = vmatpush3.bf16.msra.mxu1 %v808_v27 }
  0xe6   :  { %779 = vmatprep.subr.bf16.mxu1 %v809_v28 }
  0xe7   :  { %755 = vmatprep.mubr.msk.bf16.mxu1 %vm108_vm0, %v196_v40 }
  0xe8   :  { %756 = vmatmul.mubr.msk.bf16.gmra.mxu1 %vm108_vm0, %v197_v41 }
  0xe9   :  { %780 = vmatpush3.bf16.msra.mxu1 %v809_v28 }
  0xea   :  { %781 = vmatprep.subr.bf16.mxu1 %v810_v29 }
  0xed   :  { %782 = vmatpush3.bf16.msra.mxu1 %v810_v29 }
 0x1a0   :  { %v753_v46 = vpop.f32.mrf.mxu1 }
 0x1a1   :  { %v292_v53 = vadd.f32 %v753_v46, %v652_v47 }
 0x1a2   :  { %v283_v48 = vpop.f32.mrf.mxu1 }
 0x1a3   :  { %v284_v50 = vadd.f32 %v652_v47, %v283_v48  ;;  %v950_v61 = vadd.f32 %v292_v53, %v43_v52 }
 0x1a4   :  { %v754_v54 = vpop.f32.mrf.mxu1 }
 0x1a5   :  { %v295_v56 = vadd.f32 %v754_v54, %v652_v47  ;;  %v946_v58 = vadd.f32 %v284_v50, %v41_v49  ;;  %v324_v9 = vmax.f32 %v950_v61, 0.0 }
 0x1a6   :  { %v286_v57 = vpop.f32.mrf.mxu1 }
 0x1a7   :  { %v948_v59 = vadd.f32 %v295_v56, %v44_v51  ;;  %v287_v60 = vadd.f32 %v652_v47, %v286_v57  ;;  %v322_v4 = vmax.f32 %v946_v58, 0.0 }
 0x1a8   :  { %v757_v62 = vpop.f32.mrf.mxu1 }
 0x1a9   :  { %v952_v63 = vadd.f32 %v287_v60, %v42_v55  ;;  %v325_v0 = vmax.f32 %v948_v59, 0.0  ;;  %v308_v11 = vadd.f32 %v757_v62, %v652_v47  ;;  %v670_v62 = vld [vmem:[%s1069_s8] ss:$0 sm:$0xff] }
 0x1aa   :  { %v299_v2 = vpop.f32.mrf.mxu1 }
 0x1ab   :  { %v323_v3 = vmax.f32 %v952_v63, 0.0  ;;  %v300_v5 = vadd.f32 %v652_v47, %v299_v2  ;;  %v331_v16 = vpack.c.bf16 %v325_v0, %v324_v9  ;;  %v975_v20 = vadd.f32 %v308_v11, %v47_v10 }
 0x1ac   :  { %v758_v12 = vpop.f32.mrf.mxu1 }
 0x1ad   :  { %v330_v13 = vpack.c.bf16 %v323_v3, %v322_v4  ;;  %v311_v14 = vadd.f32 %v758_v12, %v652_v47  ;;  %v970_v18 = vadd.f32 %v300_v5, %v45_v1  ;;  %v328_v24 = vmax.f32 %v975_v20, 0.0 }
 0x1ae   :  { %v302_v17 = vpop.f32.mrf.mxu1 }
 0x1af   :  { %v972_v19 = vadd.f32 %v311_v14, %v48_v6  ;;  %v303_v8 = vadd.f32 %v652_v47, %v302_v17  ;;  %767 = vmatprep.mubr.msk.bf16.mxu0 %vm108_vm0, %v330_v13  ;;  %v326_v22 = vmax.f32 %v970_v18, 0.0 }
 0x1b0   :  { %768 = vmatmul.mubr.msk.bf16.vlgmr.msra.gmra.mxu0 %vm108_vm0, %v331_v16 }
 0x1b1   :  { %v978_v21 = vadd.f32 %v303_v8, %v46_v15  ;;  %v329_v7 = vmax.f32 %v972_v19, 0.0 }
 0x1b3   :  { %v327_v23 = vmax.f32 %v978_v21, 0.0  ;;  %v333_v26 = vpack.c.bf16 %v329_v7, %v328_v24 }
 0x1b5   :  { %v332_v25 = vpack.c.bf16 %v327_v23, %v326_v22 }
 0x1b7   :  { %771 = vmatprep.mubr.msk.bf16.mxu0 %vm108_vm0, %v332_v25 }
 0x1b8   :  { %772 = vmatmul.mubr.msk.bf16.gmra.mxu0 %vm108_vm0, %v333_v26 }
 0x270   :  { %v769_v30 = vpop.f32.mrf.mxu0 }
 0x271   :  { %v428_v36 = vadd.f32 %v769_v30, %v661_v32 }
 0x272   :  { %v419_v31 = vpop.f32.mrf.mxu0 }
 0x273   :  { %v420_v34 = vadd.f32 %v661_v32, %v419_v31  ;;  %v452_v43 = vmax.f32 %v428_v36, 0.0 }
 0x274   :  { %v770_v33 = vpop.f32.mrf.mxu0 }
 0x275   :  { %v431_v35 = vadd.f32 %v770_v33, %v661_v32  ;;  %v450_v41 = vmax.f32 %v420_v34, 0.0 }
 0x276   :  { %v422_v37 = vpop.f32.mrf.mxu0 }
 0x277   :  { %v423_v38 = vadd.f32 %v661_v32, %v422_v37  ;;  %v453_v39 = vmax.f32 %v431_v35, 0.0 }
 0x278   :  { %v773_v40 = vpop.f32.mrf.mxu0 }
 0x279   :  { %v451_v42 = vmax.f32 %v423_v38, 0.0  ;;  %v459_v46 = vpack.c.bf16 %v453_v39, %v452_v43  ;;  %v444_v50 = vadd.f32 %v773_v40, %v661_v32 }
 0x27a   :  { %v435_v44 = vpop.f32.mrf.mxu0 }
 0x27b   :  { %v458_v45 = vpack.c.bf16 %v451_v42, %v450_v41  ;;  %v436_v48 = vadd.f32 %v661_v32, %v435_v44  ;;  %v456_v56 = vmax.f32 %v444_v50, 0.0 }
 0x27c   :  { %v774_v47 = vpop.f32.mrf.mxu0 }
 0x27d   :  { %v447_v49 = vadd.f32 %v774_v47, %v661_v32  ;;  %783 = vmatprep.mubr.msk.bf16.mxu1 %vm108_vm0, %v458_v45  ;;  %v454_v54 = vmax.f32 %v436_v48, 0.0 }
 0x27e   :  { %v438_v51 = vpop.f32.mrf.mxu0  ;;  %784 = vmatmul.mubr.msk.bf16.vlgmr.msra.gmra.mxu1 %vm108_vm0, %v459_v46 }
 0x27f   :  { %v439_v52 = vadd.f32 %v661_v32, %v438_v51  ;;  %v457_v53 = vmax.f32 %v447_v49, 0.0 }
 0x281   :  { %v455_v55 = vmax.f32 %v439_v52, 0.0  ;;  %v461_v60 = vpack.c.bf16 %v457_v53, %v456_v56 }
 0x283   :  { %v460_v57 = vpack.c.bf16 %v455_v55, %v454_v54 }
 0x285   :  { %787 = vmatprep.mubr.msk.bf16.mxu1 %vm108_vm0, %v460_v57 }
 0x286   :  { %788 = vmatmul.mubr.msk.bf16.gmra.mxu1 %vm108_vm0, %v461_v60 }
 0x33e   :  { %v785_v1 = vpop.f32.mrf.mxu1 }
 0x33f   :  { %v556_v2 = vadd.f32 %v785_v1, %v670_v62 }
 0x340   :  { %v547_v5 = vpop.f32.mrf.mxu1 }
 0x341   :  { %v580_v6 = vadd.f32 %v556_v2, %v324_v9  ;;  %v548_v10 = vadd.f32 %v670_v62, %v547_v5 }
 0x342   :  { %v786_v11 = vpop.f32.mrf.mxu1 }
 0x343   :  { %v588_v12 = vmax.f32 %v580_v6, 0.0  ;;  %v578_v13 = vadd.f32 %v548_v10, %v322_v4  ;;  %v559_v14 = vadd.f32 %v786_v11, %v670_v62 }
 0x344   :  { %v550_v15 = vpop.f32.mrf.mxu1 }
 0x345   :  { %v689_v16 = vpack.c.bf16 %v588_v12, %v588_v12  ;;  %v586_v17 = vmax.f32 %v578_v13, 0.0  ;;  %v581_v8 = vadd.f32 %v559_v14, %v325_v0  ;;  %v551_v25 = vadd.f32 %v670_v62, %v550_v15 }
 0x346   :  { %v789_v26 = vpop.f32.mrf.mxu1 }
 0x347   :  { %629 = vst.msk [vmem:[%s1070_s9 + $0x8] sm:$0xf] %vm626_vm1, %v689_v16  ;;  %v687_v61 = vpack.c.bf16 %v586_v17, %v586_v17  ;;  %v589_v9 = vmax.f32 %v581_v8, 0.0  ;;  %v579_v58 = vadd.f32 %v551_v25, %v323_v3  ;;  %v572_v4 = vadd.f32 %v789_v26, %v670_v62 }
 0x348   :  { %v563_v27 = vpop.f32.mrf.mxu1 }
 0x349   :  { %627 = vst.msk [vmem:[%s1070_s9] sm:$0xf] %vm626_vm1, %v687_v61  ;;  %v690_v59 = vpack.c.bf16 %v589_v9, %v589_v9  ;;  %v587_v0 = vmax.f32 %v579_v58, 0.0  ;;  %v584_v28 = vadd.f32 %v572_v4, %v328_v24  ;;  %v564_v29 = vadd.f32 %v670_v62, %v563_v27 }
 0x34a   :  { %v790_v30 = vpop.f32.mrf.mxu1 }
 0x34b   :  { %630 = vst.msk [vmem:[%s1070_s9 + $0xc] sm:$0xf] %vm626_vm1, %v690_v59  ;;  %v688_v63 = vpack.c.bf16 %v587_v0, %v587_v0  ;;  %v592_v3 = vmax.f32 %v584_v28, 0.0  ;;  %v582_v31 = vadd.f32 %v564_v29, %v326_v22  ;;  %v575_v32 = vadd.f32 %v790_v30, %v670_v62 }
 0x34c   :  { %v566_v33 = vpop.f32.mrf.mxu1 }
 0x34d   :  { %628 = vst.msk [vmem:[%s1070_s9 + $0x4] sm:$0xf] %vm626_vm1, %v688_v63  ;;  %v693_v20 = vpack.c.bf16 %v592_v3, %v592_v3  ;;  %v590_v24 = vmax.f32 %v582_v31, 0.0  ;;  %v585_v34 = vadd.f32 %v575_v32, %v329_v7  ;;  %v567_v35 = vadd.f32 %v670_v62, %v566_v33 }
 0x34f   :  { %633 = vst.msk [vmem:[%s1070_s9 + $0x18] sm:$0xf] %vm626_vm1, %v693_v20  ;;  %v691_v18 = vpack.c.bf16 %v590_v24, %v590_v24  ;;  %v593_v22 = vmax.f32 %v585_v34, 0.0  ;;  %v583_v36 = vadd.f32 %v567_v35, %v327_v23 }
 0x351   :  { %631 = vst.msk [vmem:[%s1070_s9 + $0x10] sm:$0xf] %vm626_vm1, %v691_v18  ;;  %v694_v37 = vpack.c.bf16 %v593_v22, %v593_v22  ;;  %v591_v38 = vmax.f32 %v583_v36, 0.0 }
 0x353   :  { %634 = vst.msk [vmem:[%s1070_s9 + $0x1c] sm:$0xf] %vm626_vm1, %v694_v37  ;;  %v692_v19 = vpack.c.bf16 %v591_v38, %v591_v38 }
 0x355   :  { %632 = vst.msk [vmem:[%s1070_s9 + $0x14] sm:$0xf] %vm626_vm1, %v692_v19 }

// kernel: pointmlp_forward.5
= control target key start
LH: loop header
LB: loop body
LE: loop exit
PB: predicated region body
PF: predicated region fallthrough
CT: control target
= control target key end

     0   :  { %vm302_vm0 = vcmask 523264   ;;  %vm3728_vm1 = vcmask 1041409   ;;  %vm3730_vm2 = vcmask 1042434   ;;  %vm3732_vm3 = vcmask 1043459   ;;  %s6719_s1 = inlined_call_operand.vmem [shape: bf16[64,64], index: 1, kind: input, shape index: {}]   ;;  %s6720_s0 = inlined_call_operand.vmem [shape: bf16[512,64], index: 0, kind: input, shape index: {}]   ;;  %s6721_s3 = inlined_call_operand.vmem [shape: bf16[64,64], index: 3, kind: input, shape index: {}]   ;;  %s6722_s2 = inlined_call_operand.vmem [shape: f32[1,64], index: 2, kind: input, shape index: {}]   ;;  %s6723_s5 = inlined_call_operand.vmem [shape: bf16[64,64], index: 5, kind: input, shape index: {}]   ;;  %s6724_s7 = inlined_call_operand.vmem [shape: bf16[64,64], index: 7, kind: input, shape index: {}]   ;;  %s6725_s4 = inlined_call_operand.vmem [shape: f32[1,64], index: 4, kind: input, shape index: {}]   ;;  %s6726_s9 = inlined_call_operand.vmem [shape: bf16[64,64], index: 9, kind: input, shape index: {}]   ;;  %s6727_s6 = inlined_call_operand.vmem [shape: f32[1,64], index: 6, kind: input, shape index: {}]   ;;  %s6728_s8 = inlined_call_operand.vmem [shape: f32[1,64], index: 8, kind: input, shape index: {}]   ;;  %s6729_s10 = inlined_call_operand.vmem [shape: f32[1,64], index: 10, kind: input, shape index: {}]   ;;  %s6730_s11 = inlined_call_operand.vmem [shape: bf16[64,64], index: 11, kind: output, shape index: {}]  }
   0x1   :  { %v4713_v0 = vld [vmem:[%s6719_s1 + $0x18] sm:$0xff]   ;;  %v4714_v1 = vld [vmem:[%s6719_s1 + $0x10] sm:$0xff]   ;;  %v4715_v2 = vld [vmem:[%s6719_s1 + $0x8] sm:$0xff]   ;;  %vm3734_vm4 = vcmask 1044484   ;;  %vm3736_vm5 = vcmask 1045509   ;;  %vm3738_vm6 = vcmask 1046534  }
   0x2   :  { %4345 = vmatprep.subr.bf16.mxu0 %v4713_v0  ;;  %4705 = vmatprep.subr.bf16.mxu1 %v4713_v0  ;;  %v4717_v3 = vld [vmem:[%s6720_s0] sm:$0xff]   ;;  %v4718_v5 = vld [vmem:[%s6720_s0 + $0x8] sm:$0xff]   ;;  %v4719_v6 = vld [vmem:[%s6720_s0 + $0x10] sm:$0xff]   ;;  %vm3740_vm7 = vcmask 1047559   ;;  %vm3807_vm8 = vcmask 519168  }
   0x3   :  { %4346 = vmatpush3.bf16.msra.mxu0 %v4713_v0  ;;  %4709 = vmatpush3.bf16.msra.mxu1 %v4713_v0  ;;  %v4716_v4 = vld [vmem:[%s6719_s1] sm:$0xff]   ;;  %v4720_v7 = vld [vmem:[%s6720_s0 + $0x18] sm:$0xff]   ;;  %v4734_v9 = vld [vmem:[%s6720_s0 + $0x88] sm:$0xff]  }
   0x4   :  { %4347 = vmatprep.subr.bf16.mxu0 %v4714_v1  ;;  %4706 = vmatprep.subr.bf16.mxu1 %v4714_v1  ;;  %v4733_v8 = vld [vmem:[%s6720_s0 + $0x80] sm:$0xff]   ;;  %v4735_v10 = vld [vmem:[%s6720_s0 + $0x90] sm:$0xff]   ;;  %v4736_v12 = vld [vmem:[%s6720_s0 + $0x98] sm:$0xff]  }
   0x5   :  { %4353 = vmatprep.mubr.msk.bf16.mxu0 %vm302_vm0, %v4717_v3  ;;  %4385 = vmatprep.mubr.msk.bf16.mxu1 %vm302_vm0, %v4733_v8  ;;  %v4721_v11 = vld [vmem:[%s6720_s0 + $0x20] sm:$0xff]   ;;  %v4722_v14 = vld [vmem:[%s6720_s0 + $0x28] sm:$0xff]   ;;  %v4723_v15 = vld [vmem:[%s6720_s0 + $0x30] sm:$0xff]  }
   0x6   :  { %v4737_v13 = vld [vmem:[%s6720_s0 + $0xa0] sm:$0xff]   ;;  %v4738_v16 = vld [vmem:[%s6720_s0 + $0xa8] sm:$0xff]   ;;  %v4739_v17 = vld [vmem:[%s6720_s0 + $0xb0] sm:$0xff]  }
   0x7   :  { %4348 = vmatpush3.bf16.msra.mxu0 %v4714_v1  ;;  %4710 = vmatpush3.bf16.msra.mxu1 %v4714_v1  ;;  %v4749_v18 = vld [vmem:[%s6721_s3 + $0x18] sm:$0xff]   ;;  %v4750_v19 = vld [vmem:[%s6721_s3 + $0x10] sm:$0xff]   ;;  %v4725_v21 = vld [vmem:[%s6720_s0 + $0x40] sm:$0xff]  }
   0x8   :  { %4349 = vmatprep.subr.bf16.mxu0 %v4715_v2  ;;  %4707 = vmatprep.subr.bf16.mxu1 %v4715_v2  ;;  %v4724_v20 = vld [vmem:[%s6720_s0 + $0x38] sm:$0xff]   ;;  %v4751_v22 = vld [vmem:[%s6721_s3 + $0x8] sm:$0xff]   ;;  %v4741_v24 = vld [vmem:[%s6720_s0 + $0xc0] sm:$0xff]  }
   0x9   :  { %v4740_v23 = vld [vmem:[%s6720_s0 + $0xb8] sm:$0xff]   ;;  %v4752_v25 = vld [vmem:[%s6721_s3] sm:$0xff]   ;;  %v4726_v26 = vld [vmem:[%s6720_s0 + $0x48] sm:$0xff]  }
   0xa   :  { %v4727_v27 = vld [vmem:[%s6720_s0 + $0x50] sm:$0xff]   ;;  %v4742_v28 = vld [vmem:[%s6720_s0 + $0xc8] sm:$0xff]   ;;  %v4728_v30 = vld [vmem:[%s6720_s0 + $0x58] sm:$0xff]  }
   0xb   :  { %4350 = vmatpush3.bf16.msra.mxu0 %v4715_v2  ;;  %4711 = vmatpush3.bf16.msra.mxu1 %v4715_v2  ;;  %v4743_v29 = vld [vmem:[%s6720_s0 + $0xd0] sm:$0xff]   ;;  %v4729_v31 = vld [vmem:[%s6720_s0 + $0x60] sm:$0xff]   ;;  %v4744_v32 = vld [vmem:[%s6720_s0 + $0xd8] sm:$0xff]  }
   0xc   :  { %4351 = vmatprep.subr.bf16.mxu0 %v4716_v4  ;;  %4708 = vmatprep.subr.bf16.mxu1 %v4716_v4  ;;  %v4745_v33 = vld [vmem:[%s6720_s0 + $0xe0] sm:$0xff]   ;;  %v4730_v34 = vld [vmem:[%s6720_s0 + $0x68] sm:$0xff]   ;;  %v4731_v35 = vld [vmem:[%s6720_s0 + $0x70] sm:$0xff]  }
   0xd   :  { %v4746_v36 = vld [vmem:[%s6720_s0 + $0xe8] sm:$0xff]   ;;  %v4747_v37 = vld [vmem:[%s6720_s0 + $0xf0] sm:$0xff]   ;;  %v4732_v38 = vld [vmem:[%s6720_s0 + $0x78] sm:$0xff]  }
   0xe   :  { %v4748_v39 = vld [vmem:[%s6720_s0 + $0xf8] sm:$0xff]   ;;  %v4981_v42 = vld [vmem:[%s6722_s2] ss:$0 sm:$0xff]  ;;  %v4754_v54 = vld [vmem:[%s6723_s5 + $0x10] sm:$0xff]  }
   0xf   :  { %4352 = vmatpush3.bf16.msra.mxu0 %v4716_v4  ;;  %4712 = vmatpush3.bf16.msra.mxu1 %v4716_v4  ;;  %v4753_v51 = vld [vmem:[%s6723_s5 + $0x18] sm:$0xff]   ;;  %v4755_v62 = vld [vmem:[%s6723_s5 + $0x8] sm:$0xff]   ;;  %v4756_v8 = vld [vmem:[%s6723_s5] sm:$0xff]  }
  0x10   :  { %4417 = vmatprep.subr.bf16.mxu1 %v4749_v18  ;;  %4489 = vmatprep.subr.bf16.mxu0 %v4753_v51 }
  0x12   :  { %4354 = vmatmul.mubr.msk.bf16.vlgmr.msra.gmra.mxu0 %vm302_vm0, %v4718_v5  ;;  %4386 = vmatmul.mubr.msk.bf16.vlgmr.msra.gmra.mxu1 %vm302_vm0, %v4734_v9 }
  0x13   :  { %4357 = vmatprep.mubr.msk.bf16.mxu0 %vm302_vm0, %v4719_v6  ;;  %4389 = vmatprep.mubr.msk.bf16.mxu1 %vm302_vm0, %v4735_v10 }
  0x14   :  { %4418 = vmatpush3.bf16.msra.mxu1 %v4749_v18  ;;  %4490 = vmatpush3.bf16.msra.mxu0 %v4753_v51 }
  0x15   :  { %4419 = vmatprep.subr.bf16.mxu1 %v4750_v19  ;;  %4491 = vmatprep.subr.bf16.mxu0 %v4754_v54 }
  0x18   :  { %4420 = vmatpush3.bf16.msra.mxu1 %v4750_v19  ;;  %4492 = vmatpush3.bf16.msra.mxu0 %v4754_v54 }
  0x19   :  { %4421 = vmatprep.subr.bf16.mxu1 %v4751_v22  ;;  %4493 = vmatprep.subr.bf16.mxu0 %v4755_v62 }
  0x1a   :  { %4358 = vmatmul.mubr.msk.bf16.gmra.mxu0 %vm302_vm0, %v4720_v7  ;;  %4390 = vmatmul.mubr.msk.bf16.gmra.mxu1 %vm302_vm0, %v4736_v12 }
  0x1b   :  { %4361 = vmatprep.mubr.msk.bf16.mxu0 %vm302_vm0, %v4721_v11  ;;  %4393 = vmatprep.mubr.msk.bf16.mxu1 %vm302_vm0, %v4737_v13 }
  0x1c   :  { %4422 = vmatpush3.bf16.msra.mxu1 %v4751_v22  ;;  %4494 = vmatpush3.bf16.msra.mxu0 %v4755_v62 }
  0x1d   :  { %4423 = vmatprep.subr.bf16.mxu1 %v4752_v25  ;;  %4495 = vmatprep.subr.bf16.mxu0 %v4756_v8 }
  0x20   :  { %4424 = vmatpush3.bf16.msra.mxu1 %v4752_v25  ;;  %4496 = vmatpush3.bf16.msra.mxu0 %v4756_v8 }
  0x22   :  { %4362 = vmatmul.mubr.msk.bf16.gmra.mxu0 %vm302_vm0, %v4722_v14  ;;  %4394 = vmatmul.mubr.msk.bf16.gmra.mxu1 %vm302_vm0, %v4738_v16 }
  0x23   :  { %4365 = vmatprep.mubr.msk.bf16.mxu0 %vm302_vm0, %v4723_v15  ;;  %4397 = vmatprep.mubr.msk.bf16.mxu1 %vm302_vm0, %v4739_v17 }
  0x2a   :  { %4366 = vmatmul.mubr.msk.bf16.gmra.mxu0 %vm302_vm0, %v4724_v20  ;;  %4398 = vmatmul.mubr.msk.bf16.gmra.mxu1 %vm302_vm0, %v4740_v23 }
  0x2b   :  { %4369 = vmatprep.mubr.msk.bf16.mxu0 %vm302_vm0, %v4725_v21  ;;  %4401 = vmatprep.mubr.msk.bf16.mxu1 %vm302_vm0, %v4741_v24 }
  0x32   :  { %4370 = vmatmul.mubr.msk.bf16.gmra.mxu0 %vm302_vm0, %v4726_v26  ;;  %4402 = vmatmul.mubr.msk.bf16.gmra.mxu1 %vm302_vm0, %v4742_v28 }
  0x33   :  { %4373 = vmatprep.mubr.msk.bf16.mxu0 %vm302_vm0, %v4727_v27  ;;  %4405 = vmatprep.mubr.msk.bf16.mxu1 %vm302_vm0, %v4743_v29 }
  0x3a   :  { %4374 = vmatmul.mubr.msk.bf16.gmra.mxu0 %vm302_vm0, %v4728_v30  ;;  %4406 = vmatmul.mubr.msk.bf16.gmra.mxu1 %vm302_vm0, %v4744_v32 }
  0x3b   :  { %4377 = vmatprep.mubr.msk.bf16.mxu0 %vm302_vm0, %v4729_v31  ;;  %4409 = vmatprep.mubr.msk.bf16.mxu1 %vm302_vm0, %v4745_v33 }
  0x42   :  { %4378 = vmatmul.mubr.msk.bf16.gmra.mxu0 %vm302_vm0, %v4730_v34  ;;  %4410 = vmatmul.mubr.msk.bf16.gmra.mxu1 %vm302_vm0, %v4746_v36 }
  0x43   :  { %4381 = vmatprep.mubr.msk.bf16.mxu0 %vm302_vm0, %v4731_v35  ;;  %4413 = vmatprep.mubr.msk.bf16.mxu1 %vm302_vm0, %v4747_v37 }
  0x4a   :  { %4382 = vmatmul.mubr.msk.bf16.gmra.mxu0 %vm302_vm0, %v4732_v38  ;;  %4414 = vmatmul.mubr.msk.bf16.gmra.mxu1 %vm302_vm0, %v4748_v39 }
  0xd2   :  { %v4355_v40 = vpop.f32.mrf.mxu0  ;;  %v4989_v46 = vpop.f32.mrf.mxu1 }
  0xd3   :  { %v4992_v47 = vadd.f32 %v4355_v40, %v4981_v42 }
  0xd4   :  { %v433_v41 = vpop.f32.mrf.mxu0  ;;  %v4997_v50 = vpop.f32.mrf.mxu1 }
  0xd5   :  { %v4984_v44 = vadd.f32 %v4981_v42, %v433_v41  ;;  %v6756_v58 = vmax.f32 %v4992_v47, 0.0 }
  0xd6   :  { %v4356_v43 = vpop.f32.mrf.mxu0  ;;  %v5008_v57 = vpop.f32.mrf.mxu1 }
  0xd7   :  { %v4987_v45 = vadd.f32 %v4356_v43, %v4981_v42  ;;  %v6758_v55 = vmax.f32 %v4984_v44, 0.0 }
  0xd8   :  { %v436_v48 = vpop.f32.mrf.mxu0  ;;  %v5015_v61 = vpop.f32.mrf.mxu1 }
  0xd9   :  { %v4995_v49 = vadd.f32 %v4981_v42, %v436_v48  ;;  %v6757_v52 = vmax.f32 %v4987_v45, 0.0 }
  0xda   :  { %v4359_v53 = vpop.f32.mrf.mxu0  ;;  %v5031_v3 = vpop.f32.mrf.mxu1 }
  0xdb   :  { %v6755_v56 = vmax.f32 %v4995_v49, 0.0  ;;  %v753_v63 = vpack.c.bf16 %v6757_v52, %v6756_v58  ;;  %v5034_v4 = vadd.f32 %v4359_v53, %v4981_v42 }
  0xdc   :  { %v449_v59 = vpop.f32.mrf.mxu0  ;;  %v5040_v7 = vpop.f32.mrf.mxu1 }
  0xdd   :  { %v752_v60 = vpack.c.bf16 %v6755_v56, %v6758_v55  ;;  %v5025_v1 = vadd.f32 %v4981_v42, %v449_v59  ;;  %v6748_v14 = vmax.f32 %v5034_v4, 0.0  ;;  %v5251_v58 = vadd.f32 %v4981_v42, %v5040_v7 }
  0xde   :  { %v4360_v0 = vpop.f32.mrf.mxu0  ;;  %v5048_v13 = vpop.f32.mrf.mxu1  ;;  %v5259_v55 = vadd.f32 %v4989_v46, %v4981_v42 }
  0xdf   :  { %v5028_v2 = vadd.f32 %v4360_v0, %v4981_v42  ;;  %4425 = vmatprep.mubr.msk.bf16.mxu1 %vm302_vm0, %v752_v60  ;;  %v6750_v11 = vmax.f32 %v5025_v1, 0.0  ;;  %6905 = vst [vmem:[#allocation2_spill] sm:$0xff] %v5251_v58  ;;  %v6766_v7 = vmax.f32 %v5251_v58, 0.0 }
  0xe0   :  { %v452_v5 = vpop.f32.mrf.mxu0  ;;  %4426 = vmatmul.mubr.msk.bf16.vlgmr.msra.gmra.mxu1 %vm302_vm0, %v753_v63  ;;  %v5055_v17 = vpop.f32.mrf.mxu1 }
  0xe1   :  { %v5038_v6 = vadd.f32 %v4981_v42, %v452_v5  ;;  %v6749_v9 = vmax.f32 %v5028_v2, 0.0  ;;  %v5255_v52 = vadd.f32 %v4981_v42, %v5055_v17  ;;  %v6768_v17 = vmax.f32 %v5259_v55, 0.0 }
  0xe2   :  { %v4363_v10 = vpop.f32.mrf.mxu0  ;;  %v5068_v22 = vpop.f32.mrf.mxu1 }
  0xe3   :  { %v6747_v12 = vmax.f32 %v5038_v6, 0.0  ;;  %v755_v18 = vpack.c.bf16 %v6749_v9, %v6748_v14  ;;  %v5071_v23 = vadd.f32 %v4363_v10, %v4981_v42  ;;  %6906 = vst [vmem:[#allocation3_spill] sm:$0xff] %v5255_v52  ;;  %v6765_v46 = vmax.f32 %v5255_v52, 0.0 }
  0xe4   :  { %v465_v15 = vpop.f32.mrf.mxu0  ;;  %v5078_v28 = vpop.f32.mrf.mxu1  ;;  %v5326_v58 = vadd.f32 %v5068_v22, %v4981_v42 }
  0xe5   :  { %v754_v16 = vpack.c.bf16 %v6747_v12, %v6750_v11  ;;  %v5062_v20 = vadd.f32 %v4981_v42, %v465_v15  ;;  %v6740_v31 = vmax.f32 %v5071_v23, 0.0 }
  0xe6   :  { %v4364_v19 = vpop.f32.mrf.mxu0  ;;  %v5091_v36 = vpop.f32.mrf.mxu1 }
  0xe7   :  { %v5065_v21 = vadd.f32 %v4364_v19, %v4981_v42  ;;  %4429 = vmatprep.mubr.msk.bf16.mxu1 %vm302_vm0, %v754_v16  ;;  %v6746_v29 = vmax.f32 %v5062_v20, 0.0 }
  0xe8   :  { %v468_v24 = vpop.f32.mrf.mxu0  ;;  %4430 = vmatmul.mubr.msk.bf16.gmra.mxu1 %vm302_vm0, %v755_v18  ;;  %v5108_v51 = vpop.f32.mrf.mxu1 }
  0xe9   :  { %v5075_v25 = vadd.f32 %v4981_v42, %v468_v24  ;;  %v6745_v26 = vmax.f32 %v5065_v21, 0.0 }
  0xea   :  { %v4367_v27 = vpop.f32.mrf.mxu0  ;;  %v5121_v5 = vpop.f32.mrf.mxu1 }
  0xeb   :  { %v6739_v30 = vmax.f32 %v5075_v25, 0.0  ;;  %v757_v34 = vpack.c.bf16 %v6745_v26, %v6740_v31  ;;  %v5101_v39 = vadd.f32 %v4367_v27, %v4981_v42 }
  0xec   :  { %v481_v32 = vpop.f32.mrf.mxu0  ;;  %v5138_v27 = vpop.f32.mrf.mxu1 }
  0xed   :  { %v756_v33 = vpack.c.bf16 %v6739_v30, %v6746_v29  ;;  %v5094_v37 = vadd.f32 %v4981_v42, %v481_v32  ;;  %v6736_v59 = vmax.f32 %v5101_v39, 0.0 }
  0xee   :  { %v4368_v35 = vpop.f32.mrf.mxu0 }
  0xef   :  { %v5097_v38 = vadd.f32 %v4368_v35, %v4981_v42  ;;  %4433 = vmatprep.mubr.msk.bf16.mxu1 %vm302_vm0, %v756_v33  ;;  %v6738_v53 = vmax.f32 %v5094_v37, 0.0 }
  0xf0   :  { %v484_v40 = vpop.f32.mrf.mxu0  ;;  %4434 = vmatmul.mubr.msk.bf16.gmra.mxu1 %vm302_vm0, %v757_v34 }
  0xf1   :  { %v5105_v41 = vadd.f32 %v4981_v42, %v484_v40  ;;  %v6737_v43 = vmax.f32 %v5097_v38, 0.0 }
  0xf2   :  { %v4371_v48 = vpop.f32.mrf.mxu0 }
  0xf3   :  { %v6735_v54 = vmax.f32 %v5105_v41, 0.0  ;;  %v759_v63 = vpack.c.bf16 %v6737_v43, %v6736_v59  ;;  %v5131_v15 = vadd.f32 %v4371_v48, %v4981_v42 }
  0xf4   :  { %v497_v60 = vpop.f32.mrf.mxu0 }
  0xf5   :  { %v758_v62 = vpack.c.bf16 %v6735_v54, %v6738_v53  ;;  %v5124_v8 = vadd.f32 %v4981_v42, %v497_v60  ;;  %v6733_v34 = vmax.f32 %v5131_v15, 0.0 }
  0xf6   :  { %v4372_v0 = vpop.f32.mrf.mxu0 }
  0xf7   :  { %v5127_v10 = vadd.f32 %v4372_v0, %v4981_v42  ;;  %4437 = vmatprep.mubr.msk.bf16.mxu1 %vm302_vm0, %v758_v62  ;;  %v6732_v32 = vmax.f32 %v5124_v8, 0.0  ;;  %v5151_v62 = vpop.f32.mrf.mxu1 }
  0xf8   :  { %v500_v16 = vpop.f32.mrf.mxu0  ;;  %4438 = vmatmul.mubr.msk.bf16.gmra.mxu1 %vm302_vm0, %v759_v63 }
  0xf9   :  { %v5135_v18 = vadd.f32 %v4981_v42, %v500_v16  ;;  %v6734_v19 = vmax.f32 %v5127_v10, 0.0  ;;  %v5168_v54 = vpop.f32.mrf.mxu1 }
  0xfa   :  { %v4375_v24 = vpop.f32.mrf.mxu0 }
  0xfb   :  { %v6731_v33 = vmax.f32 %v5135_v18, 0.0  ;;  %v761_v48 = vpack.c.bf16 %v6734_v19, %v6733_v34  ;;  %v5161_v16 = vadd.f32 %v4375_v24, %v4981_v42  ;;  %v5181_v43 = vpop.f32.mrf.mxu1 }
  0xfc   :  { %v513_v35 = vpop.f32.mrf.mxu0 }
  0xfd   :  { %v760_v40 = vpack.c.bf16 %v6731_v33, %v6732_v32  ;;  %v5154_v63 = vadd.f32 %v4981_v42, %v513_v35  ;;  %v5198_v26 = vpop.f32.mrf.mxu1 }
  0xfe   :  { %v4376_v60 = vpop.f32.mrf.mxu0 }
  0xff   :  { %v5157_v0 = vadd.f32 %v4376_v60, %v4981_v42  ;;  %4441 = vmatprep.mubr.msk.bf16.mxu1 %vm302_vm0, %v760_v40  ;;  %v6742_v35 = vmax.f32 %v5154_v63, 0.0  ;;  %v6743_v40 = vmax.f32 %v5161_v16, 0.0  ;;  %v5219_v9 = vpop.f32.mrf.mxu1 }
 0x100   :  { %v516_v33 = vpop.f32.mrf.mxu0  ;;  %4442 = vmatmul.mubr.msk.bf16.gmra.mxu1 %vm302_vm0, %v761_v48 }
 0x101   :  { %v5165_v32 = vadd.f32 %v4981_v42, %v516_v33  ;;  %v6744_v34 = vmax.f32 %v5157_v0, 0.0  ;;  %v628_v56 = vpop.f32.mrf.mxu1 }
 0x102   :  { %v4379_v19 = vpop.f32.mrf.mxu0 }
 0x103   :  { %v6741_v60 = vmax.f32 %v5165_v32, 0.0  ;;  %v763_v33 = vpack.c.bf16 %v6744_v34, %v6743_v40  ;;  %v5191_v31 = vadd.f32 %v4379_v19, %v4981_v42 }
 0x104   :  { %v529_v59 = vpop.f32.mrf.mxu0 }
 0x105   :  { %v762_v24 = vpack.c.bf16 %v6741_v60, %v6742_v35  ;;  %v5184_v53 = vadd.f32 %v4981_v42, %v529_v59 }
 0x106   :  { %v4380_v48 = vpop.f32.mrf.mxu0 }
 0x107   :  { %v5187_v30 = vadd.f32 %v4380_v48, %v4981_v42  ;;  %4445 = vmatprep.mubr.msk.bf16.mxu1 %vm302_vm0, %v762_v24  ;;  %v6752_v59 = vmax.f32 %v5184_v53, 0.0  ;;  %v6753_v24 = vmax.f32 %v5191_v31, 0.0 }
 0x108   :  { %v532_v60 = vpop.f32.mrf.mxu0  ;;  %4446 = vmatmul.mubr.msk.bf16.gmra.mxu1 %vm302_vm0, %v763_v33  ;;  %v5213_v33 = vadd.f32 %v4981_v42, %v5015_v61 }
 0x109   :  { %v5195_v35 = vadd.f32 %v4981_v42, %v532_v60  ;;  %v6754_v40 = vmax.f32 %v5187_v30, 0.0  ;;  %v5209_v60 = vadd.f32 %v4981_v42, %v4997_v50 }
 0x10a   :  { %v4383_v34 = vpop.f32.mrf.mxu0 }
 0x10b   :  { %v6751_v48 = vmax.f32 %v5195_v35, 0.0  ;;  %v765_v12 = vpack.c.bf16 %v6754_v40, %v6753_v24  ;;  %v5229_v50 = vadd.f32 %v4383_v34, %v4981_v42  ;;  %v6760_v40 = vmax.f32 %v5213_v33, 0.0 }
 0x10c   :  { %v545_v29 = vpop.f32.mrf.mxu0 }
 0x10d   :  { %v764_v19 = vpack.c.bf16 %v6751_v48, %v6752_v59  ;;  %v5222_v11 = vadd.f32 %v4981_v42, %v545_v29  ;;  %v6761_v59 = vmax.f32 %v5209_v60, 0.0  ;;  %v6762_v34 = vmax.f32 %v5229_v50, 0.0 }
 0x10e   :  { %v4384_v14 = vpop.f32.mrf.mxu0 }
 0x10f   :  { %v5225_v48 = vadd.f32 %v4384_v14, %v4981_v42  ;;  %4449 = vmatprep.mubr.msk.bf16.mxu1 %vm302_vm0, %v764_v19  ;;  %v6764_v14 = vmax.f32 %v5222_v11, 0.0 }
 0x110   :  { %v548_v61 = vpop.f32.mrf.mxu0  ;;  %4450 = vmatmul.mubr.msk.bf16.gmra.mxu1 %vm302_vm0, %v765_v12 }
 0x111   :  { %v5234_v24 = vadd.f32 %v4981_v42, %v548_v61  ;;  %v6763_v29 = vmax.f32 %v5225_v48, 0.0  ;;  %v768_v61 = vpack.c.bf16 %v6760_v40, %v6761_v59  ;;  %v5267_v40 = vadd.f32 %v5008_v57, %v4981_v42  ;;  %v5269_v59 = vpop.f32.mrf.mxu1 }
 0x112   :  { %v770_v57 = vpack.c.bf16 %v6765_v46, %v6766_v7  ;;  %v5300_v46 = vadd.f32 %v5048_v13, %v4981_v42  ;;  %v5314_v13 = vadd.f32 %v4981_v42, %v5138_v27 }
 0x113   :  { %v6759_v19 = vmax.f32 %v5234_v24, 0.0 }
 0x114   :  { %6909 = vst [vmem:[#allocation6_spill] sm:$0xff] %v5314_v13  ;;  %v6779_v27 = vmax.f32 %v5314_v13, 0.0  ;;  %v5383_v13 = vadd.f32 %v5181_v43, %v4981_v42 }
 0x115   :  { %v766_v12 = vpack.c.bf16 %v6759_v19, %v6764_v14  ;;  %v767_v19 = vpack.c.bf16 %v6763_v29, %v6762_v34  ;;  %v6769_v34 = vmax.f32 %v5267_v40, 0.0  ;;  %v641_v29 = vpop.f32.mrf.mxu1  ;;  %v5296_v14 = vadd.f32 %v5031_v3, %v4981_v42 }
 0x116   :  { %6915 = vst [vmem:[#allocation12_spill] sm:$0xff] %v5383_v13 }
 0x117   :  { %4453 = vmatprep.mubr.msk.bf16.mxu1 %vm302_vm0, %v766_v12  ;;  %v5284_v12 = vadd.f32 %v4981_v42, %v5078_v28  ;;  %v4408_v7 = vpop.f32.mrf.mxu1  ;;  %v6774_v52 = vmax.f32 %v5296_v14, 0.0 }
 0x118   :  { %4454 = vmatmul.mubr.msk.bf16.gmra.mxu1 %vm302_vm0, %v767_v19  ;;  %v5288_v19 = vadd.f32 %v4981_v42, %v5108_v51 }
 0x119   :  { %4457 = vmatprep.mubr.msk.bf16.mxu1 %vm302_vm0, %v768_v61  ;;  %6907 = vst [vmem:[#allocation4_spill] sm:$0xff] %v5284_v12  ;;  %v769_v61 = vpack.c.bf16 %v6769_v34, %v6768_v17  ;;  %v6772_v28 = vmax.f32 %v5284_v12, 0.0  ;;  %v6775_v17 = vmax.f32 %v5300_v46, 0.0  ;;  %v644_v34 = vpop.f32.mrf.mxu1  ;;  %v5355_v12 = vadd.f32 %v5121_v5, %v4981_v42 }
 0x11a   :  { %6908 = vst [vmem:[#allocation5_spill] sm:$0xff] %v5288_v19  ;;  %v6771_v51 = vmax.f32 %v5288_v19, 0.0  ;;  %v6780_v19 = vmax.f32 %v5326_v58, 0.0 }
 0x11c   :  { %v772_v3 = vpack.c.bf16 %v6771_v51, %v6772_v28  ;;  %v5330_v51 = vadd.f32 %v5091_v36, %v4981_v42  ;;  %v4411_v28 = vpop.f32.mrf.mxu1  ;;  %v5344_v36 = vadd.f32 %v4981_v42, %v5198_v26 }
 0x11e   :  { %6911 = vst [vmem:[#allocation8_spill] sm:$0xff] %v5344_v36  ;;  %v6785_v26 = vmax.f32 %v5344_v36, 0.0  ;;  %v5387_v36 = vadd.f32 %v5219_v9, %v4981_v42 }
 0x120   :  { %4458 = vmatmul.mubr.msk.bf16.gmra.mxu1 %vm302_vm0, %v769_v61  ;;  %v5318_v61 = vadd.f32 %v4981_v42, %v5168_v54 }
 0x121   :  { %4461 = vmatprep.mubr.msk.bf16.mxu1 %vm302_vm0, %v770_v57  ;;  %v771_v57 = vpack.c.bf16 %v6775_v17, %v6774_v52  ;;  %v6781_v52 = vmax.f32 %v5330_v51, 0.0  ;;  %v657_v17 = vpop.f32.mrf.mxu1 }
 0x122   :  { %6910 = vst [vmem:[#allocation7_spill] sm:$0xff] %v5318_v61  ;;  %v6778_v54 = vmax.f32 %v5318_v61, 0.0  ;;  %v5359_v61 = vadd.f32 %v5151_v62, %v4981_v42  ;;  %v5372_v62 = vadd.f32 %v4981_v42, %v641_v29  ;;  %v5400_v43 = vadd.f32 %v4981_v42, %v657_v17 }
 0x124   :  { %v774_v22 = vpack.c.bf16 %v6778_v54, %v6779_v27  ;;  %v4412_v54 = vpop.f32.mrf.mxu1  ;;  %v6786_v27 = vmax.f32 %v5355_v12, 0.0  ;;  %6913 = vst [vmem:[#allocation10_spill] sm:$0xff] %v5372_v62  ;;  %v6792_v29 = vmax.f32 %v5372_v62, 0.0  ;;  %6916 = vst [vmem:[#allocation13_spill] sm:$0xff] %v5400_v43  ;;  %v5414_v62 = vadd.f32 %v4408_v7, %v4981_v42 }
 0x125   :  { %v6797_v17 = vmax.f32 %v5400_v43, 0.0 }
 0x128   :  { %4462 = vmatmul.mubr.msk.bf16.gmra.mxu1 %vm302_vm0, %v771_v57  ;;  %v5347_v57 = vadd.f32 %v4981_v42, %v628_v56 }
 0x129   :  { %4465 = vmatprep.mubr.msk.bf16.mxu1 %vm302_vm0, %v772_v3  ;;  %v773_v3 = vpack.c.bf16 %v6781_v52, %v6780_v19  ;;  %v6787_v19 = vmax.f32 %v5359_v61, 0.0  ;;  %v660_v52 = vpop.f32.mrf.mxu1 }
 0x12a   :  { %6912 = vst [vmem:[#allocation9_spill] sm:$0xff] %v5347_v57  ;;  %v6784_v56 = vmax.f32 %v5347_v57, 0.0  ;;  %v5411_v57 = vadd.f32 %v5269_v59, %v4981_v42 }
 0x12c   :  { %v776_v5 = vpack.c.bf16 %v6784_v56, %v6785_v26  ;;  %v4415_v56 = vpop.f32.mrf.mxu1  ;;  %v6793_v26 = vmax.f32 %v5383_v13, 0.0  ;;  %6918 = vst [vmem:[#allocation15_spill] sm:$0xff] %v5411_v57  ;;  %v5440_v13 = vadd.f32 %v4412_v54, %v4981_v42 }
 0x12e   :  { %6922 = vst [vmem:[#allocation19_spill] sm:$0xff] %v5440_v13 }
 0x130   :  { %4466 = vmatmul.mubr.msk.bf16.gmra.mxu1 %vm302_vm0, %v773_v3  ;;  %v5375_v3 = vadd.f32 %v4981_v42, %v644_v34 }
 0x131   :  { %4469 = vmatprep.mubr.msk.bf16.mxu1 %vm302_vm0, %v774_v22  ;;  %v775_v22 = vpack.c.bf16 %v6787_v19, %v6786_v27  ;;  %v6794_v27 = vmax.f32 %v5387_v36, 0.0  ;;  %v673_v19 = vpop.f32.mrf.mxu1 }
 0x132   :  { %6914 = vst [vmem:[#allocation11_spill] sm:$0xff] %v5375_v3  ;;  %v6791_v34 = vmax.f32 %v5375_v3, 0.0  ;;  %v5427_v7 = vadd.f32 %v4981_v42, %v673_v19 }
 0x133   :  { %v4416_v3 = vpop.f32.mrf.mxu1 }
 0x134   :  { %v778_v9 = vpack.c.bf16 %v6791_v34, %v6792_v29  ;;  %v6798_v34 = vmax.f32 %v5411_v57, 0.0  ;;  %v6799_v29 = vmax.f32 %v5414_v62, 0.0  ;;  %6919 = vst [vmem:[#allocation16_spill] sm:$0xff] %v5427_v7 }
 0x138   :  { %4470 = vmatmul.mubr.msk.bf16.gmra.mxu1 %vm302_vm0, %v775_v22  ;;  %v5403_v22 = vadd.f32 %v4981_v42, %v660_v52 }
 0x139   :  { %4473 = vmatprep.mubr.msk.bf16.mxu1 %vm302_vm0, %v776_v5  ;;  %v777_v5 = vpack.c.bf16 %v6794_v27, %v6793_v26  ;;  %v676_v26 = vpop.f32.mrf.mxu1  ;;  %v5437_v27 = vadd.f32 %v4411_v28, %v4981_v42 }
 0x13a   :  { %6917 = vst [vmem:[#allocation14_spill] sm:$0xff] %v5403_v22  ;;  %v6796_v52 = vmax.f32 %v5403_v22, 0.0 }
 0x13b   :  { %6921 = vst [vmem:[#allocation18_spill] sm:$0xff] %v5437_v27 }
 0x13c   :  { %v780_v59 = vpack.c.bf16 %v6796_v52, %v6797_v17  ;;  %v6803_v52 = vmax.f32 %v5427_v7, 0.0  ;;  %v6805_v17 = vmax.f32 %v5440_v13, 0.0 }
 0x140   :  { %4474 = vmatmul.mubr.msk.bf16.gmra.mxu1 %vm302_vm0, %v777_v5  ;;  %v5430_v5 = vadd.f32 %v4981_v42, %v676_v26  ;;  %v6804_v26 = vmax.f32 %v5437_v27, 0.0 }
 0x141   :  { %4477 = vmatprep.mubr.msk.bf16.mxu1 %vm302_vm0, %v778_v9  ;;  %v779_v9 = vpack.c.bf16 %v6799_v29, %v6798_v34 }
 0x142   :  { %6920 = vst [vmem:[#allocation17_spill] sm:$0xff] %v5430_v5  ;;  %v6800_v19 = vmax.f32 %v5430_v5, 0.0  ;;  %v781_v54 = vpack.c.bf16 %v6805_v17, %v6804_v26  ;;  %v4759_v26 = vld [vmem:[%s6724_s7 + $0x8] sm:$0xff]   ;;  %v4760_v17 = vld [vmem:[%s6724_s7] sm:$0xff]  }
 0x144   :  { %v782_v28 = vpack.c.bf16 %v6800_v19, %v6803_v52 }
 0x148   :  { %4478 = vmatmul.mubr.msk.bf16.gmra.mxu1 %vm302_vm0, %v779_v9  ;;  %v5457_v9 = vadd.f32 %v4415_v56, %v4981_v42 }
 0x149   :  { %4481 = vmatprep.mubr.msk.bf16.mxu1 %vm302_vm0, %v780_v59  ;;  %v5460_v59 = vadd.f32 %v4416_v3, %v4981_v42  ;;  %v4757_v42 = vld [vmem:[%s6724_s7 + $0x18] sm:$0xff]   ;;  %v4758_v3 = vld [vmem:[%s6724_s7 + $0x10] sm:$0xff]  }
 0x14a   :  { %6923 = vst [vmem:[#allocation20_spill] sm:$0xff] %v5457_v9  ;;  %v6801_v34 = vmax.f32 %v5457_v9, 0.0  ;;  %4561 = vmatprep.subr.bf16.mxu1 %v4757_v42 }
 0x14b   :  { %6924 = vst [vmem:[#allocation21_spill] sm:$0xff] %v5460_v59  ;;  %v6802_v29 = vmax.f32 %v5460_v59, 0.0  ;;  %4562 = vmatpush3.bf16.msra.mxu1 %v4757_v42 }
 0x14c   :  { %4563 = vmatprep.subr.bf16.mxu1 %v4758_v3 }
 0x14d   :  { %v783_v19 = vpack.c.bf16 %v6802_v29, %v6801_v34 }
 0x14f   :  { %4564 = vmatpush3.bf16.msra.mxu1 %v4758_v3 }
 0x150   :  { %4482 = vmatmul.mubr.msk.bf16.gmra.mxu1 %vm302_vm0, %v781_v54  ;;  %v5480_v54 = vld [vmem:[%s6725_s4] ss:$0 sm:$0xff]  ;;  %4565 = vmatprep.subr.bf16.mxu1 %v4759_v26 }
 0x151   :  { %4485 = vmatprep.mubr.msk.bf16.mxu1 %vm302_vm0, %v782_v28 }
 0x153   :  { %4566 = vmatpush3.bf16.msra.mxu1 %v4759_v26 }
 0x154   :  { %4567 = vmatprep.subr.bf16.mxu1 %v4760_v17 }
 0x157   :  { %4568 = vmatpush3.bf16.msra.mxu1 %v4760_v17 }
 0x158   :  { %4486 = vmatmul.mubr.msk.bf16.gmra.mxu1 %vm302_vm0, %v783_v19 }
 0x1a0   :  { %v4427_v56 = vpop.f32.mrf.mxu1 }
 0x1a1   :  { %v962_v42 = vadd.f32 %v4427_v56, %v5480_v54 }
 0x1a2   :  { %v953_v28 = vpop.f32.mrf.mxu1 }
 0x1a3   :  { %v954_v19 = vadd.f32 %v5480_v54, %v953_v28 }
 0x1a4   :  { %v4428_v34 = vpop.f32.mrf.mxu1 }
 0x1a5   :  { %v965_v29 = vadd.f32 %v4428_v34, %v5480_v54  ;;  %v1208_v3 = vmax.f32 %v954_v19, 0.0  ;;  %v1210_v34 = vmax.f32 %v962_v42, 0.0 }
 0x1a6   :  { %v956_v52 = vpop.f32.mrf.mxu1 }
 0x1a7   :  { %v957_v5 = vadd.f32 %v5480_v54, %v956_v52  ;;  %v1211_v9 = vmax.f32 %v965_v29, 0.0 }
 0x1a8   :  { %v4431_v59 = vpop.f32.mrf.mxu1 }
 0x1a9   :  { %v1209_v28 = vmax.f32 %v957_v5, 0.0  ;;  %v1273_v22 = vpack.c.bf16 %v1211_v9, %v1210_v34  ;;  %v978_v29 = vadd.f32 %v4431_v59, %v5480_v54 }
 0x1aa   :  { %v969_v7 = vpop.f32.mrf.mxu1 }
 0x1ab   :  { %v1272_v56 = vpack.c.bf16 %v1209_v28, %v1208_v3  ;;  %v970_v13 = vadd.f32 %v5480_v54, %v969_v7  ;;  %v1214_v9 = vmax.f32 %v978_v29, 0.0 }
 0x1ac   :  { %v4432_v27 = vpop.f32.mrf.mxu1 }
 0x1ad   :  { %v981_v43 = vadd.f32 %v4432_v27, %v5480_v54  ;;  %4497 = vmatprep.mubr.msk.bf16.mxu0 %vm302_vm0, %v1272_v56  ;;  %v1212_v42 = vmax.f32 %v970_v13, 0.0 }
 0x1ae   :  { %v972_v52 = vpop.f32.mrf.mxu1  ;;  %4498 = vmatmul.mubr.msk.bf16.vlgmr.msra.gmra.mxu0 %vm302_vm0, %v1273_v22 }
 0x1af   :  { %v973_v5 = vadd.f32 %v5480_v54, %v972_v52  ;;  %v1215_v26 = vmax.f32 %v981_v43, 0.0 }
 0x1b0   :  { %v4435_v19 = vpop.f32.mrf.mxu1 }
 0x1b1   :  { %v1213_v3 = vmax.f32 %v973_v5, 0.0  ;;  %v1275_v7 = vpack.c.bf16 %v1215_v26, %v1214_v9  ;;  %v994_v59 = vadd.f32 %v4435_v19, %v5480_v54 }
 0x1b2   :  { %v985_v28 = vpop.f32.mrf.mxu1 }
 0x1b3   :  { %v1274_v34 = vpack.c.bf16 %v1213_v3, %v1212_v42  ;;  %v986_v27 = vadd.f32 %v5480_v54, %v985_v28  ;;  %v1218_v5 = vmax.f32 %v994_v59, 0.0 }
 0x1b4   :  { %v4436_v57 = vpop.f32.mrf.mxu1 }
 0x1b5   :  { %v997_v17 = vadd.f32 %v4436_v57, %v5480_v54  ;;  %4501 = vmatprep.mubr.msk.bf16.mxu0 %vm302_vm0, %v1274_v34  ;;  %v1216_v29 = vmax.f32 %v986_v27, 0.0 }
 0x1b6   :  { %v988_v22 = vpop.f32.mrf.mxu1  ;;  %4502 = vmatmul.mubr.msk.bf16.gmra.mxu0 %vm302_vm0, %v1275_v7 }
 0x1b7   :  { %v989_v43 = vadd.f32 %v5480_v54, %v988_v22  ;;  %v1219_v13 = vmax.f32 %v997_v17, 0.0 }
 0x1b8   :  { %v4439_v56 = vpop.f32.mrf.mxu1 }
 0x1b9   :  { %v1217_v52 = vmax.f32 %v989_v43, 0.0  ;;  %v1277_v3 = vpack.c.bf16 %v1219_v13, %v1218_v5  ;;  %v1010_v19 = vadd.f32 %v4439_v56, %v5480_v54 }
 0x1ba   :  { %v1001_v26 = vpop.f32.mrf.mxu1 }
 0x1bb   :  { %v1276_v42 = vpack.c.bf16 %v1217_v52, %v1216_v29  ;;  %v1002_v57 = vadd.f32 %v5480_v54, %v1001_v26  ;;  %v1222_v43 = vmax.f32 %v1010_v19, 0.0 }
 0x1bc   :  { %v4440_v9 = vpop.f32.mrf.mxu1 }
 0x1bd   :  { %v1013_v28 = vadd.f32 %v4440_v9, %v5480_v54  ;;  %4505 = vmatprep.mubr.msk.bf16.mxu0 %vm302_vm0, %v1276_v42  ;;  %v1220_v59 = vmax.f32 %v1002_v57, 0.0 }
 0x1be   :  { %v1004_v34 = vpop.f32.mrf.mxu1  ;;  %4506 = vmatmul.mubr.msk.bf16.gmra.mxu0 %vm302_vm0, %v1277_v3 }
 0x1bf   :  { %v1005_v7 = vadd.f32 %v5480_v54, %v1004_v34  ;;  %v1223_v27 = vmax.f32 %v1013_v28, 0.0 }
 0x1c0   :  { %v4443_v17 = vpop.f32.mrf.mxu1 }
 0x1c1   :  { %v1221_v22 = vmax.f32 %v1005_v7, 0.0  ;;  %v1279_v52 = vpack.c.bf16 %v1223_v27, %v1222_v43  ;;  %v1026_v56 = vadd.f32 %v4443_v17, %v5480_v54 }
 0x1c2   :  { %v1017_v13 = vpop.f32.mrf.mxu1 }
 0x1c3   :  { %v1278_v29 = vpack.c.bf16 %v1221_v22, %v1220_v59  ;;  %v1018_v26 = vadd.f32 %v5480_v54, %v1017_v13  ;;  %v1226_v7 = vmax.f32 %v1026_v56, 0.0 }
 0x1c4   :  { %v4444_v5 = vpop.f32.mrf.mxu1 }
 0x1c5   :  { %v1029_v42 = vadd.f32 %v4444_v5, %v5480_v54  ;;  %4509 = vmatprep.mubr.msk.bf16.mxu0 %vm302_vm0, %v1278_v29  ;;  %v1224_v19 = vmax.f32 %v1018_v26, 0.0 }
 0x1c6   :  { %v1020_v3 = vpop.f32.mrf.mxu1  ;;  %4510 = vmatmul.mubr.msk.bf16.gmra.mxu0 %vm302_vm0, %v1279_v52 }
 0x1c7   :  { %v1021_v9 = vadd.f32 %v5480_v54, %v1020_v3  ;;  %v1227_v57 = vmax.f32 %v1029_v42, 0.0 }
 0x1c8   :  { %v4447_v28 = vpop.f32.mrf.mxu1 }
 0x1c9   :  { %v1225_v34 = vmax.f32 %v1021_v9, 0.0  ;;  %v1281_v22 = vpack.c.bf16 %v1227_v57, %v1226_v7  ;;  %v1042_v17 = vadd.f32 %v4447_v28, %v5480_v54 }
 0x1ca   :  { %v1033_v27 = vpop.f32.mrf.mxu1 }
 0x1cb   :  { %v1280_v59 = vpack.c.bf16 %v1225_v34, %v1224_v19  ;;  %v1034_v13 = vadd.f32 %v5480_v54, %v1033_v27  ;;  %v1230_v9 = vmax.f32 %v1042_v17, 0.0 }
 0x1cc   :  { %v4448_v43 = vpop.f32.mrf.mxu1 }
 0x1cd   :  { %v1045_v29 = vadd.f32 %v4448_v43, %v5480_v54  ;;  %4513 = vmatprep.mubr.msk.bf16.mxu0 %vm302_vm0, %v1280_v59  ;;  %v1228_v56 = vmax.f32 %v1034_v13, 0.0 }
 0x1ce   :  { %v1036_v52 = vpop.f32.mrf.mxu1  ;;  %4514 = vmatmul.mubr.msk.bf16.gmra.mxu0 %vm302_vm0, %v1281_v22 }
 0x1cf   :  { %v1037_v5 = vadd.f32 %v5480_v54, %v1036_v52  ;;  %v1231_v26 = vmax.f32 %v1045_v29, 0.0 }
 0x1d0   :  { %v4451_v42 = vpop.f32.mrf.mxu1 }
 0x1d1   :  { %v1229_v3 = vmax.f32 %v1037_v5, 0.0  ;;  %v1283_v34 = vpack.c.bf16 %v1231_v26, %v1230_v9  ;;  %v1058_v28 = vadd.f32 %v4451_v42, %v5480_v54 }
 0x1d2   :  { %v1049_v57 = vpop.f32.mrf.mxu1 }
 0x1d3   :  { %v1282_v19 = vpack.c.bf16 %v1229_v3, %v1228_v56  ;;  %v1050_v27 = vadd.f32 %v5480_v54, %v1049_v57  ;;  %v1234_v5 = vmax.f32 %v1058_v28, 0.0 }
 0x1d4   :  { %v4452_v7 = vpop.f32.mrf.mxu1 }
 0x1d5   :  { %v1061_v59 = vadd.f32 %v4452_v7, %v5480_v54  ;;  %4517 = vmatprep.mubr.msk.bf16.mxu0 %vm302_vm0, %v1282_v19  ;;  %v1232_v17 = vmax.f32 %v1050_v27, 0.0 }
 0x1d6   :  { %v1052_v22 = vpop.f32.mrf.mxu1  ;;  %4518 = vmatmul.mubr.msk.bf16.gmra.mxu0 %vm302_vm0, %v1283_v34 }
 0x1d7   :  { %v1053_v43 = vadd.f32 %v5480_v54, %v1052_v22  ;;  %v1235_v13 = vmax.f32 %v1061_v59, 0.0 }
 0x1d8   :  { %v4455_v29 = vpop.f32.mrf.mxu1 }
 0x1d9   :  { %v1233_v52 = vmax.f32 %v1053_v43, 0.0  ;;  %v1285_v3 = vpack.c.bf16 %v1235_v13, %v1234_v5  ;;  %v1074_v42 = vadd.f32 %v4455_v29, %v5480_v54 }
 0x1da   :  { %v1065_v26 = vpop.f32.mrf.mxu1 }
 0x1db   :  { %v1284_v56 = vpack.c.bf16 %v1233_v52, %v1232_v17  ;;  %v1066_v57 = vadd.f32 %v5480_v54, %v1065_v26  ;;  %v1238_v43 = vmax.f32 %v1074_v42, 0.0 }
 0x1dc   :  { %v4456_v9 = vpop.f32.mrf.mxu1 }
 0x1dd   :  { %v1077_v19 = vadd.f32 %v4456_v9, %v5480_v54  ;;  %4521 = vmatprep.mubr.msk.bf16.mxu0 %vm302_vm0, %v1284_v56  ;;  %v1236_v28 = vmax.f32 %v1066_v57, 0.0 }
 0x1de   :  { %v1068_v34 = vpop.f32.mrf.mxu1  ;;  %4522 = vmatmul.mubr.msk.bf16.gmra.mxu0 %vm302_vm0, %v1285_v3 }
 0x1df   :  { %v1069_v7 = vadd.f32 %v5480_v54, %v1068_v34  ;;  %v1239_v27 = vmax.f32 %v1077_v19, 0.0 }
 0x1e0   :  { %v4459_v59 = vpop.f32.mrf.mxu1 }
 0x1e1   :  { %v1237_v22 = vmax.f32 %v1069_v7, 0.0  ;;  %v1287_v52 = vpack.c.bf16 %v1239_v27, %v1238_v43  ;;  %v1090_v29 = vadd.f32 %v4459_v59, %v5480_v54 }
 0x1e2   :  { %v1081_v13 = vpop.f32.mrf.mxu1 }
 0x1e3   :  { %v1286_v17 = vpack.c.bf16 %v1237_v22, %v1236_v28  ;;  %v1082_v26 = vadd.f32 %v5480_v54, %v1081_v13  ;;  %v1242_v7 = vmax.f32 %v1090_v29, 0.0 }
 0x1e4   :  { %v4460_v5 = vpop.f32.mrf.mxu1 }
 0x1e5   :  { %v1093_v56 = vadd.f32 %v4460_v5, %v5480_v54  ;;  %4525 = vmatprep.mubr.msk.bf16.mxu0 %vm302_vm0, %v1286_v17  ;;  %v1240_v42 = vmax.f32 %v1082_v26, 0.0 }
 0x1e6   :  { %v1084_v3 = vpop.f32.mrf.mxu1  ;;  %4526 = vmatmul.mubr.msk.bf16.gmra.mxu0 %vm302_vm0, %v1287_v52 }
 0x1e7   :  { %v1085_v9 = vadd.f32 %v5480_v54, %v1084_v3  ;;  %v1243_v57 = vmax.f32 %v1093_v56, 0.0 }
 0x1e8   :  { %v4463_v19 = vpop.f32.mrf.mxu1 }
 0x1e9   :  { %v1241_v34 = vmax.f32 %v1085_v9, 0.0  ;;  %v1289_v22 = vpack.c.bf16 %v1243_v57, %v1242_v7  ;;  %v1106_v59 = vadd.f32 %v4463_v19, %v5480_v54 }
 0x1ea   :  { %v1097_v27 = vpop.f32.mrf.mxu1 }
 0x1eb   :  { %v1288_v28 = vpack.c.bf16 %v1241_v34, %v1240_v42  ;;  %v1098_v13 = vadd.f32 %v5480_v54, %v1097_v27  ;;  %v1246_v9 = vmax.f32 %v1106_v59, 0.0 }
 0x1ec   :  { %v4464_v43 = vpop.f32.mrf.mxu1 }
 0x1ed   :  { %v1109_v17 = vadd.f32 %v4464_v43, %v5480_v54  ;;  %4529 = vmatprep.mubr.msk.bf16.mxu0 %vm302_vm0, %v1288_v28  ;;  %v1244_v29 = vmax.f32 %v1098_v13, 0.0 }
 0x1ee   :  { %v1100_v52 = vpop.f32.mrf.mxu1  ;;  %4530 = vmatmul.mubr.msk.bf16.gmra.mxu0 %vm302_vm0, %v1289_v22 }
 0x1ef   :  { %v1101_v5 = vadd.f32 %v5480_v54, %v1100_v52  ;;  %v1247_v26 = vmax.f32 %v1109_v17, 0.0 }
 0x1f0   :  { %v4467_v56 = vpop.f32.mrf.mxu1 }
 0x1f1   :  { %v1245_v3 = vmax.f32 %v1101_v5, 0.0  ;;  %v1291_v34 = vpack.c.bf16 %v1247_v26, %v1246_v9  ;;  %v1122_v19 = vadd.f32 %v4467_v56, %v5480_v54 }
 0x1f2   :  { %v1113_v57 = vpop.f32.mrf.mxu1 }
 0x1f3   :  { %v1290_v42 = vpack.c.bf16 %v1245_v3, %v1244_v29  ;;  %v1114_v27 = vadd.f32 %v5480_v54, %v1113_v57  ;;  %v1250_v5 = vmax.f32 %v1122_v19, 0.0 }
 0x1f4   :  { %v4468_v7 = vpop.f32.mrf.mxu1 }
 0x1f5   :  { %v1125_v28 = vadd.f32 %v4468_v7, %v5480_v54  ;;  %4533 = vmatprep.mubr.msk.bf16.mxu0 %vm302_vm0, %v1290_v42  ;;  %v1248_v59 = vmax.f32 %v1114_v27, 0.0 }
 0x1f6   :  { %v1116_v22 = vpop.f32.mrf.mxu1  ;;  %4534 = vmatmul.mubr.msk.bf16.gmra.mxu0 %vm302_vm0, %v1291_v34 }
 0x1f7   :  { %v1117_v43 = vadd.f32 %v5480_v54, %v1116_v22  ;;  %v1251_v13 = vmax.f32 %v1125_v28, 0.0 }
 0x1f8   :  { %v4471_v17 = vpop.f32.mrf.mxu1 }
 0x1f9   :  { %v1249_v52 = vmax.f32 %v1117_v43, 0.0  ;;  %v1293_v3 = vpack.c.bf16 %v1251_v13, %v1250_v5  ;;  %v1138_v56 = vadd.f32 %v4471_v17, %v5480_v54 }
 0x1fa   :  { %v1129_v26 = vpop.f32.mrf.mxu1 }
 0x1fb   :  { %v1292_v29 = vpack.c.bf16 %v1249_v52, %v1248_v59  ;;  %v1130_v57 = vadd.f32 %v5480_v54, %v1129_v26  ;;  %v1254_v43 = vmax.f32 %v1138_v56, 0.0 }
 0x1fc   :  { %v4472_v9 = vpop.f32.mrf.mxu1 }
 0x1fd   :  { %v1141_v42 = vadd.f32 %v4472_v9, %v5480_v54  ;;  %4537 = vmatprep.mubr.msk.bf16.mxu0 %vm302_vm0, %v1292_v29  ;;  %v1252_v19 = vmax.f32 %v1130_v57, 0.0 }
 0x1fe   :  { %v1132_v34 = vpop.f32.mrf.mxu1  ;;  %4538 = vmatmul.mubr.msk.bf16.gmra.mxu0 %vm302_vm0, %v1293_v3 }
 0x1ff   :  { %v1133_v7 = vadd.f32 %v5480_v54, %v1132_v34  ;;  %v1255_v27 = vmax.f32 %v1141_v42, 0.0 }
 0x200   :  { %v4475_v28 = vpop.f32.mrf.mxu1 }
 0x201   :  { %v1253_v22 = vmax.f32 %v1133_v7, 0.0  ;;  %v1295_v52 = vpack.c.bf16 %v1255_v27, %v1254_v43  ;;  %v1154_v17 = vadd.f32 %v4475_v28, %v5480_v54 }
 0x202   :  { %v1145_v13 = vpop.f32.mrf.mxu1 }
 0x203   :  { %v1294_v59 = vpack.c.bf16 %v1253_v22, %v1252_v19  ;;  %v1146_v26 = vadd.f32 %v5480_v54, %v1145_v13  ;;  %v1258_v7 = vmax.f32 %v1154_v17, 0.0 }
 0x204   :  { %v4476_v5 = vpop.f32.mrf.mxu1 }
 0x205   :  { %v1157_v29 = vadd.f32 %v4476_v5, %v5480_v54  ;;  %4541 = vmatprep.mubr.msk.bf16.mxu0 %vm302_vm0, %v1294_v59  ;;  %v1256_v56 = vmax.f32 %v1146_v26, 0.0 }
 0x206   :  { %v1148_v3 = vpop.f32.mrf.mxu1  ;;  %4542 = vmatmul.mubr.msk.bf16.gmra.mxu0 %vm302_vm0, %v1295_v52 }
 0x207   :  { %v1149_v9 = vadd.f32 %v5480_v54, %v1148_v3  ;;  %v1259_v57 = vmax.f32 %v1157_v29, 0.0 }
 0x208   :  { %v4479_v42 = vpop.f32.mrf.mxu1 }
 0x209   :  { %v1257_v34 = vmax.f32 %v1149_v9, 0.0  ;;  %v1297_v22 = vpack.c.bf16 %v1259_v57, %v1258_v7  ;;  %v1170_v28 = vadd.f32 %v4479_v42, %v5480_v54 }
 0x20a   :  { %v1161_v27 = vpop.f32.mrf.mxu1 }
 0x20b   :  { %v1296_v19 = vpack.c.bf16 %v1257_v34, %v1256_v56  ;;  %v1162_v13 = vadd.f32 %v5480_v54, %v1161_v27  ;;  %v1262_v9 = vmax.f32 %v1170_v28, 0.0 }
 0x20c   :  { %v4480_v43 = vpop.f32.mrf.mxu1 }
 0x20d   :  { %v1173_v59 = vadd.f32 %v4480_v43, %v5480_v54  ;;  %4545 = vmatprep.mubr.msk.bf16.mxu0 %vm302_vm0, %v1296_v19  ;;  %v1260_v17 = vmax.f32 %v1162_v13, 0.0 }
 0x20e   :  { %v1164_v52 = vpop.f32.mrf.mxu1  ;;  %4546 = vmatmul.mubr.msk.bf16.gmra.mxu0 %vm302_vm0, %v1297_v22 }
 0x20f   :  { %v1165_v5 = vadd.f32 %v5480_v54, %v1164_v52  ;;  %v1263_v26 = vmax.f32 %v1173_v59, 0.0 }
 0x210   :  { %v4483_v29 = vpop.f32.mrf.mxu1 }
 0x211   :  { %v1261_v3 = vmax.f32 %v1165_v5, 0.0  ;;  %v1299_v34 = vpack.c.bf16 %v1263_v26, %v1262_v9  ;;  %v1186_v42 = vadd.f32 %v4483_v29, %v5480_v54 }
 0x212   :  { %v1177_v57 = vpop.f32.mrf.mxu1 }
 0x213   :  { %v1298_v56 = vpack.c.bf16 %v1261_v3, %v1260_v17  ;;  %v1178_v27 = vadd.f32 %v5480_v54, %v1177_v57  ;;  %v1266_v5 = vmax.f32 %v1186_v42, 0.0 }
 0x214   :  { %v4484_v7 = vpop.f32.mrf.mxu1 }
 0x215   :  { %v1189_v19 = vadd.f32 %v4484_v7, %v5480_v54  ;;  %4549 = vmatprep.mubr.msk.bf16.mxu0 %vm302_vm0, %v1298_v56  ;;  %v1264_v28 = vmax.f32 %v1178_v27, 0.0 }
 0x216   :  { %v1180_v22 = vpop.f32.mrf.mxu1  ;;  %4550 = vmatmul.mubr.msk.bf16.gmra.mxu0 %vm302_vm0, %v1299_v34 }
 0x217   :  { %v1181_v43 = vadd.f32 %v5480_v54, %v1180_v22  ;;  %v1267_v13 = vmax.f32 %v1189_v19, 0.0 }
 0x218   :  { %v4487_v59 = vpop.f32.mrf.mxu1 }
 0x219   :  { %v1265_v52 = vmax.f32 %v1181_v43, 0.0  ;;  %v1301_v3 = vpack.c.bf16 %v1267_v13, %v1266_v5  ;;  %v1202_v29 = vadd.f32 %v4487_v59, %v5480_v54 }
 0x21a   :  { %v1193_v26 = vpop.f32.mrf.mxu1 }
 0x21b   :  { %v1300_v17 = vpack.c.bf16 %v1265_v52, %v1264_v28  ;;  %v1194_v57 = vadd.f32 %v5480_v54, %v1193_v26  ;;  %v1270_v22 = vmax.f32 %v1202_v29, 0.0  ;;  %v4761_v28 = vld [vmem:[%s6726_s9 + $0x18] sm:$0xff]   ;;  %v4762_v26 = vld [vmem:[%s6726_s9 + $0x10] sm:$0xff]  }
 0x21c   :  { %v4488_v9 = vpop.f32.mrf.mxu1  ;;  %4633 = vmatprep.subr.bf16.mxu0 %v4761_v28 }
 0x21d   :  { %v1205_v56 = vadd.f32 %v4488_v9, %v5480_v54  ;;  %4553 = vmatprep.mubr.msk.bf16.mxu0 %vm302_vm0, %v1300_v17  ;;  %v1268_v19 = vmax.f32 %v1194_v57, 0.0  ;;  %4634 = vmatpush3.bf16.msra.mxu0 %v4761_v28 }
 0x21e   :  { %v1196_v34 = vpop.f32.mrf.mxu1  ;;  %4554 = vmatmul.mubr.msk.bf16.gmra.mxu0 %vm302_vm0, %v1301_v3  ;;  %4635 = vmatprep.subr.bf16.mxu0 %v4762_v26 }
 0x21f   :  { %v1197_v7 = vadd.f32 %v5480_v54, %v1196_v34  ;;  %v1271_v27 = vmax.f32 %v1205_v56, 0.0  ;;  %v5590_v54 = vld [vmem:[%s6727_s6] ss:$0 sm:$0xff]  ;;  %v6925_v56 = vmax.f32 %v4984_v44, 0.0  ;;  %v6926_v34 = vmax.f32 %v4987_v45, 0.0 }
 0x220   :  { %v4764_v44 = vld [vmem:[%s6726_s9] sm:$0xff]  }
 0x221   :  { %v1269_v42 = vmax.f32 %v1197_v7, 0.0  ;;  %v1303_v13 = vpack.c.bf16 %v1271_v27, %v1270_v22  ;;  %4636 = vmatpush3.bf16.msra.mxu0 %v4762_v26 }
 0x223   :  { %v1302_v43 = vpack.c.bf16 %v1269_v42, %v1268_v19  ;;  %v6927_v19 = vmax.f32 %v4992_v47, 0.0 }
 0x225   :  { %4557 = vmatprep.mubr.msk.bf16.mxu0 %vm302_vm0, %v1302_v43  ;;  %v4763_v43 = vld [vmem:[%s6726_s9 + $0x8] sm:$0xff]  }
 0x226   :  { %4558 = vmatmul.mubr.msk.bf16.gmra.mxu0 %vm302_vm0, %v1303_v13  ;;  %v6928_v13 = vmax.f32 %v4995_v49, 0.0  ;;  %4637 = vmatprep.subr.bf16.mxu0 %v4763_v43 }
 0x227   :  { %4638 = vmatpush3.bf16.msra.mxu0 %v4763_v43 }
 0x228   :  { %4639 = vmatprep.subr.bf16.mxu0 %v4764_v44 }
 0x22b   :  { %4640 = vmatpush3.bf16.msra.mxu0 %v4764_v44 }
 0x26e   :  { %v4499_v59 = vpop.f32.mrf.mxu0 }
 0x26f   :  { %v1482_v17 = vadd.f32 %v4499_v59, %v5590_v54 }
 0x270   :  { %v1473_v52 = vpop.f32.mrf.mxu0 }
 0x271   :  { %v1474_v5 = vadd.f32 %v5590_v54, %v1473_v52  ;;  %v5609_v42 = vadd.f32 %v1482_v17, %v6927_v19  ;;  %v6930_v19 = vmax.f32 %v5028_v2, 0.0 }
 0x272   :  { %v4500_v3 = vpop.f32.mrf.mxu0 }
 0x273   :  { %v1485_v9 = vadd.f32 %v4500_v3, %v5590_v54  ;;  %v5600_v29 = vadd.f32 %v1474_v5, %v6925_v56  ;;  %v6850_v26 = vmax.f32 %v5609_v42, 0.0 }
 0x274   :  { %v1476_v57 = vpop.f32.mrf.mxu0 }
 0x275   :  { %v5604_v7 = vadd.f32 %v1485_v9, %v6926_v34  ;;  %v1477_v27 = vadd.f32 %v5590_v54, %v1476_v57  ;;  %v6849_v47 = vmax.f32 %v5600_v29, 0.0  ;;  %v6929_v34 = vmax.f32 %v5025_v1, 0.0 }
 0x276   :  { %v4503_v22 = vpop.f32.mrf.mxu0  ;;  %v6932_v1 = vmax.f32 %v5038_v6, 0.0 }
 0x277   :  { %v5619_v45 = vadd.f32 %v1477_v27, %v6928_v13  ;;  %v6844_v28 = vmax.f32 %v5604_v7, 0.0  ;;  %v1498_v17 = vadd.f32 %v4503_v22, %v5590_v54  ;;  %v6931_v13 = vmax.f32 %v5034_v4, 0.0 }
 0x278   :  { %v1489_v59 = vpop.f32.mrf.mxu0 }
 0x279   :  { %v6815_v52 = vmax.f32 %v5619_v45, 0.0  ;;  %v1490_v5 = vadd.f32 %v5590_v54, %v1489_v59  ;;  %v1857_v57 = vpack.c.bf16 %v6844_v28, %v6850_v26  ;;  %v5648_v59 = vadd.f32 %v1498_v17, %v6931_v13 }
 0x27a   :  { %v4504_v3 = vpop.f32.mrf.mxu0  ;;  %v6933_v13 = vmax.f32 %v5062_v20, 0.0 }
 0x27b   :  { %v1856_v49 = vpack.c.bf16 %v6815_v52, %v6849_v47  ;;  %v1501_v9 = vadd.f32 %v4504_v3, %v5590_v54  ;;  %v5638_v27 = vadd.f32 %v1490_v5, %v6929_v34  ;;  %v6819_v4 = vmax.f32 %v5648_v59, 0.0 }
 0x27c   :  { %v1492_v56 = vpop.f32.mrf.mxu0 }
 0x27d   :  { %v5642_v22 = vadd.f32 %v1501_v9, %v6930_v19  ;;  %v1493_v43 = vadd.f32 %v5590_v54, %v1492_v56  ;;  %4569 = vmatprep.mubr.msk.bf16.mxu1 %vm302_vm0, %v1856_v49  ;;  %v6817_v34 = vmax.f32 %v5638_v27, 0.0 }
 0x27e   :  { %v4507_v3 = vpop.f32.mrf.mxu0  ;;  %4570 = vmatmul.mubr.msk.bf16.vlgmr.msra.gmra.mxu1 %vm302_vm0, %v1857_v57 }
 0x27f   :  { %v5653_v5 = vadd.f32 %v1493_v43, %v6932_v1  ;;  %v6818_v2 = vmax.f32 %v5642_v22, 0.0  ;;  %v1514_v17 = vadd.f32 %v4507_v3, %v5590_v54  ;;  %v6934_v3 = vmax.f32 %v5065_v21, 0.0 }
 0x280   :  { %v1505_v9 = vpop.f32.mrf.mxu0 }
 0x281   :  { %v6816_v56 = vmax.f32 %v5653_v5, 0.0  ;;  %v1506_v44 = vadd.f32 %v5590_v54, %v1505_v9  ;;  %v1859_v19 = vpack.c.bf16 %v6818_v2, %v6819_v4  ;;  %v6936_v2 = vmax.f32 %v5075_v25, 0.0 }
 0x282   :  { %v4508_v49 = vpop.f32.mrf.mxu0 }
 0x283   :  { %v1858_v6 = vpack.c.bf16 %v6816_v56, %v6817_v34  ;;  %v1517_v57 = vadd.f32 %v4508_v49, %v5590_v54  ;;  %v5672_v1 = vadd.f32 %v1506_v44, %v6933_v13  ;;  %v6935_v49 = vmax.f32 %v5071_v23, 0.0 }
 0x284   :  { %v1508_v43 = vpop.f32.mrf.mxu0 }
 0x285   :  { %v5676_v9 = vadd.f32 %v1517_v57, %v6934_v3  ;;  %v1509_v52 = vadd.f32 %v5590_v54, %v1508_v43  ;;  %4573 = vmatprep.mubr.msk.bf16.mxu1 %vm302_vm0, %v1858_v6  ;;  %v5682_v56 = vadd.f32 %v1514_v17, %v6935_v49  ;;  %v6821_v57 = vmax.f32 %v5672_v1, 0.0 }
 0x286   :  { %v4511_v34 = vpop.f32.mrf.mxu0  ;;  %4574 = vmatmul.mubr.msk.bf16.gmra.mxu1 %vm302_vm0, %v1859_v19  ;;  %v6937_v3 = vmax.f32 %v5094_v37, 0.0 }
 0x287   :  { %v5687_v20 = vadd.f32 %v1509_v52, %v6936_v2  ;;  %v6822_v44 = vmax.f32 %v5676_v9, 0.0  ;;  %v6823_v23 = vmax.f32 %v5682_v56, 0.0  ;;  %v1530_v17 = vadd.f32 %v4511_v34, %v5590_v54 }
 0x288   :  { %v1521_v21 = vpop.f32.mrf.mxu0  ;;  %v6938_v34 = vmax.f32 %v5097_v38, 0.0 }
 0x289   :  { %v6820_v43 = vmax.f32 %v5687_v20, 0.0  ;;  %v1522_v6 = vadd.f32 %v5590_v54, %v1521_v21  ;;  %v1861_v2 = vpack.c.bf16 %v6822_v44, %v6823_v23  ;;  %v6940_v44 = vmax.f32 %v5105_v41, 0.0 }
 0x28a   :  { %v4512_v13 = vpop.f32.mrf.mxu0 }
 0x28b   :  { %v1860_v25 = vpack.c.bf16 %v6820_v43, %v6821_v57  ;;  %v1533_v52 = vadd.f32 %v4512_v13, %v5590_v54  ;;  %v5706_v49 = vadd.f32 %v1522_v6, %v6937_v3  ;;  %v6939_v13 = vmax.f32 %v5101_v39, 0.0 }
 0x28c   :  { %v1524_v19 = vpop.f32.mrf.mxu0 }
 0x28d   :  { %v5710_v21 = vadd.f32 %v1533_v52, %v6938_v34  ;;  %v1525_v4 = vadd.f32 %v5590_v54, %v1524_v19  ;;  %4577 = vmatprep.mubr.msk.bf16.mxu1 %vm302_vm0, %v1860_v25  ;;  %v5716_v43 = vadd.f32 %v1530_v17, %v6939_v13  ;;  %v6825_v52 = vmax.f32 %v5706_v49, 0.0 }
 0x28e   :  { %v4515_v57 = vpop.f32.mrf.mxu0  ;;  %4578 = vmatmul.mubr.msk.bf16.gmra.mxu1 %vm302_vm0, %v1861_v2  ;;  %v6941_v34 = vmax.f32 %v5124_v8, 0.0 }
 0x28f   :  { %v5721_v37 = vadd.f32 %v1525_v4, %v6940_v44  ;;  %v6826_v6 = vmax.f32 %v5710_v21, 0.0  ;;  %v6827_v39 = vmax.f32 %v5716_v43, 0.0  ;;  %v1546_v17 = vadd.f32 %v4515_v57, %v5590_v54 }
 0x290   :  { %v1537_v38 = vpop.f32.mrf.mxu0  ;;  %v6942_v57 = vmax.f32 %v5127_v10, 0.0 }
 0x291   :  { %v6824_v19 = vmax.f32 %v5721_v37, 0.0  ;;  %v1538_v25 = vadd.f32 %v5590_v54, %v1537_v38  ;;  %v1863_v44 = vpack.c.bf16 %v6826_v6, %v6827_v39  ;;  %v6944_v6 = vmax.f32 %v5135_v18, 0.0 }
 0x292   :  { %v4516_v3 = vpop.f32.mrf.mxu0 }
 0x293   :  { %v1862_v41 = vpack.c.bf16 %v6824_v19, %v6825_v52  ;;  %v1549_v4 = vadd.f32 %v4516_v3, %v5590_v54  ;;  %v5740_v13 = vadd.f32 %v1538_v25, %v6941_v34  ;;  %v6943_v3 = vmax.f32 %v5131_v15, 0.0 }
 0x294   :  { %v1540_v2 = vpop.f32.mrf.mxu0 }
 0x295   :  { %v5744_v38 = vadd.f32 %v1549_v4, %v6942_v57  ;;  %v1541_v23 = vadd.f32 %v5590_v54, %v1540_v2  ;;  %4581 = vmatprep.mubr.msk.bf16.mxu1 %vm302_vm0, %v1862_v41  ;;  %v5750_v19 = vadd.f32 %v1546_v17, %v6943_v3  ;;  %v6829_v4 = vmax.f32 %v5740_v13, 0.0 }
 0x296   :  { %v4519_v52 = vpop.f32.mrf.mxu0  ;;  %4582 = vmatmul.mubr.msk.bf16.gmra.mxu1 %vm302_vm0, %v1863_v44  ;;  %v6945_v57 = vmax.f32 %v5154_v63, 0.0 }
 0x297   :  { %v5755_v8 = vadd.f32 %v1541_v23, %v6944_v6  ;;  %v6830_v25 = vmax.f32 %v5744_v38, 0.0  ;;  %v6831_v15 = vmax.f32 %v5750_v19, 0.0  ;;  %v1562_v17 = vadd.f32 %v4519_v52, %v5590_v54 }
 0x298   :  { %v1553_v10 = vpop.f32.mrf.mxu0  ;;  %v6946_v52 = vmax.f32 %v5157_v0, 0.0 }
 0x299   :  { %v6828_v2 = vmax.f32 %v5755_v8, 0.0  ;;  %v1554_v41 = vadd.f32 %v5590_v54, %v1553_v10  ;;  %v1865_v6 = vpack.c.bf16 %v6830_v25, %v6831_v15  ;;  %v6948_v25 = vmax.f32 %v5165_v32, 0.0 }
 0x29a   :  { %v4520_v34 = vpop.f32.mrf.mxu0 }
 0x29b   :  { %v1864_v18 = vpack.c.bf16 %v6828_v2, %v6829_v4  ;;  %v1565_v23 = vadd.f32 %v4520_v34, %v5590_v54  ;;  %v5774_v3 = vadd.f32 %v1554_v41, %v6945_v57  ;;  %v6947_v34 = vmax.f32 %v5161_v16, 0.0 }
 0x29c   :  { %v1556_v44 = vpop.f32.mrf.mxu0 }
 0x29d   :  { %v5778_v10 = vadd.f32 %v1565_v23, %v6946_v52  ;;  %v1557_v39 = vadd.f32 %v5590_v54, %v1556_v44  ;;  %4585 = vmatprep.mubr.msk.bf16.mxu1 %vm302_vm0, %v1864_v18  ;;  %v5784_v2 = vadd.f32 %v1562_v17, %v6947_v34  ;;  %v6833_v23 = vmax.f32 %v5774_v3, 0.0 }
 0x29e   :  { %v4523_v4 = vpop.f32.mrf.mxu0  ;;  %4586 = vmatmul.mubr.msk.bf16.gmra.mxu1 %vm302_vm0, %v1865_v6  ;;  %v6949_v52 = vmax.f32 %v5184_v53, 0.0 }
 0x29f   :  { %v5789_v63 = vadd.f32 %v1557_v39, %v6948_v25  ;;  %v6834_v41 = vmax.f32 %v5778_v10, 0.0  ;;  %v6835_v16 = vmax.f32 %v5784_v2, 0.0  ;;  %v1578_v17 = vadd.f32 %v4523_v4, %v5590_v54 }
 0x2a0   :  { %v1569_v0 = vpop.f32.mrf.mxu0  ;;  %v6950_v4 = vmax.f32 %v5187_v30, 0.0 }
 0x2a1   :  { %v6832_v44 = vmax.f32 %v5789_v63, 0.0  ;;  %v1570_v18 = vadd.f32 %v5590_v54, %v1569_v0  ;;  %v1867_v25 = vpack.c.bf16 %v6834_v41, %v6835_v16  ;;  %v6952_v41 = vmax.f32 %v5195_v35, 0.0 }
 0x2a2   :  { %v4524_v57 = vpop.f32.mrf.mxu0 }
 0x2a3   :  { %v1866_v32 = vpack.c.bf16 %v6832_v44, %v6833_v23  ;;  %v1581_v39 = vadd.f32 %v4524_v57, %v5590_v54  ;;  %v5808_v34 = vadd.f32 %v1570_v18, %v6949_v52  ;;  %v6951_v57 = vmax.f32 %v5191_v31, 0.0 }
 0x2a4   :  { %v1572_v6 = vpop.f32.mrf.mxu0 }
 0x2a5   :  { %v5812_v0 = vadd.f32 %v1581_v39, %v6950_v4  ;;  %v1573_v15 = vadd.f32 %v5590_v54, %v1572_v6  ;;  %4589 = vmatprep.mubr.msk.bf16.mxu1 %vm302_vm0, %v1866_v32  ;;  %v5818_v44 = vadd.f32 %v1578_v17, %v6951_v57  ;;  %v6837_v39 = vmax.f32 %v5808_v34, 0.0 }
 0x2a6   :  { %v4527_v23 = vpop.f32.mrf.mxu0  ;;  %4590 = vmatmul.mubr.msk.bf16.gmra.mxu1 %vm302_vm0, %v1867_v25  ;;  %v6953_v4 = vmax.f32 %v5222_v11, 0.0 }
 0x2a7   :  { %v5823_v53 = vadd.f32 %v1573_v15, %v6952_v41  ;;  %v6838_v18 = vmax.f32 %v5812_v0, 0.0  ;;  %v6839_v31 = vmax.f32 %v5818_v44, 0.0  ;;  %v1594_v17 = vadd.f32 %v4527_v23, %v5590_v54 }
 0x2a8   :  { %v1585_v30 = vpop.f32.mrf.mxu0  ;;  %v6954_v23 = vmax.f32 %v5225_v48, 0.0 }
 0x2a9   :  { %v6836_v6 = vmax.f32 %v5823_v53, 0.0  ;;  %v1586_v32 = vadd.f32 %v5590_v54, %v1585_v30  ;;  %v1869_v41 = vpack.c.bf16 %v6838_v18, %v6839_v31  ;;  %v6956_v18 = vmax.f32 %v5234_v24, 0.0 }
 0x2aa   :  { %v4528_v52 = vpop.f32.mrf.mxu0 }
 0x2ab   :  { %v1868_v35 = vpack.c.bf16 %v6836_v6, %v6837_v39  ;;  %v1597_v15 = vadd.f32 %v4528_v52, %v5590_v54  ;;  %v5842_v57 = vadd.f32 %v1586_v32, %v6953_v4  ;;  %v6955_v52 = vmax.f32 %v5229_v50, 0.0 }
 0x2ac   :  { %v1588_v25 = vpop.f32.mrf.mxu0 }
 0x2ad   :  { %v5846_v30 = vadd.f32 %v1597_v15, %v6954_v23  ;;  %v1589_v16 = vadd.f32 %v5590_v54, %v1588_v25  ;;  %4593 = vmatprep.mubr.msk.bf16.mxu1 %vm302_vm0, %v1868_v35  ;;  %v5852_v6 = vadd.f32 %v1594_v17, %v6955_v52  ;;  %v6841_v15 = vmax.f32 %v5842_v57, 0.0 }
 0x2ae   :  { %v4531_v39 = vpop.f32.mrf.mxu0  ;;  %4594 = vmatmul.mubr.msk.bf16.gmra.mxu1 %vm302_vm0, %v1869_v41  ;;  %v6957_v23 = vmax.f32 %v5209_v60, 0.0 }
 0x2af   :  { %v5857_v11 = vadd.f32 %v1589_v16, %v6956_v18  ;;  %v6842_v32 = vmax.f32 %v5846_v30, 0.0  ;;  %v6843_v50 = vmax.f32 %v5852_v6, 0.0  ;;  %v1610_v17 = vadd.f32 %v4531_v39, %v5590_v54 }
 0x2b0   :  { %v1601_v48 = vpop.f32.mrf.mxu0  ;;  %v6958_v39 = vmax.f32 %v5267_v40, 0.0 }
 0x2b1   :  { %v6840_v25 = vmax.f32 %v5857_v11, 0.0  ;;  %v1602_v35 = vadd.f32 %v5590_v54, %v1601_v48  ;;  %v1871_v18 = vpack.c.bf16 %v6842_v32, %v6843_v50  ;;  %v6960_v32 = vmax.f32 %v5213_v33, 0.0 }
 0x2b2   :  { %v4532_v4 = vpop.f32.mrf.mxu0 }
 0x2b3   :  { %v1870_v24 = vpack.c.bf16 %v6840_v25, %v6841_v15  ;;  %v1613_v16 = vadd.f32 %v4532_v4, %v5590_v54  ;;  %v5876_v52 = vadd.f32 %v1602_v35, %v6957_v23  ;;  %v6959_v4 = vmax.f32 %v5259_v55, 0.0 }
 0x2b4   :  { %v1604_v41 = vpop.f32.mrf.mxu0 }
 0x2b5   :  { %v5880_v48 = vadd.f32 %v1613_v16, %v6958_v39  ;;  %v1605_v31 = vadd.f32 %v5590_v54, %v1604_v41  ;;  %4597 = vmatprep.mubr.msk.bf16.mxu1 %vm302_vm0, %v1870_v24  ;;  %v5886_v25 = vadd.f32 %v1610_v17, %v6959_v4  ;;  %v6846_v16 = vmax.f32 %v5876_v52, 0.0  ;;  %v6961_v39 = vld [vmem:[#allocation2_spill] sm:$0xff] }
 0x2b6   :  { %v4535_v15 = vpop.f32.mrf.mxu0  ;;  %4598 = vmatmul.mubr.msk.bf16.gmra.mxu1 %vm302_vm0, %v1871_v18  ;;  %v6962_v4 = vmax.f32 %v6961_v39, 0.0 }
 0x2b7   :  { %v5891_v60 = vadd.f32 %v1605_v31, %v6960_v32  ;;  %v6847_v35 = vmax.f32 %v5880_v48, 0.0  ;;  %v6848_v55 = vmax.f32 %v5886_v25, 0.0  ;;  %v1626_v17 = vadd.f32 %v4535_v15, %v5590_v54 }
 0x2b8   :  { %v1617_v40 = vpop.f32.mrf.mxu0  ;;  %v6963_v15 = vmax.f32 %v5300_v46, 0.0 }
 0x2b9   :  { %v6845_v41 = vmax.f32 %v5891_v60, 0.0  ;;  %v1618_v24 = vadd.f32 %v5590_v54, %v1617_v40  ;;  %v1873_v32 = vpack.c.bf16 %v6847_v35, %v6848_v55  ;;  %v6966_v35 = vld [vmem:[#allocation3_spill] sm:$0xff] }
 0x2ba   :  { %v4536_v23 = vpop.f32.mrf.mxu0  ;;  %v6967_v55 = vmax.f32 %v6966_v35, 0.0 }
 0x2bb   :  { %v1872_v33 = vpack.c.bf16 %v6845_v41, %v6846_v16  ;;  %v1629_v31 = vadd.f32 %v4536_v23, %v5590_v54  ;;  %v5910_v40 = vadd.f32 %v1618_v24, %v6962_v4  ;;  %v6965_v23 = vmax.f32 %v5296_v14, 0.0 }
 0x2bc   :  { %v1620_v18 = vpop.f32.mrf.mxu0 }
 0x2bd   :  { %v5914_v50 = vadd.f32 %v1629_v31, %v6963_v15  ;;  %v1621_v28 = vadd.f32 %v5590_v54, %v1620_v18  ;;  %4601 = vmatprep.mubr.msk.bf16.mxu1 %vm302_vm0, %v1872_v33  ;;  %v5920_v41 = vadd.f32 %v1626_v17, %v6965_v23  ;;  %v6852_v31 = vmax.f32 %v5910_v40, 0.0  ;;  %v6969_v15 = vld [vmem:[#allocation4_spill] sm:$0xff] }
 0x2be   :  { %v4539_v16 = vpop.f32.mrf.mxu0  ;;  %4602 = vmatmul.mubr.msk.bf16.gmra.mxu1 %vm302_vm0, %v1873_v32  ;;  %v6970_v23 = vmax.f32 %v6969_v15, 0.0 }
 0x2bf   :  { %6964 = vst [vmem:[#allocation2_spill] sm:$0xff] %v5914_v50  ;;  %v5925_v39 = vadd.f32 %v1621_v28, %v6967_v55  ;;  %v6853_v24 = vmax.f32 %v5914_v50, 0.0  ;;  %v6854_v14 = vmax.f32 %v5920_v41, 0.0  ;;  %v1642_v17 = vadd.f32 %v4539_v16, %v5590_v54 }
 0x2c0   :  { %v1633_v46 = vpop.f32.mrf.mxu0  ;;  %v6972_v16 = vmax.f32 %v5330_v51, 0.0 }
 0x2c1   :  { %6968 = vst [vmem:[#allocation3_spill] sm:$0xff] %v5925_v39  ;;  %v6851_v18 = vmax.f32 %v5925_v39, 0.0  ;;  %v1634_v33 = vadd.f32 %v5590_v54, %v1633_v46  ;;  %v1875_v55 = vpack.c.bf16 %v6853_v24, %v6854_v14  ;;  %v6976_v24 = vld [vmem:[#allocation5_spill] sm:$0xff] }
 0x2c2   :  { %v4540_v4 = vpop.f32.mrf.mxu0  ;;  %v6977_v14 = vmax.f32 %v6976_v24, 0.0 }
 0x2c3   :  { %v1874_v28 = vpack.c.bf16 %v6851_v18, %v6852_v31  ;;  %v1645_v35 = vadd.f32 %v4540_v4, %v5590_v54  ;;  %v5944_v46 = vadd.f32 %v1634_v33, %v6970_v23  ;;  %v6974_v4 = vmax.f32 %v5326_v58, 0.0 }
 0x2c4   :  { %v1636_v32 = vpop.f32.mrf.mxu0 }
 0x2c5   :  { %6971 = vst [vmem:[#allocation4_spill] sm:$0xff] %v5944_v46  ;;  %v5948_v47 = vadd.f32 %v1645_v35, %v6972_v16  ;;  %v1637_v26 = vadd.f32 %v5590_v54, %v1636_v32  ;;  %4605 = vmatprep.mubr.msk.bf16.mxu1 %vm302_vm0, %v1874_v28  ;;  %v5954_v18 = vadd.f32 %v1642_v17, %v6974_v4  ;;  %v6858_v35 = vmax.f32 %v5944_v46, 0.0  ;;  %v6979_v16 = vld [vmem:[#allocation6_spill] sm:$0xff] }
 0x2c6   :  { %v4543_v31 = vpop.f32.mrf.mxu0  ;;  %4606 = vmatmul.mubr.msk.bf16.gmra.mxu1 %vm302_vm0, %v1875_v55  ;;  %v6980_v4 = vmax.f32 %v6979_v16, 0.0 }
 0x2c7   :  { %6973 = vst [vmem:[#allocation22_spill] sm:$0xff] %v5948_v47  ;;  %6975 = vst [vmem:[#allocation23_spill] sm:$0xff] %v5954_v18  ;;  %v5959_v15 = vadd.f32 %v1637_v26, %v6977_v14  ;;  %v6859_v33 = vmax.f32 %v5948_v47, 0.0  ;;  %v6860_v58 = vmax.f32 %v5954_v18, 0.0  ;;  %v1658_v17 = vadd.f32 %v4543_v31, %v5590_v54 }
 0x2c8   :  { %v1649_v51 = vpop.f32.mrf.mxu0  ;;  %v6982_v31 = vmax.f32 %v5359_v61, 0.0 }
 0x2c9   :  { %6978 = vst [vmem:[#allocation5_spill] sm:$0xff] %v5959_v15  ;;  %v6857_v32 = vmax.f32 %v5959_v15, 0.0  ;;  %v1650_v28 = vadd.f32 %v5590_v54, %v1649_v51  ;;  %v1877_v14 = vpack.c.bf16 %v6859_v33, %v6860_v58  ;;  %v6986_v33 = vld [vmem:[#allocation7_spill] sm:$0xff] }
 0x2ca   :  { %v4544_v23 = vpop.f32.mrf.mxu0  ;;  %v6987_v58 = vmax.f32 %v6986_v33, 0.0 }
 0x2cb   :  { %v1876_v26 = vpack.c.bf16 %v6857_v32, %v6858_v35  ;;  %v1661_v24 = vadd.f32 %v4544_v23, %v5590_v54  ;;  %v5978_v51 = vadd.f32 %v1650_v28, %v6980_v4  ;;  %v6984_v23 = vmax.f32 %v5355_v12, 0.0 }
 0x2cc   :  { %v1652_v55 = vpop.f32.mrf.mxu0 }
 0x2cd   :  { %6981 = vst [vmem:[#allocation6_spill] sm:$0xff] %v5978_v51  ;;  %v5982_v39 = vadd.f32 %v1661_v24, %v6982_v31  ;;  %v1653_v46 = vadd.f32 %v5590_v54, %v1652_v55  ;;  %4609 = vmatprep.mubr.msk.bf16.mxu1 %vm302_vm0, %v1876_v26  ;;  %v5988_v32 = vadd.f32 %v1658_v17, %v6984_v23  ;;  %v6864_v24 = vmax.f32 %v5978_v51, 0.0  ;;  %v6989_v31 = vld [vmem:[#allocation8_spill] sm:$0xff] }
 0x2ce   :  { %v4547_v35 = vpop.f32.mrf.mxu0  ;;  %4610 = vmatmul.mubr.msk.bf16.gmra.mxu1 %vm302_vm0, %v1877_v14  ;;  %v6990_v23 = vmax.f32 %v6989_v31, 0.0 }
 0x2cf   :  { %6983 = vst [vmem:[#allocation24_spill] sm:$0xff] %v5982_v39  ;;  %6985 = vst [vmem:[#allocation25_spill] sm:$0xff] %v5988_v32  ;;  %v5993_v16 = vadd.f32 %v1653_v46, %v6987_v58  ;;  %v6866_v28 = vmax.f32 %v5982_v39, 0.0  ;;  %v6867_v12 = vmax.f32 %v5988_v32, 0.0  ;;  %v1674_v17 = vadd.f32 %v4547_v35, %v5590_v54 }
 0x2d0   :  { %v1665_v61 = vpop.f32.mrf.mxu0  ;;  %v6992_v35 = vmax.f32 %v5387_v36, 0.0 }
 0x2d1   :  { %6988 = vst [vmem:[#allocation7_spill] sm:$0xff] %v5993_v16  ;;  %v6863_v55 = vmax.f32 %v5993_v16, 0.0  ;;  %v1666_v26 = vadd.f32 %v5590_v54, %v1665_v61  ;;  %v1879_v58 = vpack.c.bf16 %v6866_v28, %v6867_v12  ;;  %v6997_v28 = vld [vmem:[#allocation9_spill] sm:$0xff] }
 0x2d2   :  { %v4548_v4 = vpop.f32.mrf.mxu0  ;;  %v6998_v12 = vmax.f32 %v6997_v28, 0.0 }
 0x2d3   :  { %v1878_v46 = vpack.c.bf16 %v6863_v55, %v6864_v24  ;;  %v1677_v33 = vadd.f32 %v4548_v4, %v5590_v54  ;;  %v6012_v61 = vadd.f32 %v1666_v26, %v6990_v23  ;;  %v6994_v55 = vld [vmem:[#allocation12_spill] sm:$0xff] }
 0x2d4   :  { %v1668_v14 = vpop.f32.mrf.mxu0  ;;  %v6995_v4 = vmax.f32 %v6994_v55, 0.0 }
 0x2d5   :  { %6991 = vst [vmem:[#allocation8_spill] sm:$0xff] %v6012_v61  ;;  %v6016_v15 = vadd.f32 %v1677_v33, %v6992_v35  ;;  %v1669_v51 = vadd.f32 %v5590_v54, %v1668_v14  ;;  %4613 = vmatprep.mubr.msk.bf16.mxu1 %vm302_vm0, %v1878_v46  ;;  %v6871_v33 = vmax.f32 %v6012_v61, 0.0  ;;  %v7000_v35 = vld [vmem:[#allocation10_spill] sm:$0xff] }
 0x2d6   :  { %v6022_v24 = vadd.f32 %v1674_v17, %v6995_v4  ;;  %v4551_v16 = vpop.f32.mrf.mxu0  ;;  %4614 = vmatmul.mubr.msk.bf16.gmra.mxu1 %vm302_vm0, %v1879_v58  ;;  %v7001_v4 = vmax.f32 %v7000_v35, 0.0 }
 0x2d7   :  { %6993 = vst [vmem:[#allocation26_spill] sm:$0xff] %v6016_v15  ;;  %v6027_v31 = vadd.f32 %v1669_v51, %v6998_v12  ;;  %v6873_v26 = vmax.f32 %v6016_v15, 0.0  ;;  %v1690_v17 = vadd.f32 %v4551_v16, %v5590_v54  ;;  %v7003_v16 = vmax.f32 %v5414_v62, 0.0  ;;  %v7014_v15 = vld [vmem:[#allocation19_spill] sm:$0xff] }
 0x2d8   :  { %6996 = vst [vmem:[#allocation12_spill] sm:$0xff] %v6022_v24  ;;  %v1681_v36 = vpop.f32.mrf.mxu0  ;;  %v6874_v55 = vmax.f32 %v6022_v24, 0.0 }
 0x2d9   :  { %6999 = vst [vmem:[#allocation9_spill] sm:$0xff] %v6027_v31  ;;  %v6870_v14 = vmax.f32 %v6027_v31, 0.0  ;;  %v1682_v46 = vadd.f32 %v5590_v54, %v1681_v36 }
 0x2da   :  { %v4552_v23 = vpop.f32.mrf.mxu0  ;;  %v1881_v12 = vpack.c.bf16 %v6873_v26, %v6874_v55  ;;  %v7008_v26 = vld [vmem:[#allocation11_spill] sm:$0xff] }
 0x2db   :  { %v1880_v51 = vpack.c.bf16 %v6870_v14, %v6871_v33  ;;  %v1693_v28 = vadd.f32 %v4552_v23, %v5590_v54  ;;  %v6046_v36 = vadd.f32 %v1682_v46, %v7001_v4  ;;  %v7005_v14 = vld [vmem:[#allocation15_spill] sm:$0xff]  ;;  %v7009_v55 = vmax.f32 %v7008_v26, 0.0 }
 0x2dc   :  { %v1684_v58 = vpop.f32.mrf.mxu0  ;;  %v7006_v23 = vmax.f32 %v7005_v14, 0.0 }
 0x2dd   :  { %7002 = vst [vmem:[#allocation10_spill] sm:$0xff] %v6046_v36  ;;  %v6050_v39 = vadd.f32 %v1693_v28, %v7003_v16  ;;  %v1685_v61 = vadd.f32 %v5590_v54, %v1684_v58  ;;  %4617 = vmatprep.mubr.msk.bf16.mxu1 %vm302_vm0, %v1880_v51  ;;  %v6879_v28 = vmax.f32 %v6046_v36, 0.0  ;;  %v7011_v16 = vld [vmem:[#allocation13_spill] sm:$0xff] }
 0x2de   :  { %v6056_v33 = vadd.f32 %v1690_v17, %v7006_v23  ;;  %v4555_v31 = vpop.f32.mrf.mxu0  ;;  %4618 = vmatmul.mubr.msk.bf16.gmra.mxu1 %vm302_vm0, %v1881_v12  ;;  %v7012_v23 = vmax.f32 %v7011_v16, 0.0 }
 0x2df   :  { %7004 = vst [vmem:[#allocation27_spill] sm:$0xff] %v6050_v39  ;;  %v6061_v35 = vadd.f32 %v1685_v61, %v7009_v55  ;;  %v6881_v46 = vmax.f32 %v6050_v39, 0.0  ;;  %v1706_v17 = vadd.f32 %v4555_v31, %v5590_v54  ;;  %v7015_v31 = vmax.f32 %v7014_v15, 0.0  ;;  %v7026_v39 = vld [vmem:[#allocation21_spill] sm:$0xff] }
 0x2e0   :  { %7007 = vst [vmem:[#allocation15_spill] sm:$0xff] %v6056_v33  ;;  %v1697_v62 = vpop.f32.mrf.mxu0  ;;  %v6882_v14 = vmax.f32 %v6056_v33, 0.0 }
 0x2e1   :  { %7010 = vst [vmem:[#allocation11_spill] sm:$0xff] %v6061_v35  ;;  %v6878_v58 = vmax.f32 %v6061_v35, 0.0  ;;  %v1698_v51 = vadd.f32 %v5590_v54, %v1697_v62 }
 0x2e2   :  { %v4556_v4 = vpop.f32.mrf.mxu0  ;;  %v1883_v55 = vpack.c.bf16 %v6881_v46, %v6882_v14  ;;  %v7020_v46 = vld [vmem:[#allocation14_spill] sm:$0xff] }
 0x2e3   :  { %v1882_v61 = vpack.c.bf16 %v6878_v58, %v6879_v28  ;;  %v1709_v26 = vadd.f32 %v4556_v4, %v5590_v54  ;;  %v6080_v62 = vadd.f32 %v1698_v51, %v7012_v23  ;;  %v7017_v58 = vld [vmem:[#allocation18_spill] sm:$0xff]  ;;  %v7021_v14 = vmax.f32 %v7020_v46, 0.0 }
 0x2e4   :  { %v1700_v12 = vpop.f32.mrf.mxu0  ;;  %v7018_v4 = vmax.f32 %v7017_v58, 0.0 }
 0x2e5   :  { %7013 = vst [vmem:[#allocation13_spill] sm:$0xff] %v6080_v62  ;;  %v6084_v24 = vadd.f32 %v1709_v26, %v7015_v31  ;;  %v1701_v36 = vadd.f32 %v5590_v54, %v1700_v12  ;;  %4621 = vmatprep.mubr.msk.bf16.mxu1 %vm302_vm0, %v1882_v61  ;;  %v6887_v26 = vmax.f32 %v6080_v62, 0.0  ;;  %v7023_v31 = vld [vmem:[#allocation16_spill] sm:$0xff] }
 0x2e6   :  { %v6090_v28 = vadd.f32 %v1706_v17, %v7018_v4  ;;  %v4559_v35 = vpop.f32.mrf.mxu0  ;;  %4622 = vmatmul.mubr.msk.bf16.gmra.mxu1 %vm302_vm0, %v1883_v55  ;;  %v7024_v4 = vmax.f32 %v7023_v31, 0.0 }
 0x2e7   :  { %7016 = vst [vmem:[#allocation19_spill] sm:$0xff] %v6084_v24  ;;  %v6095_v16 = vadd.f32 %v1701_v36, %v7021_v14  ;;  %v6888_v51 = vmax.f32 %v6084_v24, 0.0  ;;  %v1722_v17 = vadd.f32 %v4559_v35, %v5590_v54  ;;  %v7027_v35 = vmax.f32 %v7026_v39, 0.0 }
 0x2e8   :  { %7019 = vst [vmem:[#allocation18_spill] sm:$0xff] %v6090_v28  ;;  %v1713_v15 = vpop.f32.mrf.mxu0  ;;  %v6889_v58 = vmax.f32 %v6090_v28, 0.0 }
 0x2e9   :  { %7022 = vst [vmem:[#allocation14_spill] sm:$0xff] %v6095_v16  ;;  %v6886_v12 = vmax.f32 %v6095_v16, 0.0  ;;  %v1714_v61 = vadd.f32 %v5590_v54, %v1713_v15 }
 0x2ea   :  { %v4560_v23 = vpop.f32.mrf.mxu0  ;;  %v1885_v14 = vpack.c.bf16 %v6888_v51, %v6889_v58  ;;  %v7032_v51 = vld [vmem:[#allocation17_spill] sm:$0xff] }
 0x2eb   :  { %v1884_v36 = vpack.c.bf16 %v6886_v12, %v6887_v26  ;;  %v1725_v46 = vadd.f32 %v4560_v23, %v5590_v54  ;;  %v6114_v15 = vadd.f32 %v1714_v61, %v7024_v4  ;;  %v7029_v12 = vld [vmem:[#allocation20_spill] sm:$0xff]  ;;  %v7033_v58 = vmax.f32 %v7032_v51, 0.0 }
 0x2ec   :  { %v1716_v55 = vpop.f32.mrf.mxu0  ;;  %v7030_v23 = vmax.f32 %v7029_v12, 0.0 }
 0x2ed   :  { %7025 = vst [vmem:[#allocation16_spill] sm:$0xff] %v6114_v15  ;;  %v6118_v33 = vadd.f32 %v1725_v46, %v7027_v35  ;;  %v1717_v62 = vadd.f32 %v5590_v54, %v1716_v55  ;;  %4625 = vmatprep.mubr.msk.bf16.mxu1 %vm302_vm0, %v1884_v36  ;;  %v6893_v39 = vmax.f32 %v6114_v15, 0.0 }
 0x2ee   :  { %v6124_v26 = vadd.f32 %v1722_v17, %v7030_v23  ;;  %4626 = vmatmul.mubr.msk.bf16.gmra.mxu1 %vm302_vm0, %v1885_v14  ;;  %v6148_v17 = vld [vmem:[%s6728_s8] ss:$0 sm:$0xff] }
 0x2ef   :  { %7028 = vst [vmem:[#allocation21_spill] sm:$0xff] %v6118_v33  ;;  %v6129_v16 = vadd.f32 %v1717_v62, %v7033_v58  ;;  %v6892_v61 = vmax.f32 %v6118_v33, 0.0 }
 0x2f0   :  { %7031 = vst [vmem:[#allocation20_spill] sm:$0xff] %v6124_v26  ;;  %v6894_v54 = vmax.f32 %v6124_v26, 0.0 }
 0x2f1   :  { %7034 = vst [vmem:[#allocation17_spill] sm:$0xff] %v6129_v16  ;;  %v6891_v46 = vmax.f32 %v6129_v16, 0.0 }
 0x2f2   :  { %v1887_v51 = vpack.c.bf16 %v6892_v61, %v6894_v54 }
 0x2f3   :  { %v1886_v12 = vpack.c.bf16 %v6891_v46, %v6893_v39 }
 0x2f5   :  { %4629 = vmatprep.mubr.msk.bf16.mxu1 %vm302_vm0, %v1886_v12 }
 0x2f6   :  { %4630 = vmatmul.mubr.msk.bf16.gmra.mxu1 %vm302_vm0, %v1887_v51 }
 0x33e   :  { %v4571_v62 = vpop.f32.mrf.mxu1 }
 0x33f   :  { %v2066_v31 = vadd.f32 %v4571_v62, %v6148_v17 }
 0x340   :  { %v2057_v58 = vpop.f32.mrf.mxu1 }
 0x341   :  { %v2058_v14 = vadd.f32 %v6148_v17, %v2057_v58  ;;  %v2314_v61 = vmax.f32 %v2066_v31, 0.0 }
 0x342   :  { %v4572_v36 = vpop.f32.mrf.mxu1 }
 0x343   :  { %v2069_v55 = vadd.f32 %v4572_v36, %v6148_v17  ;;  %v2312_v51 = vmax.f32 %v2058_v14, 0.0 }
 0x344   :  { %v2060_v4 = vpop.f32.mrf.mxu1 }
 0x345   :  { %v2061_v35 = vadd.f32 %v6148_v17, %v2060_v4  ;;  %v2315_v23 = vmax.f32 %v2069_v55, 0.0 }
 0x346   :  { %v4575_v12 = vpop.f32.mrf.mxu1 }
 0x347   :  { %v2313_v46 = vmax.f32 %v2061_v35, 0.0  ;;  %v2377_v16 = vpack.c.bf16 %v2315_v23, %v2314_v61  ;;  %v2082_v62 = vadd.f32 %v4575_v12, %v6148_v17 }
 0x348   :  { %v2073_v39 = vpop.f32.mrf.mxu1 }
 0x349   :  { %v2376_v54 = vpack.c.bf16 %v2313_v46, %v2312_v51  ;;  %v2074_v15 = vadd.f32 %v6148_v17, %v2073_v39  ;;  %v2318_v46 = vmax.f32 %v2082_v62, 0.0 }
 0x34a   :  { %v4576_v33 = vpop.f32.mrf.mxu1 }
 0x34b   :  { %v2085_v58 = vadd.f32 %v4576_v33, %v6148_v17  ;;  %4641 = vmatprep.mubr.msk.bf16.mxu0 %vm302_vm0, %v2376_v54  ;;  %v2316_v31 = vmax.f32 %v2074_v15, 0.0 }
 0x34c   :  { %v2076_v36 = vpop.f32.mrf.mxu1  ;;  %4642 = vmatmul.mubr.msk.bf16.vlgmr.msra.gmra.mxu0 %vm302_vm0, %v2377_v16 }
 0x34d   :  { %v2077_v55 = vadd.f32 %v6148_v17, %v2076_v36  ;;  %v2319_v14 = vmax.f32 %v2085_v58, 0.0 }
 0x34e   :  { %v4579_v4 = vpop.f32.mrf.mxu1 }
 0x34f   :  { %v2317_v35 = vmax.f32 %v2077_v55, 0.0  ;;  %v2379_v51 = vpack.c.bf16 %v2319_v14, %v2318_v46  ;;  %v2098_v12 = vadd.f32 %v4579_v4, %v6148_v17 }
 0x350   :  { %v2089_v61 = vpop.f32.mrf.mxu1 }
 0x351   :  { %v2378_v23 = vpack.c.bf16 %v2317_v35, %v2316_v31  ;;  %v2090_v33 = vadd.f32 %v6148_v17, %v2089_v61  ;;  %v2322_v31 = vmax.f32 %v2098_v12, 0.0 }
 0x352   :  { %v4580_v39 = vpop.f32.mrf.mxu1 }
 0x353   :  { %v2101_v54 = vadd.f32 %v4580_v39, %v6148_v17  ;;  %4645 = vmatprep.mubr.msk.bf16.mxu0 %vm302_vm0, %v2378_v23  ;;  %v2320_v62 = vmax.f32 %v2090_v33, 0.0 }
 0x354   :  { %v2092_v16 = vpop.f32.mrf.mxu1  ;;  %4646 = vmatmul.mubr.msk.bf16.gmra.mxu0 %vm302_vm0, %v2379_v51 }
 0x355   :  { %v2093_v58 = vadd.f32 %v6148_v17, %v2092_v16  ;;  %v2323_v15 = vmax.f32 %v2101_v54, 0.0 }
 0x356   :  { %v4583_v36 = vpop.f32.mrf.mxu1 }
 0x357   :  { %v2321_v55 = vmax.f32 %v2093_v58, 0.0  ;;  %v2381_v46 = vpack.c.bf16 %v2323_v15, %v2322_v31  ;;  %v2114_v4 = vadd.f32 %v4583_v36, %v6148_v17 }
 0x358   :  { %v2105_v14 = vpop.f32.mrf.mxu1 }
 0x359   :  { %v2380_v35 = vpack.c.bf16 %v2321_v55, %v2320_v62  ;;  %v2106_v39 = vadd.f32 %v6148_v17, %v2105_v14  ;;  %v2326_v62 = vmax.f32 %v2114_v4, 0.0 }
 0x35a   :  { %v4584_v61 = vpop.f32.mrf.mxu1 }
 0x35b   :  { %v2117_v23 = vadd.f32 %v4584_v61, %v6148_v17  ;;  %4649 = vmatprep.mubr.msk.bf16.mxu0 %vm302_vm0, %v2380_v35  ;;  %v2324_v12 = vmax.f32 %v2106_v39, 0.0 }
 0x35c   :  { %v2108_v51 = vpop.f32.mrf.mxu1  ;;  %4650 = vmatmul.mubr.msk.bf16.gmra.mxu0 %vm302_vm0, %v2381_v46 }
 0x35d   :  { %v2109_v54 = vadd.f32 %v6148_v17, %v2108_v51  ;;  %v2327_v33 = vmax.f32 %v2117_v23, 0.0 }
 0x35e   :  { %v4587_v16 = vpop.f32.mrf.mxu1 }
 0x35f   :  { %v2325_v58 = vmax.f32 %v2109_v54, 0.0  ;;  %v2383_v31 = vpack.c.bf16 %v2327_v33, %v2326_v62  ;;  %v2130_v36 = vadd.f32 %v4587_v16, %v6148_v17 }
 0x360   :  { %v2121_v15 = vpop.f32.mrf.mxu1 }
 0x361   :  { %v2382_v55 = vpack.c.bf16 %v2325_v58, %v2324_v12  ;;  %v2122_v61 = vadd.f32 %v6148_v17, %v2121_v15  ;;  %v2330_v12 = vmax.f32 %v2130_v36, 0.0 }
 0x362   :  { %v4588_v14 = vpop.f32.mrf.mxu1 }
 0x363   :  { %v2133_v35 = vadd.f32 %v4588_v14, %v6148_v17  ;;  %4653 = vmatprep.mubr.msk.bf16.mxu0 %vm302_vm0, %v2382_v55  ;;  %v2328_v4 = vmax.f32 %v2122_v61, 0.0 }
 0x364   :  { %v2124_v46 = vpop.f32.mrf.mxu1  ;;  %4654 = vmatmul.mubr.msk.bf16.gmra.mxu0 %vm302_vm0, %v2383_v31 }
 0x365   :  { %v2125_v23 = vadd.f32 %v6148_v17, %v2124_v46  ;;  %v2331_v39 = vmax.f32 %v2133_v35, 0.0 }
 0x366   :  { %v4591_v51 = vpop.f32.mrf.mxu1 }
 0x367   :  { %v2329_v54 = vmax.f32 %v2125_v23, 0.0  ;;  %v2385_v62 = vpack.c.bf16 %v2331_v39, %v2330_v12  ;;  %v2146_v16 = vadd.f32 %v4591_v51, %v6148_v17 }
 0x368   :  { %v2137_v33 = vpop.f32.mrf.mxu1 }
 0x369   :  { %v2384_v58 = vpack.c.bf16 %v2329_v54, %v2328_v4  ;;  %v2138_v14 = vadd.f32 %v6148_v17, %v2137_v33  ;;  %v2334_v4 = vmax.f32 %v2146_v16, 0.0 }
 0x36a   :  { %v4592_v15 = vpop.f32.mrf.mxu1 }
 0x36b   :  { %v2149_v55 = vadd.f32 %v4592_v15, %v6148_v17  ;;  %4657 = vmatprep.mubr.msk.bf16.mxu0 %vm302_vm0, %v2384_v58  ;;  %v2332_v36 = vmax.f32 %v2138_v14, 0.0 }
 0x36c   :  { %v2140_v31 = vpop.f32.mrf.mxu1  ;;  %4658 = vmatmul.mubr.msk.bf16.gmra.mxu0 %vm302_vm0, %v2385_v62 }
 0x36d   :  { %v2141_v35 = vadd.f32 %v6148_v17, %v2140_v31  ;;  %v2335_v61 = vmax.f32 %v2149_v55, 0.0 }
 0x36e   :  { %v4595_v46 = vpop.f32.mrf.mxu1 }
 0x36f   :  { %v2333_v23 = vmax.f32 %v2141_v35, 0.0  ;;  %v2387_v12 = vpack.c.bf16 %v2335_v61, %v2334_v4  ;;  %v2162_v51 = vadd.f32 %v4595_v46, %v6148_v17 }
 0x370   :  { %v2153_v39 = vpop.f32.mrf.mxu1 }
 0x371   :  { %v2386_v54 = vpack.c.bf16 %v2333_v23, %v2332_v36  ;;  %v2154_v15 = vadd.f32 %v6148_v17, %v2153_v39  ;;  %v2338_v36 = vmax.f32 %v2162_v51, 0.0 }
 0x372   :  { %v4596_v33 = vpop.f32.mrf.mxu1 }
 0x373   :  { %v2165_v58 = vadd.f32 %v4596_v33, %v6148_v17  ;;  %4661 = vmatprep.mubr.msk.bf16.mxu0 %vm302_vm0, %v2386_v54  ;;  %v2336_v16 = vmax.f32 %v2154_v15, 0.0 }
 0x374   :  { %v2156_v62 = vpop.f32.mrf.mxu1  ;;  %4662 = vmatmul.mubr.msk.bf16.gmra.mxu0 %vm302_vm0, %v2387_v12 }
 0x375   :  { %v2157_v55 = vadd.f32 %v6148_v17, %v2156_v62  ;;  %v2339_v14 = vmax.f32 %v2165_v58, 0.0 }
 0x376   :  { %v4599_v31 = vpop.f32.mrf.mxu1 }
 0x377   :  { %v2337_v35 = vmax.f32 %v2157_v55, 0.0  ;;  %v2389_v4 = vpack.c.bf16 %v2339_v14, %v2338_v36  ;;  %v2178_v46 = vadd.f32 %v4599_v31, %v6148_v17 }
 0x378   :  { %v2169_v61 = vpop.f32.mrf.mxu1 }
 0x379   :  { %v2388_v23 = vpack.c.bf16 %v2337_v35, %v2336_v16  ;;  %v2170_v33 = vadd.f32 %v6148_v17, %v2169_v61  ;;  %v2342_v16 = vmax.f32 %v2178_v46, 0.0 }
 0x37a   :  { %v4600_v39 = vpop.f32.mrf.mxu1 }
 0x37b   :  { %v2181_v54 = vadd.f32 %v4600_v39, %v6148_v17  ;;  %4665 = vmatprep.mubr.msk.bf16.mxu0 %vm302_vm0, %v2388_v23  ;;  %v2340_v51 = vmax.f32 %v2170_v33, 0.0 }
 0x37c   :  { %v2172_v12 = vpop.f32.mrf.mxu1  ;;  %4666 = vmatmul.mubr.msk.bf16.gmra.mxu0 %vm302_vm0, %v2389_v4 }
 0x37d   :  { %v2173_v58 = vadd.f32 %v6148_v17, %v2172_v12  ;;  %v2343_v15 = vmax.f32 %v2181_v54, 0.0 }
 0x37e   :  { %v4603_v62 = vpop.f32.mrf.mxu1 }
 0x37f   :  { %v2341_v55 = vmax.f32 %v2173_v58, 0.0  ;;  %v2391_v36 = vpack.c.bf16 %v2343_v15, %v2342_v16  ;;  %v2194_v31 = vadd.f32 %v4603_v62, %v6148_v17 }
 0x380   :  { %v2185_v14 = vpop.f32.mrf.mxu1 }
 0x381   :  { %v2390_v35 = vpack.c.bf16 %v2341_v55, %v2340_v51  ;;  %v2186_v39 = vadd.f32 %v6148_v17, %v2185_v14  ;;  %v2346_v51 = vmax.f32 %v2194_v31, 0.0 }
 0x382   :  { %v4604_v61 = vpop.f32.mrf.mxu1 }
 0x383   :  { %v2197_v23 = vadd.f32 %v4604_v61, %v6148_v17  ;;  %4669 = vmatprep.mubr.msk.bf16.mxu0 %vm302_vm0, %v2390_v35  ;;  %v2344_v46 = vmax.f32 %v2186_v39, 0.0 }
 0x384   :  { %v2188_v4 = vpop.f32.mrf.mxu1  ;;  %4670 = vmatmul.mubr.msk.bf16.gmra.mxu0 %vm302_vm0, %v2391_v36 }
 0x385   :  { %v2189_v54 = vadd.f32 %v6148_v17, %v2188_v4  ;;  %v2347_v33 = vmax.f32 %v2197_v23, 0.0 }
 0x386   :  { %v4607_v12 = vpop.f32.mrf.mxu1 }
 0x387   :  { %v2345_v58 = vmax.f32 %v2189_v54, 0.0  ;;  %v2393_v16 = vpack.c.bf16 %v2347_v33, %v2346_v51  ;;  %v2210_v62 = vadd.f32 %v4607_v12, %v6148_v17 }
 0x388   :  { %v2201_v15 = vpop.f32.mrf.mxu1 }
 0x389   :  { %v2392_v55 = vpack.c.bf16 %v2345_v58, %v2344_v46  ;;  %v2202_v61 = vadd.f32 %v6148_v17, %v2201_v15  ;;  %v2350_v46 = vmax.f32 %v2210_v62, 0.0 }
 0x38a   :  { %v4608_v14 = vpop.f32.mrf.mxu1 }
 0x38b   :  { %v2213_v35 = vadd.f32 %v4608_v14, %v6148_v17  ;;  %4673 = vmatprep.mubr.msk.bf16.mxu0 %vm302_vm0, %v2392_v55  ;;  %v2348_v31 = vmax.f32 %v2202_v61, 0.0 }
 0x38c   :  { %v2204_v36 = vpop.f32.mrf.mxu1  ;;  %4674 = vmatmul.mubr.msk.bf16.gmra.mxu0 %vm302_vm0, %v2393_v16 }
 0x38d   :  { %v2205_v23 = vadd.f32 %v6148_v17, %v2204_v36  ;;  %v2351_v39 = vmax.f32 %v2213_v35, 0.0 }
 0x38e   :  { %v4611_v4 = vpop.f32.mrf.mxu1 }
 0x38f   :  { %v2349_v54 = vmax.f32 %v2205_v23, 0.0  ;;  %v2395_v51 = vpack.c.bf16 %v2351_v39, %v2350_v46  ;;  %v2226_v12 = vadd.f32 %v4611_v4, %v6148_v17 }
 0x390   :  { %v2217_v33 = vpop.f32.mrf.mxu1 }
 0x391   :  { %v2394_v58 = vpack.c.bf16 %v2349_v54, %v2348_v31  ;;  %v2218_v14 = vadd.f32 %v6148_v17, %v2217_v33  ;;  %v2354_v31 = vmax.f32 %v2226_v12, 0.0 }
 0x392   :  { %v4612_v15 = vpop.f32.mrf.mxu1 }
 0x393   :  { %v2229_v55 = vadd.f32 %v4612_v15, %v6148_v17  ;;  %4677 = vmatprep.mubr.msk.bf16.mxu0 %vm302_vm0, %v2394_v58  ;;  %v2352_v62 = vmax.f32 %v2218_v14, 0.0 }
 0x394   :  { %v2220_v16 = vpop.f32.mrf.mxu1  ;;  %4678 = vmatmul.mubr.msk.bf16.gmra.mxu0 %vm302_vm0, %v2395_v51 }
 0x395   :  { %v2221_v35 = vadd.f32 %v6148_v17, %v2220_v16  ;;  %v2355_v61 = vmax.f32 %v2229_v55, 0.0 }
 0x396   :  { %v4615_v36 = vpop.f32.mrf.mxu1 }
 0x397   :  { %v2353_v23 = vmax.f32 %v2221_v35, 0.0  ;;  %v2397_v46 = vpack.c.bf16 %v2355_v61, %v2354_v31  ;;  %v2242_v4 = vadd.f32 %v4615_v36, %v6148_v17 }
 0x398   :  { %v2233_v39 = vpop.f32.mrf.mxu1 }
 0x399   :  { %v2396_v54 = vpack.c.bf16 %v2353_v23, %v2352_v62  ;;  %v2234_v15 = vadd.f32 %v6148_v17, %v2233_v39  ;;  %v2358_v62 = vmax.f32 %v2242_v4, 0.0 }
 0x39a   :  { %v4616_v33 = vpop.f32.mrf.mxu1 }
 0x39b   :  { %v2245_v58 = vadd.f32 %v4616_v33, %v6148_v17  ;;  %4681 = vmatprep.mubr.msk.bf16.mxu0 %vm302_vm0, %v2396_v54  ;;  %v2356_v12 = vmax.f32 %v2234_v15, 0.0 }
 0x39c   :  { %v2236_v51 = vpop.f32.mrf.mxu1  ;;  %4682 = vmatmul.mubr.msk.bf16.gmra.mxu0 %vm302_vm0, %v2397_v46 }
 0x39d   :  { %v2237_v55 = vadd.f32 %v6148_v17, %v2236_v51  ;;  %v2359_v14 = vmax.f32 %v2245_v58, 0.0 }
 0x39e   :  { %v4619_v16 = vpop.f32.mrf.mxu1 }
 0x39f   :  { %v2357_v35 = vmax.f32 %v2237_v55, 0.0  ;;  %v2399_v31 = vpack.c.bf16 %v2359_v14, %v2358_v62  ;;  %v2258_v36 = vadd.f32 %v4619_v16, %v6148_v17 }
 0x3a0   :  { %v2249_v61 = vpop.f32.mrf.mxu1 }
 0x3a1   :  { %v2398_v23 = vpack.c.bf16 %v2357_v35, %v2356_v12  ;;  %v2250_v33 = vadd.f32 %v6148_v17, %v2249_v61  ;;  %v2362_v12 = vmax.f32 %v2258_v36, 0.0 }
 0x3a2   :  { %v4620_v39 = vpop.f32.mrf.mxu1 }
 0x3a3   :  { %v2261_v54 = vadd.f32 %v4620_v39, %v6148_v17  ;;  %4685 = vmatprep.mubr.msk.bf16.mxu0 %vm302_vm0, %v2398_v23  ;;  %v2360_v4 = vmax.f32 %v2250_v33, 0.0 }
 0x3a4   :  { %v2252_v46 = vpop.f32.mrf.mxu1  ;;  %4686 = vmatmul.mubr.msk.bf16.gmra.mxu0 %vm302_vm0, %v2399_v31 }
 0x3a5   :  { %v2253_v58 = vadd.f32 %v6148_v17, %v2252_v46  ;;  %v2363_v15 = vmax.f32 %v2261_v54, 0.0 }
 0x3a6   :  { %v4623_v51 = vpop.f32.mrf.mxu1 }
 0x3a7   :  { %v2361_v55 = vmax.f32 %v2253_v58, 0.0  ;;  %v2401_v62 = vpack.c.bf16 %v2363_v15, %v2362_v12  ;;  %v2274_v16 = vadd.f32 %v4623_v51, %v6148_v17 }
 0x3a8   :  { %v2265_v14 = vpop.f32.mrf.mxu1 }
 0x3a9   :  { %v2400_v35 = vpack.c.bf16 %v2361_v55, %v2360_v4  ;;  %v2266_v39 = vadd.f32 %v6148_v17, %v2265_v14  ;;  %v2366_v4 = vmax.f32 %v2274_v16, 0.0 }
 0x3aa   :  { %v4624_v61 = vpop.f32.mrf.mxu1 }
 0x3ab   :  { %v2277_v23 = vadd.f32 %v4624_v61, %v6148_v17  ;;  %4689 = vmatprep.mubr.msk.bf16.mxu0 %vm302_vm0, %v2400_v35  ;;  %v2364_v36 = vmax.f32 %v2266_v39, 0.0 }
 0x3ac   :  { %v2268_v31 = vpop.f32.mrf.mxu1  ;;  %4690 = vmatmul.mubr.msk.bf16.gmra.mxu0 %vm302_vm0, %v2401_v62 }
 0x3ad   :  { %v2269_v54 = vadd.f32 %v6148_v17, %v2268_v31  ;;  %v2367_v33 = vmax.f32 %v2277_v23, 0.0 }
 0x3ae   :  { %v4627_v46 = vpop.f32.mrf.mxu1 }
 0x3af   :  { %v2365_v58 = vmax.f32 %v2269_v54, 0.0  ;;  %v2403_v12 = vpack.c.bf16 %v2367_v33, %v2366_v4  ;;  %v2290_v51 = vadd.f32 %v4627_v46, %v6148_v17 }
 0x3b0   :  { %v2281_v15 = vpop.f32.mrf.mxu1 }
 0x3b1   :  { %v2402_v55 = vpack.c.bf16 %v2365_v58, %v2364_v36  ;;  %v2282_v61 = vadd.f32 %v6148_v17, %v2281_v15  ;;  %v2370_v36 = vmax.f32 %v2290_v51, 0.0 }
 0x3b2   :  { %v4628_v14 = vpop.f32.mrf.mxu1 }
 0x3b3   :  { %v2293_v35 = vadd.f32 %v4628_v14, %v6148_v17  ;;  %4693 = vmatprep.mubr.msk.bf16.mxu0 %vm302_vm0, %v2402_v55  ;;  %v2368_v16 = vmax.f32 %v2282_v61, 0.0 }
 0x3b4   :  { %v2284_v62 = vpop.f32.mrf.mxu1  ;;  %4694 = vmatmul.mubr.msk.bf16.gmra.mxu0 %vm302_vm0, %v2403_v12 }
 0x3b5   :  { %v2285_v23 = vadd.f32 %v6148_v17, %v2284_v62  ;;  %v2371_v39 = vmax.f32 %v2293_v35, 0.0 }
 0x3b6   :  { %v4631_v31 = vpop.f32.mrf.mxu1 }
 0x3b7   :  { %v2369_v54 = vmax.f32 %v2285_v23, 0.0  ;;  %v2405_v4 = vpack.c.bf16 %v2371_v39, %v2370_v36  ;;  %v2306_v46 = vadd.f32 %v4631_v31, %v6148_v17 }
 0x3b8   :  { %v2297_v33 = vpop.f32.mrf.mxu1 }
 0x3b9   :  { %v2404_v58 = vpack.c.bf16 %v2369_v54, %v2368_v16  ;;  %v2298_v14 = vadd.f32 %v6148_v17, %v2297_v33  ;;  %v2374_v23 = vmax.f32 %v2306_v46, 0.0  ;;  %v6249_v54 = vld [vmem:[%s6729_s10] ss:$0 sm:$0xff] }
 0x3ba   :  { %v4632_v15 = vpop.f32.mrf.mxu1 }
 0x3bb   :  { %v2309_v55 = vadd.f32 %v4632_v15, %v6148_v17  ;;  %4697 = vmatprep.mubr.msk.bf16.mxu0 %vm302_vm0, %v2404_v58  ;;  %v2372_v62 = vmax.f32 %v2298_v14, 0.0 }
 0x3bc   :  { %v2300_v12 = vpop.f32.mrf.mxu1  ;;  %4698 = vmatmul.mubr.msk.bf16.gmra.mxu0 %vm302_vm0, %v2405_v4 }
 0x3bd   :  { %v2301_v35 = vadd.f32 %v6148_v17, %v2300_v12  ;;  %v2375_v61 = vmax.f32 %v2309_v55, 0.0  ;;  %v7035_v17 = vmax.f32 %v5609_v42, 0.0  ;;  %v7036_v55 = vmax.f32 %v5600_v29, 0.0 }
 0x3bf   :  { %v2373_v51 = vmax.f32 %v2301_v35, 0.0  ;;  %v2407_v39 = vpack.c.bf16 %v2375_v61, %v2374_v23 }
 0x3c1   :  { %v2406_v16 = vpack.c.bf16 %v2373_v51, %v2372_v62  ;;  %v7037_v51 = vmax.f32 %v5604_v7, 0.0  ;;  %v7039_v7 = vmax.f32 %v5648_v59, 0.0 }
 0x3c3   :  { %4701 = vmatprep.mubr.msk.bf16.mxu0 %vm302_vm0, %v2406_v16 }
 0x3c4   :  { %4702 = vmatmul.mubr.msk.bf16.gmra.mxu0 %vm302_vm0, %v2407_v39 }
 0x40c   :  { %v4643_v31 = vpop.f32.mrf.mxu0 }
 0x40d   :  { %v2586_v36 = vadd.f32 %v4643_v31, %v6249_v54 }
 0x40e   :  { %v2577_v33 = vpop.f32.mrf.mxu0 }
 0x40f   :  { %v2834_v58 = vadd.f32 %v2586_v36, %v7035_v17  ;;  %v2578_v4 = vadd.f32 %v6249_v54, %v2577_v33  ;;  %v7038_v33 = vmax.f32 %v5619_v45, 0.0 }
 0x410   :  { %v4644_v15 = vpop.f32.mrf.mxu0 }
 0x411   :  { %v2898_v14 = vmax.f32 %v2834_v58, 0.0  ;;  %v2832_v46 = vadd.f32 %v2578_v4, %v7036_v55  ;;  %v2589_v12 = vadd.f32 %v4644_v15, %v6249_v54 }
 0x412   :  { %v2580_v35 = vpop.f32.mrf.mxu0 }
 0x413   :  { %v2974_v61 = vsel %vm302_vm0, %v2898_v14, -inf  ;;  %v2896_v62 = vmax.f32 %v2832_v46, 0.0  ;;  %v2835_v23 = vadd.f32 %v2589_v12, %v7037_v51  ;;  %v2581_v16 = vadd.f32 %v6249_v54, %v2580_v35 }
 0x414   :  { %v2975_v42 = vrot.slane %v2974_v61, 4  ;;  %v4647_v39 = vpop.f32.mrf.mxu0 }
 0x415   :  { %v2960_v31 = vsel %vm302_vm0, %v2896_v62, -inf  ;;  %v2899_v36 = vmax.f32 %v2835_v23, 0.0  ;;  %v2833_v29 = vadd.f32 %v2581_v16, %v7038_v33  ;;  %v2602_v17 = vadd.f32 %v4647_v39, %v6249_v54 }
 0x416   :  { %v2976_v58 = vmax.f32 %v2974_v61, %v2975_v42  ;;  %v2961_v4 = vrot.slane %v2960_v31, 4  ;;  %v2593_v15 = vpop.f32.mrf.mxu0  ;;  %v7040_v39 = vmax.f32 %v5638_v27, 0.0 }
 0x417   :  { %v2981_v14 = vsel %vm302_vm0, %v2899_v36, -inf  ;;  %v2897_v55 = vmax.f32 %v2833_v29, 0.0  ;;  %v2838_v46 = vadd.f32 %v2602_v17, %v7039_v7  ;;  %v2594_v12 = vadd.f32 %v6249_v54, %v2593_v15 }
 0x418   :  { %v2977_v35 = vrot.slane %v2976_v58, 2  ;;  %v2962_v51 = vmax.f32 %v2960_v31, %v2961_v4  ;;  %v2982_v62 = vrot.slane %v2981_v14, 4  ;;  %v4648_v23 = vpop.f32.mrf.mxu0  ;;  %v7041_v31 = vmax.f32 %v5642_v22, 0.0 }
 0x419   :  { %v2967_v45 = vsel %vm302_vm0, %v2897_v55, -inf  ;;  %v2902_v16 = vmax.f32 %v2838_v46, 0.0  ;;  %v2836_v61 = vadd.f32 %v2594_v12, %v7040_v39  ;;  %v2605_v42 = vadd.f32 %v4648_v23, %v6249_v54 }
 0x41a   :  { %v2978_v33 = vmax.f32 %v2976_v58, %v2977_v35  ;;  %v2963_v36 = vrot.slane %v2962_v51, 2  ;;  %v2983_v29 = vmax.f32 %v2981_v14, %v2982_v62  ;;  %v2968_v26 = vrot.slane %v2967_v45, 4  ;;  %v2596_v59 = vpop.f32.mrf.mxu0 }
 0x41b   :  { %v3002_v17 = vsel %vm302_vm0, %v2902_v16, -inf  ;;  %v2900_v15 = vmax.f32 %v2836_v61, 0.0  ;;  %v2839_v4 = vadd.f32 %v2605_v42, %v7041_v31  ;;  %v2597_v7 = vadd.f32 %v6249_v54, %v2596_v59 }
 0x41c   :  { %v2979_v55 = vrot.slane %v2978_v33, 1  ;;  %v2964_v46 = vmax.f32 %v2962_v51, %v2963_v36  ;;  %v2984_v24 = vrot.slane %v2983_v29, 2  ;;  %v2969_v27 = vmax.f32 %v2967_v45, %v2968_v26  ;;  %v4651_v12 = vpop.f32.mrf.mxu0 }
 0x41d   :  { %v3003_v39 = vrot.slane %v3002_v17, 4  ;;  %v2988_v58 = vsel %vm302_vm0, %v2900_v15, -inf  ;;  %v2903_v35 = vmax.f32 %v2839_v4, 0.0  ;;  %v7042_v14 = vmax.f32 %v5653_v5, 0.0 }
 0x41e   :  { %v2980_v23 = vmax.f32 %v2978_v33, %v2979_v55  ;;  %v2965_v16 = vrot.slane %v2964_v46, 1  ;;  %v2985_v61 = vmax.f32 %v2983_v29, %v2984_v24  ;;  %v2970_v28 = vrot.slane %v2969_v27, 2  ;;  %v2609_v22 = vpop.f32.mrf.mxu0 }
 0x41f   :  { %v2837_v62 = vadd.f32 %v2597_v7, %v7042_v14  ;;  %v3004_v42 = vmax.f32 %v3002_v17, %v3003_v39  ;;  %v2989_v59 = vrot.slane %v2988_v58, 4  ;;  %v3009_v51 = vsel %vm302_vm0, %v2903_v35, -inf }
 0x420   :  { %v4103_v26 = vpack.c.bf16 %v2980_v23, %v2980_v23  ;;  %v2966_v45 = vmax.f32 %v2964_v46, %v2965_v16  ;;  %v2986_v31 = vrot.slane %v2985_v61, 1  ;;  %v2971_v32 = vmax.f32 %v2969_v27, %v2970_v28  ;;  %v4652_v15 = vpop.f32.mrf.mxu0 }
 0x421   :  { %v2901_v36 = vmax.f32 %v2837_v62, 0.0  ;;  %v3005_v4 = vrot.slane %v3004_v42, 2  ;;  %v2990_v5 = vmax.f32 %v2988_v58, %v2989_v59  ;;  %v3010_v33 = vrot.slane %v3009_v51, 4 }
 0x422   :  { %v3666_v29 = vunpack.c.l.b16 %v4103_v26  ;;  %v4101_v7 = vpack.c.bf16 %v2966_v45, %v2966_v45  ;;  %v2987_v55 = vmax.f32 %v2985_v61, %v2986_v31  ;;  %v2972_v17 = vrot.slane %v2971_v32, 1  ;;  %v2612_v39 = vpop.f32.mrf.mxu0 }
 0x423   :  { %v2995_v24 = vsel %vm302_vm0, %v2901_v36, -inf  ;;  %v3006_v14 = vmax.f32 %v3004_v42, %v3005_v4  ;;  %v2991_v35 = vrot.slane %v2990_v5, 2  ;;  %v3011_v62 = vmax.f32 %v3009_v51, %v3010_v33 }
 0x424   :  { %v2996_v23 = vrot.slane %v2995_v24, 4  ;;  %v3664_v46 = vunpack.c.l.b16 %v4101_v7  ;;  %v4104_v16 = vpack.c.bf16 %v2987_v55, %v2987_v55  ;;  %v2973_v28 = vmax.f32 %v2971_v32, %v2972_v17  ;;  %v4655_v58 = vpop.f32.mrf.mxu0 }
 0x425   :  { %v2618_v27 = vadd.f32 %v4651_v12, %v6249_v54  ;;  %v3007_v59 = vrot.slane %v3006_v14, 1  ;;  %v2992_v47 = vmax.f32 %v2990_v5, %v2991_v35  ;;  %v3012_v18 = vrot.slane %v3011_v62, 2 }
 0x426   :  { %v2997_v36 = vmax.f32 %v2995_v24, %v2996_v23  ;;  %v3667_v26 = vunpack.c.l.b16 %v4104_v16  ;;  %v4102_v45 = vpack.c.bf16 %v2973_v28, %v2973_v28  ;;  %v7043_v61 = vmax.f32 %v5682_v56, 0.0  ;;  %v2625_v51 = vpop.f32.mrf.mxu0 }
 0x427   :  { %v2610_v42 = vadd.f32 %v6249_v54, %v2609_v22  ;;  %v3008_v4 = vmax.f32 %v3006_v14, %v3007_v59  ;;  %v2993_v33 = vrot.slane %v2992_v47, 1  ;;  %v3013_v7 = vmax.f32 %v3011_v62, %v3012_v18 }
 0x428   :  { %v2842_v31 = vadd.f32 %v2618_v27, %v7043_v61  ;;  %v2998_v32 = vrot.slane %v2997_v36, 2  ;;  %v3665_v55 = vunpack.c.l.b16 %v4102_v45  ;;  %v7044_v12 = vmax.f32 %v5672_v1, 0.0  ;;  %v4656_v24 = vpop.f32.mrf.mxu0 }
 0x429   :  { %v2621_v5 = vadd.f32 %v4652_v15, %v6249_v54  ;;  %v4107_v35 = vpack.c.bf16 %v3008_v4, %v3008_v4  ;;  %v2994_v23 = vmax.f32 %v2992_v47, %v2993_v33  ;;  %v3014_v16 = vrot.slane %v3013_v7, 1 }
 0x42a   :  { %v2906_v17 = vmax.f32 %v2842_v31, 0.0  ;;  %v2840_v50 = vadd.f32 %v2610_v42, %v7044_v12  ;;  %v2999_v56 = vmax.f32 %v2997_v36, %v2998_v32  ;;  %v3729_v22 = vsel %vm3728_vm1, %v3665_v55, %v3664_v46  ;;  %v6294_v27 = vpop.f32.mrf.mxu0 }
 0x42b   :  { %v7045_v62 = vmax.f32 %v5676_v9, 0.0  ;;  %v3731_v1 = vsel %vm3730_vm2, %v3666_v29, %v3729_v22  ;;  %v3670_v15 = vunpack.c.l.b16 %v4107_v35  ;;  %v4105_v59 = vpack.c.bf16 %v2994_v23, %v2994_v23 }
 0x42c   :  { %v3030_v14 = vsel %vm302_vm0, %v2906_v17, -inf  ;;  %v2904_v18 = vmax.f32 %v2840_v50, 0.0  ;;  %v3015_v45 = vmax.f32 %v3013_v7, %v3014_v16  ;;  %v3733_v47 = vsel %vm3732_vm3, %v3667_v26, %v3731_v1  ;;  %v6299_v31 = vpop.f32.mrf.mxu0 }
 0x42d   :  { %v2843_v28 = vadd.f32 %v2621_v5, %v7045_v62  ;;  %v3000_v36 = vrot.slane %v2999_v56, 1  ;;  %v3031_v61 = vrot.slane %v3030_v14, 4  ;;  %v3668_v50 = vunpack.c.l.b16 %v4105_v59 }
 0x42e   :  { %v3016_v46 = vsel %vm302_vm0, %v2904_v18, -inf  ;;  %v4108_v42 = vpack.c.bf16 %v3015_v45, %v3015_v45  ;;  %v2613_v29 = vadd.f32 %v6249_v54, %v2612_v39  ;;  %v2634_v7 = vadd.f32 %v4655_v58, %v6249_v54  ;;  %v6303_v55 = vpop.f32.mrf.mxu0 }
 0x42f   :  { %v3017_v9 = vrot.slane %v3016_v46, 4  ;;  %v2907_v4 = vmax.f32 %v2843_v28, 0.0  ;;  %v3001_v33 = vmax.f32 %v2999_v56, %v3000_v36  ;;  %v3032_v32 = vmax.f32 %v3030_v14, %v3031_v61 }
 0x430   :  { %v3735_v26 = vsel %vm3734_vm4, %v3668_v50, %v3733_v47  ;;  %v3671_v17 = vunpack.c.l.b16 %v4108_v42  ;;  %v7046_v22 = vmax.f32 %v5687_v20, 0.0  ;;  %v6309_v18 = vpop.f32.mrf.mxu0  ;;  %v7047_v39 = vmax.f32 %v5716_v43, 0.0 }
 0x431   :  { %v3018_v12 = vmax.f32 %v3016_v46, %v3017_v9  ;;  %v3037_v5 = vsel %vm302_vm0, %v2907_v4, -inf  ;;  %v4106_v35 = vpack.c.bf16 %v3001_v33, %v3001_v33  ;;  %v3033_v23 = vrot.slane %v3032_v32, 2 }
 0x432   :  { %v3038_v16 = vrot.slane %v3037_v5, 4  ;;  %v2841_v56 = vadd.f32 %v2613_v29, %v7046_v22  ;;  %v2846_v58 = vadd.f32 %v2634_v7, %v7047_v39  ;;  %v2626_v62 = vadd.f32 %v6249_v54, %v2625_v51  ;;  %v6315_v36 = vpop.f32.mrf.mxu0 }
 0x433   :  { %v3019_v14 = vrot.slane %v3018_v12, 2  ;;  %v2637_v28 = vadd.f32 %v4656_v24, %v6249_v54  ;;  %v3669_v1 = vunpack.c.l.b16 %v4106_v35  ;;  %v3034_v59 = vmax.f32 %v3032_v32, %v3033_v23 }
 0x434   :  { %v3039_v45 = vmax.f32 %v3037_v5, %v3038_v16  ;;  %v2905_v47 = vmax.f32 %v2841_v56, 0.0  ;;  %v2910_v46 = vmax.f32 %v2846_v58, 0.0  ;;  %v7048_v20 = vmax.f32 %v5706_v49, 0.0  ;;  %v6323_v33 = vpop.f32.mrf.mxu0 }
 0x435   :  { %v3020_v61 = vmax.f32 %v3018_v12, %v3019_v14  ;;  %v7049_v42 = vmax.f32 %v5710_v21, 0.0  ;;  %v3737_v43 = vsel %vm3736_vm5, %v3669_v1, %v3735_v26  ;;  %v3035_v4 = vrot.slane %v3034_v59, 1 }
 0x436   :  { %v2844_v50 = vadd.f32 %v2626_v62, %v7048_v20  ;;  %v3040_v51 = vrot.slane %v3039_v45, 2  ;;  %v3023_v24 = vsel %vm302_vm0, %v2905_v47, -inf  ;;  %v3739_v32 = vsel %vm3738_vm6, %v3670_v15, %v3737_v43  ;;  %v6328_v23 = vpop.f32.mrf.mxu0 }
 0x437   :  { %v2847_v9 = vadd.f32 %v2637_v28, %v7049_v42  ;;  %v3021_v29 = vrot.slane %v3020_v61, 1  ;;  %v3024_v7 = vrot.slane %v3023_v24, 4  ;;  %v3058_v12 = vsel %vm302_vm0, %v2910_v46, -inf }
 0x438   :  { %v3741_v49 = vsel %vm3740_vm7, %v3671_v17, %v3739_v32  ;;  %v3036_v5 = vmax.f32 %v3034_v59, %v3035_v4  ;;  %v3041_v35 = vmax.f32 %v3039_v45, %v3040_v51  ;;  %v3059_v21 = vrot.slane %v3058_v12, 4  ;;  %v6330_v15 = vpop.f32.mrf.mxu0 }
 0x439   :  { %v3791_v26 = vpack.c.b16 %v3741_v49, %v3741_v49  ;;  %v3022_v16 = vmax.f32 %v3020_v61, %v3021_v29  ;;  %v3025_v22 = vmax.f32 %v3023_v24, %v3024_v7  ;;  %v2908_v56 = vmax.f32 %v2844_v50, 0.0 }
 0x43a   :  { %v4111_v14 = vpack.c.bf16 %v3036_v5, %v3036_v5  ;;  %v3042_v39 = vrot.slane %v3041_v35, 1  ;;  %v3060_v58 = vmax.f32 %v3058_v12, %v3059_v21  ;;  %v2911_v62 = vmax.f32 %v2847_v9, 0.0  ;;  %v6339_v20 = vpop.f32.mrf.mxu0 }
 0x43b   :  { %3808 = vst.msk [vmem:[%s6730_s11] sm:$0xf] %vm3807_vm8, %v3791_v26  ;;  %v4109_v17 = vpack.c.bf16 %v3022_v16, %v3022_v16  ;;  %v3026_v28 = vrot.slane %v3025_v22, 2  ;;  %v3044_v1 = vsel %vm302_vm0, %v2908_v56, -inf  ;;  %v2629_v59 = vadd.f32 %v6249_v54, %v6294_v27 }
 0x43c   :  { %v3674_v45 = vunpack.c.l.b16 %v4111_v14  ;;  %v3043_v47 = vmax.f32 %v3041_v35, %v3042_v39  ;;  %v3061_v61 = vrot.slane %v3060_v58, 2  ;;  %v3045_v46 = vrot.slane %v3044_v1, 4  ;;  %v6344_v7 = vpop.f32.mrf.mxu0 }
 0x43d   :  { %v3672_v50 = vunpack.c.l.b16 %v4109_v17  ;;  %v3027_v42 = vmax.f32 %v3025_v22, %v3026_v28  ;;  %v3065_v9 = vsel %vm302_vm0, %v2911_v62, -inf  ;;  %v7050_v43 = vmax.f32 %v5721_v37, 0.0 }
 0x43e   :  { %v4112_v51 = vpack.c.bf16 %v3043_v47, %v3043_v47  ;;  %v3062_v24 = vmax.f32 %v3060_v58, %v3061_v61  ;;  %v3046_v32 = vmax.f32 %v3044_v1, %v3045_v46  ;;  %v3066_v29 = vrot.slane %v3065_v9, 4  ;;  %v6350_v37 = vpop.f32.mrf.mxu0 }
 0x43f   :  { %v2845_v4 = vadd.f32 %v2629_v59, %v7050_v43  ;;  %v3028_v27 = vrot.slane %v3027_v42, 1  ;;  %v2650_v49 = vadd.f32 %v6299_v31, %v6249_v54  ;;  %v2642_v5 = vadd.f32 %v6249_v54, %v6303_v55 }
 0x440   :  { %v3675_v35 = vunpack.c.l.b16 %v4112_v51  ;;  %v3063_v21 = vrot.slane %v3062_v24, 1  ;;  %v3047_v26 = vrot.slane %v3046_v32, 2  ;;  %v3067_v16 = vmax.f32 %v3065_v9, %v3066_v29  ;;  %v6357_v55 = vpop.f32.mrf.mxu0 }
 0x441   :  { %v2909_v12 = vmax.f32 %v2845_v4, 0.0  ;;  %v3029_v22 = vmax.f32 %v3027_v42, %v3028_v27  ;;  %v7051_v14 = vmax.f32 %v5750_v19, 0.0  ;;  %v7052_v58 = vmax.f32 %v5740_v13, 0.0 }
 0x442   :  { %v3064_v17 = vmax.f32 %v3062_v24, %v3063_v21  ;;  %v3048_v31 = vmax.f32 %v3046_v32, %v3047_v26  ;;  %v3068_v28 = vrot.slane %v3067_v16, 2  ;;  %v2653_v46 = vadd.f32 %v6309_v18, %v6249_v54  ;;  %v6361_v4 = vpop.f32.mrf.mxu0 }
 0x443   :  { %v3051_v56 = vsel %vm302_vm0, %v2909_v12, -inf  ;;  %v2850_v39 = vadd.f32 %v2650_v49, %v7051_v14  ;;  %v2848_v62 = vadd.f32 %v2642_v5, %v7052_v58  ;;  %v4110_v59 = vpack.c.bf16 %v3029_v22, %v3029_v22 }
 0x444   :  { %v3052_v1 = vrot.slane %v3051_v56, 4  ;;  %v4115_v42 = vpack.c.bf16 %v3064_v17, %v3064_v17  ;;  %v3049_v9 = vrot.slane %v3048_v31, 1  ;;  %v3069_v43 = vmax.f32 %v3067_v16, %v3068_v28  ;;  %v6367_v21 = vpop.f32.mrf.mxu0 }
 0x445   :  { %v2914_v47 = vmax.f32 %v2850_v39, 0.0  ;;  %v2912_v61 = vmax.f32 %v2848_v62, 0.0  ;;  %v3673_v13 = vunpack.c.l.b16 %v4110_v59  ;;  %v7053_v32 = vmax.f32 %v5744_v38, 0.0 }
 0x446   :  { %v3053_v19 = vmax.f32 %v3051_v56, %v3052_v1  ;;  %v3678_v27 = vunpack.c.l.b16 %v4115_v42  ;;  %v3050_v12 = vmax.f32 %v3048_v31, %v3049_v9  ;;  %v3070_v49 = vrot.slane %v3069_v43, 1 }
 0x447   :  { %v3086_v51 = vsel %vm302_vm0, %v2914_v47, -inf  ;;  %v3072_v24 = vsel %vm302_vm0, %v2912_v61, -inf  ;;  %v2851_v29 = vadd.f32 %v2653_v46, %v7053_v32  ;;  %v3742_v18 = vsel %vm3728_vm1, %v3673_v13, %v3672_v50  ;;  %v6373_v61 = vpop.f32.mrf.mxu0 }
 0x448   :  { %v3054_v5 = vrot.slane %v3053_v19, 2  ;;  %v3087_v26 = vrot.slane %v3086_v51, 4  ;;  %v3073_v16 = vrot.slane %v3072_v24, 4  ;;  %v3743_v56 = vsel %vm3730_vm2, %v3674_v45, %v3742_v18 }
 0x449   :  { %v2915_v22 = vmax.f32 %v2851_v29, 0.0  ;;  %v4113_v14 = vpack.c.bf16 %v3050_v12, %v3050_v12  ;;  %v3071_v39 = vmax.f32 %v3069_v43, %v3070_v49  ;;  %v3744_v62 = vsel %vm3732_vm3, %v3675_v35, %v3743_v56  ;;  %v6388_v18 = vpop.f32.mrf.mxu0 }
 0x44a   :  { %v3055_v58 = vmax.f32 %v3053_v19, %v3054_v5  ;;  %v3088_v38 = vmax.f32 %v3086_v51, %v3087_v26  ;;  %v3074_v17 = vmax.f32 %v3072_v24, %v3073_v16  ;;  %v2645_v45 = vadd.f32 %v6249_v54, %v6315_v36 }
 0x44b   :  { %v3093_v31 = vsel %vm302_vm0, %v2915_v22, -inf  ;;  %v3676_v28 = vunpack.c.l.b16 %v4113_v14  ;;  %v4116_v1 = vpack.c.bf16 %v3071_v39, %v3071_v39  ;;  %v2666_v42 = vadd.f32 %v6323_v33, %v6249_v54 }
 0x44c   :  { %v3056_v59 = vrot.slane %v3055_v58, 1  ;;  %v3094_v47 = vrot.slane %v3093_v31, 4  ;;  %v3089_v50 = vrot.slane %v3088_v38, 2  ;;  %v3075_v46 = vrot.slane %v3074_v17, 2 }
 0x44d   :  { %v3745_v35 = vsel %vm3734_vm4, %v3676_v28, %v3744_v62  ;;  %v3679_v9 = vunpack.c.l.b16 %v4116_v1  ;;  %v7054_v24 = vmax.f32 %v5755_v8, 0.0  ;;  %v7055_v29 = vmax.f32 %v5784_v2, 0.0 }
 0x44e   :  { %v3057_v43 = vmax.f32 %v3055_v58, %v3056_v59  ;;  %v3095_v19 = vmax.f32 %v3093_v31, %v3094_v47  ;;  %v3090_v13 = vmax.f32 %v3088_v38, %v3089_v50  ;;  %v3076_v51 = vmax.f32 %v3074_v17, %v3075_v46  ;;  %v6397_v47 = vpop.f32.mrf.mxu0 }
 0x44f   :  { %v2849_v32 = vadd.f32 %v2645_v45, %v7054_v24  ;;  %v2854_v12 = vadd.f32 %v2666_v42, %v7055_v29  ;;  %v2658_v36 = vadd.f32 %v6249_v54, %v6328_v23  ;;  %v2669_v33 = vadd.f32 %v6330_v15, %v6249_v54 }
 0x450   :  { %v4114_v49 = vpack.c.bf16 %v3057_v43, %v3057_v43  ;;  %v3096_v5 = vrot.slane %v3095_v19, 2  ;;  %v3091_v26 = vrot.slane %v3090_v13, 1  ;;  %v3077_v16 = vrot.slane %v3076_v51, 1 }
 0x451   :  { %v2913_v22 = vmax.f32 %v2849_v32, 0.0  ;;  %v2918_v56 = vmax.f32 %v2854_v12, 0.0  ;;  %v7056_v39 = vmax.f32 %v5774_v3, 0.0  ;;  %v7057_v58 = vmax.f32 %v5778_v10, 0.0 }
 0x452   :  { %v3677_v14 = vunpack.c.l.b16 %v4114_v49  ;;  %v3097_v8 = vmax.f32 %v3095_v19, %v3096_v5  ;;  %v3092_v38 = vmax.f32 %v3090_v13, %v3091_v26  ;;  %v3078_v17 = vmax.f32 %v3076_v51, %v3077_v16  ;;  %v6402_v5 = vpop.f32.mrf.mxu0 }
 0x453   :  { %v2852_v2 = vadd.f32 %v2658_v36, %v7056_v39  ;;  %v2855_v62 = vadd.f32 %v2669_v33, %v7057_v58  ;;  %v3079_v23 = vsel %vm302_vm0, %v2913_v22, -inf  ;;  %v3114_v15 = vsel %vm302_vm0, %v2918_v56, -inf }
 0x454   :  { %v3746_v31 = vsel %vm3736_vm5, %v3677_v14, %v3745_v35  ;;  %v3098_v28 = vrot.slane %v3097_v8, 1  ;;  %v3080_v1 = vrot.slane %v3079_v23, 4  ;;  %v3115_v59 = vrot.slane %v3114_v15, 4 }
 0x455   :  { %v3747_v50 = vsel %vm3738_vm6, %v3678_v27, %v3746_v31  ;;  %v4119_v3 = vpack.c.bf16 %v3092_v38, %v3092_v38  ;;  %v4117_v46 = vpack.c.bf16 %v3078_v17, %v3078_v17  ;;  %v2916_v45 = vmax.f32 %v2852_v2, 0.0 }
 0x456   :  { %v3748_v10 = vsel %vm3740_vm7, %v3679_v9, %v3747_v50  ;;  %v3099_v42 = vmax.f32 %v3097_v8, %v3098_v28  ;;  %v3081_v43 = vmax.f32 %v3079_v23, %v3080_v1  ;;  %v3116_v19 = vmax.f32 %v3114_v15, %v3115_v59 }
 0x457   :  { %v3792_v13 = vpack.c.b16 %v3748_v10, %v3748_v10  ;;  %v3682_v51 = vunpack.c.l.b16 %v4119_v3  ;;  %v3680_v24 = vunpack.c.l.b16 %v4117_v46  ;;  %v3100_v35 = vsel %vm302_vm0, %v2916_v45, -inf }
 0x458   :  { %v4120_v32 = vpack.c.bf16 %v3099_v42, %v3099_v42  ;;  %v3082_v29 = vrot.slane %v3081_v43, 2  ;;  %v3117_v12 = vrot.slane %v3116_v19, 2  ;;  %v3101_v49 = vrot.slane %v3100_v35, 4 }
 0x459   :  { %3809 = vst.msk [vmem:[%s6730_s11 + $0x4] sm:$0xf] %vm3807_vm8, %v3792_v13  ;;  %v2919_v27 = vmax.f32 %v2855_v62, 0.0  ;;  %v2661_v9 = vadd.f32 %v6249_v54, %v6339_v20  ;;  %v2682_v36 = vadd.f32 %v6344_v7, %v6249_v54  ;;  %v2674_v33 = vadd.f32 %v6249_v54, %v6350_v37  ;;  %v6421_v37 = vpop.f32.mrf.mxu0 }
 0x45a   :  { %v3683_v26 = vunpack.c.l.b16 %v4120_v32  ;;  %v3083_v16 = vmax.f32 %v3081_v43, %v3082_v29  ;;  %v3118_v22 = vmax.f32 %v3116_v19, %v3117_v12  ;;  %v3102_v56 = vmax.f32 %v3100_v35, %v3101_v49 }
 0x45b   :  { %v3121_v14 = vsel %vm302_vm0, %v2919_v27, -inf  ;;  %v7058_v8 = vmax.f32 %v5789_v63, 0.0  ;;  %v7059_v2 = vmax.f32 %v5818_v44, 0.0  ;;  %v7060_v20 = vmax.f32 %v5808_v34, 0.0  ;;  %v6430_v35 = vpop.f32.mrf.mxu0 }
 0x45c   :  { %v3084_v38 = vrot.slane %v3083_v16, 1  ;;  %v3119_v7 = vrot.slane %v3118_v22, 1  ;;  %v3103_v17 = vrot.slane %v3102_v56, 2  ;;  %v3122_v23 = vrot.slane %v3121_v14, 4 }
 0x45d   :  { %v2853_v39 = vadd.f32 %v2661_v9, %v7058_v8  ;;  %v2858_v58 = vadd.f32 %v2682_v36, %v7059_v2  ;;  %v2856_v62 = vadd.f32 %v2674_v33, %v7060_v20  ;;  %v2685_v1 = vadd.f32 %v6357_v55, %v6249_v54  ;;  %v6436_v2 = vpop.f32.mrf.mxu0 }
 0x45e   :  { %v3085_v63 = vmax.f32 %v3083_v16, %v3084_v38  ;;  %v3120_v59 = vmax.f32 %v3118_v22, %v3119_v7  ;;  %v3104_v50 = vmax.f32 %v3102_v56, %v3103_v17  ;;  %v3123_v44 = vmax.f32 %v3121_v14, %v3122_v23 }
 0x45f   :  { %v2917_v15 = vmax.f32 %v2853_v39, 0.0  ;;  %v2922_v31 = vmax.f32 %v2858_v58, 0.0  ;;  %v2920_v28 = vmax.f32 %v2856_v62, 0.0  ;;  %v7061_v45 = vmax.f32 %v5812_v0, 0.0 }
 0x460   :  { %v4118_v42 = vpack.c.bf16 %v3085_v63, %v3085_v63  ;;  %v4123_v43 = vpack.c.bf16 %v3120_v59, %v3120_v59  ;;  %v3105_v19 = vrot.slane %v3104_v50, 1  ;;  %v3124_v13 = vrot.slane %v3123_v44, 2 }
 0x461   :  { %v3107_v3 = vsel %vm302_vm0, %v2917_v15, -inf  ;;  %v3142_v34 = vsel %vm302_vm0, %v2922_v31, -inf  ;;  %v3128_v46 = vsel %vm302_vm0, %v2920_v28, -inf  ;;  %v2859_v10 = vadd.f32 %v2685_v1, %v7061_v45 }
 0x462   :  { %v3108_v55 = vrot.slane %v3107_v3, 4  ;;  %v3143_v32 = vrot.slane %v3142_v34, 4  ;;  %v3129_v29 = vrot.slane %v3128_v46, 4  ;;  %v3681_v49 = vunpack.c.l.b16 %v4118_v42 }
 0x463   :  { %v2923_v12 = vmax.f32 %v2859_v10, 0.0  ;;  %v6432_v27 = vunpack.c.l.b16 %v4123_v43  ;;  %v3106_v9 = vmax.f32 %v3104_v50, %v3105_v19  ;;  %v3125_v36 = vmax.f32 %v3123_v44, %v3124_v13  ;;  %v6445_v44 = vpop.f32.mrf.mxu0 }
 0x464   :  { %v3109_v33 = vmax.f32 %v3107_v3, %v3108_v55  ;;  %v3144_v16 = vmax.f32 %v3142_v34, %v3143_v32  ;;  %v3130_v22 = vmax.f32 %v3128_v46, %v3129_v29  ;;  %v3749_v56 = vsel %vm3728_vm1, %v3681_v49, %v3680_v24 }
 0x465   :  { %v3149_v0 = vsel %vm302_vm0, %v2923_v12, -inf  ;;  %v4121_v14 = vpack.c.bf16 %v3106_v9, %v3106_v9  ;;  %v3126_v8 = vrot.slane %v3125_v36, 1  ;;  %v3750_v58 = vsel %vm3730_vm2, %v3682_v51, %v3749_v56 }
 0x466   :  { %v3150_v39 = vrot.slane %v3149_v0, 4  ;;  %v3110_v20 = vrot.slane %v3109_v33, 2  ;;  %v3145_v62 = vrot.slane %v3144_v16, 2  ;;  %v3131_v38 = vrot.slane %v3130_v22, 2 }
 0x467   :  { %v3684_v7 = vunpack.c.l.b16 %v4121_v14  ;;  %v3751_v17 = vsel %vm3732_vm3, %v3683_v26, %v3750_v58  ;;  %v3127_v23 = vmax.f32 %v3125_v36, %v3126_v8  ;;  %v2677_v24 = vadd.f32 %v6249_v54, %v6361_v4  ;;  %v6457_v36 = vpop.f32.mrf.mxu0 }
 0x468   :  { %v3151_v15 = vmax.f32 %v3149_v0, %v3150_v39  ;;  %v3111_v31 = vmax.f32 %v3109_v33, %v3110_v20  ;;  %v3146_v28 = vmax.f32 %v3144_v16, %v3145_v62  ;;  %v3132_v1 = vmax.f32 %v3130_v22, %v3131_v38 }
 0x469   :  { %v3752_v63 = vsel %vm3734_vm4, %v3684_v7, %v3751_v17  ;;  %v4124_v59 = vpack.c.bf16 %v3127_v23, %v3127_v23  ;;  %v2698_v51 = vadd.f32 %v6367_v21, %v6249_v54  ;;  %v7062_v46 = vmax.f32 %v5823_v53, 0.0  ;;  %v6468_v17 = vpop.f32.mrf.mxu0 }
 0x46a   :  { %v3152_v50 = vrot.slane %v3151_v15, 2  ;;  %v3112_v3 = vrot.slane %v3111_v31, 1  ;;  %v3147_v34 = vrot.slane %v3146_v28, 1  ;;  %v3133_v26 = vrot.slane %v3132_v1, 1 }
 0x46b   :  { %v2857_v45 = vadd.f32 %v2677_v24, %v7062_v46  ;;  %v3687_v10 = vunpack.c.l.b16 %v4124_v59  ;;  %v7063_v43 = vmax.f32 %v5852_v6, 0.0  ;;  %v2690_v19 = vadd.f32 %v6249_v54, %v6373_v61 }
 0x46c   :  { %v3153_v42 = vmax.f32 %v3151_v15, %v3152_v50  ;;  %v3113_v13 = vmax.f32 %v3111_v31, %v3112_v3  ;;  %v3148_v55 = vmax.f32 %v3146_v28, %v3147_v34  ;;  %v3134_v32 = vmax.f32 %v3132_v1, %v3133_v26 }
 0x46d   :  { %v2862_v4 = vadd.f32 %v2698_v51, %v7063_v43  ;;  %v2921_v21 = vmax.f32 %v2857_v45, 0.0  ;;  %v7064_v49 = vmax.f32 %v5842_v57, 0.0  ;;  %v2701_v53 = vadd.f32 %v6388_v18, %v6249_v54 }
 0x46e   :  { %v3154_v29 = vrot.slane %v3153_v42, 1  ;;  %v4122_v33 = vpack.c.bf16 %v3113_v13, %v3113_v13  ;;  %v4127_v6 = vpack.c.bf16 %v3148_v55, %v3148_v55  ;;  %v4125_v16 = vpack.c.bf16 %v3134_v32, %v3134_v32 }
 0x46f   :  { %v2926_v12 = vmax.f32 %v2862_v4, 0.0  ;;  %v2860_v9 = vadd.f32 %v2690_v19, %v7064_v49  ;;  %v3135_v22 = vsel %vm302_vm0, %v2921_v21, -inf  ;;  %v7065_v38 = vmax.f32 %v5846_v30, 0.0 }
 0x470   :  { %v3155_v61 = vmax.f32 %v3153_v42, %v3154_v29  ;;  %v3136_v0 = vrot.slane %v3135_v22, 4  ;;  %v3685_v8 = vunpack.c.l.b16 %v4122_v33  ;;  %v6461_v39 = vunpack.c.l.b16 %v4127_v6  ;;  %v6481_v42 = vpop.f32.mrf.mxu0 }
 0x471   :  { %v3170_v56 = vsel %vm302_vm0, %v2926_v12, -inf  ;;  %v2924_v14 = vmax.f32 %v2860_v9, 0.0  ;;  %v6463_v57 = vunpack.c.l.b16 %v4125_v16  ;;  %v2863_v7 = vadd.f32 %v2701_v53, %v7065_v38 }
 0x472   :  { %v3171_v58 = vrot.slane %v3170_v56, 4  ;;  %v4128_v20 = vpack.c.bf16 %v3155_v61, %v3155_v61  ;;  %v3137_v18 = vmax.f32 %v3135_v22, %v3136_v0  ;;  %v3753_v23 = vsel %vm3736_vm5, %v3685_v8, %v3752_v63  ;;  %v6496_v16 = vpop.f32.mrf.mxu0 }
 0x473   :  { %v3156_v62 = vsel %vm302_vm0, %v2924_v14, -inf  ;;  %v2693_v28 = vadd.f32 %v6249_v54, %v6397_v47  ;;  %v3754_v1 = vsel %vm3738_vm6, %v6432_v27, %v3753_v23  ;;  %v2927_v50 = vmax.f32 %v2863_v7, 0.0 }
 0x474   :  { %v3172_v15 = vmax.f32 %v3170_v56, %v3171_v58  ;;  %v3157_v31 = vrot.slane %v3156_v62, 4  ;;  %v3691_v24 = vunpack.c.l.b16 %v4128_v20  ;;  %v3138_v59 = vrot.slane %v3137_v18, 2 }
 0x475   :  { %v3755_v51 = vsel %vm3740_vm7, %v3687_v10, %v3754_v1  ;;  %v7066_v34 = vmax.f32 %v5857_v11, 0.0  ;;  %v3177_v45 = vsel %vm302_vm0, %v2927_v50, -inf  ;;  %v2714_v47 = vadd.f32 %v6402_v5, %v6249_v54 }
 0x476   :  { %v3173_v3 = vrot.slane %v3172_v15, 2  ;;  %v3158_v30 = vmax.f32 %v3156_v62, %v3157_v31  ;;  %v3793_v46 = vpack.c.b16 %v3755_v51, %v3755_v51  ;;  %v3139_v63 = vmax.f32 %v3137_v18, %v3138_v59 }
 0x477   :  { %v2861_v26 = vadd.f32 %v2693_v28, %v7066_v34  ;;  %v3178_v4 = vrot.slane %v3177_v45, 4  ;;  %v7067_v10 = vmax.f32 %v5886_v25, 0.0  ;;  %v2706_v55 = vadd.f32 %v6249_v54, %v6421_v37 }
 0x478   :  { %v3174_v27 = vmax.f32 %v3172_v15, %v3173_v3  ;;  %v3159_v43 = vrot.slane %v3158_v30, 2  ;;  %3810 = vst.msk [vmem:[%s6730_s11 + $0x8] sm:$0xf] %vm3807_vm8, %v3793_v46  ;;  %v3140_v11 = vrot.slane %v3139_v63, 1  ;;  %v2717_v5 = vadd.f32 %v6430_v35, %v6249_v54  ;;  %v6502_v15 = vpop.f32.mrf.mxu0 }
 0x479   :  { %v2925_v19 = vmax.f32 %v2861_v26, 0.0  ;;  %v2866_v13 = vadd.f32 %v2714_v47, %v7067_v10  ;;  %v3179_v29 = vmax.f32 %v3177_v45, %v3178_v4  ;;  %v7068_v33 = vmax.f32 %v5876_v52, 0.0 }
 0x47a   :  { %v3175_v32 = vrot.slane %v3174_v27, 1  ;;  %v3160_v21 = vmax.f32 %v3158_v30, %v3159_v43  ;;  %v3141_v49 = vmax.f32 %v3139_v63, %v3140_v11  ;;  %v7069_v37 = vmax.f32 %v5880_v48, 0.0  ;;  %v6510_v43 = vpop.f32.mrf.mxu0 }
 0x47b   :  { %v3163_v12 = vsel %vm302_vm0, %v2925_v19, -inf  ;;  %v2930_v53 = vmax.f32 %v2866_v13, 0.0  ;;  %v2864_v6 = vadd.f32 %v2706_v55, %v7068_v33  ;;  %v3180_v61 = vrot.slane %v3179_v29, 2 }
 0x47c   :  { %v3164_v9 = vrot.slane %v3163_v12, 4  ;;  %v3176_v25 = vmax.f32 %v3174_v27, %v3175_v32  ;;  %v3161_v22 = vrot.slane %v3160_v21, 1  ;;  %v2867_v0 = vadd.f32 %v2717_v5, %v7069_v37  ;;  %v6523_v33 = vpop.f32.mrf.mxu0 }
 0x47d   :  { %v4126_v35 = vpack.c.bf16 %v3141_v49, %v3141_v49  ;;  %v3198_v14 = vsel %vm302_vm0, %v2930_v53, -inf  ;;  %v2928_v8 = vmax.f32 %v2864_v6, 0.0  ;;  %v3181_v18 = vmax.f32 %v3179_v29, %v3180_v61 }
 0x47e   :  { %v3165_v56 = vmax.f32 %v3163_v12, %v3164_v9  ;;  %v4131_v58 = vpack.c.bf16 %v3176_v25, %v3176_v25  ;;  %v3162_v20 = vmax.f32 %v3160_v21, %v3161_v22  ;;  %v3199_v62 = vrot.slane %v3198_v14, 4 }
 0x47f   :  { %v3689_v38 = vunpack.c.l.b16 %v4126_v35  ;;  %v3184_v7 = vsel %vm302_vm0, %v2928_v8, -inf  ;;  %v2931_v23 = vmax.f32 %v2867_v0, 0.0  ;;  %v3182_v48 = vrot.slane %v3181_v18, 1 }
 0x480   :  { %v3166_v52 = vrot.slane %v3165_v56, 2  ;;  %v3694_v31 = vunpack.c.l.b16 %v4131_v58  ;;  %v4129_v28 = vpack.c.bf16 %v3162_v20, %v3162_v20  ;;  %v3200_v1 = vmax.f32 %v3198_v14, %v3199_v62 }
 0x481   :  { %v3756_v59 = vsel %vm3728_vm1, %v3689_v38, %v6463_v57  ;;  %v3185_v51 = vrot.slane %v3184_v7, 4  ;;  %v3205_v3 = vsel %vm302_vm0, %v2931_v23, -inf  ;;  %v3183_v26 = vmax.f32 %v3181_v18, %v3182_v48  ;;  %v6533_v38 = vpop.f32.mrf.mxu0 }
 0x482   :  { %v3167_v50 = vmax.f32 %v3165_v56, %v3166_v52  ;;  %v3757_v30 = vsel %vm3730_vm2, %v6461_v39, %v3756_v59  ;;  %v3692_v34 = vunpack.c.l.b16 %v4129_v28  ;;  %v3201_v46 = vrot.slane %v3200_v1, 2 }
 0x483   :  { %v3758_v63 = vsel %vm3732_vm3, %v3691_v24, %v3757_v30  ;;  %v3186_v47 = vmax.f32 %v3184_v7, %v3185_v51  ;;  %v3206_v27 = vrot.slane %v3205_v3, 4  ;;  %v4132_v57 = vpack.c.bf16 %v3183_v26, %v3183_v26 }
 0x484   :  { %v3168_v45 = vrot.slane %v3167_v50, 1  ;;  %v3759_v4 = vsel %vm3734_vm4, %v3692_v34, %v3758_v63  ;;  %v3202_v19 = vmax.f32 %v3200_v1, %v3201_v46  ;;  %v2709_v11 = vadd.f32 %v6249_v54, %v6436_v2  ;;  %v6548_v46 = vpop.f32.mrf.mxu0 }
 0x485   :  { %v3187_v13 = vrot.slane %v3186_v47, 2  ;;  %v3207_v39 = vmax.f32 %v3205_v3, %v3206_v27  ;;  %v2730_v55 = vadd.f32 %v6445_v44, %v6249_v54  ;;  %v3695_v5 = vunpack.c.l.b16 %v4132_v57 }
 0x486   :  { %v3169_v10 = vmax.f32 %v3167_v50, %v3168_v45  ;;  %v3203_v24 = vrot.slane %v3202_v19, 1  ;;  %v7070_v32 = vmax.f32 %v5891_v60, 0.0  ;;  %v2722_v29 = vadd.f32 %v6249_v54, %v6457_v36 }
 0x487   :  { %v3188_v49 = vmax.f32 %v3186_v47, %v3187_v13  ;;  %v3208_v9 = vrot.slane %v3207_v39, 2  ;;  %v7071_v53 = vmax.f32 %v5920_v41, 0.0  ;;  %v7072_v44 = vmax.f32 %v5910_v40, 0.0  ;;  %v7073_v41 = vld [vmem:[#allocation2_spill] sm:$0xff] }
 0x488   :  { %v2865_v21 = vadd.f32 %v2709_v11, %v7070_v32  ;;  %v4130_v12 = vpack.c.bf16 %v3169_v10, %v3169_v10  ;;  %v3204_v6 = vmax.f32 %v3202_v19, %v3203_v24  ;;  %v2733_v60 = vadd.f32 %v6468_v17, %v6249_v54 }
 0x489   :  { %v2870_v2 = vadd.f32 %v2730_v55, %v7071_v53  ;;  %v2868_v22 = vadd.f32 %v2722_v29, %v7072_v44  ;;  %v3189_v37 = vrot.slane %v3188_v49, 1  ;;  %v3209_v0 = vmax.f32 %v3207_v39, %v3208_v9  ;;  %v7077_v55 = vld [vmem:[#allocation23_spill] sm:$0xff] }
 0x48a   :  { %v2929_v25 = vmax.f32 %v2865_v21, 0.0  ;;  %v3693_v61 = vunpack.c.l.b16 %v4130_v12  ;;  %v4135_v35 = vpack.c.bf16 %v3204_v6, %v3204_v6  ;;  %v7074_v8 = vmax.f32 %v7073_v41, 0.0  ;;  %v7079_v6 = vld [vmem:[#allocation4_spill] sm:$0xff] }
 0x48b   :  { %v2934_v36 = vmax.f32 %v2870_v2, 0.0  ;;  %v2932_v14 = vmax.f32 %v2868_v22, 0.0  ;;  %v3190_v18 = vmax.f32 %v3188_v49, %v3189_v37  ;;  %v3210_v62 = vrot.slane %v3209_v0, 1  ;;  %v4688_v49 = vpop.f32.mrf.mxu0  ;;  %v7081_v37 = vld [vmem:[#allocation22_spill] sm:$0xff] }
 0x48c   :  { %v3191_v56 = vsel %vm302_vm0, %v2929_v25, -inf  ;;  %v2871_v58 = vadd.f32 %v2733_v60, %v7074_v8  ;;  %v3760_v20 = vsel %vm3736_vm5, %v3693_v61, %v3759_v4  ;;  %v3698_v3 = vunpack.c.l.b16 %v4135_v35 }
 0x48d   :  { %v3192_v40 = vrot.slane %v3191_v56, 4  ;;  %v3761_v54 = vsel %vm3738_vm6, %v3694_v31, %v3760_v20  ;;  %v3226_v17 = vsel %vm302_vm0, %v2934_v36, -inf  ;;  %v3212_v52 = vsel %vm302_vm0, %v2932_v14, -inf  ;;  %v6544_v31 = vld [vmem:[%s6729_s10] ss:$0 sm:$0xff]  ;;  %v6573_v20 = vpop.f32.mrf.mxu0 }
 0x48e   :  { %v3762_v7 = vsel %vm3740_vm7, %v3695_v5, %v3761_v54  ;;  %v4133_v23 = vpack.c.bf16 %v3190_v18, %v3190_v18  ;;  %v6539_v28 = vmax.f32 %v3209_v0, %v3210_v62  ;;  %v3227_v59 = vrot.slane %v3226_v17, 4 }
 0x48f   :  { %v3193_v48 = vmax.f32 %v3191_v56, %v3192_v40  ;;  %v3794_v1 = vpack.c.b16 %v3762_v7, %v3762_v7  ;;  %v3213_v50 = vrot.slane %v3212_v52, 4  ;;  %v2935_v51 = vmax.f32 %v2871_v58, 0.0 }
 0x490   :  { %v3696_v30 = vunpack.c.l.b16 %v4133_v23  ;;  %v2725_v26 = vadd.f32 %v6544_v31, %v6481_v42  ;;  %v3228_v63 = vmax.f32 %v3226_v17, %v3227_v59  ;;  %v2746_v27 = vadd.f32 %v6544_v31, %v6496_v16  ;;  %v7075_v42 = vld [vmem:[#allocation3_spill] sm:$0xff] }
 0x491   :  { %v3194_v34 = vrot.slane %v3193_v48, 2  ;;  %3811 = vst.msk [vmem:[%s6730_s11 + $0xc] sm:$0xf] %vm3807_vm8, %v3794_v1  ;;  %v3214_v45 = vmax.f32 %v3212_v52, %v3213_v50  ;;  %v3233_v47 = vsel %vm302_vm0, %v2935_v51, -inf  ;;  %v4136_v4 = vpack.c.bf16 %v6539_v28, %v6539_v28 }
 0x492   :  { %v3234_v19 = vrot.slane %v3233_v47, 4  ;;  %v7076_v11 = vmax.f32 %v7075_v42, 0.0  ;;  %v3229_v13 = vrot.slane %v3228_v63, 2  ;;  %v7078_v5 = vmax.f32 %v7077_v55, 0.0 }
 0x493   :  { %v3195_v57 = vmax.f32 %v3193_v48, %v3194_v34  ;;  %v3215_v39 = vrot.slane %v3214_v45, 2  ;;  %v2738_v32 = vadd.f32 %v6544_v31, %v6502_v15  ;;  %v2749_v16 = vadd.f32 %v6544_v31, %v6510_v43 }
 0x494   :  { %v2869_v10 = vadd.f32 %v2725_v26, %v7076_v11  ;;  %v2874_v24 = vadd.f32 %v2746_v27, %v7078_v5  ;;  %v3235_v29 = vmax.f32 %v3233_v47, %v3234_v19  ;;  %v3230_v9 = vmax.f32 %v3228_v63, %v3229_v13  ;;  %v6578_v63 = vpop.f32.mrf.mxu0 }
 0x495   :  { %v3196_v21 = vrot.slane %v3195_v57, 1  ;;  %v3216_v53 = vmax.f32 %v3214_v45, %v3215_v39  ;;  %v7080_v25 = vmax.f32 %v7079_v6, 0.0  ;;  %v7082_v0 = vmax.f32 %v7081_v37, 0.0 }
 0x496   :  { %v2933_v12 = vmax.f32 %v2869_v10, 0.0  ;;  %v2938_v2 = vmax.f32 %v2874_v24, 0.0  ;;  %v3236_v60 = vrot.slane %v3235_v29, 2  ;;  %v3231_v36 = vrot.slane %v3230_v9, 1 }
 0x497   :  { %v2872_v44 = vadd.f32 %v2738_v32, %v7080_v25  ;;  %v3197_v22 = vmax.f32 %v3195_v57, %v3196_v21  ;;  %v2875_v15 = vadd.f32 %v2749_v16, %v7082_v0  ;;  %v3217_v35 = vrot.slane %v3216_v53, 1  ;;  %v2769_v32 = vpop.f32.mrf.mxu0 }
 0x498   :  { %v3219_v61 = vsel %vm302_vm0, %v2933_v12, -inf  ;;  %v3254_v14 = vsel %vm302_vm0, %v2938_v2, -inf  ;;  %v3237_v41 = vmax.f32 %v3235_v29, %v3236_v60  ;;  %v3232_v18 = vmax.f32 %v3230_v9, %v3231_v36  ;;  %v7085_v2 = vld [vmem:[#allocation25_spill] sm:$0xff] }
 0x499   :  { %v3220_v56 = vrot.slane %v3219_v61, 4  ;;  %v4134_v43 = vpack.c.bf16 %v3197_v22, %v3197_v22  ;;  %v3255_v8 = vrot.slane %v3254_v14, 4  ;;  %v2936_v58 = vmax.f32 %v2872_v44, 0.0 }
 0x49a   :  { %v3218_v62 = vmax.f32 %v3216_v53, %v3217_v35  ;;  %v2939_v54 = vmax.f32 %v2875_v15, 0.0  ;;  %v3238_v52 = vrot.slane %v3237_v41, 1  ;;  %v4139_v28 = vpack.c.bf16 %v3232_v18, %v3232_v18  ;;  %v7089_v35 = vld [vmem:[#allocation24_spill] sm:$0xff] }
 0x49b   :  { %v3221_v40 = vmax.f32 %v3219_v61, %v3220_v56  ;;  %v3697_v17 = vunpack.c.l.b16 %v4134_v43  ;;  %v3256_v7 = vmax.f32 %v3254_v14, %v3255_v8  ;;  %v3240_v23 = vsel %vm302_vm0, %v2936_v58, -inf  ;;  %v4692_v14 = vpop.f32.mrf.mxu0 }
 0x49c   :  { %v4137_v48 = vpack.c.bf16 %v3218_v62, %v3218_v62  ;;  %v3241_v59 = vrot.slane %v3240_v23, 4  ;;  %v3239_v51 = vmax.f32 %v3237_v41, %v3238_v52  ;;  %v3261_v26 = vsel %vm302_vm0, %v2939_v54, -inf }
 0x49d   :  { %v3222_v1 = vrot.slane %v3221_v40, 2  ;;  %v3763_v50 = vsel %vm3728_vm1, %v3697_v17, %v3696_v30  ;;  %v3257_v34 = vrot.slane %v3256_v7, 2  ;;  %v3699_v27 = vunpack.c.l.b16 %v4136_v4  ;;  %v7083_v4 = vld [vmem:[#allocation5_spill] sm:$0xff] }
 0x49e   :  { %v3764_v45 = vsel %vm3730_vm2, %v3698_v3, %v3763_v50  ;;  %v3702_v57 = vunpack.c.l.b16 %v4139_v28  ;;  %v3242_v42 = vmax.f32 %v3240_v23, %v3241_v59  ;;  %v3700_v11 = vunpack.c.l.b16 %v4137_v48 }
 0x49f   :  { %v3223_v47 = vmax.f32 %v3221_v40, %v3222_v1  ;;  %v3258_v19 = vmax.f32 %v3256_v7, %v3257_v34  ;;  %v3262_v13 = vrot.slane %v3261_v26, 4  ;;  %v2741_v39 = vadd.f32 %v6544_v31, %v6523_v33  ;;  %v6605_v1 = vpop.f32.mrf.mxu0 }
 0x4a0   :  { %v3765_v30 = vsel %vm3732_vm3, %v3699_v27, %v3764_v45  ;;  %v4140_v55 = vpack.c.bf16 %v3239_v51, %v3239_v51  ;;  %v3243_v5 = vrot.slane %v3242_v42, 2  ;;  %v2762_v24 = vadd.f32 %v6544_v31, %v6533_v38  ;;  %v7087_v38 = vld [vmem:[#allocation6_spill] sm:$0xff] }
 0x4a1   :  { %v3224_v10 = vrot.slane %v3223_v47, 1  ;;  %v3263_v21 = vmax.f32 %v3261_v26, %v3262_v13  ;;  %v7084_v29 = vmax.f32 %v7083_v4, 0.0  ;;  %v2754_v16 = vadd.f32 %v6544_v31, %v6548_v46 }
 0x4a2   :  { %v3259_v9 = vrot.slane %v3258_v19, 1  ;;  %v3244_v53 = vmax.f32 %v3242_v42, %v3243_v5  ;;  %v7086_v33 = vmax.f32 %v7085_v2, 0.0  ;;  %v2765_v25 = vadd.f32 %v6544_v31, %v4688_v49 }
 0x4a3   :  { %v3225_v3 = vmax.f32 %v3223_v47, %v3224_v10  ;;  %v2873_v12 = vadd.f32 %v2741_v39, %v7084_v29  ;;  %v3264_v22 = vrot.slane %v3263_v21, 2  ;;  %v7088_v61 = vmax.f32 %v7087_v38, 0.0 }
 0x4a4   :  { %v2878_v6 = vadd.f32 %v2762_v24, %v7086_v33  ;;  %v3766_v0 = vsel %vm3734_vm4, %v3700_v11, %v3765_v30  ;;  %v3245_v15 = vrot.slane %v3244_v53, 1  ;;  %v7090_v56 = vmax.f32 %v7089_v35, 0.0  ;;  %v7097_v35 = vld [vmem:[#allocation26_spill] sm:$0xff] }
 0x4a5   :  { %v4138_v44 = vpack.c.bf16 %v3225_v3, %v3225_v3  ;;  %v2937_v60 = vmax.f32 %v2873_v12, 0.0  ;;  %v2876_v37 = vadd.f32 %v2754_v16, %v7088_v61  ;;  %v3265_v41 = vmax.f32 %v3263_v21, %v3264_v22  ;;  %v7091_v3 = vld [vmem:[#allocation7_spill] sm:$0xff] }
 0x4a6   :  { %v2942_v36 = vmax.f32 %v2878_v6, 0.0  ;;  %v2879_v46 = vadd.f32 %v2765_v25, %v7090_v56  ;;  %v3703_v49 = vunpack.c.l.b16 %v4140_v55  ;;  %v6599_v18 = vmax.f32 %v3258_v19, %v3259_v9  ;;  %v4695_v55 = vpop.f32.mrf.mxu0  ;;  %v7093_v9 = vld [vmem:[#allocation12_spill] sm:$0xff] }
 0x4a7   :  { %v3701_v43 = vunpack.c.l.b16 %v4138_v44  ;;  %v3247_v8 = vsel %vm302_vm0, %v2937_v60, -inf  ;;  %v2940_v58 = vmax.f32 %v2876_v37, 0.0  ;;  %v3246_v17 = vmax.f32 %v3244_v53, %v3245_v15  ;;  %v7095_v25 = vld [vmem:[#allocation8_spill] sm:$0xff] }
 0x4a8   :  { %v3248_v62 = vrot.slane %v3247_v8, 4  ;;  %v3282_v40 = vsel %vm302_vm0, %v2942_v36, -inf  ;;  %v3266_v50 = vrot.slane %v3265_v41, 1  ;;  %v2943_v34 = vmax.f32 %v2879_v46, 0.0 }
 0x4a9   :  { %v3767_v54 = vsel %vm3736_vm5, %v3701_v43, %v3766_v0  ;;  %v3283_v52 = vrot.slane %v3282_v40, 4  ;;  %v3268_v7 = vsel %vm302_vm0, %v2940_v58, -inf  ;;  %v4143_v45 = vpack.c.bf16 %v6599_v18, %v6599_v18  ;;  %v2785_v0 = vpop.f32.mrf.mxu0 }
 0x4aa   :  { %v3768_v23 = vsel %vm3738_vm6, %v3702_v57, %v3767_v54  ;;  %v3249_v28 = vmax.f32 %v3247_v8, %v3248_v62  ;;  %v3269_v48 = vrot.slane %v3268_v7, 4  ;;  %v4141_v19 = vpack.c.bf16 %v3246_v17, %v3246_v17 }
 0x4ab   :  { %v3769_v59 = vsel %vm3740_vm7, %v3703_v49, %v3768_v23  ;;  %v3284_v51 = vmax.f32 %v3282_v40, %v3283_v52  ;;  %v3289_v11 = vsel %vm302_vm0, %v2943_v34, -inf  ;;  %v2757_v57 = vadd.f32 %v6544_v31, %v6573_v20 }
 0x4ac   :  { %v3795_v26 = vpack.c.b16 %v3769_v59, %v3769_v59  ;;  %v3250_v47 = vrot.slane %v3249_v28, 2  ;;  %v3270_v27 = vmax.f32 %v3268_v7, %v3269_v48  ;;  %v3290_v39 = vrot.slane %v3289_v11, 4  ;;  %v4696_v7 = vpop.f32.mrf.mxu0 }
 0x4ad   :  { %v3285_v42 = vrot.slane %v3284_v51, 2  ;;  %v2778_v30 = vadd.f32 %v6544_v31, %v6578_v63  ;;  %v3267_v5 = vmax.f32 %v3265_v41, %v3266_v50  ;;  %v7092_v21 = vmax.f32 %v7091_v3, 0.0 }
 0x4ae   :  { %3812 = vst.msk [vmem:[%s6730_s11 + $0x10] sm:$0xf] %vm3807_vm8, %v3795_v26  ;;  %v3251_v10 = vmax.f32 %v3249_v28, %v3250_v47  ;;  %v3271_v13 = vrot.slane %v3270_v27, 2  ;;  %v2770_v29 = vadd.f32 %v6544_v31, %v2769_v32  ;;  %v3291_v16 = vmax.f32 %v3289_v11, %v3290_v39 }
 0x4af   :  { %v3286_v24 = vmax.f32 %v3284_v51, %v3285_v42  ;;  %v2877_v4 = vadd.f32 %v2757_v57, %v7092_v21  ;;  %v7094_v53 = vmax.f32 %v7093_v9, 0.0  ;;  %v7096_v44 = vmax.f32 %v7095_v25, 0.0  ;;  %v7099_v21 = vld [vmem:[#allocation9_spill] sm:$0xff] }
 0x4b0   :  { %v3252_v20 = vrot.slane %v3251_v10, 1  ;;  %v3272_v12 = vmax.f32 %v3270_v27, %v3271_v13  ;;  %v2781_v63 = vadd.f32 %v6544_v31, %v4692_v14  ;;  %v3292_v61 = vrot.slane %v3291_v16, 2  ;;  %v2788_v13 = vpop.f32.mrf.mxu0 }
 0x4b1   :  { %v2882_v2 = vadd.f32 %v2778_v30, %v7094_v53  ;;  %v3287_v33 = vrot.slane %v3286_v24, 1  ;;  %v2941_v6 = vmax.f32 %v2877_v4, 0.0  ;;  %v2880_v22 = vadd.f32 %v2770_v29, %v7096_v44 }
 0x4b2   :  { %v3253_v60 = vmax.f32 %v3251_v10, %v3252_v20  ;;  %v3273_v38 = vrot.slane %v3272_v12, 1  ;;  %v4144_v15 = vpack.c.bf16 %v3267_v5, %v3267_v5  ;;  %v7098_v56 = vmax.f32 %v7097_v35, 0.0 }
 0x4b3   :  { %v2946_v37 = vmax.f32 %v2882_v2, 0.0  ;;  %v3275_v32 = vsel %vm302_vm0, %v2941_v6, -inf  ;;  %v2944_v36 = vmax.f32 %v2880_v22, 0.0  ;;  %v3293_v8 = vmax.f32 %v3291_v16, %v3292_v61  ;;  %v4699_v22 = vpop.f32.mrf.mxu0  ;;  %v7103_v61 = vld [vmem:[#allocation10_spill] sm:$0xff] }
 0x4b4   :  { %v2883_v46 = vadd.f32 %v2781_v63, %v7098_v56  ;;  %v4142_v43 = vpack.c.bf16 %v3253_v60, %v3253_v60  ;;  %v3274_v41 = vmax.f32 %v3272_v12, %v3273_v38  ;;  %v3276_v58 = vrot.slane %v3275_v32, 4 }
 0x4b5   :  { %v3704_v49 = vunpack.c.l.b16 %v4141_v19  ;;  %v3310_v18 = vsel %vm302_vm0, %v2946_v37, -inf  ;;  %v3296_v14 = vsel %vm302_vm0, %v2944_v36, -inf  ;;  %v3288_v54 = vmax.f32 %v3286_v24, %v3287_v33  ;;  %v7101_v33 = vld [vmem:[#allocation15_spill] sm:$0xff] }
 0x4b6   :  { %v2947_v62 = vmax.f32 %v2883_v46, 0.0  ;;  %v3705_v40 = vunpack.c.l.b16 %v4142_v43  ;;  %v4145_v17 = vpack.c.bf16 %v3274_v41, %v3274_v41  ;;  %v3277_v52 = vmax.f32 %v3275_v32, %v3276_v58 }
 0x4b7   :  { %v3294_v23 = vrot.slane %v3293_v8, 1  ;;  %v3311_v28 = vrot.slane %v3310_v18, 4  ;;  %v3297_v48 = vrot.slane %v3296_v14, 4  ;;  %v3706_v50 = vunpack.c.l.b16 %v4143_v45 }
 0x4b8   :  { %v3317_v59 = vsel %vm302_vm0, %v2947_v62, -inf  ;;  %v3707_v51 = vunpack.c.l.b16 %v4144_v15  ;;  %v3278_v34 = vrot.slane %v3277_v52, 2  ;;  %v3770_v26 = vsel %vm3728_vm1, %v3705_v40, %v3704_v49  ;;  %v2801_v62 = vpop.f32.mrf.mxu0 }
 0x4b9   :  { %v3312_v47 = vmax.f32 %v3310_v18, %v3311_v28  ;;  %v3298_v27 = vmax.f32 %v3296_v14, %v3297_v48  ;;  %v3318_v19 = vrot.slane %v3317_v59, 4  ;;  %v4147_v42 = vpack.c.bf16 %v3288_v54, %v3288_v54 }
 0x4ba   :  { %v3708_v11 = vunpack.c.l.b16 %v4145_v17  ;;  %v3279_v57 = vmax.f32 %v3277_v52, %v3278_v34  ;;  %v2773_v10 = vadd.f32 %v6544_v31, %v6605_v1  ;;  %v3295_v39 = vmax.f32 %v3293_v8, %v3294_v23 }
 0x4bb   :  { %v3313_v30 = vrot.slane %v3312_v47, 2  ;;  %v3299_v5 = vrot.slane %v3298_v27, 2  ;;  %v3319_v24 = vmax.f32 %v3317_v59, %v3318_v19  ;;  %v3771_v45 = vsel %vm3730_vm2, %v3706_v50, %v3770_v26  ;;  %v4700_v19 = vpop.f32.mrf.mxu0 }
 0x4bc   :  { %v3280_v3 = vrot.slane %v3279_v57, 1  ;;  %v7100_v4 = vmax.f32 %v7099_v21, 0.0  ;;  %v2794_v20 = vadd.f32 %v6544_v31, %v4695_v55  ;;  %v2786_v53 = vadd.f32 %v6544_v31, %v2785_v0  ;;  %v7105_v0 = vld [vmem:[#allocation27_spill] sm:$0xff] }
 0x4bd   :  { %v3314_v12 = vmax.f32 %v3312_v47, %v3313_v30  ;;  %v3300_v16 = vmax.f32 %v3298_v27, %v3299_v5  ;;  %v3320_v9 = vrot.slane %v3319_v24, 2  ;;  %v7102_v6 = vmax.f32 %v7101_v33, 0.0 }
 0x4be   :  { %v2881_v29 = vadd.f32 %v2773_v10, %v7100_v4  ;;  %v3281_v2 = vmax.f32 %v3279_v57, %v3280_v3  ;;  %v2797_v44 = vadd.f32 %v6544_v31, %v4696_v7  ;;  %v3772_v63 = vsel %vm3732_vm3, %v3707_v51, %v3771_v45  ;;  %v7107_v3 = vld [vmem:[#allocation11_spill] sm:$0xff] }
 0x4bf   :  { %v2886_v25 = vadd.f32 %v2794_v20, %v7102_v6  ;;  %v4148_v60 = vpack.c.bf16 %v3295_v39, %v3295_v39  ;;  %v3301_v38 = vrot.slane %v3300_v16, 1  ;;  %v7104_v37 = vmax.f32 %v7103_v61, 0.0 }
 0x4c0   :  { %v2945_v1 = vmax.f32 %v2881_v29, 0.0  ;;  %v4146_v15 = vpack.c.bf16 %v3281_v2, %v3281_v2  ;;  %v7106_v35 = vmax.f32 %v7105_v0, 0.0  ;;  %v3710_v46 = vunpack.c.l.b16 %v4147_v42 }
 0x4c1   :  { %v2884_v55 = vadd.f32 %v2786_v53, %v7104_v37  ;;  %v2950_v36 = vmax.f32 %v2886_v25, 0.0  ;;  %v3315_v43 = vrot.slane %v3314_v12, 1  ;;  %v3321_v41 = vmax.f32 %v3319_v24, %v3320_v9  ;;  %v7109_v9 = vld [vmem:[#allocation18_spill] sm:$0xff]  ;;  %v7111_v25 = vld [vmem:[#allocation13_spill] sm:$0xff] }
 0x4c2   :  { %v3303_v32 = vsel %vm302_vm0, %v2945_v1, -inf  ;;  %v2887_v56 = vadd.f32 %v2797_v44, %v7106_v35  ;;  %v3709_v58 = vunpack.c.l.b16 %v4146_v15  ;;  %v3773_v40 = vsel %vm3734_vm4, %v3708_v11, %v3772_v63  ;;  %v2804_v1 = vpop.f32.mrf.mxu0  ;;  %v7113_v63 = vld [vmem:[#allocation19_spill] sm:$0xff] }
 0x4c3   :  { %v3304_v8 = vrot.slane %v3303_v32, 4  ;;  %v3338_v49 = vsel %vm302_vm0, %v2950_v36, -inf  ;;  %v2948_v18 = vmax.f32 %v2884_v55, 0.0  ;;  %v3711_v54 = vunpack.c.l.b16 %v4148_v60 }
 0x4c4   :  { %v2951_v14 = vmax.f32 %v2887_v56, 0.0  ;;  %v3302_v17 = vmax.f32 %v3300_v16, %v3301_v38  ;;  %v3774_v7 = vsel %vm3736_vm5, %v3709_v58, %v3773_v40  ;;  %v3339_v23 = vrot.slane %v3338_v49, 4 }
 0x4c5   :  { %v3305_v52 = vmax.f32 %v3303_v32, %v3304_v8  ;;  %v3324_v28 = vsel %vm302_vm0, %v2948_v18, -inf  ;;  %v3775_v59 = vsel %vm3738_vm6, %v3710_v46, %v3774_v7  ;;  %v3316_v50 = vmax.f32 %v3314_v12, %v3315_v43  ;;  %v4703_v8 = vpop.f32.mrf.mxu0 }
 0x4c6   :  { %v3345_v48 = vsel %vm302_vm0, %v2951_v14, -inf  ;;  %v3322_v51 = vrot.slane %v3321_v41, 1  ;;  %v3776_v34 = vsel %vm3740_vm7, %v3711_v54, %v3775_v59  ;;  %v3340_v47 = vmax.f32 %v3338_v49, %v3339_v23 }
 0x4c7   :  { %v3306_v26 = vrot.slane %v3305_v52, 2  ;;  %v3325_v27 = vrot.slane %v3324_v28, 4  ;;  %v3796_v42 = vpack.c.b16 %v3776_v34, %v3776_v34  ;;  %v4149_v11 = vpack.c.bf16 %v3302_v17, %v3302_v17 }
 0x4c8   :  { %v3346_v57 = vrot.slane %v3345_v48, 4  ;;  %v2789_v10 = vadd.f32 %v6544_v31, %v2788_v13  ;;  %v3341_v30 = vrot.slane %v3340_v47, 2  ;;  %v2810_v24 = vadd.f32 %v6544_v31, %v4699_v22 }
 0x4c9   :  { %v3307_v39 = vmax.f32 %v3305_v52, %v3306_v26  ;;  %v3326_v5 = vmax.f32 %v3324_v28, %v3325_v27  ;;  %3813 = vst.msk [vmem:[%s6730_s11 + $0x14] sm:$0xf] %vm3807_vm8, %v3796_v42  ;;  %v7108_v21 = vmax.f32 %v7107_v3, 0.0  ;;  %v2802_v29 = vadd.f32 %v6544_v31, %v2801_v62 }
 0x4ca   :  { %v3347_v45 = vmax.f32 %v3345_v48, %v3346_v57  ;;  %v2813_v20 = vadd.f32 %v6544_v31, %v4700_v19  ;;  %v3342_v13 = vmax.f32 %v3340_v47, %v3341_v30  ;;  %v7110_v53 = vmax.f32 %v7109_v9, 0.0  ;;  %v2817_v48 = vpop.f32.mrf.mxu0  ;;  %v7117_v9 = vld [vmem:[#allocation20_spill] sm:$0xff] }
 0x4cb   :  { %v2885_v4 = vadd.f32 %v2789_v10, %v7108_v21  ;;  %v3308_v12 = vrot.slane %v3307_v39, 1  ;;  %v3327_v16 = vrot.slane %v3326_v5, 2  ;;  %v7112_v44 = vmax.f32 %v7111_v25, 0.0  ;;  %v7115_v21 = vld [vmem:[#allocation14_spill] sm:$0xff] }
 0x4cc   :  { %v2890_v2 = vadd.f32 %v2810_v24, %v7110_v53  ;;  %v3348_v33 = vrot.slane %v3347_v45, 2  ;;  %v7114_v60 = vmax.f32 %v7113_v63, 0.0  ;;  %v3343_v37 = vrot.slane %v3342_v13, 1  ;;  %v4704_v24 = vpop.f32.mrf.mxu0 }
 0x4cd   :  { %v2949_v6 = vmax.f32 %v2885_v4, 0.0  ;;  %v2888_v22 = vadd.f32 %v2802_v29, %v7112_v44  ;;  %v3309_v61 = vmax.f32 %v3307_v39, %v3308_v12  ;;  %v3328_v55 = vmax.f32 %v3326_v5, %v3327_v16 }
 0x4ce   :  { %v2891_v38 = vadd.f32 %v2813_v20, %v7114_v60  ;;  %v2954_v15 = vmax.f32 %v2890_v2, 0.0  ;;  %v3323_v32 = vmax.f32 %v3321_v41, %v3322_v51  ;;  %v3349_v36 = vmax.f32 %v3347_v45, %v3348_v33 }
 0x4cf   :  { %v3331_v0 = vsel %vm302_vm0, %v2949_v6, -inf  ;;  %v2952_v35 = vmax.f32 %v2888_v22, 0.0  ;;  %v4150_v56 = vpack.c.bf16 %v3309_v61, %v3309_v61  ;;  %v3329_v46 = vrot.slane %v3328_v55, 1  ;;  %v7119_v6 = vld [vmem:[#allocation16_spill] sm:$0xff] }
 0x4d0   :  { %v3332_v43 = vrot.slane %v3331_v0, 4  ;;  %v4151_v58 = vpack.c.bf16 %v3316_v50, %v3316_v50  ;;  %v3350_v49 = vrot.slane %v3349_v36, 1  ;;  %v2955_v14 = vmax.f32 %v2891_v38, 0.0 }
 0x4d1   :  { %v3352_v18 = vsel %vm302_vm0, %v2952_v35, -inf  ;;  %v3713_v62 = vunpack.c.l.b16 %v4150_v56  ;;  %v3344_v40 = vmax.f32 %v3342_v13, %v3343_v37  ;;  %v3366_v17 = vsel %vm302_vm0, %v2954_v15, -inf }
 0x4d2   :  { %v3333_v54 = vmax.f32 %v3331_v0, %v3332_v43  ;;  %v3712_v52 = vunpack.c.l.b16 %v4149_v11  ;;  %v4152_v41 = vpack.c.bf16 %v3323_v32, %v3323_v32  ;;  %v3330_v7 = vmax.f32 %v3328_v55, %v3329_v46 }
 0x4d3   :  { %v3353_v23 = vrot.slane %v3352_v18, 4  ;;  %v3351_v51 = vmax.f32 %v3349_v36, %v3350_v49  ;;  %v3367_v34 = vrot.slane %v3366_v17, 4  ;;  %v3373_v50 = vsel %vm302_vm0, %v2955_v14, -inf }
 0x4d4   :  { %v3334_v28 = vrot.slane %v3333_v54, 2  ;;  %v3777_v59 = vsel %vm3728_vm1, %v3713_v62, %v3712_v52  ;;  %v3714_v26 = vunpack.c.l.b16 %v4151_v58  ;;  %v4155_v47 = vpack.c.bf16 %v3344_v40, %v3344_v40  ;;  %v7121_v58 = vld [vmem:[#allocation21_spill] sm:$0xff] }
 0x4d5   :  { %v3354_v19 = vmax.f32 %v3352_v18, %v3353_v23  ;;  %v3715_v42 = vunpack.c.l.b16 %v4152_v41  ;;  %v4153_v57 = vpack.c.bf16 %v3330_v7, %v3330_v7  ;;  %v2805_v10 = vadd.f32 %v6544_v31, %v2804_v1 }
 0x4d6   :  { %v3335_v27 = vmax.f32 %v3333_v54, %v3334_v28  ;;  %v3778_v11 = vsel %vm3730_vm2, %v3714_v26, %v3777_v59  ;;  %v3374_v30 = vrot.slane %v3373_v50, 4  ;;  %v2826_v5 = vadd.f32 %v6544_v31, %v4703_v8 }
 0x4d7   :  { %v4156_v45 = vpack.c.bf16 %v3351_v51, %v3351_v51  ;;  %v3368_v3 = vmax.f32 %v3366_v17, %v3367_v34  ;;  %v7116_v4 = vmax.f32 %v7115_v21, 0.0  ;;  %v2818_v20 = vadd.f32 %v6544_v31, %v2817_v48  ;;  %v2820_v17 = vpop.f32.mrf.mxu0 }
 0x4d8   :  { %v3336_v39 = vrot.slane %v3335_v27, 1  ;;  %v3718_v12 = vunpack.c.l.b16 %v4155_v47  ;;  %v3355_v16 = vrot.slane %v3354_v19, 2  ;;  %v7118_v53 = vmax.f32 %v7117_v9, 0.0 }
 0x4d9   :  { %v2889_v29 = vadd.f32 %v2805_v10, %v7116_v4  ;;  %v3716_v1 = vunpack.c.l.b16 %v4153_v57  ;;  %v7120_v25 = vmax.f32 %v7119_v6, 0.0  ;;  %v2829_v22 = vadd.f32 %v6544_v31, %v4704_v24  ;;  %v7123_v10 = vld [vmem:[#allocation17_spill] sm:$0xff] }
 0x4da   :  { %v3337_v13 = vmax.f32 %v3335_v27, %v3336_v39  ;;  %v2894_v2 = vadd.f32 %v2826_v5, %v7118_v53  ;;  %v3779_v63 = vsel %vm3732_vm3, %v3715_v42, %v3778_v11  ;;  %v3375_v38 = vmax.f32 %v3373_v50, %v3374_v30 }
 0x4db   :  { %v2953_v33 = vmax.f32 %v2889_v29, 0.0  ;;  %v2892_v44 = vadd.f32 %v2818_v20, %v7120_v25  ;;  %v3719_v37 = vunpack.c.l.b16 %v4156_v45  ;;  %v3369_v55 = vrot.slane %v3368_v3, 2 }
 0x4dc   :  { %v4154_v60 = vpack.c.bf16 %v3337_v13, %v3337_v13  ;;  %v2958_v61 = vmax.f32 %v2894_v2, 0.0  ;;  %v3356_v0 = vmax.f32 %v3354_v19, %v3355_v16  ;;  %v3780_v46 = vsel %vm3734_vm4, %v3716_v1, %v3779_v63 }
 0x4dd   :  { %v3359_v15 = vsel %vm302_vm0, %v2953_v33, -inf  ;;  %v2956_v32 = vmax.f32 %v2892_v44, 0.0  ;;  %v7122_v49 = vmax.f32 %v7121_v58, 0.0  ;;  %v3376_v62 = vrot.slane %v3375_v38, 2 }
 0x4de   :  { %v3717_v36 = vunpack.c.l.b16 %v4154_v60  ;;  %v3360_v35 = vrot.slane %v3359_v15, 4  ;;  %v3394_v56 = vsel %vm302_vm0, %v2958_v61, -inf  ;;  %v3370_v41 = vmax.f32 %v3368_v3, %v3369_v55 }
 0x4df   :  { %v3395_v43 = vrot.slane %v3394_v56, 4  ;;  %v3380_v8 = vsel %vm302_vm0, %v2956_v32, -inf  ;;  %v2895_v18 = vadd.f32 %v2829_v22, %v7122_v49  ;;  %v3357_v28 = vrot.slane %v3356_v0, 1 }
 0x4e0   :  { %v3781_v14 = vsel %vm3736_vm5, %v3717_v36, %v3780_v46  ;;  %v3361_v40 = vmax.f32 %v3359_v15, %v3360_v35  ;;  %v3381_v54 = vrot.slane %v3380_v8, 4  ;;  %v2821_v50 = vadd.f32 %v6544_v31, %v2820_v17 }
 0x4e1   :  { %v3782_v52 = vsel %vm3738_vm6, %v3718_v12, %v3781_v14  ;;  %v3396_v7 = vmax.f32 %v3394_v56, %v3395_v43  ;;  %v2959_v34 = vmax.f32 %v2895_v18, 0.0  ;;  %v3377_v26 = vmax.f32 %v3375_v38, %v3376_v62 }
 0x4e2   :  { %v3783_v23 = vsel %vm3740_vm7, %v3719_v37, %v3782_v52  ;;  %v3362_v48 = vrot.slane %v3361_v40, 2  ;;  %v3382_v59 = vmax.f32 %v3380_v8, %v3381_v54  ;;  %v3371_v19 = vrot.slane %v3370_v41, 1 }
 0x4e3   :  { %v3797_v51 = vpack.c.b16 %v3783_v23, %v3783_v23  ;;  %v3397_v42 = vrot.slane %v3396_v7, 2  ;;  %v3401_v57 = vsel %vm302_vm0, %v2959_v34, -inf  ;;  %v7124_v11 = vmax.f32 %v7123_v10, 0.0 }
 0x4e4   :  { %v3363_v47 = vmax.f32 %v3361_v40, %v3362_v48  ;;  %v3383_v27 = vrot.slane %v3382_v59, 2  ;;  %v3358_v30 = vmax.f32 %v3356_v0, %v3357_v28  ;;  %v3402_v45 = vrot.slane %v3401_v57, 4 }
 0x4e5   :  { %3814 = vst.msk [vmem:[%s6730_s11 + $0x18] sm:$0xf] %vm3807_vm8, %v3797_v51  ;;  %v2893_v39 = vadd.f32 %v2821_v50, %v7124_v11  ;;  %v3378_v3 = vrot.slane %v3377_v26, 1  ;;  %v3372_v29 = vmax.f32 %v3370_v41, %v3371_v19  ;;  %v3398_v20 = vmax.f32 %v3396_v7, %v3397_v42 }
 0x4e6   :  { %v3364_v5 = vrot.slane %v3363_v47, 1  ;;  %v3384_v24 = vmax.f32 %v3382_v59, %v3383_v27  ;;  %v3403_v4 = vmax.f32 %v3401_v57, %v3402_v45  ;;  %v4157_v16 = vpack.c.bf16 %v3358_v30, %v3358_v30 }
 0x4e7   :  { %v2957_v31 = vmax.f32 %v2893_v39, 0.0  ;;  %v3379_v1 = vmax.f32 %v3377_v26, %v3378_v3  ;;  %v4159_v44 = vpack.c.bf16 %v3372_v29, %v3372_v29  ;;  %v3399_v22 = vrot.slane %v3398_v20, 1 }
 0x4e8   :  { %v3365_v21 = vmax.f32 %v3363_v47, %v3364_v5  ;;  %v3385_v12 = vrot.slane %v3384_v24, 1  ;;  %v3404_v53 = vrot.slane %v3403_v4, 2  ;;  %v3720_v60 = vunpack.c.l.b16 %v4157_v16 }
 0x4e9   :  { %v3387_v13 = vsel %vm302_vm0, %v2957_v31, -inf  ;;  %v4160_v37 = vpack.c.bf16 %v3379_v1, %v3379_v1  ;;  %v3722_v32 = vunpack.c.l.b16 %v4159_v44  ;;  %v3400_v36 = vmax.f32 %v3398_v20, %v3399_v22 }
 0x4ea   :  { %v4158_v9 = vpack.c.bf16 %v3365_v21, %v3365_v21  ;;  %v3388_v2 = vrot.slane %v3387_v13, 4  ;;  %v3405_v6 = vmax.f32 %v3403_v4, %v3404_v53  ;;  %v3386_v63 = vmax.f32 %v3384_v24, %v3385_v12 }
 0x4eb   :  { %v3723_v43 = vunpack.c.l.b16 %v4160_v37  ;;  %v4163_v58 = vpack.c.bf16 %v3400_v36, %v3400_v36 }
 0x4ec   :  { %v3721_v33 = vunpack.c.l.b16 %v4158_v9  ;;  %v3389_v25 = vmax.f32 %v3387_v13, %v3388_v2  ;;  %v3406_v38 = vrot.slane %v3405_v6, 1  ;;  %v4161_v0 = vpack.c.bf16 %v3386_v63, %v3386_v63 }
 0x4ed   :  { %v3726_v54 = vunpack.c.l.b16 %v4163_v58 }
 0x4ee   :  { %v3390_v61 = vrot.slane %v3389_v25, 2  ;;  %v3784_v55 = vsel %vm3728_vm1, %v3721_v33, %v3720_v60  ;;  %v3407_v35 = vmax.f32 %v3405_v6, %v3406_v38  ;;  %v3724_v49 = vunpack.c.l.b16 %v4161_v0 }
 0x4ef   :  { %v3785_v46 = vsel %vm3730_vm2, %v3722_v32, %v3784_v55 }
 0x4f0   :  { %v3391_v15 = vmax.f32 %v3389_v25, %v3390_v61  ;;  %v3786_v18 = vsel %vm3732_vm3, %v3723_v43, %v3785_v46  ;;  %v4164_v14 = vpack.c.bf16 %v3407_v35, %v3407_v35 }
 0x4f1   :  { %v3787_v17 = vsel %vm3734_vm4, %v3724_v49, %v3786_v18 }
 0x4f2   :  { %v3392_v56 = vrot.slane %v3391_v15, 1  ;;  %v3727_v52 = vunpack.c.l.b16 %v4164_v14 }
 0x4f4   :  { %v3393_v8 = vmax.f32 %v3391_v15, %v3392_v56 }
 0x4f6   :  { %v4162_v62 = vpack.c.bf16 %v3393_v8, %v3393_v8 }
 0x4f8   :  { %v3725_v40 = vunpack.c.l.b16 %v4162_v62 }
 0x4fa   :  { %v3788_v41 = vsel %vm3736_vm5, %v3725_v40, %v3787_v17 }
 0x4fb   :  { %v3789_v7 = vsel %vm3738_vm6, %v3726_v54, %v3788_v41 }
 0x4fc   :  { %v3790_v23 = vsel %vm3740_vm7, %v3727_v52, %v3789_v7 }
 0x4fd   :  { %v3798_v28 = vpack.c.b16 %v3790_v23, %v3790_v23 }
 0x4ff   :  { %3815 = vst.msk [vmem:[%s6730_s11 + $0x1c] sm:$0xf] %vm3807_vm8, %v3798_v28 }

// kernel: pointmlp_forward.8
= control target key start
LH: loop header
LB: loop body
LE: loop exit
PB: predicated region body
PF: predicated region fallthrough
CT: control target
= control target key end

     0   :  { %s980_s1 = inlined_call_operand.vmem [shape: bf16[128,128], index: 1, kind: input, shape index: {}]   ;;  %s981_s0 = inlined_call_operand.vmem [shape: bf16[32,128], index: 0, kind: input, shape index: {}]   ;;  %s982_s3 = inlined_call_operand.vmem [shape: bf16[128,128], index: 3, kind: input, shape index: {}]   ;;  %s983_s5 = inlined_call_operand.vmem [shape: bf16[128,128], index: 5, kind: input, shape index: {}]   ;;  %s984_s2 = inlined_call_operand.vmem [shape: f32[1,128], index: 2, kind: input, shape index: {}]   ;;  %s985_s7 = inlined_call_operand.vmem [shape: bf16[128,128], index: 7, kind: input, shape index: {}]   ;;  %s986_s4 = inlined_call_operand.vmem [shape: f32[1,128], index: 4, kind: input, shape index: {}]   ;;  %s987_s6 = inlined_call_operand.vmem [shape: f32[1,128], index: 6, kind: input, shape index: {}]   ;;  %s988_s8 = inlined_call_operand.vmem [shape: f32[1,128], index: 8, kind: input, shape index: {}]   ;;  %s989_s9 = inlined_call_operand.vmem [shape: bf16[32,128], index: 9, kind: output, shape index: {}]  }
   0x1   :  { %v764_v0 = vld [vmem:[%s980_s1 + $0x38] sm:$0xff]   ;;  %v765_v1 = vld [vmem:[%s980_s1 + $0x30] sm:$0xff]   ;;  %v766_v2 = vld [vmem:[%s980_s1 + $0x28] sm:$0xff]  }
   0x2   :  { %684 = vmatprep.subr.bf16.mxu0 %v764_v0  ;;  %v767_v3 = vld [vmem:[%s980_s1 + $0x20] sm:$0xff]   ;;  %v774_v5 = vld [vmem:[%s982_s3 + $0x38] sm:$0xff]   ;;  %v775_v6 = vld [vmem:[%s982_s3 + $0x30] sm:$0xff]  }
   0x3   :  { %685 = vmatpush3.bf16.msra.mxu0 %v764_v0  ;;  %v865_v4 = vld [vmem:[%s981_s0] sm:$0xff]   ;;  %v768_v7 = vld [vmem:[%s980_s1 + $0x18] sm:$0xff]   ;;  %704 = vmatprep.subr.bf16.mxu1 %v774_v5  ;;  %v776_v8 = vld [vmem:[%s982_s3 + $0x28] sm:$0xff]  }
   0x4   :  { %686 = vmatprep.subr.bf16.mxu0 %v765_v1  ;;  %700 = vmatprep.mubr.bf16.mxu0 %v865_v4  ;;  %v769_v9 = vld [vmem:[%s980_s1 + $0x10] sm:$0xff]   ;;  %v777_v10 = vld [vmem:[%s982_s3 + $0x20] sm:$0xff]   ;;  %v770_v11 = vld [vmem:[%s980_s1 + $0x8] sm:$0xff]   ;;  %v37_v49 = vunpack.c.l.bf16 %v865_v4  ;;  %v38_v55 = vunpack.c.h.bf16 %v865_v4 }
   0x5   :  { %705 = vmatpush3.bf16.msra.mxu1 %v774_v5  ;;  %v778_v12 = vld [vmem:[%s982_s3 + $0x18] sm:$0xff]   ;;  %v771_v13 = vld [vmem:[%s980_s1] sm:$0xff]   ;;  %v898_v14 = vld [vmem:[%s981_s0 + $0x8] sm:$0xff]  }
   0x6   :  { %706 = vmatprep.subr.bf16.mxu1 %v775_v6  ;;  %v779_v15 = vld [vmem:[%s982_s3 + $0x10] sm:$0xff]   ;;  %v780_v16 = vld [vmem:[%s982_s3 + $0x8] sm:$0xff]   ;;  %v781_v17 = vld [vmem:[%s982_s3] sm:$0xff]   ;;  %v40_v51 = vunpack.c.h.bf16 %v898_v14  ;;  %v39_v52 = vunpack.c.l.bf16 %v898_v14 }
   0x7   :  { %687 = vmatpush3.bf16.msra.mxu0 %v765_v1  ;;  %v782_v18 = vld [vmem:[%s983_s5 + $0x38] sm:$0xff]   ;;  %v783_v19 = vld [vmem:[%s983_s5 + $0x30] sm:$0xff]   ;;  %v784_v20 = vld [vmem:[%s983_s5 + $0x28] sm:$0xff]  }
   0x8   :  { %688 = vmatprep.subr.bf16.mxu0 %v766_v2  ;;  %v785_v21 = vld [vmem:[%s983_s5 + $0x20] sm:$0xff]   ;;  %v786_v37 = vld [vmem:[%s983_s5 + $0x18] sm:$0xff]   ;;  %v787_v38 = vld [vmem:[%s983_s5 + $0x10] sm:$0xff]  }
   0x9   :  { %707 = vmatpush3.bf16.msra.mxu1 %v775_v6  ;;  %v587_v24 = vld [vmem:[%s984_s2] ss:$0 sm:$0xff]  ;;  %v788_v39 = vld [vmem:[%s983_s5 + $0x8] sm:$0xff]   ;;  %v790_v41 = vld [vmem:[%s985_s7 + $0x38] sm:$0xff]  }
   0xa   :  { %708 = vmatprep.subr.bf16.mxu1 %v776_v8  ;;  %v789_v40 = vld [vmem:[%s983_s5] sm:$0xff]   ;;  %v791_v42 = vld [vmem:[%s985_s7 + $0x30] sm:$0xff]   ;;  %v792_v43 = vld [vmem:[%s985_s7 + $0x28] sm:$0xff]  }
   0xb   :  { %689 = vmatpush3.bf16.msra.mxu0 %v766_v2  ;;  %v793_v44 = vld [vmem:[%s985_s7 + $0x20] sm:$0xff]   ;;  %v794_v45 = vld [vmem:[%s985_s7 + $0x18] sm:$0xff]   ;;  %v795_v6 = vld [vmem:[%s985_s7 + $0x10] sm:$0xff]  }
   0xc   :  { %690 = vmatprep.subr.bf16.mxu0 %v767_v3  ;;  %v598_v47 = vld [vmem:[%s986_s4] ss:$0 sm:$0xff]  ;;  %v796_v4 = vld [vmem:[%s985_s7 + $0x8] sm:$0xff]  }
   0xd   :  { %709 = vmatpush3.bf16.msra.mxu1 %v776_v8 }
   0xe   :  { %710 = vmatprep.subr.bf16.mxu1 %v777_v10 }
   0xf   :  { %691 = vmatpush3.bf16.msra.mxu0 %v767_v3 }
  0x10   :  { %692 = vmatprep.subr.bf16.mxu0 %v768_v7 }
  0x11   :  { %711 = vmatpush3.bf16.msra.mxu1 %v777_v10  ;;  %v607_v10 = vld [vmem:[%s987_s6] ss:$0 sm:$0xff] }
  0x12   :  { %712 = vmatprep.subr.bf16.mxu1 %v778_v12 }
  0x13   :  { %693 = vmatpush3.bf16.msra.mxu0 %v768_v7  ;;  %v797_v7 = vld [vmem:[%s985_s7] sm:$0xff]  }
  0x14   :  { %694 = vmatprep.subr.bf16.mxu0 %v769_v9 }
  0x15   :  { %713 = vmatpush3.bf16.msra.mxu1 %v778_v12 }
  0x16   :  { %714 = vmatprep.subr.bf16.mxu1 %v779_v15 }
  0x17   :  { %695 = vmatpush3.bf16.msra.mxu0 %v769_v9 }
  0x18   :  { %696 = vmatprep.subr.bf16.mxu0 %v770_v11 }
  0x19   :  { %715 = vmatpush3.bf16.msra.mxu1 %v779_v15 }
  0x1a   :  { %716 = vmatprep.subr.bf16.mxu1 %v780_v16 }
  0x1b   :  { %697 = vmatpush3.bf16.msra.mxu0 %v770_v11 }
  0x1c   :  { %698 = vmatprep.subr.bf16.mxu0 %v771_v13 }
  0x1d   :  { %717 = vmatpush3.bf16.msra.mxu1 %v780_v16 }
  0x1e   :  { %718 = vmatprep.subr.bf16.mxu1 %v781_v17 }
  0x1f   :  { %699 = vmatpush3.bf16.msra.mxu0 %v771_v13 }
  0x20   :  { %724 = vmatprep.subr.bf16.mxu0 %v782_v18 }
  0x21   :  { %719 = vmatpush3.bf16.msra.mxu1 %v781_v17 }
  0x22   :  { %701 = vmatmul.mubr.bf16.vlgmr.msra.gmra.mxu0 %v898_v14  ;;  %744 = vmatprep.subr.bf16.mxu1 %v790_v41 }
  0x23   :  { %725 = vmatpush3.bf16.msra.mxu0 %v782_v18 }
  0x24   :  { %726 = vmatprep.subr.bf16.mxu0 %v783_v19 }
  0x27   :  { %727 = vmatpush3.bf16.msra.mxu0 %v783_v19 }
  0x28   :  { %728 = vmatprep.subr.bf16.mxu0 %v784_v20 }
  0x2b   :  { %729 = vmatpush3.bf16.msra.mxu0 %v784_v20 }
  0x2c   :  { %730 = vmatprep.subr.bf16.mxu0 %v785_v21 }
  0x2f   :  { %731 = vmatpush3.bf16.msra.mxu0 %v785_v21 }
  0x30   :  { %732 = vmatprep.subr.bf16.mxu0 %v786_v37 }
  0x33   :  { %733 = vmatpush3.bf16.msra.mxu0 %v786_v37 }
  0x34   :  { %734 = vmatprep.subr.bf16.mxu0 %v787_v38 }
  0x37   :  { %735 = vmatpush3.bf16.msra.mxu0 %v787_v38 }
  0x38   :  { %736 = vmatprep.subr.bf16.mxu0 %v788_v39 }
  0x3b   :  { %737 = vmatpush3.bf16.msra.mxu0 %v788_v39 }
  0x3c   :  { %738 = vmatprep.subr.bf16.mxu0 %v789_v40 }
  0x3f   :  { %739 = vmatpush3.bf16.msra.mxu0 %v789_v40 }
  0xe2   :  { %v702_v22 = vpop.f32.mrf.mxu0 }
  0xe3   :  { %v167_v28 = vadd.f32 %v702_v22, %v587_v24 }
  0xe4   :  { %v158_v23 = vpop.f32.mrf.mxu0 }
  0xe5   :  { %v159_v26 = vadd.f32 %v587_v24, %v158_v23  ;;  %v175_v34 = vmax.f32 %v167_v28, 0.0  ;;  %v616_v23 = vld [vmem:[%s988_s8] ss:$0 sm:$0xff] }
  0xe6   :  { %v703_v25 = vpop.f32.mrf.mxu0 }
  0xe7   :  { %v170_v27 = vadd.f32 %v703_v25, %v587_v24  ;;  %v173_v32 = vmax.f32 %v159_v26, 0.0 }
  0xe8   :  { %v161_v29 = vpop.f32.mrf.mxu0 }
  0xe9   :  { %v162_v30 = vadd.f32 %v587_v24, %v161_v29  ;;  %v176_v31 = vmax.f32 %v170_v27, 0.0 }
  0xeb   :  { %v174_v33 = vmax.f32 %v162_v30, 0.0  ;;  %v178_v36 = vpack.c.bf16 %v176_v31, %v175_v34 }
  0xed   :  { %v177_v35 = vpack.c.bf16 %v174_v33, %v173_v32 }
  0xef   :  { %720 = vmatprep.mubr.bf16.mxu1 %v177_v35 }
  0xf0   :  { %721 = vmatmul.mubr.bf16.vlgmr.msra.gmra.mxu1 %v178_v36 }
  0xf1   :  { %745 = vmatpush3.bf16.msra.mxu1 %v790_v41 }
  0xf2   :  { %746 = vmatprep.subr.bf16.mxu1 %v791_v42 }
  0xf5   :  { %747 = vmatpush3.bf16.msra.mxu1 %v791_v42 }
  0xf6   :  { %748 = vmatprep.subr.bf16.mxu1 %v792_v43 }
  0xf9   :  { %749 = vmatpush3.bf16.msra.mxu1 %v792_v43 }
  0xfa   :  { %750 = vmatprep.subr.bf16.mxu1 %v793_v44 }
  0xfd   :  { %751 = vmatpush3.bf16.msra.mxu1 %v793_v44 }
  0xfe   :  { %752 = vmatprep.subr.bf16.mxu1 %v794_v45 }
 0x101   :  { %753 = vmatpush3.bf16.msra.mxu1 %v794_v45 }
 0x102   :  { %754 = vmatprep.subr.bf16.mxu1 %v795_v6 }
 0x105   :  { %755 = vmatpush3.bf16.msra.mxu1 %v795_v6 }
 0x106   :  { %756 = vmatprep.subr.bf16.mxu1 %v796_v4 }
 0x109   :  { %757 = vmatpush3.bf16.msra.mxu1 %v796_v4 }
 0x10a   :  { %758 = vmatprep.subr.bf16.mxu1 %v797_v7 }
 0x10d   :  { %759 = vmatpush3.bf16.msra.mxu1 %v797_v7 }
 0x1b0   :  { %v722_v46 = vpop.f32.mrf.mxu1 }
 0x1b1   :  { %v293_v53 = vadd.f32 %v722_v46, %v598_v47 }
 0x1b2   :  { %v284_v48 = vpop.f32.mrf.mxu1 }
 0x1b3   :  { %v285_v50 = vadd.f32 %v598_v47, %v284_v48  ;;  %v301_v61 = vadd.f32 %v293_v53, %v39_v52 }
 0x1b4   :  { %v723_v54 = vpop.f32.mrf.mxu1 }
 0x1b5   :  { %v296_v56 = vadd.f32 %v723_v54, %v598_v47  ;;  %v299_v58 = vadd.f32 %v285_v50, %v37_v49  ;;  %v305_v2 = vmax.f32 %v301_v61, 0.0 }
 0x1b6   :  { %v287_v57 = vpop.f32.mrf.mxu1 }
 0x1b7   :  { %v302_v59 = vadd.f32 %v296_v56, %v40_v51  ;;  %v288_v60 = vadd.f32 %v598_v47, %v287_v57  ;;  %v303_v0 = vmax.f32 %v299_v58, 0.0 }
 0x1b9   :  { %v300_v62 = vadd.f32 %v288_v60, %v38_v55  ;;  %v306_v63 = vmax.f32 %v302_v59, 0.0 }
 0x1bb   :  { %v304_v1 = vmax.f32 %v300_v62, 0.0  ;;  %v308_v5 = vpack.c.bf16 %v306_v63, %v305_v2 }
 0x1bd   :  { %v307_v3 = vpack.c.bf16 %v304_v1, %v303_v0 }
 0x1bf   :  { %740 = vmatprep.mubr.bf16.mxu0 %v307_v3 }
 0x1c0   :  { %741 = vmatmul.mubr.bf16.vlgmr.msra.gmra.mxu0 %v308_v5 }
 0x280   :  { %v742_v8 = vpop.f32.mrf.mxu0 }
 0x281   :  { %v423_v14 = vadd.f32 %v742_v8, %v607_v10 }
 0x282   :  { %v414_v9 = vpop.f32.mrf.mxu0 }
 0x283   :  { %v415_v12 = vadd.f32 %v607_v10, %v414_v9  ;;  %v431_v20 = vmax.f32 %v423_v14, 0.0 }
 0x284   :  { %v743_v11 = vpop.f32.mrf.mxu0 }
 0x285   :  { %v426_v13 = vadd.f32 %v743_v11, %v607_v10  ;;  %v429_v18 = vmax.f32 %v415_v12, 0.0 }
 0x286   :  { %v417_v15 = vpop.f32.mrf.mxu0 }
 0x287   :  { %v418_v16 = vadd.f32 %v607_v10, %v417_v15  ;;  %v432_v17 = vmax.f32 %v426_v13, 0.0 }
 0x289   :  { %v430_v19 = vmax.f32 %v418_v16, 0.0  ;;  %v434_v22 = vpack.c.bf16 %v432_v17, %v431_v20 }
 0x28b   :  { %v433_v21 = vpack.c.bf16 %v430_v19, %v429_v18 }
 0x28d   :  { %760 = vmatprep.mubr.bf16.mxu1 %v433_v21 }
 0x28e   :  { %761 = vmatmul.mubr.bf16.vlgmr.msra.gmra.mxu1 %v434_v22 }
 0x34e   :  { %v762_v24 = vpop.f32.mrf.mxu1 }
 0x34f   :  { %v549_v25 = vadd.f32 %v762_v24, %v616_v23 }
 0x350   :  { %v540_v26 = vpop.f32.mrf.mxu1 }
 0x351   :  { %v541_v27 = vadd.f32 %v616_v23, %v540_v26  ;;  %v557_v29 = vadd.f32 %v549_v25, %v305_v2 }
 0x352   :  { %v763_v28 = vpop.f32.mrf.mxu1 }
 0x353   :  { %v552_v30 = vadd.f32 %v763_v28, %v616_v23  ;;  %v555_v32 = vadd.f32 %v541_v27, %v303_v0  ;;  %v561_v35 = vmax.f32 %v557_v29, 0.0 }
 0x354   :  { %v543_v31 = vpop.f32.mrf.mxu1 }
 0x355   :  { %v558_v33 = vadd.f32 %v552_v30, %v306_v63  ;;  %v544_v34 = vadd.f32 %v616_v23, %v543_v31  ;;  %v559_v38 = vmax.f32 %v555_v32, 0.0 }
 0x357   :  { %v562_v36 = vmax.f32 %v558_v33, 0.0  ;;  %v556_v37 = vadd.f32 %v544_v34, %v304_v1 }
 0x359   :  { %v641_v39 = vpack.c.bf16 %v562_v36, %v561_v35  ;;  %v560_v40 = vmax.f32 %v556_v37, 0.0 }
 0x35b   :  { %643 = vst [vmem:[%s989_s9 + $0x8] sm:$0xff] %v641_v39   ;;  %v636_v41 = vpack.c.bf16 %v560_v40, %v559_v38 }
 0x35d   :  { %637 = vst [vmem:[%s989_s9] sm:$0xff] %v636_v41  }

// kernel: pointmlp_forward.7
= control target key start
LH: loop header
LB: loop body
LE: loop exit
PB: predicated region body
PF: predicated region fallthrough
CT: control target
= control target key end

     0   :  { %vm1967_vm0 = vcmask 1041409   ;;  %vm1969_vm1 = vcmask 1042434   ;;  %vm1971_vm2 = vcmask 1043459   ;;  %vm1973_vm3 = vcmask 1044484   ;;  %s3500_s1 = inlined_call_operand.vmem [shape: bf16[128,128], index: 1, kind: input, shape index: {}]   ;;  %s3501_s0 = inlined_call_operand.vmem [shape: bf16[256,128], index: 0, kind: input, shape index: {}]   ;;  %s3502_s3 = inlined_call_operand.vmem [shape: bf16[128,128], index: 3, kind: input, shape index: {}]   ;;  %s3503_s5 = inlined_call_operand.vmem [shape: bf16[128,128], index: 5, kind: input, shape index: {}]   ;;  %s3504_s2 = inlined_call_operand.vmem [shape: f32[1,128], index: 2, kind: input, shape index: {}]   ;;  %s3505_s7 = inlined_call_operand.vmem [shape: bf16[128,128], index: 7, kind: input, shape index: {}]   ;;  %s3506_s4 = inlined_call_operand.vmem [shape: f32[1,128], index: 4, kind: input, shape index: {}]   ;;  %s3507_s9 = inlined_call_operand.vmem [shape: bf16[128,128], index: 9, kind: input, shape index: {}]   ;;  %s3508_s6 = inlined_call_operand.vmem [shape: f32[1,128], index: 6, kind: input, shape index: {}]   ;;  %s3509_s8 = inlined_call_operand.vmem [shape: f32[1,128], index: 8, kind: input, shape index: {}]   ;;  %s3510_s10 = inlined_call_operand.vmem [shape: f32[1,128], index: 10, kind: input, shape index: {}]   ;;  %s3511_s11 = inlined_call_operand.vmem [shape: bf16[32,128], index: 11, kind: output, shape index: {}]  }
   0x1   :  { %v2519_v0 = vld [vmem:[%s3500_s1 + $0x38] sm:$0xff]   ;;  %v2520_v1 = vld [vmem:[%s3500_s1 + $0x30] sm:$0xff]   ;;  %v2521_v2 = vld [vmem:[%s3500_s1 + $0x28] sm:$0xff]   ;;  %vm1975_vm4 = vcmask 1045509   ;;  %vm1977_vm5 = vcmask 1046534   ;;  %vm1979_vm6 = vcmask 1047559  }
   0x2   :  { %2263 = vmatprep.subr.bf16.mxu0 %v2519_v0  ;;  %2503 = vmatprep.subr.bf16.mxu1 %v2519_v0  ;;  %v2522_v3 = vld [vmem:[%s3500_s1 + $0x20] sm:$0xff]   ;;  %v2523_v5 = vld [vmem:[%s3500_s1 + $0x18] sm:$0xff]   ;;  %v2524_v6 = vld [vmem:[%s3500_s1 + $0x10] sm:$0xff]  }
   0x3   :  { %2264 = vmatpush3.bf16.msra.mxu0 %v2519_v0  ;;  %2511 = vmatpush3.bf16.msra.mxu1 %v2519_v0  ;;  %v2527_v4 = vld [vmem:[%s3501_s0] sm:$0xff]   ;;  %v2525_v8 = vld [vmem:[%s3500_s1 + $0x8] sm:$0xff]   ;;  %v2543_v12 = vld [vmem:[%s3502_s3 + $0x38] sm:$0xff]  }
   0x4   :  { %2265 = vmatprep.subr.bf16.mxu0 %v2520_v1  ;;  %2504 = vmatprep.subr.bf16.mxu1 %v2520_v1  ;;  %v2535_v7 = vld [vmem:[%s3501_s0 + $0x40] sm:$0xff]   ;;  %v2528_v10 = vld [vmem:[%s3501_s0 + $0x8] sm:$0xff]   ;;  %v2529_v13 = vld [vmem:[%s3501_s0 + $0x10] sm:$0xff]  }
   0x5   :  { %2279 = vmatprep.mubr.bf16.mxu0 %v2527_v4  ;;  %2295 = vmatprep.mubr.bf16.mxu1 %v2535_v7  ;;  %v2526_v9 = vld [vmem:[%s3500_s1] sm:$0xff]   ;;  %v2536_v11 = vld [vmem:[%s3501_s0 + $0x48] sm:$0xff]   ;;  %v2537_v14 = vld [vmem:[%s3501_s0 + $0x50] sm:$0xff]  }
   0x6   :  { %v2544_v15 = vld [vmem:[%s3502_s3 + $0x30] sm:$0xff]   ;;  %v2545_v16 = vld [vmem:[%s3502_s3 + $0x28] sm:$0xff]   ;;  %v2530_v17 = vld [vmem:[%s3501_s0 + $0x18] sm:$0xff]  }
   0x7   :  { %2266 = vmatpush3.bf16.msra.mxu0 %v2520_v1  ;;  %2512 = vmatpush3.bf16.msra.mxu1 %v2520_v1  ;;  %v2538_v18 = vld [vmem:[%s3501_s0 + $0x58] sm:$0xff]   ;;  %v2531_v19 = vld [vmem:[%s3501_s0 + $0x20] sm:$0xff]   ;;  %v2532_v23 = vld [vmem:[%s3501_s0 + $0x28] sm:$0xff]  }
   0x8   :  { %2267 = vmatprep.subr.bf16.mxu0 %v2521_v2  ;;  %2505 = vmatprep.subr.bf16.mxu1 %v2521_v2  ;;  %v2539_v20 = vld [vmem:[%s3501_s0 + $0x60] sm:$0xff]   ;;  %v2547_v22 = vld [vmem:[%s3502_s3 + $0x18] sm:$0xff]   ;;  %v2540_v24 = vld [vmem:[%s3501_s0 + $0x68] sm:$0xff]  }
   0x9   :  { %v2546_v21 = vld [vmem:[%s3502_s3 + $0x20] sm:$0xff]   ;;  %v2533_v25 = vld [vmem:[%s3501_s0 + $0x30] sm:$0xff]   ;;  %v2534_v27 = vld [vmem:[%s3501_s0 + $0x38] sm:$0xff]  }
   0xa   :  { %v2541_v26 = vld [vmem:[%s3501_s0 + $0x70] sm:$0xff]   ;;  %v2542_v28 = vld [vmem:[%s3501_s0 + $0x78] sm:$0xff]   ;;  %v2549_v30 = vld [vmem:[%s3502_s3 + $0x8] sm:$0xff]  }
   0xb   :  { %2268 = vmatpush3.bf16.msra.mxu0 %v2521_v2  ;;  %2513 = vmatpush3.bf16.msra.mxu1 %v2521_v2  ;;  %v2548_v29 = vld [vmem:[%s3502_s3 + $0x10] sm:$0xff]   ;;  %v2550_v31 = vld [vmem:[%s3502_s3] sm:$0xff]   ;;  %v2551_v32 = vld [vmem:[%s3503_s5 + $0x38] sm:$0xff]  }
   0xc   :  { %2269 = vmatprep.subr.bf16.mxu0 %v2522_v3  ;;  %2506 = vmatprep.subr.bf16.mxu1 %v2522_v3  ;;  %v2552_v33 = vld [vmem:[%s3503_s5 + $0x30] sm:$0xff]   ;;  %v2553_v34 = vld [vmem:[%s3503_s5 + $0x28] sm:$0xff]   ;;  %v2554_v35 = vld [vmem:[%s3503_s5 + $0x20] sm:$0xff]  }
   0xd   :  { %v2555_v36 = vld [vmem:[%s3503_s5 + $0x18] sm:$0xff]   ;;  %v2751_v41 = vld [vmem:[%s3504_s2] ss:$0 sm:$0xff] }
   0xf   :  { %2270 = vmatpush3.bf16.msra.mxu0 %v2522_v3  ;;  %2514 = vmatpush3.bf16.msra.mxu1 %v2522_v3 }
  0x10   :  { %2271 = vmatprep.subr.bf16.mxu0 %v2523_v5  ;;  %2507 = vmatprep.subr.bf16.mxu1 %v2523_v5 }
  0x13   :  { %2272 = vmatpush3.bf16.msra.mxu0 %v2523_v5  ;;  %2515 = vmatpush3.bf16.msra.mxu1 %v2523_v5 }
  0x14   :  { %2273 = vmatprep.subr.bf16.mxu0 %v2524_v6  ;;  %2508 = vmatprep.subr.bf16.mxu1 %v2524_v6 }
  0x17   :  { %2274 = vmatpush3.bf16.msra.mxu0 %v2524_v6  ;;  %2516 = vmatpush3.bf16.msra.mxu1 %v2524_v6 }
  0x18   :  { %2275 = vmatprep.subr.bf16.mxu0 %v2525_v8  ;;  %2509 = vmatprep.subr.bf16.mxu1 %v2525_v8 }
  0x1b   :  { %2276 = vmatpush3.bf16.msra.mxu0 %v2525_v8  ;;  %2517 = vmatpush3.bf16.msra.mxu1 %v2525_v8 }
  0x1c   :  { %2277 = vmatprep.subr.bf16.mxu0 %v2526_v9  ;;  %2510 = vmatprep.subr.bf16.mxu1 %v2526_v9 }
  0x1f   :  { %2278 = vmatpush3.bf16.msra.mxu0 %v2526_v9  ;;  %2518 = vmatpush3.bf16.msra.mxu1 %v2526_v9 }
  0x20   :  { %2311 = vmatprep.subr.bf16.mxu1 %v2543_v12  ;;  %2359 = vmatprep.subr.bf16.mxu0 %v2551_v32 }
  0x22   :  { %2280 = vmatmul.mubr.bf16.vlgmr.msra.gmra.mxu0 %v2528_v10  ;;  %2296 = vmatmul.mubr.bf16.vlgmr.msra.gmra.mxu1 %v2536_v11 }
  0x23   :  { %2283 = vmatprep.mubr.bf16.mxu0 %v2529_v13  ;;  %2299 = vmatprep.mubr.bf16.mxu1 %v2537_v14 }
  0x24   :  { %2312 = vmatpush3.bf16.msra.mxu1 %v2543_v12  ;;  %2360 = vmatpush3.bf16.msra.mxu0 %v2551_v32 }
  0x25   :  { %2313 = vmatprep.subr.bf16.mxu1 %v2544_v15  ;;  %2361 = vmatprep.subr.bf16.mxu0 %v2552_v33 }
  0x28   :  { %2314 = vmatpush3.bf16.msra.mxu1 %v2544_v15  ;;  %2362 = vmatpush3.bf16.msra.mxu0 %v2552_v33 }
  0x29   :  { %2315 = vmatprep.subr.bf16.mxu1 %v2545_v16  ;;  %2363 = vmatprep.subr.bf16.mxu0 %v2553_v34 }
  0x2a   :  { %2284 = vmatmul.mubr.bf16.gmra.mxu0 %v2530_v17  ;;  %2300 = vmatmul.mubr.bf16.gmra.mxu1 %v2538_v18 }
  0x2b   :  { %2287 = vmatprep.mubr.bf16.mxu0 %v2531_v19  ;;  %2303 = vmatprep.mubr.bf16.mxu1 %v2539_v20 }
  0x2c   :  { %2316 = vmatpush3.bf16.msra.mxu1 %v2545_v16  ;;  %2364 = vmatpush3.bf16.msra.mxu0 %v2553_v34 }
  0x2d   :  { %2317 = vmatprep.subr.bf16.mxu1 %v2546_v21  ;;  %2365 = vmatprep.subr.bf16.mxu0 %v2554_v35 }
  0x30   :  { %2318 = vmatpush3.bf16.msra.mxu1 %v2546_v21  ;;  %2366 = vmatpush3.bf16.msra.mxu0 %v2554_v35 }
  0x31   :  { %2319 = vmatprep.subr.bf16.mxu1 %v2547_v22  ;;  %2367 = vmatprep.subr.bf16.mxu0 %v2555_v36 }
  0x32   :  { %2288 = vmatmul.mubr.bf16.gmra.mxu0 %v2532_v23  ;;  %2304 = vmatmul.mubr.bf16.gmra.mxu1 %v2540_v24 }
  0x33   :  { %2291 = vmatprep.mubr.bf16.mxu0 %v2533_v25  ;;  %2307 = vmatprep.mubr.bf16.mxu1 %v2541_v26 }
  0x34   :  { %2320 = vmatpush3.bf16.msra.mxu1 %v2547_v22  ;;  %2368 = vmatpush3.bf16.msra.mxu0 %v2555_v36 }
  0x35   :  { %2321 = vmatprep.subr.bf16.mxu1 %v2548_v29 }
  0x38   :  { %2322 = vmatpush3.bf16.msra.mxu1 %v2548_v29 }
  0x39   :  { %2323 = vmatprep.subr.bf16.mxu1 %v2549_v30 }
  0x3a   :  { %2292 = vmatmul.mubr.bf16.gmra.mxu0 %v2534_v27  ;;  %2308 = vmatmul.mubr.bf16.gmra.mxu1 %v2542_v28 }
  0x3c   :  { %2324 = vmatpush3.bf16.msra.mxu1 %v2549_v30 }
  0x3d   :  { %2325 = vmatprep.subr.bf16.mxu1 %v2550_v31 }
  0x40   :  { %2326 = vmatpush3.bf16.msra.mxu1 %v2550_v31 }
  0xe2   :  { %v2281_v37 = vpop.f32.mrf.mxu0  ;;  %v2746_v38 = vpop.f32.mrf.mxu1 }
  0xe3   :  { %v2762_v46 = vadd.f32 %v2281_v37, %v2751_v41 }
  0xe4   :  { %v272_v39 = vpop.f32.mrf.mxu0  ;;  %v336_v40 = vpop.f32.mrf.mxu1 }
  0xe5   :  { %v2756_v44 = vadd.f32 %v2751_v41, %v272_v39  ;;  %v401_v55 = vmax.f32 %v2762_v46, 0.0  ;;  %v2830_v27 = vadd.f32 %v2751_v41, %v336_v40 }
  0xe6   :  { %v2282_v42 = vpop.f32.mrf.mxu0  ;;  %v2753_v43 = vpop.f32.mrf.mxu1 }
  0xe7   :  { %v2759_v45 = vadd.f32 %v2282_v42, %v2751_v41  ;;  %v399_v53 = vmax.f32 %v2756_v44, 0.0  ;;  %v3527_v36 = vmax.f32 %v2830_v27, 0.0 }
  0xe8   :  { %v275_v47 = vpop.f32.mrf.mxu0  ;;  %v339_v48 = vpop.f32.mrf.mxu1 }
  0xe9   :  { %v2765_v49 = vadd.f32 %v2751_v41, %v275_v47  ;;  %v402_v50 = vmax.f32 %v2759_v45, 0.0  ;;  %v2833_v28 = vadd.f32 %v2751_v41, %v339_v48 }
  0xea   :  { %v2285_v51 = vpop.f32.mrf.mxu0  ;;  %v2768_v52 = vpop.f32.mrf.mxu1 }
  0xeb   :  { %v400_v54 = vmax.f32 %v2765_v49, 0.0  ;;  %v432_v59 = vpack.c.bf16 %v402_v50, %v401_v55  ;;  %v2790_v0 = vadd.f32 %v2285_v51, %v2751_v41  ;;  %v3524_v39 = vmax.f32 %v2833_v28, 0.0 }
  0xec   :  { %v288_v56 = vpop.f32.mrf.mxu0  ;;  %v352_v57 = vpop.f32.mrf.mxu1 }
  0xed   :  { %v431_v58 = vpack.c.bf16 %v400_v54, %v399_v53  ;;  %v2784_v62 = vadd.f32 %v2751_v41, %v288_v56  ;;  %v405_v8 = vmax.f32 %v2790_v0, 0.0 }
  0xee   :  { %v2286_v60 = vpop.f32.mrf.mxu0  ;;  %v2781_v61 = vpop.f32.mrf.mxu1 }
  0xef   :  { %v2787_v63 = vadd.f32 %v2286_v60, %v2751_v41  ;;  %2327 = vmatprep.mubr.bf16.mxu1 %v431_v58  ;;  %v403_v6 = vmax.f32 %v2784_v62, 0.0  ;;  %v439_v58 = vpack.c.bf16 %v3524_v39, %v3527_v36 }
  0xf0   :  { %v291_v1 = vpop.f32.mrf.mxu0  ;;  %2328 = vmatmul.mubr.bf16.vlgmr.msra.gmra.mxu1 %v432_v59  ;;  %v355_v5 = vpop.f32.mrf.mxu1  ;;  %v2866_v59 = vadd.f32 %v2751_v41, %v352_v57 }
  0xf1   :  { %v2793_v2 = vadd.f32 %v2751_v41, %v291_v1  ;;  %v406_v3 = vmax.f32 %v2787_v63, 0.0  ;;  %v2869_v60 = vadd.f32 %v2751_v41, %v355_v5  ;;  %v2873_v1 = vadd.f32 %v2746_v38, %v2751_v41 }
  0xf2   :  { %v2289_v4 = vpop.f32.mrf.mxu0  ;;  %v2807_v13 = vpop.f32.mrf.mxu1  ;;  %v3523_v57 = vmax.f32 %v2866_v59, 0.0 }
  0xf3   :  { %v404_v7 = vmax.f32 %v2793_v2, 0.0  ;;  %v434_v11 = vpack.c.bf16 %v406_v3, %v405_v8  ;;  %v2816_v16 = vadd.f32 %v2289_v4, %v2751_v41  ;;  %v3512_v5 = vmax.f32 %v2869_v60, 0.0 }
  0xf4   :  { %v304_v9 = vpop.f32.mrf.mxu0  ;;  %v368_v21 = vpop.f32.mrf.mxu1  ;;  %v3525_v38 = vmax.f32 %v2873_v1, 0.0 }
  0xf5   :  { %v433_v10 = vpack.c.bf16 %v404_v7, %v403_v6  ;;  %v2810_v14 = vadd.f32 %v2751_v41, %v304_v9  ;;  %v409_v24 = vmax.f32 %v2816_v16, 0.0  ;;  %v2881_v9 = vadd.f32 %v2753_v43, %v2751_v41 }
  0xf6   :  { %v2290_v12 = vpop.f32.mrf.mxu0  ;;  %v2306_v31 = vpop.f32.mrf.mxu1  ;;  %v2892_v43 = vadd.f32 %v2751_v41, %v368_v21 }
  0xf7   :  { %v2813_v15 = vadd.f32 %v2290_v12, %v2751_v41  ;;  %2331 = vmatprep.mubr.bf16.mxu1 %v433_v10  ;;  %v407_v22 = vmax.f32 %v2810_v14, 0.0 }
  0xf8   :  { %v307_v17 = vpop.f32.mrf.mxu0  ;;  %2332 = vmatmul.mubr.bf16.gmra.mxu1 %v434_v11  ;;  %v371_v42 = vpop.f32.mrf.mxu1  ;;  %v3526_v11 = vmax.f32 %v2881_v9, 0.0  ;;  %v3514_v21 = vmax.f32 %v2892_v43, 0.0 }
  0xf9   :  { %v2819_v18 = vadd.f32 %v2751_v41, %v307_v17  ;;  %v410_v19 = vmax.f32 %v2813_v15, 0.0  ;;  %v441_v17 = vpack.c.bf16 %v3512_v5, %v3523_v57  ;;  %v2932_v5 = vadd.f32 %v2306_v31, %v2751_v41 }
  0xfa   :  { %v2293_v20 = vpop.f32.mrf.mxu0  ;;  %v2309_v10 = vpop.f32.mrf.mxu1 }
  0xfb   :  { %v3532_v23 = vmax.f32 %v2819_v18, 0.0  ;;  %v436_v29 = vpack.c.bf16 %v410_v19, %v409_v24  ;;  %v2846_v34 = vadd.f32 %v2293_v20, %v2751_v41  ;;  %v2895_v20 = vadd.f32 %v2751_v41, %v371_v42 }
  0xfc   :  { %v320_v25 = vpop.f32.mrf.mxu0  ;;  %v384_v12 = vpop.f32.mrf.mxu1  ;;  %v2947_v31 = vadd.f32 %v2309_v10, %v2751_v41  ;;  %v2556_v10 = vld [vmem:[%s3503_s5 + $0x10] sm:$0xff]  }
  0xfd   :  { %v435_v26 = vpack.c.bf16 %v3532_v23, %v407_v22  ;;  %v2840_v32 = vadd.f32 %v2751_v41, %v320_v25  ;;  %v3529_v51 = vmax.f32 %v2846_v34, 0.0  ;;  %v440_v25 = vpack.c.bf16 %v3526_v11, %v3525_v38  ;;  %2369 = vmatprep.subr.bf16.mxu0 %v2556_v10 }
  0xfe   :  { %v2294_v30 = vpop.f32.mrf.mxu0  ;;  %2370 = vmatpush3.bf16.msra.mxu0 %v2556_v10  ;;  %v2562_v10 = vld [vmem:[%s3505_s7 + $0x20] sm:$0xff]  }
  0xff   :  { %v2843_v33 = vadd.f32 %v2294_v30, %v2751_v41  ;;  %2335 = vmatprep.mubr.bf16.mxu1 %v435_v26  ;;  %v3531_v47 = vmax.f32 %v2840_v32, 0.0  ;;  %v2903_v26 = vadd.f32 %v2768_v52, %v2751_v41  ;;  %v2310_v30 = vpop.f32.mrf.mxu1 }
 0x100   :  { %v323_v35 = vpop.f32.mrf.mxu0  ;;  %2336 = vmatmul.mubr.bf16.gmra.mxu1 %v436_v29  ;;  %v2907_v29 = vadd.f32 %v2781_v61, %v2751_v41  ;;  %v2918_v61 = vadd.f32 %v2751_v41, %v384_v12 }
 0x101   :  { %v2850_v37 = vadd.f32 %v2751_v41, %v323_v35  ;;  %v3530_v40 = vmax.f32 %v2843_v33, 0.0  ;;  %v3513_v35 = vmax.f32 %v2895_v20, 0.0  ;;  %v3515_v42 = vmax.f32 %v2903_v26, 0.0 }
 0x103   :  { %v3528_v48 = vmax.f32 %v2850_v37, 0.0  ;;  %v438_v4 = vpack.c.bf16 %v3530_v40, %v3529_v51  ;;  %v443_v52 = vpack.c.bf16 %v3513_v35, %v3514_v21  ;;  %v3520_v35 = vmax.f32 %v2918_v61, 0.0 }
 0x104   :  { %v3522_v21 = vmax.f32 %v2932_v5, 0.0 }
 0x105   :  { %v437_v56 = vpack.c.bf16 %v3528_v48, %v3531_v47 }
 0x107   :  { %2339 = vmatprep.mubr.bf16.mxu1 %v437_v56  ;;  %v3516_v56 = vmax.f32 %v2907_v29, 0.0 }
 0x108   :  { %2340 = vmatmul.mubr.bf16.gmra.mxu1 %v438_v4 }
 0x109   :  { %2343 = vmatprep.mubr.bf16.mxu1 %v439_v58  ;;  %v387_v58 = vpop.f32.mrf.mxu1 }
 0x10a   :  { %v2921_v4 = vadd.f32 %v2751_v41, %v387_v58 }
 0x10c   :  { %v3517_v12 = vmax.f32 %v2921_v4, 0.0 }
 0x110   :  { %2344 = vmatmul.mubr.bf16.gmra.mxu1 %v440_v25  ;;  %v2929_v25 = vadd.f32 %v2807_v13, %v2751_v41 }
 0x111   :  { %2347 = vmatprep.mubr.bf16.mxu1 %v441_v17  ;;  %v442_v17 = vpack.c.bf16 %v3516_v56, %v3515_v42  ;;  %v445_v42 = vpack.c.bf16 %v3517_v12, %v3520_v35 }
 0x112   :  { %v3521_v58 = vmax.f32 %v2929_v25, 0.0 }
 0x114   :  { %v444_v13 = vpack.c.bf16 %v3522_v21, %v3521_v58 }
 0x118   :  { %2348 = vmatmul.mubr.bf16.gmra.mxu1 %v442_v17  ;;  %v3518_v17 = vmax.f32 %v2947_v31, 0.0 }
 0x119   :  { %2351 = vmatprep.mubr.bf16.mxu1 %v443_v52  ;;  %v2950_v52 = vadd.f32 %v2310_v30, %v2751_v41  ;;  %v2557_v41 = vld [vmem:[%s3503_s5 + $0x8] sm:$0xff]   ;;  %v2558_v30 = vld [vmem:[%s3503_s5] sm:$0xff]  }
 0x11a   :  { %2371 = vmatprep.subr.bf16.mxu0 %v2557_v41 }
 0x11b   :  { %v3519_v56 = vmax.f32 %v2950_v52, 0.0  ;;  %2372 = vmatpush3.bf16.msra.mxu0 %v2557_v41  ;;  %v2563_v41 = vld [vmem:[%s3505_s7 + $0x18] sm:$0xff]  }
 0x11c   :  { %2373 = vmatprep.subr.bf16.mxu0 %v2558_v30 }
 0x11d   :  { %v446_v12 = vpack.c.bf16 %v3519_v56, %v3518_v17 }
 0x11f   :  { %2374 = vmatpush3.bf16.msra.mxu0 %v2558_v30  ;;  %v2564_v30 = vld [vmem:[%s3505_s7 + $0x10] sm:$0xff]  }
 0x120   :  { %2352 = vmatmul.mubr.bf16.gmra.mxu1 %v444_v13  ;;  %v2561_v13 = vld [vmem:[%s3505_s7 + $0x28] sm:$0xff]  }
 0x121   :  { %2355 = vmatprep.mubr.bf16.mxu1 %v445_v42  ;;  %v2559_v42 = vld [vmem:[%s3505_s7 + $0x38] sm:$0xff]  }
 0x122   :  { %2407 = vmatprep.subr.bf16.mxu1 %v2559_v42 }
 0x123   :  { %2408 = vmatpush3.bf16.msra.mxu1 %v2559_v42  ;;  %v2565_v42 = vld [vmem:[%s3505_s7 + $0x8] sm:$0xff]  }
 0x128   :  { %2356 = vmatmul.mubr.bf16.gmra.mxu1 %v446_v12  ;;  %v2560_v12 = vld [vmem:[%s3505_s7 + $0x30] sm:$0xff]  }
 0x129   :  { %2409 = vmatprep.subr.bf16.mxu1 %v2560_v12 }
 0x12a   :  { %2410 = vmatpush3.bf16.msra.mxu1 %v2560_v12 }
 0x12b   :  { %2411 = vmatprep.subr.bf16.mxu1 %v2561_v13 }
 0x12e   :  { %2412 = vmatpush3.bf16.msra.mxu1 %v2561_v13 }
 0x12f   :  { %2413 = vmatprep.subr.bf16.mxu1 %v2562_v10 }
 0x132   :  { %2414 = vmatpush3.bf16.msra.mxu1 %v2562_v10  ;;  %v2991_v10 = vld [vmem:[%s3506_s4] ss:$0 sm:$0xff] }
 0x133   :  { %2415 = vmatprep.subr.bf16.mxu1 %v2563_v41 }
 0x136   :  { %2416 = vmatpush3.bf16.msra.mxu1 %v2563_v41 }
 0x137   :  { %2417 = vmatprep.subr.bf16.mxu1 %v2564_v30 }
 0x13a   :  { %2418 = vmatpush3.bf16.msra.mxu1 %v2564_v30 }
 0x13b   :  { %2419 = vmatprep.subr.bf16.mxu1 %v2565_v42 }
 0x13e   :  { %2420 = vmatpush3.bf16.msra.mxu1 %v2565_v42 }
 0x1b0   :  { %v2329_v12 = vpop.f32.mrf.mxu1 }
 0x1b1   :  { %v561_v35 = vadd.f32 %v2329_v12, %v2991_v10 }
 0x1b2   :  { %v552_v13 = vpop.f32.mrf.mxu1 }
 0x1b3   :  { %v553_v56 = vadd.f32 %v2991_v10, %v552_v13  ;;  %v681_v38 = vmax.f32 %v561_v35, 0.0 }
 0x1b4   :  { %v2330_v17 = vpop.f32.mrf.mxu1 }
 0x1b5   :  { %v564_v41 = vadd.f32 %v2330_v17, %v2991_v10  ;;  %v679_v42 = vmax.f32 %v553_v56, 0.0 }
 0x1b6   :  { %v555_v58 = vpop.f32.mrf.mxu1 }
 0x1b7   :  { %v556_v21 = vadd.f32 %v2991_v10, %v555_v58  ;;  %v682_v30 = vmax.f32 %v564_v41, 0.0 }
 0x1b8   :  { %v2333_v57 = vpop.f32.mrf.mxu1 }
 0x1b9   :  { %v680_v39 = vmax.f32 %v556_v21, 0.0  ;;  %v712_v48 = vpack.c.bf16 %v682_v30, %v681_v38  ;;  %v577_v17 = vadd.f32 %v2333_v57, %v2991_v10 }
 0x1ba   :  { %v568_v11 = vpop.f32.mrf.mxu1 }
 0x1bb   :  { %v711_v36 = vpack.c.bf16 %v680_v39, %v679_v42  ;;  %v569_v40 = vadd.f32 %v2991_v10, %v568_v11  ;;  %v685_v35 = vmax.f32 %v577_v17, 0.0 }
 0x1bc   :  { %v2334_v51 = vpop.f32.mrf.mxu1 }
 0x1bd   :  { %v580_v13 = vadd.f32 %v2334_v51, %v2991_v10  ;;  %2375 = vmatprep.mubr.bf16.mxu0 %v711_v36  ;;  %v683_v56 = vmax.f32 %v569_v40, 0.0 }
 0x1be   :  { %v571_v12 = vpop.f32.mrf.mxu1  ;;  %2376 = vmatmul.mubr.bf16.vlgmr.msra.gmra.mxu0 %v712_v48 }
 0x1bf   :  { %v572_v58 = vadd.f32 %v2991_v10, %v571_v12  ;;  %v686_v41 = vmax.f32 %v580_v13, 0.0 }
 0x1c0   :  { %v2337_v47 = vpop.f32.mrf.mxu1 }
 0x1c1   :  { %v684_v21 = vmax.f32 %v572_v58, 0.0  ;;  %v714_v38 = vpack.c.bf16 %v686_v41, %v685_v35  ;;  %v593_v36 = vadd.f32 %v2337_v47, %v2991_v10 }
 0x1c2   :  { %v584_v23 = vpop.f32.mrf.mxu1 }
 0x1c3   :  { %v713_v39 = vpack.c.bf16 %v684_v21, %v683_v56  ;;  %v585_v11 = vadd.f32 %v2991_v10, %v584_v23  ;;  %v689_v17 = vmax.f32 %v593_v36, 0.0 }
 0x1c4   :  { %v2338_v30 = vpop.f32.mrf.mxu1 }
 0x1c5   :  { %v596_v51 = vadd.f32 %v2338_v30, %v2991_v10  ;;  %2379 = vmatprep.mubr.bf16.mxu0 %v713_v39  ;;  %v687_v40 = vmax.f32 %v585_v11, 0.0 }
 0x1c6   :  { %v587_v57 = vpop.f32.mrf.mxu1  ;;  %2380 = vmatmul.mubr.bf16.gmra.mxu0 %v714_v38 }
 0x1c7   :  { %v588_v48 = vadd.f32 %v2991_v10, %v587_v57  ;;  %v690_v42 = vmax.f32 %v596_v51, 0.0 }
 0x1c8   :  { %v2341_v13 = vpop.f32.mrf.mxu1 }
 0x1c9   :  { %v688_v12 = vmax.f32 %v588_v48, 0.0  ;;  %v716_v41 = vpack.c.bf16 %v690_v42, %v689_v17  ;;  %v609_v47 = vadd.f32 %v2341_v13, %v2991_v10 }
 0x1ca   :  { %v600_v58 = vpop.f32.mrf.mxu1 }
 0x1cb   :  { %v715_v56 = vpack.c.bf16 %v688_v12, %v687_v40  ;;  %v601_v23 = vadd.f32 %v2991_v10, %v600_v58  ;;  %v693_v36 = vmax.f32 %v609_v47, 0.0 }
 0x1cc   :  { %v2342_v21 = vpop.f32.mrf.mxu1 }
 0x1cd   :  { %v612_v35 = vadd.f32 %v2342_v21, %v2991_v10  ;;  %2383 = vmatprep.mubr.bf16.mxu0 %v715_v56  ;;  %v691_v11 = vmax.f32 %v601_v23, 0.0 }
 0x1ce   :  { %v603_v39 = vpop.f32.mrf.mxu1  ;;  %2384 = vmatmul.mubr.bf16.gmra.mxu0 %v716_v41 }
 0x1cf   :  { %v604_v38 = vadd.f32 %v2991_v10, %v603_v39  ;;  %v694_v30 = vmax.f32 %v612_v35, 0.0 }
 0x1d0   :  { %v2345_v51 = vpop.f32.mrf.mxu1 }
 0x1d1   :  { %v692_v57 = vmax.f32 %v604_v38, 0.0  ;;  %v718_v42 = vpack.c.bf16 %v694_v30, %v693_v36  ;;  %v625_v13 = vadd.f32 %v2345_v51, %v2991_v10 }
 0x1d2   :  { %v616_v48 = vpop.f32.mrf.mxu1 }
 0x1d3   :  { %v717_v40 = vpack.c.bf16 %v692_v57, %v691_v11  ;;  %v617_v17 = vadd.f32 %v2991_v10, %v616_v48  ;;  %v697_v47 = vmax.f32 %v625_v13, 0.0 }
 0x1d4   :  { %v2346_v12 = vpop.f32.mrf.mxu1 }
 0x1d5   :  { %v628_v58 = vadd.f32 %v2346_v12, %v2991_v10  ;;  %2387 = vmatprep.mubr.bf16.mxu0 %v717_v40  ;;  %v695_v23 = vmax.f32 %v617_v17, 0.0 }
 0x1d6   :  { %v619_v56 = vpop.f32.mrf.mxu1  ;;  %2388 = vmatmul.mubr.bf16.gmra.mxu0 %v718_v42 }
 0x1d7   :  { %v620_v41 = vadd.f32 %v2991_v10, %v619_v56  ;;  %v698_v21 = vmax.f32 %v628_v58, 0.0 }
 0x1d8   :  { %v2349_v35 = vpop.f32.mrf.mxu1 }
 0x1d9   :  { %v696_v39 = vmax.f32 %v620_v41, 0.0  ;;  %v720_v30 = vpack.c.bf16 %v698_v21, %v697_v47  ;;  %v641_v51 = vadd.f32 %v2349_v35, %v2991_v10 }
 0x1da   :  { %v632_v38 = vpop.f32.mrf.mxu1 }
 0x1db   :  { %v719_v11 = vpack.c.bf16 %v696_v39, %v695_v23  ;;  %v633_v36 = vadd.f32 %v2991_v10, %v632_v38  ;;  %v701_v13 = vmax.f32 %v641_v51, 0.0 }
 0x1dc   :  { %v2350_v57 = vpop.f32.mrf.mxu1 }
 0x1dd   :  { %v644_v48 = vadd.f32 %v2350_v57, %v2991_v10  ;;  %2391 = vmatprep.mubr.bf16.mxu0 %v719_v11  ;;  %v699_v17 = vmax.f32 %v633_v36, 0.0 }
 0x1de   :  { %v635_v40 = vpop.f32.mrf.mxu1  ;;  %2392 = vmatmul.mubr.bf16.gmra.mxu0 %v720_v30 }
 0x1df   :  { %v636_v42 = vadd.f32 %v2991_v10, %v635_v40  ;;  %v702_v12 = vmax.f32 %v644_v48, 0.0 }
 0x1e0   :  { %v2353_v58 = vpop.f32.mrf.mxu1 }
 0x1e1   :  { %v700_v56 = vmax.f32 %v636_v42, 0.0  ;;  %v722_v21 = vpack.c.bf16 %v702_v12, %v701_v13  ;;  %v657_v35 = vadd.f32 %v2353_v58, %v2991_v10 }
 0x1e2   :  { %v648_v41 = vpop.f32.mrf.mxu1 }
 0x1e3   :  { %v721_v23 = vpack.c.bf16 %v700_v56, %v699_v17  ;;  %v649_v47 = vadd.f32 %v2991_v10, %v648_v41  ;;  %v705_v51 = vmax.f32 %v657_v35, 0.0 }
 0x1e4   :  { %v2354_v39 = vpop.f32.mrf.mxu1 }
 0x1e5   :  { %v660_v38 = vadd.f32 %v2354_v39, %v2991_v10  ;;  %2395 = vmatprep.mubr.bf16.mxu0 %v721_v23  ;;  %v703_v36 = vmax.f32 %v649_v47, 0.0 }
 0x1e6   :  { %v651_v11 = vpop.f32.mrf.mxu1  ;;  %2396 = vmatmul.mubr.bf16.gmra.mxu0 %v722_v21 }
 0x1e7   :  { %v652_v30 = vadd.f32 %v2991_v10, %v651_v11  ;;  %v706_v57 = vmax.f32 %v660_v38, 0.0 }
 0x1e8   :  { %v2357_v48 = vpop.f32.mrf.mxu1 }
 0x1e9   :  { %v704_v40 = vmax.f32 %v652_v30, 0.0  ;;  %v724_v12 = vpack.c.bf16 %v706_v57, %v705_v51  ;;  %v673_v58 = vadd.f32 %v2357_v48, %v2991_v10  ;;  %v2566_v57 = vld [vmem:[%s3505_s7] sm:$0xff]   ;;  %v2567_v48 = vld [vmem:[%s3507_s9 + $0x38] sm:$0xff]  }
 0x1ea   :  { %v664_v42 = vpop.f32.mrf.mxu1  ;;  %2421 = vmatprep.subr.bf16.mxu1 %v2566_v57  ;;  %2455 = vmatprep.subr.bf16.mxu0 %v2567_v48  ;;  %v2571_v51 = vld [vmem:[%s3507_s9 + $0x18] sm:$0xff]  }
 0x1eb   :  { %v723_v17 = vpack.c.bf16 %v704_v40, %v703_v36  ;;  %v665_v13 = vadd.f32 %v2991_v10, %v664_v42  ;;  %v709_v11 = vmax.f32 %v673_v58, 0.0  ;;  %2422 = vmatpush3.bf16.msra.mxu1 %v2566_v57  ;;  %2456 = vmatpush3.bf16.msra.mxu0 %v2567_v48  ;;  %v2569_v36 = vld [vmem:[%s3507_s9 + $0x28] sm:$0xff]   ;;  %v2570_v40 = vld [vmem:[%s3507_s9 + $0x20] sm:$0xff]   ;;  %v2572_v42 = vld [vmem:[%s3507_s9 + $0x10] sm:$0xff]  }
 0x1ec   :  { %v2358_v56 = vpop.f32.mrf.mxu1 }
 0x1ed   :  { %v676_v41 = vadd.f32 %v2358_v56, %v2991_v10  ;;  %2399 = vmatprep.mubr.bf16.mxu0 %v723_v17  ;;  %v707_v38 = vmax.f32 %v665_v13, 0.0  ;;  %v2573_v17 = vld [vmem:[%s3507_s9 + $0x8] sm:$0xff]   ;;  %v3052_v56 = vld [vmem:[%s3508_s6] ss:$0 sm:$0xff] }
 0x1ee   :  { %v667_v23 = vpop.f32.mrf.mxu1  ;;  %2400 = vmatmul.mubr.bf16.gmra.mxu0 %v724_v12 }
 0x1ef   :  { %v668_v21 = vadd.f32 %v2991_v10, %v667_v23  ;;  %v710_v39 = vmax.f32 %v676_v41, 0.0  ;;  %v2568_v10 = vld [vmem:[%s3507_s9 + $0x30] sm:$0xff]  }
 0x1f0   :  { %2457 = vmatprep.subr.bf16.mxu0 %v2568_v10 }
 0x1f1   :  { %v708_v47 = vmax.f32 %v668_v21, 0.0  ;;  %v726_v30 = vpack.c.bf16 %v710_v39, %v709_v11  ;;  %2458 = vmatpush3.bf16.msra.mxu0 %v2568_v10 }
 0x1f2   :  { %2459 = vmatprep.subr.bf16.mxu0 %v2569_v36 }
 0x1f3   :  { %v725_v35 = vpack.c.bf16 %v708_v47, %v707_v38 }
 0x1f5   :  { %2403 = vmatprep.mubr.bf16.mxu0 %v725_v35  ;;  %2460 = vmatpush3.bf16.msra.mxu0 %v2569_v36 }
 0x1f6   :  { %2404 = vmatmul.mubr.bf16.gmra.mxu0 %v726_v30  ;;  %2461 = vmatprep.subr.bf16.mxu0 %v2570_v40 }
 0x1f9   :  { %2462 = vmatpush3.bf16.msra.mxu0 %v2570_v40 }
 0x1fa   :  { %2463 = vmatprep.subr.bf16.mxu0 %v2571_v51 }
 0x1fd   :  { %2464 = vmatpush3.bf16.msra.mxu0 %v2571_v51 }
 0x1fe   :  { %2465 = vmatprep.subr.bf16.mxu0 %v2572_v42 }
 0x201   :  { %2466 = vmatpush3.bf16.msra.mxu0 %v2572_v42 }
 0x202   :  { %2467 = vmatprep.subr.bf16.mxu0 %v2573_v17 }
 0x205   :  { %2468 = vmatpush3.bf16.msra.mxu0 %v2573_v17 }
 0x27e   :  { %v2377_v12 = vpop.f32.mrf.mxu0 }
 0x27f   :  { %v841_v58 = vadd.f32 %v2377_v12, %v3052_v56 }
 0x280   :  { %v832_v13 = vpop.f32.mrf.mxu0 }
 0x281   :  { %v833_v41 = vadd.f32 %v3052_v56, %v832_v13  ;;  %v3068_v35 = vadd.f32 %v841_v58, %v401_v55 }
 0x282   :  { %v2378_v23 = vpop.f32.mrf.mxu0 }
 0x283   :  { %v844_v21 = vadd.f32 %v2378_v23, %v3052_v56  ;;  %v3059_v38 = vadd.f32 %v833_v41, %v399_v53  ;;  %v993_v10 = vmax.f32 %v3068_v35, 0.0 }
 0x284   :  { %v835_v39 = vpop.f32.mrf.mxu0 }
 0x285   :  { %v3063_v47 = vadd.f32 %v844_v21, %v402_v50  ;;  %v836_v11 = vadd.f32 %v3052_v56, %v835_v39  ;;  %v991_v53 = vmax.f32 %v3059_v38, 0.0 }
 0x286   :  { %v2381_v30 = vpop.f32.mrf.mxu0 }
 0x287   :  { %v3072_v57 = vadd.f32 %v836_v11, %v400_v54  ;;  %v994_v48 = vmax.f32 %v3063_v47, 0.0  ;;  %v857_v46 = vadd.f32 %v2381_v30, %v3052_v56 }
 0x288   :  { %v848_v44 = vpop.f32.mrf.mxu0 }
 0x289   :  { %v992_v45 = vmax.f32 %v3072_v57, 0.0  ;;  %v849_v50 = vadd.f32 %v3052_v56, %v848_v44  ;;  %v1024_v54 = vpack.c.bf16 %v994_v48, %v993_v10  ;;  %v3100_v12 = vadd.f32 %v857_v46, %v405_v8 }
 0x28a   :  { %v2382_v55 = vpop.f32.mrf.mxu0 }
 0x28b   :  { %v860_v36 = vadd.f32 %v2382_v55, %v3052_v56  ;;  %v1023_v49 = vpack.c.bf16 %v992_v45, %v991_v53  ;;  %v3091_v51 = vadd.f32 %v849_v50, %v403_v6  ;;  %v997_v23 = vmax.f32 %v3100_v12, 0.0 }
 0x28c   :  { %v851_v40 = vpop.f32.mrf.mxu0  ;;  %v3554_v55 = vmax.f32 %v2819_v18, 0.0 }
 0x28d   :  { %v3095_v42 = vadd.f32 %v860_v36, %v406_v3  ;;  %v852_v17 = vadd.f32 %v3052_v56, %v851_v40  ;;  %2423 = vmatprep.mubr.bf16.mxu1 %v1023_v49  ;;  %v995_v63 = vmax.f32 %v3091_v51, 0.0 }
 0x28e   :  { %v2385_v13 = vpop.f32.mrf.mxu0  ;;  %2424 = vmatmul.mubr.bf16.vlgmr.msra.gmra.mxu1 %v1024_v54 }
 0x28f   :  { %v3104_v41 = vadd.f32 %v852_v17, %v404_v7  ;;  %v998_v62 = vmax.f32 %v3095_v42, 0.0  ;;  %v873_v0 = vadd.f32 %v2385_v13, %v3052_v56 }
 0x290   :  { %v864_v6 = vpop.f32.mrf.mxu0 }
 0x291   :  { %v996_v3 = vmax.f32 %v3104_v41, 0.0  ;;  %v865_v58 = vadd.f32 %v3052_v56, %v864_v6  ;;  %v1026_v39 = vpack.c.bf16 %v998_v62, %v997_v23  ;;  %v3132_v50 = vadd.f32 %v873_v0, %v409_v24 }
 0x292   :  { %v2386_v8 = vpop.f32.mrf.mxu0  ;;  %v3555_v6 = vmax.f32 %v2840_v32, 0.0  ;;  %v3556_v0 = vmax.f32 %v2843_v33, 0.0 }
 0x293   :  { %v876_v21 = vadd.f32 %v2386_v8, %v3052_v56  ;;  %v1025_v2 = vpack.c.bf16 %v996_v3, %v995_v63  ;;  %v3123_v11 = vadd.f32 %v865_v58, %v407_v22  ;;  %v1001_v54 = vmax.f32 %v3132_v50, 0.0 }
 0x294   :  { %v867_v7 = vpop.f32.mrf.mxu0 }
 0x295   :  { %v3127_v30 = vadd.f32 %v876_v21, %v410_v19  ;;  %v868_v44 = vadd.f32 %v3052_v56, %v867_v7  ;;  %2427 = vmatprep.mubr.bf16.mxu1 %v1025_v2  ;;  %v999_v15 = vmax.f32 %v3123_v11, 0.0  ;;  %v3557_v2 = vmax.f32 %v2846_v34, 0.0 }
 0x296   :  { %v2389_v46 = vpop.f32.mrf.mxu0  ;;  %2428 = vmatmul.mubr.bf16.gmra.mxu1 %v1026_v39 }
 0x297   :  { %v3136_v36 = vadd.f32 %v868_v44, %v3554_v55  ;;  %v1002_v14 = vmax.f32 %v3127_v30, 0.0  ;;  %v889_v16 = vadd.f32 %v2389_v46, %v3052_v56  ;;  %v3558_v44 = vmax.f32 %v2850_v37, 0.0 }
 0x298   :  { %v880_v22 = vpop.f32.mrf.mxu0 }
 0x299   :  { %v3553_v19 = vmax.f32 %v3136_v36, 0.0  ;;  %v881_v49 = vadd.f32 %v3052_v56, %v880_v22  ;;  %v1028_v13 = vpack.c.bf16 %v1002_v14, %v1001_v54  ;;  %v3164_v7 = vadd.f32 %v889_v16, %v3557_v2 }
 0x29a   :  { %v2390_v24 = vpop.f32.mrf.mxu0 }
 0x29b   :  { %v892_v40 = vadd.f32 %v2390_v24, %v3052_v56  ;;  %v1027_v18 = vpack.c.bf16 %v3553_v19, %v999_v15  ;;  %v3155_v58 = vadd.f32 %v881_v49, %v3555_v6  ;;  %v3552_v24 = vmax.f32 %v3164_v7, 0.0 }
 0x29c   :  { %v883_v17 = vpop.f32.mrf.mxu0 }
 0x29d   :  { %v3159_v8 = vadd.f32 %v892_v40, %v3556_v0  ;;  %v884_v21 = vadd.f32 %v3052_v56, %v883_v17  ;;  %2431 = vmatprep.mubr.bf16.mxu1 %v1027_v18  ;;  %v3551_v33 = vmax.f32 %v3155_v58, 0.0  ;;  %v3560_v0 = vmax.f32 %v2881_v9, 0.0 }
 0x29e   :  { %v2393_v39 = vpop.f32.mrf.mxu0  ;;  %2432 = vmatmul.mubr.bf16.gmra.mxu1 %v1028_v13  ;;  %v3559_v13 = vmax.f32 %v2830_v27, 0.0 }
 0x29f   :  { %v3168_v46 = vadd.f32 %v884_v21, %v3558_v44  ;;  %v3536_v32 = vmax.f32 %v3159_v8, 0.0  ;;  %v905_v34 = vadd.f32 %v2393_v39, %v3052_v56  ;;  %v3561_v39 = vmax.f32 %v2873_v1, 0.0 }
 0x2a0   :  { %v896_v55 = vpop.f32.mrf.mxu0 }
 0x2a1   :  { %v3533_v22 = vmax.f32 %v3168_v46, 0.0  ;;  %v897_v49 = vadd.f32 %v3052_v56, %v896_v55  ;;  %v1030_v17 = vpack.c.bf16 %v3536_v32, %v3552_v24  ;;  %v3196_v44 = vadd.f32 %v905_v34, %v3561_v39 }
 0x2a2   :  { %v2394_v16 = vpop.f32.mrf.mxu0  ;;  %v3566_v32 = vmax.f32 %v2869_v60, 0.0 }
 0x2a3   :  { %v908_v40 = vadd.f32 %v2394_v16, %v3052_v56  ;;  %v1029_v37 = vpack.c.bf16 %v3533_v22, %v3551_v33  ;;  %v3187_v6 = vadd.f32 %v897_v49, %v3559_v13  ;;  %v3562_v16 = vmax.f32 %v2833_v28, 0.0 }
 0x2a4   :  { %v899_v18 = vpop.f32.mrf.mxu0 }
 0x2a5   :  { %v3191_v21 = vadd.f32 %v908_v40, %v3560_v0  ;;  %v900_v2 = vadd.f32 %v3052_v56, %v899_v18  ;;  %2435 = vmatprep.mubr.bf16.mxu1 %v1029_v37  ;;  %v3535_v9 = vmax.f32 %v3187_v6, 0.0  ;;  %v3540_v37 = vmax.f32 %v3196_v44, 0.0 }
 0x2a6   :  { %v2397_v55 = vpop.f32.mrf.mxu0  ;;  %2436 = vmatmul.mubr.bf16.gmra.mxu1 %v1030_v17 }
 0x2a7   :  { %v3200_v22 = vadd.f32 %v900_v2, %v3562_v16  ;;  %v3537_v27 = vmax.f32 %v3191_v21, 0.0  ;;  %v921_v1 = vadd.f32 %v2397_v55, %v3052_v56  ;;  %v3563_v2 = vmax.f32 %v2866_v59, 0.0 }
 0x2a8   :  { %v912_v49 = vpop.f32.mrf.mxu0  ;;  %v3564_v55 = vmax.f32 %v2907_v29, 0.0 }
 0x2a9   :  { %v3534_v40 = vmax.f32 %v3200_v22, 0.0  ;;  %v913_v18 = vadd.f32 %v3052_v56, %v912_v49  ;;  %v1032_v0 = vpack.c.bf16 %v3537_v27, %v3540_v37  ;;  %v3570_v37 = vmax.f32 %v2895_v20, 0.0 }
 0x2aa   :  { %v2398_v34 = vpop.f32.mrf.mxu0 }
 0x2ab   :  { %v924_v17 = vadd.f32 %v2398_v34, %v3052_v56  ;;  %v1031_v28 = vpack.c.bf16 %v3534_v40, %v3535_v9  ;;  %v3219_v39 = vadd.f32 %v913_v18, %v3563_v2  ;;  %v3565_v34 = vmax.f32 %v2903_v26, 0.0 }
 0x2ac   :  { %v915_v13 = vpop.f32.mrf.mxu0 }
 0x2ad   :  { %v3223_v16 = vadd.f32 %v924_v17, %v3564_v55  ;;  %v916_v49 = vadd.f32 %v3052_v56, %v915_v13  ;;  %2439 = vmatprep.mubr.bf16.mxu1 %v1031_v28  ;;  %v3228_v40 = vadd.f32 %v921_v1, %v3565_v34  ;;  %v3539_v29 = vmax.f32 %v3219_v39, 0.0 }
 0x2ae   :  { %v2401_v9 = vpop.f32.mrf.mxu0  ;;  %2440 = vmatmul.mubr.bf16.gmra.mxu1 %v1032_v0  ;;  %v3567_v55 = vmax.f32 %v2892_v43, 0.0 }
 0x2af   :  { %v3232_v27 = vadd.f32 %v916_v49, %v3566_v32  ;;  %v3541_v59 = vmax.f32 %v3223_v16, 0.0  ;;  %v3544_v28 = vmax.f32 %v3228_v40, 0.0  ;;  %v937_v26 = vadd.f32 %v2401_v9, %v3052_v56 }
 0x2b0   :  { %v928_v18 = vpop.f32.mrf.mxu0  ;;  %v3568_v9 = vmax.f32 %v2932_v5, 0.0 }
 0x2b1   :  { %v3538_v17 = vmax.f32 %v3232_v27, 0.0  ;;  %v929_v13 = vadd.f32 %v3052_v56, %v928_v18  ;;  %v1034_v2 = vpack.c.bf16 %v3541_v59, %v3544_v28 }
 0x2b2   :  { %v2402_v1 = vpop.f32.mrf.mxu0 }
 0x2b3   :  { %v940_v0 = vadd.f32 %v2402_v1, %v3052_v56  ;;  %v1033_v60 = vpack.c.bf16 %v3538_v17, %v3539_v29  ;;  %v3251_v49 = vadd.f32 %v929_v13, %v3567_v55  ;;  %v3569_v1 = vmax.f32 %v2929_v25, 0.0 }
 0x2b4   :  { %v931_v32 = vpop.f32.mrf.mxu0 }
 0x2b5   :  { %v3255_v34 = vadd.f32 %v940_v0, %v3568_v9  ;;  %v932_v18 = vadd.f32 %v3052_v56, %v931_v32  ;;  %2443 = vmatprep.mubr.bf16.mxu1 %v1033_v60  ;;  %v3260_v17 = vadd.f32 %v937_v26, %v3569_v1  ;;  %v3543_v5 = vmax.f32 %v3251_v49, 0.0 }
 0x2b6   :  { %v2405_v29 = vpop.f32.mrf.mxu0  ;;  %2444 = vmatmul.mubr.bf16.gmra.mxu1 %v1034_v2  ;;  %v3571_v9 = vmax.f32 %v2918_v61, 0.0 }
 0x2b7   :  { %v3264_v59 = vadd.f32 %v932_v18, %v3570_v37  ;;  %v3549_v43 = vmax.f32 %v3255_v34, 0.0  ;;  %v3550_v60 = vmax.f32 %v3260_v17, 0.0  ;;  %v953_v25 = vadd.f32 %v2405_v29, %v3052_v56 }
 0x2b8   :  { %v944_v13 = vpop.f32.mrf.mxu0  ;;  %v3572_v29 = vmax.f32 %v2950_v52, 0.0 }
 0x2b9   :  { %v3542_v0 = vmax.f32 %v3264_v59, 0.0  ;;  %v945_v32 = vadd.f32 %v3052_v56, %v944_v13  ;;  %v1036_v55 = vpack.c.bf16 %v3549_v43, %v3550_v60 }
 0x2ba   :  { %v2406_v26 = vpop.f32.mrf.mxu0 }
 0x2bb   :  { %v956_v2 = vadd.f32 %v2406_v26, %v3052_v56  ;;  %v1035_v20 = vpack.c.bf16 %v3542_v0, %v3543_v5  ;;  %v3283_v18 = vadd.f32 %v945_v32, %v3571_v9  ;;  %v3573_v26 = vmax.f32 %v2947_v31, 0.0 }
 0x2bc   :  { %v947_v37 = vpop.f32.mrf.mxu0  ;;  %v3574_v5 = vmax.f32 %v2921_v4, 0.0 }
 0x2bd   :  { %v3287_v1 = vadd.f32 %v956_v2, %v3572_v29  ;;  %v948_v13 = vadd.f32 %v3052_v56, %v947_v37  ;;  %2447 = vmatprep.mubr.bf16.mxu1 %v1035_v20  ;;  %v3292_v0 = vadd.f32 %v953_v25, %v3573_v26  ;;  %v3547_v32 = vmax.f32 %v3283_v18, 0.0  ;;  %v2574_v56 = vld [vmem:[%s3507_s9] sm:$0xff]  }
 0x2be   :  { %2448 = vmatmul.mubr.bf16.gmra.mxu1 %v1036_v55  ;;  %2469 = vmatprep.subr.bf16.mxu0 %v2574_v56  ;;  %v3316_v20 = vld [vmem:[%s3509_s8] ss:$0 sm:$0xff] }
 0x2bf   :  { %v3296_v28 = vadd.f32 %v948_v13, %v3574_v5  ;;  %v3546_v61 = vmax.f32 %v3287_v1, 0.0  ;;  %v3548_v2 = vmax.f32 %v3292_v0, 0.0  ;;  %2470 = vmatpush3.bf16.msra.mxu0 %v2574_v56 }
 0x2c1   :  { %v3545_v52 = vmax.f32 %v3296_v28, 0.0  ;;  %v1038_v4 = vpack.c.bf16 %v3546_v61, %v3548_v2 }
 0x2c3   :  { %v1037_v31 = vpack.c.bf16 %v3545_v52, %v3547_v32 }
 0x2c5   :  { %2451 = vmatprep.mubr.bf16.mxu1 %v1037_v31 }
 0x2c6   :  { %2452 = vmatmul.mubr.bf16.gmra.mxu1 %v1038_v4 }
 0x34e   :  { %v2425_v5 = vpop.f32.mrf.mxu1 }
 0x34f   :  { %v1153_v29 = vadd.f32 %v2425_v5, %v3316_v20 }
 0x350   :  { %v1144_v25 = vpop.f32.mrf.mxu1 }
 0x351   :  { %v1145_v55 = vadd.f32 %v3316_v20, %v1144_v25  ;;  %v1273_v61 = vmax.f32 %v1153_v29, 0.0 }
 0x352   :  { %v2426_v37 = vpop.f32.mrf.mxu1 }
 0x353   :  { %v1156_v9 = vadd.f32 %v2426_v37, %v3316_v20  ;;  %v1271_v56 = vmax.f32 %v1145_v55, 0.0 }
 0x354   :  { %v1147_v13 = vpop.f32.mrf.mxu1 }
 0x355   :  { %v1148_v26 = vadd.f32 %v3316_v20, %v1147_v13  ;;  %v1274_v31 = vmax.f32 %v1156_v9, 0.0 }
 0x356   :  { %v2429_v4 = vpop.f32.mrf.mxu1 }
 0x357   :  { %v1272_v52 = vmax.f32 %v1148_v26, 0.0  ;;  %v1304_v43 = vpack.c.bf16 %v1274_v31, %v1273_v61  ;;  %v1169_v37 = vadd.f32 %v2429_v4, %v3316_v20 }
 0x358   :  { %v1160_v32 = vpop.f32.mrf.mxu1 }
 0x359   :  { %v1303_v2 = vpack.c.bf16 %v1272_v52, %v1271_v56  ;;  %v1161_v33 = vadd.f32 %v3316_v20, %v1160_v32  ;;  %v1277_v29 = vmax.f32 %v1169_v37, 0.0 }
 0x35a   :  { %v2430_v60 = vpop.f32.mrf.mxu1 }
 0x35b   :  { %v1172_v25 = vadd.f32 %v2430_v60, %v3316_v20  ;;  %2471 = vmatprep.mubr.bf16.mxu0 %v1303_v2  ;;  %v1275_v55 = vmax.f32 %v1161_v33, 0.0 }
 0x35c   :  { %v1163_v5 = vpop.f32.mrf.mxu1  ;;  %2472 = vmatmul.mubr.bf16.vlgmr.msra.gmra.mxu0 %v1304_v43 }
 0x35d   :  { %v1164_v13 = vadd.f32 %v3316_v20, %v1163_v5  ;;  %v1278_v9 = vmax.f32 %v1172_v25, 0.0 }
 0x35e   :  { %v2433_v24 = vpop.f32.mrf.mxu1 }
 0x35f   :  { %v1276_v26 = vmax.f32 %v1164_v13, 0.0  ;;  %v1306_v61 = vpack.c.bf16 %v1278_v9, %v1277_v29  ;;  %v1185_v2 = vadd.f32 %v2433_v24, %v3316_v20 }
 0x360   :  { %v1176_v19 = vpop.f32.mrf.mxu1 }
 0x361   :  { %v1305_v52 = vpack.c.bf16 %v1276_v26, %v1275_v55  ;;  %v1177_v32 = vadd.f32 %v3316_v20, %v1176_v19  ;;  %v1281_v37 = vmax.f32 %v1185_v2, 0.0 }
 0x362   :  { %v2434_v31 = vpop.f32.mrf.mxu1 }
 0x363   :  { %v1188_v60 = vadd.f32 %v2434_v31, %v3316_v20  ;;  %2475 = vmatprep.mubr.bf16.mxu0 %v1305_v52  ;;  %v1279_v33 = vmax.f32 %v1177_v32, 0.0 }
 0x364   :  { %v1179_v4 = vpop.f32.mrf.mxu1  ;;  %2476 = vmatmul.mubr.bf16.gmra.mxu0 %v1306_v61 }
 0x365   :  { %v1180_v43 = vadd.f32 %v3316_v20, %v1179_v4  ;;  %v1282_v56 = vmax.f32 %v1188_v60, 0.0 }
 0x366   :  { %v2437_v25 = vpop.f32.mrf.mxu1 }
 0x367   :  { %v1280_v5 = vmax.f32 %v1180_v43, 0.0  ;;  %v1308_v9 = vpack.c.bf16 %v1282_v56, %v1281_v37  ;;  %v1201_v24 = vadd.f32 %v2437_v25, %v3316_v20 }
 0x368   :  { %v1192_v13 = vpop.f32.mrf.mxu1 }
 0x369   :  { %v1307_v55 = vpack.c.bf16 %v1280_v5, %v1279_v33  ;;  %v1193_v19 = vadd.f32 %v3316_v20, %v1192_v13  ;;  %v1285_v2 = vmax.f32 %v1201_v24, 0.0 }
 0x36a   :  { %v2438_v26 = vpop.f32.mrf.mxu1 }
 0x36b   :  { %v1204_v29 = vadd.f32 %v2438_v26, %v3316_v20  ;;  %2479 = vmatprep.mubr.bf16.mxu0 %v1307_v55  ;;  %v1283_v32 = vmax.f32 %v1193_v19, 0.0 }
 0x36c   :  { %v1195_v52 = vpop.f32.mrf.mxu1  ;;  %2480 = vmatmul.mubr.bf16.gmra.mxu0 %v1308_v9 }
 0x36d   :  { %v1196_v61 = vadd.f32 %v3316_v20, %v1195_v52  ;;  %v1286_v31 = vmax.f32 %v1204_v29, 0.0 }
 0x36e   :  { %v2441_v60 = vpop.f32.mrf.mxu1 }
 0x36f   :  { %v1284_v4 = vmax.f32 %v1196_v61, 0.0  ;;  %v1310_v56 = vpack.c.bf16 %v1286_v31, %v1285_v2  ;;  %v1217_v25 = vadd.f32 %v2441_v60, %v3316_v20 }
 0x370   :  { %v1208_v43 = vpop.f32.mrf.mxu1 }
 0x371   :  { %v1309_v33 = vpack.c.bf16 %v1284_v4, %v1283_v32  ;;  %v1209_v37 = vadd.f32 %v3316_v20, %v1208_v43  ;;  %v1289_v24 = vmax.f32 %v1217_v25, 0.0 }
 0x372   :  { %v2442_v5 = vpop.f32.mrf.mxu1 }
 0x373   :  { %v1220_v13 = vadd.f32 %v2442_v5, %v3316_v20  ;;  %2483 = vmatprep.mubr.bf16.mxu0 %v1309_v33  ;;  %v1287_v19 = vmax.f32 %v1209_v37, 0.0 }
 0x374   :  { %v1211_v55 = vpop.f32.mrf.mxu1  ;;  %2484 = vmatmul.mubr.bf16.gmra.mxu0 %v1310_v56 }
 0x375   :  { %v1212_v9 = vadd.f32 %v3316_v20, %v1211_v55  ;;  %v1290_v26 = vmax.f32 %v1220_v13, 0.0 }
 0x376   :  { %v2445_v29 = vpop.f32.mrf.mxu1 }
 0x377   :  { %v1288_v52 = vmax.f32 %v1212_v9, 0.0  ;;  %v1312_v31 = vpack.c.bf16 %v1290_v26, %v1289_v24  ;;  %v1233_v60 = vadd.f32 %v2445_v29, %v3316_v20 }
 0x378   :  { %v1224_v61 = vpop.f32.mrf.mxu1 }
 0x379   :  { %v1311_v32 = vpack.c.bf16 %v1288_v52, %v1287_v19  ;;  %v1225_v2 = vadd.f32 %v3316_v20, %v1224_v61  ;;  %v1293_v25 = vmax.f32 %v1233_v60, 0.0 }
 0x37a   :  { %v2446_v4 = vpop.f32.mrf.mxu1 }
 0x37b   :  { %v1236_v43 = vadd.f32 %v2446_v4, %v3316_v20  ;;  %2487 = vmatprep.mubr.bf16.mxu0 %v1311_v32  ;;  %v1291_v37 = vmax.f32 %v1225_v2, 0.0 }
 0x37c   :  { %v1227_v33 = vpop.f32.mrf.mxu1  ;;  %2488 = vmatmul.mubr.bf16.gmra.mxu0 %v1312_v31 }
 0x37d   :  { %v1228_v56 = vadd.f32 %v3316_v20, %v1227_v33  ;;  %v1294_v5 = vmax.f32 %v1236_v43, 0.0 }
 0x37e   :  { %v2449_v13 = vpop.f32.mrf.mxu1 }
 0x37f   :  { %v1292_v55 = vmax.f32 %v1228_v56, 0.0  ;;  %v1314_v26 = vpack.c.bf16 %v1294_v5, %v1293_v25  ;;  %v1249_v29 = vadd.f32 %v2449_v13, %v3316_v20 }
 0x380   :  { %v1240_v9 = vpop.f32.mrf.mxu1 }
 0x381   :  { %v1313_v19 = vpack.c.bf16 %v1292_v55, %v1291_v37  ;;  %v1241_v24 = vadd.f32 %v3316_v20, %v1240_v9  ;;  %v1297_v60 = vmax.f32 %v1249_v29, 0.0 }
 0x382   :  { %v2450_v52 = vpop.f32.mrf.mxu1 }
 0x383   :  { %v1252_v61 = vadd.f32 %v2450_v52, %v3316_v20  ;;  %2491 = vmatprep.mubr.bf16.mxu0 %v1313_v19  ;;  %v1295_v2 = vmax.f32 %v1241_v24, 0.0 }
 0x384   :  { %v1243_v32 = vpop.f32.mrf.mxu1  ;;  %2492 = vmatmul.mubr.bf16.gmra.mxu0 %v1314_v26 }
 0x385   :  { %v1244_v31 = vadd.f32 %v3316_v20, %v1243_v32  ;;  %v1298_v4 = vmax.f32 %v1252_v61, 0.0 }
 0x386   :  { %v2453_v43 = vpop.f32.mrf.mxu1 }
 0x387   :  { %v1296_v33 = vmax.f32 %v1244_v31, 0.0  ;;  %v1316_v5 = vpack.c.bf16 %v1298_v4, %v1297_v60  ;;  %v1265_v13 = vadd.f32 %v2453_v43, %v3316_v20  ;;  %v3353_v4 = vld [vmem:[%s3510_s10] ss:$0 sm:$0xff] }
 0x388   :  { %v1256_v56 = vpop.f32.mrf.mxu1 }
 0x389   :  { %v1315_v37 = vpack.c.bf16 %v1296_v33, %v1295_v2  ;;  %v1257_v25 = vadd.f32 %v3316_v20, %v1256_v56  ;;  %v1301_v32 = vmax.f32 %v1265_v13, 0.0 }
 0x38a   :  { %v2454_v55 = vpop.f32.mrf.mxu1 }
 0x38b   :  { %v1268_v9 = vadd.f32 %v2454_v55, %v3316_v20  ;;  %2495 = vmatprep.mubr.bf16.mxu0 %v1315_v37  ;;  %v1299_v61 = vmax.f32 %v1257_v25, 0.0 }
 0x38c   :  { %v1259_v19 = vpop.f32.mrf.mxu1  ;;  %2496 = vmatmul.mubr.bf16.gmra.mxu0 %v1316_v5 }
 0x38d   :  { %v1260_v26 = vadd.f32 %v3316_v20, %v1259_v19  ;;  %v1302_v52 = vmax.f32 %v1268_v9, 0.0 }
 0x38f   :  { %v1300_v24 = vmax.f32 %v1260_v26, 0.0  ;;  %v1318_v31 = vpack.c.bf16 %v1302_v52, %v1301_v32 }
 0x391   :  { %v1317_v29 = vpack.c.bf16 %v1300_v24, %v1299_v61 }
 0x393   :  { %2499 = vmatprep.mubr.bf16.mxu0 %v1317_v29 }
 0x394   :  { %2500 = vmatmul.mubr.bf16.gmra.mxu0 %v1318_v31 }
 0x41c   :  { %v2473_v2 = vpop.f32.mrf.mxu0 }
 0x41d   :  { %v1433_v43 = vadd.f32 %v2473_v2, %v3353_v4 }
 0x41e   :  { %v1424_v33 = vpop.f32.mrf.mxu0 }
 0x41f   :  { %v1553_v20 = vadd.f32 %v1433_v43, %v993_v10  ;;  %v1425_v60 = vadd.f32 %v3353_v4, %v1424_v33 }
 0x420   :  { %v2474_v56 = vpop.f32.mrf.mxu0 }
 0x421   :  { %v1585_v37 = vmax.f32 %v1553_v20, 0.0  ;;  %v1551_v5 = vadd.f32 %v1425_v60, %v991_v53  ;;  %v1436_v55 = vadd.f32 %v2474_v56, %v3353_v4 }
 0x422   :  { %v1427_v25 = vpop.f32.mrf.mxu0 }
 0x423   :  { %v1627_v9 = vrot.slane %v1585_v37, 4  ;;  %v1583_v13 = vmax.f32 %v1551_v5, 0.0  ;;  %v1554_v19 = vadd.f32 %v1436_v55, %v994_v48  ;;  %v1428_v26 = vadd.f32 %v3353_v4, %v1427_v25 }
 0x424   :  { %v2477_v52 = vpop.f32.mrf.mxu0 }
 0x425   :  { %v1628_v35 = vmax.f32 %v1585_v37, %v1627_v9  ;;  %v1615_v10 = vrot.slane %v1583_v13, 4  ;;  %v1586_v61 = vmax.f32 %v1554_v19, 0.0  ;;  %v1552_v24 = vadd.f32 %v1428_v26, %v992_v45 }
 0x426   :  { %v1449_v38 = vadd.f32 %v2477_v52, %v3353_v4  ;;  %v1440_v53 = vpop.f32.mrf.mxu0 }
 0x427   :  { %v1629_v32 = vrot.slane %v1628_v35, 2  ;;  %v1616_v29 = vmax.f32 %v1583_v13, %v1615_v10  ;;  %v1633_v31 = vrot.slane %v1586_v61, 4  ;;  %v1584_v2 = vmax.f32 %v1552_v24, 0.0 }
 0x428   :  { %v1557_v47 = vadd.f32 %v1449_v38, %v997_v23  ;;  %v1441_v48 = vadd.f32 %v3353_v4, %v1440_v53  ;;  %v2478_v43 = vpop.f32.mrf.mxu0 }
 0x429   :  { %v1630_v33 = vmax.f32 %v1628_v35, %v1629_v32  ;;  %v1617_v20 = vrot.slane %v1616_v29, 2  ;;  %v1634_v60 = vmax.f32 %v1586_v61, %v1633_v31  ;;  %v1621_v56 = vrot.slane %v1584_v2, 4 }
 0x42a   :  { %v1589_v37 = vmax.f32 %v1557_v47, 0.0  ;;  %v1555_v57 = vadd.f32 %v1441_v48, %v995_v63  ;;  %v1452_v45 = vadd.f32 %v2478_v43, %v3353_v4  ;;  %v1443_v5 = vpop.f32.mrf.mxu0 }
 0x42b   :  { %v1631_v55 = vrot.slane %v1630_v33, 1  ;;  %v1618_v25 = vmax.f32 %v1616_v29, %v1617_v20  ;;  %v1635_v9 = vrot.slane %v1634_v60, 2  ;;  %v1622_v13 = vmax.f32 %v1584_v2, %v1621_v56 }
 0x42c   :  { %v1651_v12 = vrot.slane %v1589_v37, 4  ;;  %v1587_v23 = vmax.f32 %v1555_v57, 0.0  ;;  %v1558_v19 = vadd.f32 %v1452_v45, %v998_v62  ;;  %v1444_v26 = vadd.f32 %v3353_v4, %v1443_v5  ;;  %v2481_v52 = vpop.f32.mrf.mxu0 }
 0x42d   :  { %v1632_v35 = vmax.f32 %v1630_v33, %v1631_v55  ;;  %v1619_v10 = vrot.slane %v1618_v25, 1  ;;  %v1636_v61 = vmax.f32 %v1634_v60, %v1635_v9  ;;  %v1623_v51 = vrot.slane %v1622_v13, 2 }
 0x42e   :  { %v1652_v63 = vmax.f32 %v1589_v37, %v1651_v12  ;;  %v1639_v24 = vrot.slane %v1587_v23, 4  ;;  %v1590_v38 = vmax.f32 %v1558_v19, 0.0  ;;  %v1556_v53 = vadd.f32 %v1444_v26, %v996_v3  ;;  %v1456_v32 = vpop.f32.mrf.mxu0 }
 0x42f   :  { %v2113_v29 = vpack.c.bf16 %v1632_v35, %v1632_v35  ;;  %v1620_v31 = vmax.f32 %v1618_v25, %v1619_v10  ;;  %v1637_v2 = vrot.slane %v1636_v61, 1  ;;  %v1624_v42 = vmax.f32 %v1622_v13, %v1623_v51 }
 0x430   :  { %v1653_v62 = vrot.slane %v1652_v63, 2  ;;  %v1640_v47 = vmax.f32 %v1587_v23, %v1639_v24  ;;  %v1657_v48 = vrot.slane %v1590_v38, 4  ;;  %v1588_v43 = vmax.f32 %v1556_v53, 0.0  ;;  %v2482_v33 = vpop.f32.mrf.mxu0 }
 0x431   :  { %v2111_v20 = vpack.c.bf16 %v1620_v31, %v1620_v31  ;;  %v1638_v60 = vmax.f32 %v1636_v61, %v1637_v2  ;;  %v1625_v56 = vrot.slane %v1624_v42, 1  ;;  %v1937_v5 = vunpack.c.l.b16 %v2113_v29 }
 0x432   :  { %v1654_v37 = vmax.f32 %v1652_v63, %v1653_v62  ;;  %v1641_v57 = vrot.slane %v1640_v47, 2  ;;  %v1658_v45 = vmax.f32 %v1590_v38, %v1657_v48  ;;  %v1645_v41 = vrot.slane %v1588_v43, 4  ;;  %v1459_v3 = vpop.f32.mrf.mxu0 }
 0x433   :  { %v2114_v55 = vpack.c.bf16 %v1638_v60, %v1638_v60  ;;  %v1626_v25 = vmax.f32 %v1624_v42, %v1625_v56  ;;  %v1465_v9 = vadd.f32 %v2481_v52, %v3353_v4  ;;  %v1935_v35 = vunpack.c.l.b16 %v2111_v20 }
 0x434   :  { %v1655_v13 = vrot.slane %v1654_v37, 1  ;;  %v1642_v12 = vmax.f32 %v1640_v47, %v1641_v57  ;;  %v1659_v23 = vrot.slane %v1658_v45, 2  ;;  %v1646_v19 = vmax.f32 %v1588_v43, %v1645_v41  ;;  %v2485_v26 = vpop.f32.mrf.mxu0 }
 0x435   :  { %v2112_v10 = vpack.c.bf16 %v1626_v25, %v1626_v25  ;;  %v1561_v61 = vadd.f32 %v1465_v9, %v1001_v54  ;;  %v1457_v51 = vadd.f32 %v3353_v4, %v1456_v32  ;;  %v1468_v42 = vadd.f32 %v2482_v33, %v3353_v4 }
 0x436   :  { %v1656_v63 = vmax.f32 %v1654_v37, %v1655_v13  ;;  %v1643_v24 = vrot.slane %v1642_v12, 1  ;;  %v1660_v38 = vmax.f32 %v1658_v45, %v1659_v23  ;;  %v1647_v53 = vrot.slane %v1646_v19, 2  ;;  %v1472_v29 = vpop.f32.mrf.mxu0 }
 0x437   :  { %v1936_v31 = vunpack.c.l.b16 %v2112_v10  ;;  %v1593_v2 = vmax.f32 %v1561_v61, 0.0  ;;  %v1559_v52 = vadd.f32 %v1457_v51, %v999_v15  ;;  %v1938_v62 = vunpack.c.l.b16 %v2114_v55 }
 0x438   :  { %v1644_v47 = vmax.f32 %v1642_v12, %v1643_v24  ;;  %v1661_v48 = vrot.slane %v1660_v38, 1  ;;  %v1648_v43 = vmax.f32 %v1646_v19, %v1647_v53  ;;  %v2486_v50 = vpop.f32.mrf.mxu0  ;;  %v1562_v60 = vadd.f32 %v1468_v42, %v1002_v14 }
 0x439   :  { %v1968_v54 = vsel %vm1967_vm0, %v1936_v31, %v1935_v35  ;;  %v1675_v32 = vrot.slane %v1593_v2, 4  ;;  %v1591_v20 = vmax.f32 %v1559_v52, 0.0  ;;  %v2117_v11 = vpack.c.bf16 %v1656_v63, %v1656_v63 }
 0x43a   :  { %v1970_v56 = vsel %vm1969_vm1, %v1937_v5, %v1968_v54  ;;  %v2115_v15 = vpack.c.bf16 %v1644_v47, %v1644_v47  ;;  %v1662_v37 = vmax.f32 %v1660_v38, %v1661_v48  ;;  %v1475_v33 = vpop.f32.mrf.mxu0  ;;  %v1649_v45 = vrot.slane %v1648_v43, 1 }
 0x43b   :  { %v1972_v57 = vsel %vm1971_vm2, %v1938_v62, %v1970_v56  ;;  %v1676_v41 = vmax.f32 %v1593_v2, %v1675_v32  ;;  %v1663_v55 = vrot.slane %v1591_v20, 4  ;;  %v1594_v13 = vmax.f32 %v1562_v60, 0.0 }
 0x43c   :  { %v1939_v25 = vunpack.c.l.b16 %v2115_v15  ;;  %v2118_v9 = vpack.c.bf16 %v1662_v37, %v1662_v37  ;;  %v1460_v12 = vadd.f32 %v3353_v4, %v1459_v3  ;;  %v2489_v23 = vpop.f32.mrf.mxu0  ;;  %v1650_v30 = vmax.f32 %v1648_v43, %v1649_v45 }
 0x43d   :  { %v1677_v14 = vrot.slane %v1676_v41, 2  ;;  %v1664_v19 = vmax.f32 %v1591_v20, %v1663_v55  ;;  %v1481_v5 = vadd.f32 %v2485_v26, %v3353_v4  ;;  %v1941_v35 = vunpack.c.l.b16 %v2117_v11 }
 0x43e   :  { %v1974_v10 = vsel %vm1973_vm3, %v1939_v25, %v1972_v57  ;;  %v1681_v61 = vrot.slane %v1594_v13, 4  ;;  %v3575_v51 = vmax.f32 %v3136_v36, 0.0  ;;  %v1488_v24 = vpop.f32.mrf.mxu0  ;;  %v2116_v38 = vpack.c.bf16 %v1650_v30, %v1650_v30 }
 0x43f   :  { %v1678_v53 = vmax.f32 %v1676_v41, %v1677_v14  ;;  %v1665_v31 = vrot.slane %v1664_v19, 2  ;;  %v3576_v2 = vmax.f32 %v3164_v7, 0.0  ;;  %v1473_v62 = vadd.f32 %v3353_v4, %v1472_v29 }
 0x440   :  { %v1560_v63 = vadd.f32 %v1460_v12, %v3575_v51  ;;  %v1682_v52 = vmax.f32 %v1594_v13, %v1681_v61  ;;  %v1484_v26 = vadd.f32 %v2486_v50, %v3353_v4  ;;  %v2490_v47 = vpop.f32.mrf.mxu0  ;;  %v1942_v48 = vunpack.c.l.b16 %v2118_v9 }
 0x441   :  { %v1565_v3 = vadd.f32 %v1481_v5, %v3576_v2  ;;  %v1940_v43 = vunpack.c.l.b16 %v2116_v38  ;;  %v1666_v54 = vmax.f32 %v1664_v19, %v1665_v31  ;;  %v1679_v36 = vrot.slane %v1678_v53, 1 }
 0x442   :  { %v1592_v42 = vmax.f32 %v1560_v63, 0.0  ;;  %v1683_v20 = vrot.slane %v1682_v52, 2  ;;  %v3577_v56 = vmax.f32 %v3155_v58, 0.0  ;;  %v3402_v15 = vpop.f32.mrf.mxu0  ;;  %v3578_v29 = vmax.f32 %v3159_v8, 0.0 }
 0x443   :  { %v1597_v32 = vmax.f32 %v1565_v3, 0.0  ;;  %v1976_v7 = vsel %vm1975_vm4, %v1940_v43, %v1974_v10  ;;  %v1667_v37 = vrot.slane %v1666_v54, 1  ;;  %v1680_v14 = vmax.f32 %v1678_v53, %v1679_v36 }
 0x444   :  { %v1669_v60 = vrot.slane %v1592_v42, 4  ;;  %v1563_v11 = vadd.f32 %v1473_v62, %v3577_v56  ;;  %v1566_v50 = vadd.f32 %v1484_v26, %v3578_v29  ;;  %v1978_v45 = vsel %vm1977_vm5, %v1941_v35, %v1976_v7  ;;  %v3409_v58 = vpop.f32.mrf.mxu0 }
 0x445   :  { %v1699_v57 = vrot.slane %v1597_v32, 4  ;;  %v1684_v41 = vmax.f32 %v1682_v52, %v1683_v20  ;;  %v1980_v9 = vsel %vm1979_vm6, %v1942_v48, %v1978_v45  ;;  %v1668_v13 = vmax.f32 %v1666_v54, %v1667_v37 }
 0x446   :  { %v1670_v55 = vmax.f32 %v1592_v42, %v1669_v60  ;;  %v1595_v25 = vmax.f32 %v1563_v11, 0.0  ;;  %v2002_v30 = vpack.c.b16 %v1980_v9, %v1980_v9  ;;  %v1598_v51 = vmax.f32 %v1566_v50, 0.0  ;;  %v1504_v52 = vpop.f32.mrf.mxu0 }
 0x447   :  { %v1700_v12 = vmax.f32 %v1597_v32, %v1699_v57  ;;  %v1685_v10 = vrot.slane %v1684_v41, 1  ;;  %v2119_v8 = vpack.c.bf16 %v1668_v13, %v1668_v13  ;;  %v1476_v38 = vadd.f32 %v3353_v4, %v1475_v33 }
 0x448   :  { %v1671_v19 = vrot.slane %v1670_v55, 2  ;;  %v1687_v5 = vrot.slane %v1595_v25, 4  ;;  %2010 = vst [vmem:[%s3511_s11] sm:$0xf] %v2002_v30  ;;  %v1705_v2 = vrot.slane %v1598_v51, 4  ;;  %v1497_v3 = vadd.f32 %v2489_v23, %v3353_v4  ;;  %v2494_v50 = vpop.f32.mrf.mxu0 }
 0x449   :  { %v1701_v61 = vrot.slane %v1700_v12, 2  ;;  %v2121_v53 = vpack.c.bf16 %v1680_v14, %v1680_v14  ;;  %v3579_v26 = vmax.f32 %v3168_v46, 0.0  ;;  %v1686_v43 = vmax.f32 %v1684_v41, %v1685_v10 }
 0x44a   :  { %v1672_v35 = vmax.f32 %v1670_v55, %v1671_v19  ;;  %v1688_v63 = vmax.f32 %v1595_v25, %v1687_v5  ;;  %v1706_v54 = vmax.f32 %v1598_v51, %v1705_v2  ;;  %v3580_v32 = vmax.f32 %v3196_v44, 0.0  ;;  %v3426_v51 = vpop.f32.mrf.mxu0 }
 0x44b   :  { %v1702_v31 = vmax.f32 %v1700_v12, %v1701_v61  ;;  %v1564_v48 = vadd.f32 %v1476_v38, %v3579_v26  ;;  %v1489_v20 = vadd.f32 %v3353_v4, %v1488_v24  ;;  %v1943_v60 = vunpack.c.l.b16 %v2119_v8 }
 0x44c   :  { %v1673_v42 = vrot.slane %v1672_v35, 1  ;;  %v1689_v62 = vrot.slane %v1688_v63, 2  ;;  %v1569_v36 = vadd.f32 %v1497_v3, %v3580_v32  ;;  %v1707_v23 = vrot.slane %v1706_v54, 2 }
 0x44d   :  { %v1596_v11 = vmax.f32 %v1564_v48, 0.0  ;;  %v1703_v7 = vrot.slane %v1702_v31, 1  ;;  %v3581_v57 = vmax.f32 %v3187_v6, 0.0  ;;  %v1500_v55 = vadd.f32 %v2490_v47, %v3353_v4 }
 0x44e   :  { %v1674_v33 = vmax.f32 %v1672_v35, %v1673_v42  ;;  %v1690_v56 = vmax.f32 %v1688_v63, %v1689_v62  ;;  %v1601_v37 = vmax.f32 %v1569_v36, 0.0  ;;  %v2122_v44 = vpack.c.bf16 %v1686_v43, %v1686_v43 }
 0x44f   :  { %v1567_v29 = vadd.f32 %v1489_v20, %v3581_v57  ;;  %v1693_v41 = vrot.slane %v1596_v11, 4  ;;  %v1708_v25 = vmax.f32 %v1706_v54, %v1707_v23  ;;  %v3582_v14 = vmax.f32 %v3191_v21, 0.0  ;;  %v2497_v54 = vpop.f32.mrf.mxu0 }
 0x450   :  { %v2120_v46 = vpack.c.bf16 %v1674_v33, %v1674_v33  ;;  %v1691_v45 = vrot.slane %v1690_v56, 1  ;;  %v1723_v9 = vrot.slane %v1601_v37, 4  ;;  %v1704_v5 = vmax.f32 %v1702_v31, %v1703_v7 }
 0x451   :  { %v1599_v24 = vmax.f32 %v1567_v29, 0.0  ;;  %v1694_v30 = vmax.f32 %v1596_v11, %v1693_v41  ;;  %v1570_v19 = vadd.f32 %v1500_v55, %v3582_v14  ;;  %v1709_v10 = vrot.slane %v1708_v25, 1 }
 0x452   :  { %v1944_v13 = vunpack.c.l.b16 %v2120_v46  ;;  %v1692_v12 = vmax.f32 %v1690_v56, %v1691_v45  ;;  %v1724_v6 = vmax.f32 %v1601_v37, %v1723_v9  ;;  %v1945_v3 = vunpack.c.l.b16 %v2121_v53 }
 0x453   :  { %v1711_v61 = vrot.slane %v1599_v24, 4  ;;  %v1695_v8 = vrot.slane %v1694_v30, 2  ;;  %v1602_v35 = vmax.f32 %v1570_v19, 0.0  ;;  %v1946_v42 = vunpack.c.l.b16 %v2122_v44 }
 0x454   :  { %v1981_v47 = vsel %vm1967_vm0, %v1944_v13, %v1943_v60  ;;  %v2123_v63 = vpack.c.bf16 %v1692_v12, %v1692_v12  ;;  %v1725_v38 = vrot.slane %v1724_v6, 2  ;;  %v2125_v48 = vpack.c.bf16 %v1704_v5, %v1704_v5 }
 0x455   :  { %v1712_v2 = vmax.f32 %v1599_v24, %v1711_v61  ;;  %v1696_v62 = vmax.f32 %v1694_v30, %v1695_v8  ;;  %v1729_v26 = vrot.slane %v1602_v35, 4  ;;  %v1710_v21 = vmax.f32 %v1708_v25, %v1709_v10 }
 0x456   :  { %v1492_v31 = vadd.f32 %v3353_v4, %v3402_v15  ;;  %v1982_v32 = vsel %vm1969_vm1, %v1945_v3, %v1981_v47  ;;  %v1513_v60 = vadd.f32 %v3409_v58, %v3353_v4  ;;  %v1947_v33 = vunpack.c.l.b16 %v2123_v63  ;;  %v1520_v58 = vpop.f32.mrf.mxu0 }
 0x457   :  { %v1713_v43 = vrot.slane %v1712_v2, 2  ;;  %v1697_v36 = vrot.slane %v1696_v62, 1  ;;  %v1730_v20 = vmax.f32 %v1602_v35, %v1729_v26  ;;  %v1726_v56 = vmax.f32 %v1724_v6, %v1725_v38 }
 0x458   :  { %v3583_v11 = vmax.f32 %v3200_v22, 0.0  ;;  %v3584_v57 = vmax.f32 %v3228_v40, 0.0  ;;  %v1505_v15 = vadd.f32 %v3353_v4, %v1504_v52  ;;  %v1983_v46 = vsel %vm1971_vm2, %v1946_v42, %v1982_v32  ;;  %v2498_v35 = vpop.f32.mrf.mxu0 }
 0x459   :  { %v1714_v53 = vmax.f32 %v1712_v2, %v1713_v43  ;;  %v1698_v23 = vmax.f32 %v1696_v62, %v1697_v36  ;;  %v1731_v37 = vrot.slane %v1730_v20, 2  ;;  %v2126_v45 = vpack.c.bf16 %v1710_v21, %v1710_v21 }
 0x45a   :  { %v1568_v7 = vadd.f32 %v1492_v31, %v3583_v11  ;;  %v1573_v29 = vadd.f32 %v1513_v60, %v3584_v57  ;;  %v1516_v55 = vadd.f32 %v2494_v50, %v3353_v4  ;;  %v3585_v22 = vmax.f32 %v3219_v39, 0.0 }
 0x45b   :  { %v2124_v44 = vpack.c.bf16 %v1698_v23, %v1698_v23  ;;  %v1715_v25 = vrot.slane %v1714_v53, 1  ;;  %v1949_v13 = vunpack.c.l.b16 %v2125_v48  ;;  %v1727_v12 = vrot.slane %v1726_v56, 1 }
 0x45c   :  { %v1600_v41 = vmax.f32 %v1568_v7, 0.0  ;;  %v1605_v9 = vmax.f32 %v1573_v29, 0.0  ;;  %v1571_v24 = vadd.f32 %v1505_v15, %v3585_v22  ;;  %v3586_v40 = vmax.f32 %v3223_v16, 0.0 }
 0x45d   :  { %v1948_v52 = vunpack.c.l.b16 %v2124_v44  ;;  %v1732_v19 = vmax.f32 %v1730_v20, %v1731_v37  ;;  %v1984_v6 = vsel %vm1973_vm3, %v1947_v33, %v1983_v46  ;;  %v1950_v50 = vunpack.c.l.b16 %v2126_v45  ;;  %v1523_v20 = vpop.f32.mrf.mxu0 }
 0x45e   :  { %v1717_v30 = vrot.slane %v1600_v41, 4  ;;  %v1574_v14 = vadd.f32 %v1516_v55, %v3586_v40  ;;  %v1747_v5 = vrot.slane %v1605_v9, 4  ;;  %v1603_v10 = vmax.f32 %v1571_v24, 0.0 }
 0x45f   :  { %v1985_v47 = vsel %vm1975_vm4, %v1948_v52, %v1984_v6  ;;  %v1716_v39 = vmax.f32 %v1714_v53, %v1715_v25  ;;  %v1728_v3 = vmax.f32 %v1726_v56, %v1727_v12  ;;  %v1733_v26 = vrot.slane %v1732_v19, 1 }
 0x460   :  { %v1718_v61 = vmax.f32 %v1600_v41, %v1717_v30  ;;  %v1606_v8 = vmax.f32 %v1574_v14, 0.0  ;;  %v1748_v63 = vmax.f32 %v1605_v9, %v1747_v5  ;;  %v1735_v38 = vrot.slane %v1603_v10, 4  ;;  %v2501_v9 = vpop.f32.mrf.mxu0 }
 0x461   :  { %v1986_v2 = vsel %vm1977_vm5, %v1949_v13, %v1985_v47  ;;  %v1508_v36 = vadd.f32 %v3353_v4, %v3426_v51  ;;  %v2127_v60 = vpack.c.bf16 %v1716_v39, %v1716_v39  ;;  %v1529_v11 = vadd.f32 %v2497_v54, %v3353_v4 }
 0x462   :  { %v1719_v16 = vrot.slane %v1718_v61, 2  ;;  %v1753_v42 = vrot.slane %v1606_v8, 4  ;;  %v1987_v62 = vsel %vm1979_vm6, %v1950_v50, %v1986_v2  ;;  %v1749_v48 = vrot.slane %v1748_v63, 2 }
 0x463   :  { %v1736_v21 = vmax.f32 %v1603_v10, %v1735_v38  ;;  %v2003_v43 = vpack.c.b16 %v1987_v62, %v1987_v62  ;;  %v3587_v23 = vmax.f32 %v3232_v27, 0.0  ;;  %v1521_v57 = vadd.f32 %v3353_v4, %v1520_v58 }
 0x464   :  { %v1720_v31 = vmax.f32 %v1718_v61, %v1719_v16  ;;  %v1754_v32 = vmax.f32 %v1606_v8, %v1753_v42  ;;  %v1750_v33 = vmax.f32 %v1748_v63, %v1749_v48  ;;  %v1734_v29 = vmax.f32 %v1732_v19, %v1733_v26  ;;  %v1536_v61 = vpop.f32.mrf.mxu0 }
 0x465   :  { %v1737_v53 = vrot.slane %v1736_v21, 2  ;;  %2011 = vst [vmem:[%s3511_s11 + $0x4] sm:$0xf] %v2003_v43  ;;  %v1572_v37 = vadd.f32 %v1508_v36, %v3587_v23  ;;  %v3588_v51 = vmax.f32 %v3260_v17, 0.0  ;;  %v1532_v45 = vadd.f32 %v2498_v35, %v3353_v4 }
 0x466   :  { %v1721_v56 = vrot.slane %v1720_v31, 1  ;;  %v1755_v7 = vrot.slane %v1754_v32, 2  ;;  %v3589_v44 = vmax.f32 %v3251_v49, 0.0  ;;  %v1751_v22 = vrot.slane %v1750_v33, 1  ;;  %v2502_v62 = vpop.f32.mrf.mxu0 }
 0x467   :  { %v1738_v15 = vmax.f32 %v1736_v21, %v1737_v53  ;;  %v1577_v46 = vadd.f32 %v1529_v11, %v3588_v51  ;;  %v1604_v55 = vmax.f32 %v1572_v37, 0.0  ;;  %v3590_v13 = vmax.f32 %v3255_v34, 0.0 }
 0x468   :  { %v1722_v41 = vmax.f32 %v1720_v31, %v1721_v56  ;;  %v1756_v54 = vmax.f32 %v1754_v32, %v1755_v7  ;;  %v1575_v25 = vadd.f32 %v1521_v57, %v3589_v44  ;;  %v2129_v12 = vpack.c.bf16 %v1728_v3, %v1728_v3 }
 0x469   :  { %v1739_v24 = vrot.slane %v1738_v15, 1  ;;  %v1609_v27 = vmax.f32 %v1577_v46, 0.0  ;;  %v1578_v58 = vadd.f32 %v1532_v45, %v3590_v13  ;;  %v1741_v40 = vrot.slane %v1604_v55, 4 }
 0x46a   :  { %v2128_v30 = vpack.c.bf16 %v1722_v41, %v1722_v41  ;;  %v1607_v17 = vmax.f32 %v1575_v25, 0.0  ;;  %v1951_v14 = vunpack.c.l.b16 %v2127_v60  ;;  %v2130_v52 = vpack.c.bf16 %v1734_v29, %v1734_v29 }
 0x46b   :  { %v1740_v19 = vmax.f32 %v1738_v15, %v1739_v24  ;;  %v1757_v5 = vrot.slane %v1756_v54, 1  ;;  %v1742_v6 = vmax.f32 %v1604_v55, %v1741_v40  ;;  %v1610_v49 = vmax.f32 %v1578_v58, 0.0 }
 0x46c   :  { %v1952_v10 = vunpack.c.l.b16 %v2128_v30  ;;  %v1759_v50 = vrot.slane %v1607_v17, 4  ;;  %v1752_v8 = vmax.f32 %v1750_v33, %v1751_v22  ;;  %v1771_v35 = vrot.slane %v1609_v27, 4 }
 0x46d   :  { %v1743_v39 = vrot.slane %v1742_v6, 2  ;;  %v1953_v63 = vunpack.c.l.b16 %v2129_v12  ;;  %v2131_v38 = vpack.c.bf16 %v1740_v19, %v1740_v19  ;;  %v1758_v2 = vmax.f32 %v1756_v54, %v1757_v5 }
 0x46e   :  { %v1988_v47 = vsel %vm1967_vm0, %v1952_v10, %v1951_v14  ;;  %v1760_v34 = vmax.f32 %v1607_v17, %v1759_v50  ;;  %v1954_v3 = vunpack.c.l.b16 %v2130_v52  ;;  %v1777_v42 = vrot.slane %v1610_v49, 4  ;;  %v1539_v14 = vpop.f32.mrf.mxu0 }
 0x46f   :  { %v1744_v16 = vmax.f32 %v1742_v6, %v1743_v39  ;;  %v1989_v26 = vsel %vm1969_vm1, %v1953_v63, %v1988_v47  ;;  %v2133_v48 = vpack.c.bf16 %v1752_v8, %v1752_v8  ;;  %v1772_v21 = vmax.f32 %v1609_v27, %v1771_v35 }
 0x470   :  { %v1524_v43 = vadd.f32 %v3353_v4, %v1523_v20  ;;  %v1761_v32 = vrot.slane %v1760_v34, 2  ;;  %v1545_v36 = vadd.f32 %v2501_v9, %v3353_v4  ;;  %v1537_v60 = vadd.f32 %v3353_v4, %v1536_v61 }
 0x471   :  { %v1745_v31 = vrot.slane %v1744_v16, 1  ;;  %v1955_v33 = vunpack.c.l.b16 %v2131_v38  ;;  %v2134_v53 = vpack.c.bf16 %v1758_v2, %v1758_v2  ;;  %v3591_v11 = vmax.f32 %v3264_v59, 0.0 }
 0x472   :  { %v1548_v7 = vadd.f32 %v2502_v62, %v3353_v4  ;;  %v1778_v37 = vmax.f32 %v1610_v49, %v1777_v42  ;;  %v3592_v57 = vmax.f32 %v3292_v0, 0.0  ;;  %v3593_v20 = vmax.f32 %v3283_v18, 0.0 }
 0x473   :  { %v1576_v56 = vadd.f32 %v1524_v43, %v3591_v11  ;;  %v1746_v23 = vmax.f32 %v1744_v16, %v1745_v31  ;;  %v1990_v51 = vsel %vm1971_vm2, %v1954_v3, %v1989_v26  ;;  %v1773_v46 = vrot.slane %v1772_v21, 2 }
 0x474   :  { %v1581_v29 = vadd.f32 %v1545_v36, %v3592_v57  ;;  %v1579_v15 = vadd.f32 %v1537_v60, %v3593_v20  ;;  %v3594_v41 = vmax.f32 %v3287_v1, 0.0  ;;  %v1762_v59 = vmax.f32 %v1760_v34, %v1761_v32 }
 0x475   :  { %v1608_v45 = vmax.f32 %v1576_v56, 0.0  ;;  %v2132_v55 = vpack.c.bf16 %v1746_v23, %v1746_v23  ;;  %v1957_v9 = vunpack.c.l.b16 %v2133_v48  ;;  %v1958_v22 = vunpack.c.l.b16 %v2134_v53 }
 0x476   :  { %v1582_v54 = vadd.f32 %v1548_v7, %v3594_v41  ;;  %v1613_v44 = vmax.f32 %v1581_v29, 0.0  ;;  %v1611_v25 = vmax.f32 %v1579_v15, 0.0  ;;  %v1779_v13 = vrot.slane %v1778_v37, 2 }
 0x477   :  { %v1765_v24 = vrot.slane %v1608_v45, 4  ;;  %v1956_v0 = vunpack.c.l.b16 %v2132_v55  ;;  %v1991_v12 = vsel %vm1973_vm3, %v1955_v33, %v1990_v51  ;;  %v1774_v30 = vmax.f32 %v1772_v21, %v1773_v46 }
 0x478   :  { %v1614_v27 = vmax.f32 %v1582_v54, 0.0  ;;  %v1795_v58 = vrot.slane %v1613_v44, 4  ;;  %v1783_v18 = vrot.slane %v1611_v25, 4  ;;  %v1763_v52 = vrot.slane %v1762_v59, 1 }
 0x479   :  { %v1766_v40 = vmax.f32 %v1608_v45, %v1765_v24  ;;  %v1992_v1 = vsel %vm1975_vm4, %v1956_v0, %v1991_v12  ;;  %v1780_v61 = vmax.f32 %v1778_v37, %v1779_v13  ;;  %v1540_v35 = vadd.f32 %v3353_v4, %v1539_v14 }
 0x47a   :  { %v1801_v17 = vrot.slane %v1614_v27, 4  ;;  %v1796_v19 = vmax.f32 %v1613_v44, %v1795_v58  ;;  %v1784_v5 = vmax.f32 %v1611_v25, %v1783_v18  ;;  %v1993_v10 = vsel %vm1977_vm5, %v1957_v9, %v1992_v1 }
 0x47b   :  { %v1767_v6 = vrot.slane %v1766_v40, 2  ;;  %v1994_v49 = vsel %vm1979_vm6, %v1958_v22, %v1993_v10  ;;  %v1775_v39 = vrot.slane %v1774_v30, 1  ;;  %v1764_v38 = vmax.f32 %v1762_v59, %v1763_v52 }
 0x47c   :  { %v1802_v50 = vmax.f32 %v1614_v27, %v1801_v17  ;;  %v1785_v8 = vrot.slane %v1784_v5, 2  ;;  %v2004_v47 = vpack.c.b16 %v1994_v49, %v1994_v49  ;;  %v1797_v63 = vrot.slane %v1796_v19, 2 }
 0x47d   :  { %v1768_v34 = vmax.f32 %v1766_v40, %v1767_v6  ;;  %v3595_v16 = vmax.f32 %v3296_v28, 0.0  ;;  %v1781_v26 = vrot.slane %v1780_v61, 1  ;;  %v1776_v21 = vmax.f32 %v1774_v30, %v1775_v39 }
 0x47e   :  { %v1786_v2 = vmax.f32 %v1784_v5, %v1785_v8  ;;  %v1803_v3 = vrot.slane %v1802_v50, 2  ;;  %2012 = vst [vmem:[%s3511_s11 + $0x8] sm:$0xf] %v2004_v47  ;;  %v1798_v4 = vmax.f32 %v1796_v19, %v1797_v63  ;;  %v2135_v32 = vpack.c.bf16 %v1764_v38, %v1764_v38 }
 0x47f   :  { %v1580_v42 = vadd.f32 %v1540_v35, %v3595_v16  ;;  %v1769_v62 = vrot.slane %v1768_v34, 1  ;;  %v1782_v53 = vmax.f32 %v1780_v61, %v1781_v26  ;;  %v2137_v56 = vpack.c.bf16 %v1776_v21, %v1776_v21 }
 0x480   :  { %v1787_v31 = vrot.slane %v1786_v2, 1  ;;  %v1804_v36 = vmax.f32 %v1802_v50, %v1803_v3  ;;  %v1799_v7 = vrot.slane %v1798_v4, 1  ;;  %v1959_v37 = vunpack.c.l.b16 %v2135_v32 }
 0x481   :  { %v1612_v48 = vmax.f32 %v1580_v42, 0.0  ;;  %v1770_v43 = vmax.f32 %v1768_v34, %v1769_v62  ;;  %v2138_v20 = vpack.c.bf16 %v1782_v53, %v1782_v53  ;;  %v1961_v46 = vunpack.c.l.b16 %v2137_v56 }
 0x482   :  { %v1788_v23 = vmax.f32 %v1786_v2, %v1787_v31  ;;  %v1805_v57 = vrot.slane %v1804_v36, 1  ;;  %v1800_v45 = vmax.f32 %v1798_v4, %v1799_v7 }
 0x483   :  { %v1789_v60 = vrot.slane %v1612_v48, 4  ;;  %v2136_v33 = vpack.c.bf16 %v1770_v43, %v1770_v43  ;;  %v1962_v44 = vunpack.c.l.b16 %v2138_v20 }
 0x484   :  { %v2139_v41 = vpack.c.bf16 %v1788_v23, %v1788_v23  ;;  %v1806_v54 = vmax.f32 %v1804_v36, %v1805_v57  ;;  %v2141_v9 = vpack.c.bf16 %v1800_v45, %v1800_v45 }
 0x485   :  { %v1790_v11 = vmax.f32 %v1612_v48, %v1789_v60  ;;  %v1960_v28 = vunpack.c.l.b16 %v2136_v33 }
 0x486   :  { %v1963_v22 = vunpack.c.l.b16 %v2139_v41  ;;  %v2142_v27 = vpack.c.bf16 %v1806_v54, %v1806_v54  ;;  %v1965_v58 = vunpack.c.l.b16 %v2141_v9 }
 0x487   :  { %v1791_v29 = vrot.slane %v1790_v11, 2  ;;  %v1995_v15 = vsel %vm1967_vm0, %v1960_v28, %v1959_v37 }
 0x488   :  { %v1996_v59 = vsel %vm1969_vm1, %v1961_v46, %v1995_v15  ;;  %v1966_v12 = vunpack.c.l.b16 %v2142_v27 }
 0x489   :  { %v1792_v51 = vmax.f32 %v1790_v11, %v1791_v29  ;;  %v1997_v24 = vsel %vm1971_vm2, %v1962_v44, %v1996_v59 }
 0x48a   :  { %v1998_v18 = vsel %vm1973_vm3, %v1963_v22, %v1997_v24 }
 0x48b   :  { %v1793_v55 = vrot.slane %v1792_v51, 1 }
 0x48d   :  { %v1794_v25 = vmax.f32 %v1792_v51, %v1793_v55 }
 0x48f   :  { %v2140_v0 = vpack.c.bf16 %v1794_v25, %v1794_v25 }
 0x491   :  { %v1964_v13 = vunpack.c.l.b16 %v2140_v0 }
 0x493   :  { %v1999_v30 = vsel %vm1975_vm4, %v1964_v13, %v1998_v18 }
 0x494   :  { %v2000_v40 = vsel %vm1977_vm5, %v1965_v58, %v1999_v30 }
 0x495   :  { %v2001_v17 = vsel %vm1979_vm6, %v1966_v12, %v2000_v40 }
 0x496   :  { %v2005_v14 = vpack.c.b16 %v2001_v17, %v2001_v17 }
 0x498   :  { %2013 = vst [vmem:[%s3511_s11 + $0xc] sm:$0xf] %v2005_v14 }

// kernel: pointmlp_forward.9
= control target key start
LH: loop header
LB: loop body
LE: loop exit
PB: predicated region body
PF: predicated region fallthrough
CT: control target
= control target key end

     0   :  { %v1325_v2 = vmov 0   ;;  %s1728_s0 = inlined_call_operand.vmem [shape: bf16[2,128], index: 0, kind: input, shape index: {}]   ;;  %s1729_s1 = inlined_call_operand.vmem [shape: bf16[128,512], index: 1, kind: input, shape index: {}]   ;;  %s1730_s2 = inlined_call_operand.vmem [shape: f32[1,512], index: 2, kind: input, shape index: {}]   ;;  %s1731_s3 = inlined_call_operand.vmem [shape: bf16[512,256], index: 3, kind: input, shape index: {}]   ;;  %s1732_s4 = inlined_call_operand.vmem [shape: f32[1,256], index: 4, kind: input, shape index: {}]   ;;  %s1733_s5 = inlined_call_operand.vmem [shape: bf16[256,15], index: 5, kind: input, shape index: {}]   ;;  %s1734_s6 = inlined_call_operand.vmem [shape: f32[1,15], index: 6, kind: input, shape index: {}]   ;;  %s1735_s7 = inlined_call_operand.hbm [shape: f32[2,15], index: 7, kind: output, shape index: {}]  }
   0x1   :  { %v1143_v0 = vld [vmem:[%s1729_s1 + $0xe4] ss:$16 sps:$4 sm:$0xff]   ;;  %v1145_v1 = vld [vmem:[%s1729_s1 + $0xec] ss:$16 sps:$4 sm:$0xff]   ;;  %275 = vmatprep.mubr.bf16.mxu0 %v1325_v2  ;;  %316 = vmatprep.mubr.bf16.mxu1 %v1325_v2  ;;  %v1147_v3 = vld [vmem:[%s1729_s1 + $0xe0] ss:$16 sps:$4 sm:$0xff]  }
   0x2   :  { %243 = vmatprep.subr.bf16.mxu0 %v1143_v0  ;;  %v1148_v4 = vld [vmem:[%s1729_s1 + $0xe8] ss:$16 sps:$4 sm:$0xff]   ;;  %284 = vmatprep.subr.bf16.mxu1 %v1145_v1  ;;  %v1149_v5 = vld [vmem:[%s1729_s1 + $0xc4] ss:$16 sps:$4 sm:$0xff]   ;;  %v1151_v6 = vld [vmem:[%s1729_s1 + $0xcc] ss:$16 sps:$4 sm:$0xff]  }
   0x3   :  { %244 = vmatpush1.bf16.msra.mxu0 %v1147_v3  ;;  %285 = vmatpush1.bf16.msra.mxu1 %v1148_v4  ;;  %v1153_v7 = vld [vmem:[%s1729_s1 + $0xc0] ss:$16 sps:$4 sm:$0xff]   ;;  %v1154_v8 = vld [vmem:[%s1729_s1 + $0xc8] ss:$16 sps:$4 sm:$0xff]   ;;  %v1155_v9 = vld [vmem:[%s1729_s1 + $0xa4] ss:$16 sps:$4 sm:$0xff]  }
   0x4   :  { %245 = vmatprep.subr.bf16.mxu0 %v1149_v5  ;;  %286 = vmatprep.subr.bf16.mxu1 %v1151_v6  ;;  %v1157_v10 = vld [vmem:[%s1729_s1 + $0xac] ss:$16 sps:$4 sm:$0xff]   ;;  %v1159_v11 = vld [vmem:[%s1729_s1 + $0xa0] ss:$16 sps:$4 sm:$0xff]   ;;  %v1160_v12 = vld [vmem:[%s1729_s1 + $0xa8] ss:$16 sps:$4 sm:$0xff]  }
   0x5   :  { %v1161_v13 = vld [vmem:[%s1729_s1 + $0x84] ss:$16 sps:$4 sm:$0xff]   ;;  %v1163_v14 = vld [vmem:[%s1729_s1 + $0x8c] ss:$16 sps:$4 sm:$0xff]   ;;  %v1165_v15 = vld [vmem:[%s1729_s1 + $0x80] ss:$16 sps:$4 sm:$0xff]  }
   0x6   :  { %v1166_v16 = vld [vmem:[%s1729_s1 + $0x88] ss:$16 sps:$4 sm:$0xff]   ;;  %v1167_v17 = vld [vmem:[%s1729_s1 + $0x64] ss:$16 sps:$4 sm:$0xff]   ;;  %v1169_v18 = vld [vmem:[%s1729_s1 + $0x6c] ss:$16 sps:$4 sm:$0xff]  }
   0x7   :  { %246 = vmatpush1.bf16.msra.mxu0 %v1153_v7  ;;  %287 = vmatpush1.bf16.msra.mxu1 %v1154_v8  ;;  %v1171_v19 = vld [vmem:[%s1729_s1 + $0x60] ss:$16 sps:$4 sm:$0xff]   ;;  %v1172_v20 = vld [vmem:[%s1729_s1 + $0x68] ss:$16 sps:$4 sm:$0xff]   ;;  %v1173_v21 = vld [vmem:[%s1729_s1 + $0x44] ss:$16 sps:$4 sm:$0xff]  }
   0x8   :  { %247 = vmatprep.subr.bf16.mxu0 %v1155_v9  ;;  %288 = vmatprep.subr.bf16.mxu1 %v1157_v10  ;;  %v1175_v22 = vld [vmem:[%s1729_s1 + $0x4c] ss:$16 sps:$4 sm:$0xff]   ;;  %v1177_v23 = vld [vmem:[%s1729_s1 + $0x40] ss:$16 sps:$4 sm:$0xff]   ;;  %v1178_v24 = vld [vmem:[%s1729_s1 + $0x48] ss:$16 sps:$4 sm:$0xff]  }
   0x9   :  { %v1179_v25 = vld [vmem:[%s1729_s1 + $0x24] ss:$16 sps:$4 sm:$0xff]   ;;  %v1181_v26 = vld [vmem:[%s1729_s1 + $0x2c] ss:$16 sps:$4 sm:$0xff]   ;;  %v1183_v27 = vld [vmem:[%s1729_s1 + $0x20] ss:$16 sps:$4 sm:$0xff]  }
   0xa   :  { %v1184_v28 = vld [vmem:[%s1729_s1 + $0x28] ss:$16 sps:$4 sm:$0xff]   ;;  %v1185_v29 = vld [vmem:[%s1729_s1 + $0x4] ss:$16 sps:$4 sm:$0xff]   ;;  %v1187_v30 = vld [vmem:[%s1729_s1 + $0xc] ss:$16 sps:$4 sm:$0xff]  }
   0xb   :  { %248 = vmatpush1.bf16.msra.mxu0 %v1159_v11  ;;  %289 = vmatpush1.bf16.msra.mxu1 %v1160_v12  ;;  %v1189_v31 = vld [vmem:[%s1729_s1] ss:$16 sps:$4 sm:$0xff]   ;;  %v1190_v32 = vld [vmem:[%s1729_s1 + $0x8] ss:$16 sps:$4 sm:$0xff]   ;;  %v1193_v33 = vld [vmem:[%s1731_s3 + $0x74] ss:$8 sps:$4 sm:$0xff]  }
   0xc   :  { %249 = vmatprep.subr.bf16.mxu0 %v1161_v13  ;;  %290 = vmatprep.subr.bf16.mxu1 %v1163_v14  ;;  %v1196_v34 = vld [vmem:[%s1731_s3 + $0x174] ss:$8 sps:$4 sm:$0xff]   ;;  %v28_v35 = vld [vmem:[%s1728_s0] sm:$0x1]  ;;  %v1191_v36 = vld [vmem:[%s1731_s3 + $0x70] ss:$8 sps:$4 sm:$0xff]  }
   0xd   :  { %v1194_v37 = vld [vmem:[%s1731_s3 + $0x170] ss:$8 sps:$4 sm:$0xff]   ;;  %v1199_v38 = vld [vmem:[%s1731_s3 + $0x64] ss:$8 sps:$4 sm:$0xff]   ;;  %v1197_v40 = vld [vmem:[%s1731_s3 + $0x60] ss:$8 sps:$4 sm:$0xff]  }
   0xe   :  { %v1202_v39 = vld [vmem:[%s1731_s3 + $0x164] ss:$8 sps:$4 sm:$0xff]   ;;  %v1200_v41 = vld [vmem:[%s1731_s3 + $0x160] ss:$8 sps:$4 sm:$0xff]   ;;  %v1205_v42 = vld [vmem:[%s1731_s3 + $0x54] ss:$8 sps:$4 sm:$0xff]  }
   0xf   :  { %250 = vmatpush1.bf16.msra.mxu0 %v1165_v15  ;;  %291 = vmatpush1.bf16.msra.mxu1 %v1166_v16  ;;  %v1208_v43 = vld [vmem:[%s1731_s3 + $0x154] ss:$8 sps:$4 sm:$0xff]   ;;  %v1203_v44 = vld [vmem:[%s1731_s3 + $0x50] ss:$8 sps:$4 sm:$0xff]   ;;  %v1211_v46 = vld [vmem:[%s1731_s3 + $0x44] ss:$8 sps:$4 sm:$0xff]  }
  0x10   :  { %251 = vmatprep.subr.bf16.mxu0 %v1167_v17  ;;  %292 = vmatprep.subr.bf16.mxu1 %v1169_v18  ;;  %v1206_v45 = vld [vmem:[%s1731_s3 + $0x150] ss:$8 sps:$4 sm:$0xff]   ;;  %v1214_v47 = vld [vmem:[%s1731_s3 + $0x144] ss:$8 sps:$4 sm:$0xff]   ;;  %v1209_v48 = vld [vmem:[%s1731_s3 + $0x40] ss:$8 sps:$4 sm:$0xff]  }
  0x11   :  { %v1212_v49 = vld [vmem:[%s1731_s3 + $0x140] ss:$8 sps:$4 sm:$0xff]   ;;  %v1217_v50 = vld [vmem:[%s1731_s3 + $0x34] ss:$8 sps:$4 sm:$0xff]   ;;  %v1215_v52 = vld [vmem:[%s1731_s3 + $0x30] ss:$8 sps:$4 sm:$0xff]  }
  0x12   :  { %v1220_v51 = vld [vmem:[%s1731_s3 + $0x134] ss:$8 sps:$4 sm:$0xff]   ;;  %v1218_v53 = vld [vmem:[%s1731_s3 + $0x130] ss:$8 sps:$4 sm:$0xff]   ;;  %v1223_v54 = vld [vmem:[%s1731_s3 + $0x24] ss:$8 sps:$4 sm:$0xff]  }
  0x13   :  { %252 = vmatpush1.bf16.msra.mxu0 %v1171_v19  ;;  %293 = vmatpush1.bf16.msra.mxu1 %v1172_v20  ;;  %v1226_v55 = vld [vmem:[%s1731_s3 + $0x124] ss:$8 sps:$4 sm:$0xff]   ;;  %v1221_v56 = vld [vmem:[%s1731_s3 + $0x20] ss:$8 sps:$4 sm:$0xff]   ;;  %v1229_v58 = vld [vmem:[%s1731_s3 + $0x14] ss:$8 sps:$4 sm:$0xff]  }
  0x14   :  { %253 = vmatprep.subr.bf16.mxu0 %v1173_v21  ;;  %294 = vmatprep.subr.bf16.mxu1 %v1175_v22  ;;  %v1224_v57 = vld [vmem:[%s1731_s3 + $0x120] ss:$8 sps:$4 sm:$0xff]   ;;  %v1232_v59 = vld [vmem:[%s1731_s3 + $0x114] ss:$8 sps:$4 sm:$0xff]   ;;  %v1227_v60 = vld [vmem:[%s1731_s3 + $0x10] ss:$8 sps:$4 sm:$0xff]  }
  0x15   :  { %v1230_v61 = vld [vmem:[%s1731_s3 + $0x110] ss:$8 sps:$4 sm:$0xff]   ;;  %v1235_v62 = vld [vmem:[%s1731_s3 + $0x4] ss:$8 sps:$4 sm:$0xff]   ;;  %v1233_v0 = vld [vmem:[%s1731_s3] ss:$8 sps:$4 sm:$0xff]  }
  0x16   :  { %v1238_v63 = vld [vmem:[%s1731_s3 + $0x104] ss:$8 sps:$4 sm:$0xff]   ;;  %v1236_v1 = vld [vmem:[%s1731_s3 + $0x100] ss:$8 sps:$4 sm:$0xff]   ;;  %v1241_v2 = vld [vmem:[%s1731_s3 + $0xf4] ss:$8 sps:$4 sm:$0xff]  }
  0x17   :  { %254 = vmatpush1.bf16.msra.mxu0 %v1177_v23  ;;  %295 = vmatpush1.bf16.msra.mxu1 %v1178_v24  ;;  %v1244_v3 = vld [vmem:[%s1731_s3 + $0x1f4] ss:$8 sps:$4 sm:$0xff]   ;;  %v1239_v4 = vld [vmem:[%s1731_s3 + $0xf0] ss:$8 sps:$4 sm:$0xff]   ;;  %v1247_v6 = vld [vmem:[%s1731_s3 + $0xe4] ss:$8 sps:$4 sm:$0xff]  }
  0x18   :  { %255 = vmatprep.subr.bf16.mxu0 %v1179_v25  ;;  %296 = vmatprep.subr.bf16.mxu1 %v1181_v26  ;;  %v1242_v5 = vld [vmem:[%s1731_s3 + $0x1f0] ss:$8 sps:$4 sm:$0xff]   ;;  %v1250_v7 = vld [vmem:[%s1731_s3 + $0x1e4] ss:$8 sps:$4 sm:$0xff]   ;;  %v1245_v8 = vld [vmem:[%s1731_s3 + $0xe0] ss:$8 sps:$4 sm:$0xff]  }
  0x19   :  { %v1248_v9 = vld [vmem:[%s1731_s3 + $0x1e0] ss:$8 sps:$4 sm:$0xff]   ;;  %v1253_v10 = vld [vmem:[%s1731_s3 + $0xd4] ss:$8 sps:$4 sm:$0xff]   ;;  %v1251_v12 = vld [vmem:[%s1731_s3 + $0xd0] ss:$8 sps:$4 sm:$0xff]  }
  0x1a   :  { %v1256_v11 = vld [vmem:[%s1731_s3 + $0x1d4] ss:$8 sps:$4 sm:$0xff]   ;;  %v1254_v13 = vld [vmem:[%s1731_s3 + $0x1d0] ss:$8 sps:$4 sm:$0xff]  }
  0x1b   :  { %256 = vmatpush1.bf16.msra.mxu0 %v1183_v27  ;;  %297 = vmatpush1.bf16.msra.mxu1 %v1184_v28 }
  0x1c   :  { %257 = vmatprep.subr.bf16.mxu0 %v1185_v29  ;;  %298 = vmatprep.subr.bf16.mxu1 %v1187_v30 }
  0x1f   :  { %258 = vmatpush1.bf16.msra.mxu0 %v1189_v31  ;;  %299 = vmatpush1.bf16.msra.mxu1 %v1190_v32 }
  0x20   :  { %729 = vmatprep.subr.bf16.mxu0 %v1193_v33  ;;  %770 = vmatprep.subr.bf16.mxu1 %v1196_v34 }
  0x22   :  { %276 = vmatmul.mubr.bf16.vlgmr.msra.gmra.mxu0 %v28_v35  ;;  %317 = vmatmul.mubr.bf16.vlgmr.msra.gmra.mxu1 %v28_v35 }
  0x23   :  { %730 = vmatpush1.bf16.msra.mxu0 %v1191_v36  ;;  %771 = vmatpush1.bf16.msra.mxu1 %v1194_v37 }
  0x24   :  { %731 = vmatprep.subr.bf16.mxu0 %v1199_v38  ;;  %772 = vmatprep.subr.bf16.mxu1 %v1202_v39 }
  0x27   :  { %732 = vmatpush1.bf16.msra.mxu0 %v1197_v40  ;;  %773 = vmatpush1.bf16.msra.mxu1 %v1200_v41 }
  0x28   :  { %733 = vmatprep.subr.bf16.mxu0 %v1205_v42  ;;  %774 = vmatprep.subr.bf16.mxu1 %v1208_v43 }
  0x2b   :  { %734 = vmatpush1.bf16.msra.mxu0 %v1203_v44  ;;  %775 = vmatpush1.bf16.msra.mxu1 %v1206_v45 }
  0x2c   :  { %735 = vmatprep.subr.bf16.mxu0 %v1211_v46  ;;  %776 = vmatprep.subr.bf16.mxu1 %v1214_v47 }
  0x2f   :  { %736 = vmatpush1.bf16.msra.mxu0 %v1209_v48  ;;  %777 = vmatpush1.bf16.msra.mxu1 %v1212_v49 }
  0x30   :  { %737 = vmatprep.subr.bf16.mxu0 %v1217_v50  ;;  %778 = vmatprep.subr.bf16.mxu1 %v1220_v51 }
  0x33   :  { %738 = vmatpush1.bf16.msra.mxu0 %v1215_v52  ;;  %779 = vmatpush1.bf16.msra.mxu1 %v1218_v53 }
  0x34   :  { %739 = vmatprep.subr.bf16.mxu0 %v1223_v54  ;;  %780 = vmatprep.subr.bf16.mxu1 %v1226_v55 }
  0x37   :  { %740 = vmatpush1.bf16.msra.mxu0 %v1221_v56  ;;  %781 = vmatpush1.bf16.msra.mxu1 %v1224_v57 }
  0x38   :  { %741 = vmatprep.subr.bf16.mxu0 %v1229_v58  ;;  %782 = vmatprep.subr.bf16.mxu1 %v1232_v59 }
  0x3b   :  { %742 = vmatpush1.bf16.msra.mxu0 %v1227_v60  ;;  %783 = vmatpush1.bf16.msra.mxu1 %v1230_v61 }
  0x3c   :  { %743 = vmatprep.subr.bf16.mxu0 %v1235_v62  ;;  %784 = vmatprep.subr.bf16.mxu1 %v1238_v63 }
  0x3f   :  { %744 = vmatpush1.bf16.msra.mxu0 %v1233_v0  ;;  %785 = vmatpush1.bf16.msra.mxu1 %v1236_v1 }
  0x40   :  { %745 = vmatprep.subr.bf16.mxu0 %v1241_v2  ;;  %786 = vmatprep.subr.bf16.mxu1 %v1244_v3 }
  0x43   :  { %746 = vmatpush2.bf16.msra.mxu0 %v1239_v4  ;;  %787 = vmatpush2.bf16.msra.mxu1 %v1242_v5 }
  0x44   :  { %747 = vmatprep.subr.bf16.mxu0 %v1247_v6  ;;  %788 = vmatprep.subr.bf16.mxu1 %v1250_v7 }
  0x47   :  { %748 = vmatpush2.bf16.msra.mxu0 %v1245_v8  ;;  %789 = vmatpush2.bf16.msra.mxu1 %v1248_v9 }
  0x48   :  { %12 = vsyncpa [#allocation3], 0  ;;  %749 = vmatprep.subr.bf16.mxu0 %v1253_v10  ;;  %790 = vmatprep.subr.bf16.mxu1 %v1256_v11  ;;  %v1259_v14 = vld [vmem:[%s1731_s3 + $0xc4] ss:$8 sps:$4 sm:$0xff]   ;;  %v1257_v16 = vld [vmem:[%s1731_s3 + $0xc0] ss:$8 sps:$4 sm:$0xff]   ;;  %v63_v35 = vlaneseq }
  0x49   :  { %v1262_v15 = vld [vmem:[%s1731_s3 + $0x1c4] ss:$8 sps:$4 sm:$0xff]   ;;  %v1260_v17 = vld [vmem:[%s1731_s3 + $0x1c0] ss:$8 sps:$4 sm:$0xff]   ;;  %v1265_v18 = vld [vmem:[%s1731_s3 + $0xb4] ss:$8 sps:$4 sm:$0xff]  }
  0x4a   :  { %v1268_v19 = vld [vmem:[%s1731_s3 + $0x1b4] ss:$8 sps:$4 sm:$0xff]   ;;  %v1263_v20 = vld [vmem:[%s1731_s3 + $0xb0] ss:$8 sps:$4 sm:$0xff]   ;;  %v1271_v22 = vld [vmem:[%s1731_s3 + $0xa4] ss:$8 sps:$4 sm:$0xff]  }
  0x4b   :  { %750 = vmatpush2.bf16.msra.mxu0 %v1251_v12  ;;  %791 = vmatpush2.bf16.msra.mxu1 %v1254_v13  ;;  %v1266_v21 = vld [vmem:[%s1731_s3 + $0x1b0] ss:$8 sps:$4 sm:$0xff]   ;;  %v1274_v23 = vld [vmem:[%s1731_s3 + $0x1a4] ss:$8 sps:$4 sm:$0xff]   ;;  %v1269_v24 = vld [vmem:[%s1731_s3 + $0xa0] ss:$8 sps:$4 sm:$0xff]  }
  0x4c   :  { %751 = vmatprep.subr.bf16.mxu0 %v1259_v14  ;;  %792 = vmatprep.subr.bf16.mxu1 %v1262_v15  ;;  %v1272_v25 = vld [vmem:[%s1731_s3 + $0x1a0] ss:$8 sps:$4 sm:$0xff]   ;;  %v1277_v26 = vld [vmem:[%s1731_s3 + $0x94] ss:$8 sps:$4 sm:$0xff]   ;;  %v1275_v28 = vld [vmem:[%s1731_s3 + $0x90] ss:$8 sps:$4 sm:$0xff]  }
  0x4d   :  { %v1280_v27 = vld [vmem:[%s1731_s3 + $0x194] ss:$8 sps:$4 sm:$0xff]   ;;  %v1278_v29 = vld [vmem:[%s1731_s3 + $0x190] ss:$8 sps:$4 sm:$0xff]   ;;  %v1283_v30 = vld [vmem:[%s1731_s3 + $0x84] ss:$8 sps:$4 sm:$0xff]  }
  0x4e   :  { %v1286_v31 = vld [vmem:[%s1731_s3 + $0x184] ss:$8 sps:$4 sm:$0xff]   ;;  %v1281_v32 = vld [vmem:[%s1731_s3 + $0x80] ss:$8 sps:$4 sm:$0xff]   ;;  %v1287_v34 = vld [vmem:[%s1733_s5 + $0x78] sm:$0xff]   ;;  %v1661_v36 = vshrl.u32 %v63_v35, 7 }
  0x4f   :  { %752 = vmatpush2.bf16.msra.mxu0 %v1257_v16  ;;  %793 = vmatpush2.bf16.msra.mxu1 %v1260_v17  ;;  %v1284_v33 = vld [vmem:[%s1731_s3 + $0x180] ss:$8 sps:$4 sm:$0xff]   ;;  %v1288_v1 = vld [vmem:[%s1733_s5 + $0x38] sm:$0xff]   ;;  %v1289_v3 = vld [vmem:[%s1733_s5 + $0x70] sm:$0xff]   ;;  %s1326_s30 = smov [#allocation2]   ;;  %vm990_vm0 = vcmask 115712  }
  0x50   :  { %753 = vmatprep.subr.bf16.mxu0 %v1265_v18  ;;  %794 = vmatprep.subr.bf16.mxu1 %v1268_v19  ;;  %v65_v37 = vsub.s32 0, %v1661_v36  ;;  %v73_v38 = vsub.s32 2, %v1661_v36  ;;  %v61_v39 = vld [vmem:[%s1730_s2] sm:$0xf]  ;;  %v69_v40 = vsub.s32 1, %v1661_v36  ;;  %v77_v41 = vsub.s32 3, %v1661_v36 }
  0x51   :  { %v1290_v4 = vld [vmem:[%s1733_s5 + $0x30] sm:$0xff]   ;;  %v1291_v5 = vld [vmem:[%s1733_s5 + $0x68] sm:$0xff]   ;;  %v1293_v7 = vld [vmem:[%s1733_s5 + $0x60] sm:$0xff]   ;;  %s998_s8 = sshll.u32 %s1326_s30, 4  ;;  %s999_s8 = int_to_ptr.vmem [resolvable:$true] %s998_s8 }
  0x52   :  { %v66_v42 = vrot.slane %v61_v39, %v65_v37  ;;  %v74_v43 = vrot.slane %v61_v39, %v73_v38  ;;  %v70_v44 = vrot.slane %v61_v39, %v69_v40  ;;  %v78_v45 = vrot.slane %v61_v39, %v77_v41  ;;  %v1292_v6 = vld [vmem:[%s1733_s5 + $0x28] sm:$0xff]   ;;  %v1294_v8 = vld [vmem:[%s1733_s5 + $0x20] sm:$0xff]   ;;  %v1295_v9 = vld [vmem:[%s1733_s5 + $0x58] sm:$0xff]   ;;  %s1303_s0 = scalar_lea.vmem %s999_s8, 32  ;;  %p1308_p1 = scmp.lt.s32.totalorder %s999_s8, %s999_s8 }
  0x53   :  { %754 = vmatpush2.bf16.msra.mxu0 %v1263_v20  ;;  %795 = vmatpush2.bf16.msra.mxu1 %v1266_v21  ;;  %v1296_v10 = vld [vmem:[%s1733_s5 + $0x18] sm:$0xff]   ;;  %v1297_v11 = vld [vmem:[%s1733_s5 + $0x50] sm:$0xff]   ;;  %v1299_v13 = vld [vmem:[%s1733_s5 + $0x48] sm:$0xff]   ;;  %p1304_p0 = scmp.ne.s32.totalorder %s999_s8, %s1303_s0  ;;  %p1309_p2 = scmp.lt.s32.totalorder %s1303_s0, %s1303_s0 }
  0x54   :  { %755 = vmatprep.subr.bf16.mxu0 %v1271_v22  ;;  %796 = vmatprep.subr.bf16.mxu1 %v1274_v23  ;;  %v1298_v12 = vld [vmem:[%s1733_s5 + $0x10] sm:$0xff]   ;;  %v1300_v14 = vld [vmem:[%s1733_s5 + $0x8] sm:$0xff]   ;;  %v1301_v15 = vld [vmem:[%s1733_s5 + $0x40] sm:$0xff]  }
  0x55   :  { %v1302_v16 = vld [vmem:[%s1733_s5] sm:$0xff]   ;;  %p1310_p3 = por %p1309_p2, %p1308_p1 }
  0x56   :  { %v397_v17 = vld [vmem:[%s1732_s4] sm:$0x3] }
  0x57   :  { %756 = vmatpush2.bf16.msra.mxu0 %v1269_v24  ;;  %797 = vmatpush2.bf16.msra.mxu1 %v1272_v25  ;;  %v402_v18 = vrot.slane %v397_v17, %v65_v37  ;;  %v406_v19 = vrot.slane %v397_v17, %v69_v40  ;;  %v1102_v37 = vld [vmem:[%s1734_s6] ss:$0 sm:$0xff]  ;;  %p1311_p4 = pnand %p1310_p3, %p1304_p0 }
  0x58   :  { %757 = vmatprep.subr.bf16.mxu0 %v1277_v26  ;;  %798 = vmatprep.subr.bf16.mxu1 %v1280_v27 }
  0x5b   :  { %758 = vmatpush2.bf16.msra.mxu0 %v1275_v28  ;;  %799 = vmatpush2.bf16.msra.mxu1 %v1278_v29 }
  0x5c   :  { %759 = vmatprep.subr.bf16.mxu0 %v1283_v30  ;;  %800 = vmatprep.subr.bf16.mxu1 %v1286_v31 }
  0x5f   :  { %760 = vmatpush2.bf16.msra.mxu0 %v1281_v32  ;;  %801 = vmatpush2.bf16.msra.mxu1 %v1284_v33 }
  0x60   :  { %1119 = vmatprep.subr.bf16.mxu0 %v1287_v34 }
  0xe2   :  { %v277_v46 = vpop.f32.mrf.mxu0  ;;  %v318_v47 = vpop.f32.mrf.mxu1 }
  0xe3   :  { %v278_v48 = vadd.f32 %v277_v46, %v66_v42  ;;  %v319_v49 = vadd.f32 %v318_v47, %v74_v43 }
  0xe4   :  { %v279_v50 = vpop.f32.mrf.mxu0  ;;  %v320_v51 = vpop.f32.mrf.mxu1 }
  0xe5   :  { %v327_v52 = vmax.f32 %v319_v49, 0.0  ;;  %v280_v53 = vadd.f32 %v279_v50, %v70_v44  ;;  %v321_v54 = vadd.f32 %v320_v51, %v78_v45  ;;  %v325_v55 = vmax.f32 %v278_v48, 0.0 }
  0xe6   :  { %v281_v56 = vpop.f32.mrf.mxu0  ;;  %v322_v57 = vpop.f32.mrf.mxu1 }
  0xe7   :  { %v326_v58 = vmax.f32 %v280_v53, 0.0  ;;  %v328_v59 = vmax.f32 %v321_v54, 0.0  ;;  %v331_v60 = vpack.c.bf16 %v327_v52, %v327_v52  ;;  %v329_v2 = vpack.c.bf16 %v325_v55, %v325_v55 }
  0xe8   :  { %v282_v61 = vpop.f32.mrf.mxu0  ;;  %v323_v62 = vpop.f32.mrf.mxu1 }
  0xe9   :  { %v330_v63 = vpack.c.bf16 %v326_v58, %v326_v58  ;;  %v332_v0 = vpack.c.bf16 %v328_v59, %v328_v59 }
  0xeb   :  { %761 = vmatprep.mubr.bf16.mxu0 %v330_v63  ;;  %802 = vmatprep.mubr.bf16.mxu1 %v332_v0 }
  0xec   :  { %762 = vmatmul.mubr.bf16.vlgmr.msra.gmra.mxu0 %v329_v2  ;;  %803 = vmatmul.mubr.bf16.vlgmr.msra.gmra.mxu1 %v331_v60 }
  0xed   :  { %1120 = vmatpush3.bf16.msra.mxu0 %v1288_v1 }
  0xee   :  { %1121 = vmatprep.subr.bf16.mxu0 %v1289_v3 }
  0xf1   :  { %1122 = vmatpush3.bf16.msra.mxu0 %v1290_v4 }
  0xf2   :  { %1123 = vmatprep.subr.bf16.mxu0 %v1291_v5 }
  0xf5   :  { %1124 = vmatpush3.bf16.msra.mxu0 %v1292_v6 }
  0xf6   :  { %1125 = vmatprep.subr.bf16.mxu0 %v1293_v7 }
  0xf9   :  { %1126 = vmatpush3.bf16.msra.mxu0 %v1294_v8 }
  0xfa   :  { %1127 = vmatprep.subr.bf16.mxu0 %v1295_v9 }
  0xfd   :  { %1128 = vmatpush3.bf16.msra.mxu0 %v1296_v10 }
  0xfe   :  { %1129 = vmatprep.subr.bf16.mxu0 %v1297_v11 }
 0x101   :  { %1130 = vmatpush3.bf16.msra.mxu0 %v1298_v12 }
 0x102   :  { %1131 = vmatprep.subr.bf16.mxu0 %v1299_v13 }
 0x105   :  { %1132 = vmatpush3.bf16.msra.mxu0 %v1300_v14 }
 0x106   :  { %1133 = vmatprep.subr.bf16.mxu0 %v1301_v15 }
 0x109   :  { %1134 = vmatpush3.bf16.msra.mxu0 %v1302_v16 }
 0x1ac   :  { %v763_v20 = vpop.f32.mrf.mxu0  ;;  %v804_v21 = vpop.f32.mrf.mxu1 }
 0x1ad   :  { %v764_v22 = vadd.f32 %v763_v20, %v402_v18 }
 0x1ae   :  { %v765_v23 = vpop.f32.mrf.mxu0  ;;  %v806_v24 = vpop.f32.mrf.mxu1 }
 0x1af   :  { %v805_v25 = vadd.f32 %v804_v21, %v764_v22  ;;  %v766_v26 = vadd.f32 %v765_v23, %v406_v19 }
 0x1b0   :  { %v767_v27 = vpop.f32.mrf.mxu0  ;;  %v808_v28 = vpop.f32.mrf.mxu1 }
 0x1b1   :  { %v807_v29 = vadd.f32 %v806_v24, %v766_v26  ;;  %v811_v30 = vmax.f32 %v805_v25, 0.0 }
 0x1b2   :  { %v768_v31 = vpop.f32.mrf.mxu0  ;;  %v809_v32 = vpop.f32.mrf.mxu1 }
 0x1b3   :  { %v812_v33 = vmax.f32 %v807_v29, 0.0  ;;  %v813_v35 = vpack.c.bf16 %v811_v30, %v811_v30 }
 0x1b5   :  { %v814_v34 = vpack.c.bf16 %v812_v33, %v812_v33 }
 0x1b7   :  { %982 = vmatprep.mubr.bf16.mxu0 %v814_v34 }
 0x1b8   :  { %983 = vmatmul.mubr.bf16.vlgmr.msra.gmra.mxu0 %v813_v35 }
 0x278   :  { %v1135_v36 = vpop.f32.mrf.mxu0 }
 0x27a   :  { %v1136_v38 = vpop.f32.mrf.mxu0 }
 0x27b   :  { %v1137_v39 = vadd.f32 %v1136_v38, %v1135_v36 }
 0x27c   :  { %v1138_v40 = vpop.f32.mrf.mxu0 }
 0x27d   :  { %v985_v41 = vadd.f32 %v1137_v39, %v1102_v37 }
 0x27e   :  { %v1139_v42 = vpop.f32.mrf.mxu0 }
 0x27f   :  { %991 = vst.msk [vmem:[#allocation2] sm:$0x3] %vm990_vm0, %v985_v41 }
 0x280   :  { %1314 = shalt.err (!%p1311_p4)
}
 0x281   :  { %1001 = dma.vmem_to_hbm [thread:$0]  %s999_s8, 32, %s1735_s7, [#allocation3]  }
 0x282   :  { %1323 = dma.done.wait [#allocation3], 32  }
 0x283   :  { %1324 = vsyncadd [#allocation3], 4294967264 }
 0x284   :  { %1005 = vsyncpa [#allocation3], 1 }

</bundles_post_ra>
